<compile_context>
chip_gen: v7x
topology: tpu7x:2x2x1
jax: 0.10.0
libtpu: 0.0.40
codegen_flags: <defaults>
</compile_context>

<pallas_src>
import numpy as np
import jax
import jax.numpy as jnp
from jax import lax
from jax.experimental import pallas as pl
from jax.experimental.pallas import tpu as pltpu


# ------------------------------ fused kernel --------------------------------

def fused_cnn_kernel(x_ref,
                     w1_ref, s1_ref, b1_ref,
                     w2_ref, s2_ref, b2_ref,
                     w3_ref, s3_ref, b3_ref,
                     w4t_ref, b4t_ref, upsel_ref,
                     o_ref,
                     pad1_ref, col1_ref,
                     pad2_ref, col2_ref,
                     pad3_ref, col3_ref,
                     pm_ref):
    """Whole SimpleCNN forward for one batch image, fully VMEM-resident.

    x_ref:      (1, H, W, 4)        NHWC input tile
    wN_ref:     (9*Cin, Cout)       3x3 conv weights, rows ordered (ky, kx, cin)
    sN/bN_ref:  (1, Cout)           folded BatchNorm scale / bias
    w4t_ref:    (6, 128)            1x1 conv weight, channel-major
    b4t_ref:    (6, 1)              1x1 conv bias
    upsel_ref:  (Hs*W, H*W)         bilinear-x2 matrix with even-W pool selection
    o_ref:      (1, 6, H*W)         channel-major, lane-dense output
    """
    H, W = x_ref.shape[1], x_ref.shape[2]
    Hs = H // 2

    def conv3x3_bn_relu(act, pad_ref, col_ref, w_ref, s_ref, b_ref):
        # act: (H, W, Cin) f32 value.
        Cin = act.shape[-1]
        Cout = w_ref.shape[1]
        # In-kernel zero padding (no jnp.pad / extra HBM copy).
        pad_ref[...] = jnp.zeros_like(pad_ref)
        pad_ref[1:H + 1, 1:W + 1, :] = act
        # im2col once, then ONE deep-contraction matmul on the MXU.
        for ky in range(3):
            for kx in range(3):
                t = ky * 3 + kx
                col_ref[:, t * Cin:(t + 1) * Cin] = (
                    pad_ref[ky:ky + H, kx:kx + W, :].reshape(H * W, Cin))
        y = jnp.dot(col_ref[...], w_ref[...],
                    preferred_element_type=jnp.float32)        # (H*W, Cout)
        y = y * s_ref[...] + b_ref[...]                         # folded BN
        return jnp.maximum(y, 0.0).reshape(H, W, Cout)          # ReLU

    a = x_ref[0]                                                    # (H, W, 4)
    a = conv3x3_bn_relu(a, pad1_ref, col1_ref, w1_ref, s1_ref, b1_ref)  # (H,W,32)
    a = conv3x3_bn_relu(a, pad2_ref, col2_ref, w2_ref, s2_ref, b2_ref)  # (H,W,64)
    a = conv3x3_bn_relu(a, pad3_ref, col3_ref, w3_ref, s3_ref, b3_ref)  # (H,W,128)
    C = a.shape[-1]

    # ---- 2x2 max pool, entirely in VMEM ----
    # H-pairs: split the leading dim (layout-trivial) and take elementwise max.
    ar = a.reshape(Hs, 2, W, C)
    hm = jnp.maximum(ar[:, 0, :, :], ar[:, 1, :, :])                # (Hs, W, C)
    # W-pairs: column w of pm_ref holds max(hm[w], hm[w+1]).  Only even columns
    # are real pool outputs; odd columns are zeroed by the selection rows that
    # are folded into the upsample matrix below.
    pm_ref[...] = hm
    pm_ref[:, 0:W - 1, :] = jnp.maximum(pm_ref[:, 0:W - 1, :],
                                        pm_ref[:, 1:W, :])
    pm_flat = pm_ref[...].reshape(Hs * W, C)                        # row p = W*h + w

    # Dropout(p=0.5) is identity in eval mode.

    # ---- 1x1 conv, channel-major (lane-dense downstream) ----
    # logits_t[c, p] = sum_k w4t[c, k] * pm_flat[p, k] + b4[c]
    logits_t = lax.dot_general(
        w4t_ref[...], pm_flat,
        dimension_numbers=(((1,), (1,)), ((), ())),
        preferred_element_type=jnp.float32) + b4t_ref[...]          # (6, Hs*W)

    # ---- bilinear x2 upsample (+ even-W pool selection) as ONE matmul ----
    u_t = jnp.dot(logits_t, upsel_ref[...],
                  preferred_element_type=jnp.float32)               # (6, H*W)

    # ---- channel softmax over the 6 sublane rows (lanes stay fully dense) ----
    mx = jnp.max(u_t, axis=0, keepdims=True)
    e = jnp.exp(u_t - mx)
    o_ref[0] = e / jnp.sum(e, axis=0, keepdims=True)


# ----------------------------- pallas_call wrapper ---------------------------

def simple_cnn_forward(x_nchw, params):
    """Pallas forward. x_nchw: (N, 4, H, W) -> (N, 6, H, W)."""
    N, Cin, H, W = x_nchw.shape
    Hs = H // 2
    x = jnp.transpose(x_nchw, (0, 2, 3, 1)).astype(jnp.float32)     # NCHW -> NHWC

    (w1, s1, b1), (w2, s2, b2), (w3, s3, b3) = params["conv_flat"]
    w4t, b4t, upsel = params["w4t"], params["b4t"], params["upsel"]

    def fullspec(arr):
        nd = arr.ndim
        return pl.BlockSpec(arr.shape, lambda b, _nd=nd: (0,) * _nd)

    out_flat = pl.pallas_call(
        fused_cnn_kernel,
        out_shape=jax.ShapeDtypeStruct((N, 6, H * W), jnp.float32),
        grid=(N,),
        in_specs=[pl.BlockSpec((1, H, W, Cin), lambda b: (b, 0, 0, 0))]
                 + [fullspec(a) for a in (w1, s1, b1, w2, s2, b2,
                                          w3, s3, b3, w4t, b4t, upsel)],
        out_specs=pl.BlockSpec((1, 6, H * W), lambda b: (b, 0, 0)),
        scratch_shapes=[
            pltpu.VMEM((H + 2, W + 2, Cin), jnp.float32),   # pad1
            pltpu.VMEM((H * W, 9 * Cin), jnp.float32),      # col1
            pltpu.VMEM((H + 2, W + 2, 32), jnp.float32),    # pad2
            pltpu.VMEM((H * W, 9 * 32), jnp.float32),       # col2
            pltpu.VMEM((H + 2, W + 2, 64), jnp.float32),    # pad3
            pltpu.VMEM((H * W, 9 * 64), jnp.float32),       # col3
            pltpu.VMEM((Hs, W, 128), jnp.float32),          # pooled (pair-max)
        ],
        compiler_params=pltpu.CompilerParams(
            dimension_semantics=("parallel",)),
    )(x, w1, s1, b1, w2, s2, b2, w3, s3, b3, w4t, b4t, upsel)

    # (N, 6, H*W) is already channel-major; NCHW is a free reshape.
    return out_flat.reshape(N, 6, H, W)


# ----------------------------- parameters ------------------------------------

def bilinear_upsample_matrix(n_in, n_out):
    """PyTorch nn.Upsample(mode='bilinear', align_corners=False) as a matrix."""
    scale = n_in / n_out
    dst = np.arange(n_out)
    src = np.maximum((dst + 0.5) * scale - 0.5, 0.0)
    i0 = np.minimum(np.floor(src).astype(np.int64), n_in - 1)
    i1 = np.minimum(i0 + 1, n_in - 1)
    w1 = src - i0
    w0 = 1.0 - w1
    A = np.zeros((n_out, n_in), dtype=np.float64)
    A[dst, i0] += w0
    A[dst, i1] += w1
    return A


def init_params(key, h_in=16, w_in=16):
    ks = jax.random.split(key, 20)
    kidx = 0

    def conv_bn(cin, cout):
        nonlocal kidx
        k = ks[kidx:kidx + 6]
        kidx += 6
        w = 0.1 * jax.random.normal(k[0], (3, 3, cin, cout), jnp.float32)  # HWIO
        cb = 0.1 * jax.random.normal(k[1], (cout,), jnp.float32)
        gamma = 1.0 + 0.1 * jax.random.normal(k[2], (cout,), jnp.float32)
        beta = 0.1 * jax.random.normal(k[3], (cout,), jnp.float32)
        rmean = 0.1 * jax.random.normal(k[4], (cout,), jnp.float32)
        rvar = 1.0 + 0.1 * jnp.abs(jax.random.normal(k[5], (cout,), jnp.float32))
        scale = gamma / jnp.sqrt(rvar + 1e-5)
        bias = beta + scale * (cb - rmean)
        return (w, scale.reshape(1, cout), bias.reshape(1, cout))

    convs = [conv_bn(4, 32), conv_bn(32, 64), conv_bn(64, 128)]
    w4 = 0.1 * jax.random.normal(ks[kidx], (128, 6), jnp.float32)
    b4 = 0.1 * jax.random.normal(ks[kidx + 1], (1, 6), jnp.float32)

    hs, ws = h_in // 2, w_in // 2
    A_h = bilinear_upsample_matrix(hs, 2 * hs)               # (h_in, hs)
    A_w = bilinear_upsample_matrix(ws, 2 * ws)               # (w_in, ws)
    kron = np.kron(A_h, A_w)                                 # (h_in*w_in, hs*ws)
    up_mat = jnp.asarray(kron, dtype=jnp.float32)            # reference form

    # Kernel-side forms: flattened conv weights, channel-major 1x1 conv,
    # and the transposed upsample matrix with the even-W pool selection folded
    # in: row (w_in*h + 2*j) carries the bilinear weights of pooled pixel (h,j);
    # odd-W rows are zero (they absorb the pool pair-max dummies).
    conv_flat = [(w.reshape(9 * w.shape[2], w.shape[3]), s, b)
                 for (w, s, b) in convs]
    w4t = jnp.asarray(w4.T)                                  # (6, 128)
    b4t = jnp.asarray(b4.reshape(6, 1))                      # (6, 1)
    kT = kron.T.reshape(hs, ws, 2 * hs * 2 * ws)             # [h, j, out_pixel]
    upsel_np = np.zeros((hs, w_in, 2 * hs * 2 * ws), dtype=np.float64)
    upsel_np[:, 0::2, :] = kT
    upsel = jnp.asarray(upsel_np.reshape(hs * w_in, 2 * hs * 2 * ws), jnp.float32)

    return {"convs": convs, "w4": w4, "b4": b4, "up_mat": up_mat,
            "conv_flat": conv_flat, "w4t": w4t, "b4t": b4t, "upsel": upsel}


# ----------------------------- plain-JAX reference ---------------------------

def reference_forward(x_nchw, params):
    x = jnp.transpose(x_nchw, (0, 2, 3, 1)).astype(jnp.float32)
    for (w, s, b) in params["convs"]:
        y = lax.conv_general_dilated(x, w, window_strides=(1, 1), padding="SAME",
                                     dimension_numbers=("NHWC", "HWIO", "NHWC"))
        x = jnp.maximum(y * s.reshape(1, 1, 1, -1) + b.reshape(1, 1, 1, -1), 0.0)
    x = lax.reduce_window(x, -jnp.inf, lax.max, (1, 2, 2, 1), (1, 2, 2, 1), "VALID")
    x = jnp.einsum("nhwc,cd->nhwd", x, params["w4"]) + params["b4"].reshape(1, 1, 1, -1)
    n, hs, ws, c = x.shape
    u = jnp.einsum("os,nsc->noc", params["up_mat"], x.reshape(n, hs * ws, c))
    u = u.reshape(n, 2 * hs, 2 * ws, c)
    u = jax.nn.softmax(u, axis=-1)
    return jnp.transpose(u, (0, 3, 1, 2))


# ----------------------------- main ------------------------------------------

if __name__ == "__main__":
    key = jax.random.PRNGKey(0)
    k_x, k_p = jax.random.split(key)
    # PyTorch-style NCHW input, small shapes
    x = jax.random.normal(k_x, (2, 4, 16, 16), jnp.float32)
    params = init_params(k_p, h_in=16, w_in=16)

    out = jax.jit(simple_cnn_forward)(x, params)
    out = jax.block_until_ready(out)

    assert out.shape == (2, 6, 16, 16), out.shape
    ref = reference_forward(x, params)
    max_err = float(jnp.max(jnp.abs(out - ref)))
    assert jnp.allclose(out, ref, rtol=1e-4, atol=1e-4), f"max_err={max_err}"
    assert jnp.allclose(jnp.sum(out, axis=1), 1.0, atol=1e-5)  # softmax over channels
    print("KERNEL_OK")
</pallas_src>

<mosaic_0001>
module attributes {stable_mosaic.version = 11 : i64} {
  func.func @fused_cnn_kernel(%arg0: i32, %arg1: memref<1x16x16x4xf32, #tpu.memory_space<vmem>>, %arg2: memref<36x32xf32, #tpu.memory_space<vmem>>, %arg3: memref<1x32xf32, #tpu.memory_space<vmem>>, %arg4: memref<1x32xf32, #tpu.memory_space<vmem>>, %arg5: memref<288x64xf32, #tpu.memory_space<vmem>>, %arg6: memref<1x64xf32, #tpu.memory_space<vmem>>, %arg7: memref<1x64xf32, #tpu.memory_space<vmem>>, %arg8: memref<576x128xf32, #tpu.memory_space<vmem>>, %arg9: memref<1x128xf32, #tpu.memory_space<vmem>>, %arg10: memref<1x128xf32, #tpu.memory_space<vmem>>, %arg11: memref<6x128xf32, #tpu.memory_space<vmem>>, %arg12: memref<6x1xf32, #tpu.memory_space<vmem>>, %arg13: memref<128x256xf32, #tpu.memory_space<vmem>>, %arg14: memref<1x6x256xf32, #tpu.memory_space<vmem>>, %arg15: memref<18x18x4xf32, #tpu.memory_space<vmem>>, %arg16: memref<256x36xf32, #tpu.memory_space<vmem>>, %arg17: memref<18x18x32xf32, #tpu.memory_space<vmem>>, %arg18: memref<256x288xf32, #tpu.memory_space<vmem>>, %arg19: memref<18x18x64xf32, #tpu.memory_space<vmem>>, %arg20: memref<256x576xf32, #tpu.memory_space<vmem>>, %arg21: memref<8x16x128xf32, #tpu.memory_space<vmem>>) attributes {dimension_semantics = [#tpu.dimension_semantics<parallel>], iteration_bounds = array<i64: 2>, scalar_prefetch = 0 : i64, scratch_operands = 7 : i64, tpu.core_type = #tpu.core_type<tc>, window_params = [{transform_indices = @transform_0, window_bounds = array<i64: 1, 16, 16, 4>}, {pipeline_mode = #tpu.pipeline_mode<synchronous>, transform_indices = @transform_1, window_bounds = array<i64: 36, 32>}, {pipeline_mode = #tpu.pipeline_mode<synchronous>, transform_indices = @transform_2, window_bounds = array<i64: 1, 32>}, {pipeline_mode = #tpu.pipeline_mode<synchronous>, transform_indices = @transform_3, window_bounds = array<i64: 1, 32>}, {pipeline_mode = #tpu.pipeline_mode<synchronous>, transform_indices = @transform_4, window_bounds = array<i64: 288, 64>}, {pipeline_mode = #tpu.pipeline_mode<synchronous>, transform_indices = @transform_5, window_bounds = array<i64: 1, 64>}, {pipeline_mode = #tpu.pipeline_mode<synchronous>, transform_indices = @transform_6, window_bounds = array<i64: 1, 64>}, {pipeline_mode = #tpu.pipeline_mode<synchronous>, transform_indices = @transform_7, window_bounds = array<i64: 576, 128>}, {pipeline_mode = #tpu.pipeline_mode<synchronous>, transform_indices = @transform_8, window_bounds = array<i64: 1, 128>}, {pipeline_mode = #tpu.pipeline_mode<synchronous>, transform_indices = @transform_9, window_bounds = array<i64: 1, 128>}, {pipeline_mode = #tpu.pipeline_mode<synchronous>, transform_indices = @transform_10, window_bounds = array<i64: 6, 128>}, {pipeline_mode = #tpu.pipeline_mode<synchronous>, transform_indices = @transform_11, window_bounds = array<i64: 6, 1>}, {pipeline_mode = #tpu.pipeline_mode<synchronous>, transform_indices = @transform_12, window_bounds = array<i64: 128, 256>}, {transform_indices = @transform_13, window_bounds = array<i64: 1, 6, 256>}]} {
    %c0 = arith.constant 0 : index
    %c0_0 = arith.constant 0 : index
    %c0_1 = arith.constant 0 : index
    %c0_2 = arith.constant 0 : index
    %0 = vector.load %arg1[%c0, %c0_0, %c0_1, %c0_2] : memref<1x16x16x4xf32, #tpu.memory_space<vmem>>, vector<1x16x16x4xf32>
    %1 = vector.shape_cast %0 : vector<1x16x16x4xf32> to vector<16x16x4xf32>
    %cst = arith.constant 0.000000e+00 : f32
    %2 = vector.broadcast %cst : f32 to vector<18x18x4xf32>
    %c0_3 = arith.constant 0 : index
    %c0_4 = arith.constant 0 : index
    %c0_5 = arith.constant 0 : index
    %3 = vector.load %arg15[%c0_3, %c0_4, %c0_5] : memref<18x18x4xf32, #tpu.memory_space<vmem>>, vector<18x18x4xf32>
    tpu.vector_store %arg15[%c0_3, %c0_4, %c0_5], %2 {strides = array<i32>} : memref<18x18x4xf32, #tpu.memory_space<vmem>>, vector<18x18x4xf32>,
    %c1 = arith.constant 1 : index
    %c1_6 = arith.constant 1 : index
    %c0_7 = arith.constant 0 : index
    %4 = vector.load %arg15[%c1, %c1_6, %c0_7] : memref<18x18x4xf32, #tpu.memory_space<vmem>>, vector<16x16x4xf32>
    tpu.vector_store %arg15[%c1, %c1_6, %c0_7], %1 {strides = array<i32>} : memref<18x18x4xf32, #tpu.memory_space<vmem>>, vector<16x16x4xf32>,
    %c0_8 = arith.constant 0 : index
    %c0_9 = arith.constant 0 : index
    %c0_10 = arith.constant 0 : index
    %5 = vector.load %arg15[%c0_8, %c0_9, %c0_10] : memref<18x18x4xf32, #tpu.memory_space<vmem>>, vector<16x16x4xf32>
    %6 = vector.shape_cast %5 : vector<16x16x4xf32> to vector<256x4xf32>
    %c0_11 = arith.constant 0 : index
    %c0_12 = arith.constant 0 : index
    %7 = vector.load %arg16[%c0_11, %c0_12] : memref<256x36xf32, #tpu.memory_space<vmem>>, vector<256x4xf32>
    tpu.vector_store %arg16[%c0_11, %c0_12], %6 {strides = array<i32>} : memref<256x36xf32, #tpu.memory_space<vmem>>, vector<256x4xf32>,
    %c0_13 = arith.constant 0 : index
    %c1_14 = arith.constant 1 : index
    %c0_15 = arith.constant 0 : index
    %8 = vector.load %arg15[%c0_13, %c1_14, %c0_15] : memref<18x18x4xf32, #tpu.memory_space<vmem>>, vector<16x16x4xf32>
    %9 = vector.shape_cast %8 : vector<16x16x4xf32> to vector<256x4xf32>
    %c0_16 = arith.constant 0 : index
    %c4 = arith.constant 4 : index
    %10 = vector.load %arg16[%c0_16, %c4] : memref<256x36xf32, #tpu.memory_space<vmem>>, vector<256x4xf32>
    tpu.vector_store %arg16[%c0_16, %c4], %9 {strides = array<i32>} : memref<256x36xf32, #tpu.memory_space<vmem>>, vector<256x4xf32>,
    %c0_17 = arith.constant 0 : index
    %c2 = arith.constant 2 : index
    %c0_18 = arith.constant 0 : index
    %11 = vector.load %arg15[%c0_17, %c2, %c0_18] : memref<18x18x4xf32, #tpu.memory_space<vmem>>, vector<16x16x4xf32>
    %12 = vector.shape_cast %11 : vector<16x16x4xf32> to vector<256x4xf32>
    %c0_19 = arith.constant 0 : index
    %c8 = arith.constant 8 : index
    %13 = vector.load %arg16[%c0_19, %c8] : memref<256x36xf32, #tpu.memory_space<vmem>>, vector<256x4xf32>
    tpu.vector_store %arg16[%c0_19, %c8], %12 {strides = array<i32>} : memref<256x36xf32, #tpu.memory_space<vmem>>, vector<256x4xf32>,
    %c1_20 = arith.constant 1 : index
    %c0_21 = arith.constant 0 : index
    %c0_22 = arith.constant 0 : index
    %14 = vector.load %arg15[%c1_20, %c0_21, %c0_22] : memref<18x18x4xf32, #tpu.memory_space<vmem>>, vector<16x16x4xf32>
    %15 = vector.shape_cast %14 : vector<16x16x4xf32> to vector<256x4xf32>
    %c0_23 = arith.constant 0 : index
    %c12 = arith.constant 12 : index
    %16 = vector.load %arg16[%c0_23, %c12] : memref<256x36xf32, #tpu.memory_space<vmem>>, vector<256x4xf32>
    tpu.vector_store %arg16[%c0_23, %c12], %15 {strides = array<i32>} : memref<256x36xf32, #tpu.memory_space<vmem>>, vector<256x4xf32>,
    %c1_24 = arith.constant 1 : index
    %c1_25 = arith.constant 1 : index
    %c0_26 = arith.constant 0 : index
    %17 = vector.load %arg15[%c1_24, %c1_25, %c0_26] : memref<18x18x4xf32, #tpu.memory_space<vmem>>, vector<16x16x4xf32>
    %18 = vector.shape_cast %17 : vector<16x16x4xf32> to vector<256x4xf32>
    %c0_27 = arith.constant 0 : index
    %c16 = arith.constant 16 : index
    %19 = vector.load %arg16[%c0_27, %c16] : memref<256x36xf32, #tpu.memory_space<vmem>>, vector<256x4xf32>
    tpu.vector_store %arg16[%c0_27, %c16], %18 {strides = array<i32>} : memref<256x36xf32, #tpu.memory_space<vmem>>, vector<256x4xf32>,
    %c1_28 = arith.constant 1 : index
    %c2_29 = arith.constant 2 : index
    %c0_30 = arith.constant 0 : index
    %20 = vector.load %arg15[%c1_28, %c2_29, %c0_30] : memref<18x18x4xf32, #tpu.memory_space<vmem>>, vector<16x16x4xf32>
    %21 = vector.shape_cast %20 : vector<16x16x4xf32> to vector<256x4xf32>
    %c0_31 = arith.constant 0 : index
    %c20 = arith.constant 20 : index
    %22 = vector.load %arg16[%c0_31, %c20] : memref<256x36xf32, #tpu.memory_space<vmem>>, vector<256x4xf32>
    tpu.vector_store %arg16[%c0_31, %c20], %21 {strides = array<i32>} : memref<256x36xf32, #tpu.memory_space<vmem>>, vector<256x4xf32>,
    %c2_32 = arith.constant 2 : index
    %c0_33 = arith.constant 0 : index
    %c0_34 = arith.constant 0 : index
    %23 = vector.load %arg15[%c2_32, %c0_33, %c0_34] : memref<18x18x4xf32, #tpu.memory_space<vmem>>, vector<16x16x4xf32>
    %24 = vector.shape_cast %23 : vector<16x16x4xf32> to vector<256x4xf32>
    %c0_35 = arith.constant 0 : index
    %c24 = arith.constant 24 : index
    %25 = vector.load %arg16[%c0_35, %c24] : memref<256x36xf32, #tpu.memory_space<vmem>>, vector<256x4xf32>
    tpu.vector_store %arg16[%c0_35, %c24], %24 {strides = array<i32>} : memref<256x36xf32, #tpu.memory_space<vmem>>, vector<256x4xf32>,
    %c2_36 = arith.constant 2 : index
    %c1_37 = arith.constant 1 : index
    %c0_38 = arith.constant 0 : index
    %26 = vector.load %arg15[%c2_36, %c1_37, %c0_38] : memref<18x18x4xf32, #tpu.memory_space<vmem>>, vector<16x16x4xf32>
    %27 = vector.shape_cast %26 : vector<16x16x4xf32> to vector<256x4xf32>
    %c0_39 = arith.constant 0 : index
    %c28 = arith.constant 28 : index
    %28 = vector.load %arg16[%c0_39, %c28] : memref<256x36xf32, #tpu.memory_space<vmem>>, vector<256x4xf32>
    tpu.vector_store %arg16[%c0_39, %c28], %27 {strides = array<i32>} : memref<256x36xf32, #tpu.memory_space<vmem>>, vector<256x4xf32>,
    %c2_40 = arith.constant 2 : index
    %c2_41 = arith.constant 2 : index
    %c0_42 = arith.constant 0 : index
    %29 = vector.load %arg15[%c2_40, %c2_41, %c0_42] : memref<18x18x4xf32, #tpu.memory_space<vmem>>, vector<16x16x4xf32>
    %30 = vector.shape_cast %29 : vector<16x16x4xf32> to vector<256x4xf32>
    %c0_43 = arith.constant 0 : index
    %c32 = arith.constant 32 : index
    %31 = vector.load %arg16[%c0_43, %c32] : memref<256x36xf32, #tpu.memory_space<vmem>>, vector<256x4xf32>
    tpu.vector_store %arg16[%c0_43, %c32], %30 {strides = array<i32>} : memref<256x36xf32, #tpu.memory_space<vmem>>, vector<256x4xf32>,
    %c0_44 = arith.constant 0 : index
    %c0_45 = arith.constant 0 : index
    %32 = vector.load %arg16[%c0_44, %c0_45] : memref<256x36xf32, #tpu.memory_space<vmem>>, vector<256x36xf32>
    %c0_46 = arith.constant 0 : index
    %c0_47 = arith.constant 0 : index
    %33 = vector.load %arg2[%c0_46, %c0_47] : memref<36x32xf32, #tpu.memory_space<vmem>>, vector<36x32xf32>
    %cst_48 = arith.constant dense<0.000000e+00> : vector<256x32xf32>
    %34 = tpu.matmul %32, %33, %cst_48 {dimension_numbers = #tpu.dot_dimension_numbers<[1], [0], [0], [1], [0, 0, 1, 1], [], []>} : vector<256x36xf32>, vector<36x32xf32>, vector<256x32xf32> -> vector<256x32xf32>
    %c0_49 = arith.constant 0 : index
    %c0_50 = arith.constant 0 : index
    %35 = vector.load %arg3[%c0_49, %c0_50] : memref<1x32xf32, #tpu.memory_space<vmem>>, vector<1x32xf32>
    %36 = vector.broadcast %35 : vector<1x32xf32> to vector<256x32xf32>
    %37 = arith.mulf %34, %36 : vector<256x32xf32>
    %c0_51 = arith.constant 0 : index
    %c0_52 = arith.constant 0 : index
    %38 = vector.load %arg4[%c0_51, %c0_52] : memref<1x32xf32, #tpu.memory_space<vmem>>, vector<1x32xf32>
    %39 = vector.broadcast %38 : vector<1x32xf32> to vector<256x32xf32>
    %40 = arith.addf %37, %39 : vector<256x32xf32>
    %cst_53 = arith.constant 0.000000e+00 : f32
    %41 = vector.broadcast %cst_53 : f32 to vector<256x32xf32>
    %42 = arith.maximumf %40, %41 : vector<256x32xf32>
    %43 = vector.shape_cast %42 : vector<256x32xf32> to vector<16x16x32xf32>
    %cst_54 = arith.constant 0.000000e+00 : f32
    %44 = vector.broadcast %cst_54 : f32 to vector<18x18x32xf32>
    %c0_55 = arith.constant 0 : index
    %c0_56 = arith.constant 0 : index
    %c0_57 = arith.constant 0 : index
    %45 = vector.load %arg17[%c0_55, %c0_56, %c0_57] : memref<18x18x32xf32, #tpu.memory_space<vmem>>, vector<18x18x32xf32>
    tpu.vector_store %arg17[%c0_55, %c0_56, %c0_57], %44 {strides = array<i32>} : memref<18x18x32xf32, #tpu.memory_space<vmem>>, vector<18x18x32xf32>,
    %c1_58 = arith.constant 1 : index
    %c1_59 = arith.constant 1 : index
    %c0_60 = arith.constant 0 : index
    %46 = vector.load %arg17[%c1_58, %c1_59, %c0_60] : memref<18x18x32xf32, #tpu.memory_space<vmem>>, vector<16x16x32xf32>
    tpu.vector_store %arg17[%c1_58, %c1_59, %c0_60], %43 {strides = array<i32>} : memref<18x18x32xf32, #tpu.memory_space<vmem>>, vector<16x16x32xf32>,
    %c0_61 = arith.constant 0 : index
    %c0_62 = arith.constant 0 : index
    %c0_63 = arith.constant 0 : index
    %47 = vector.load %arg17[%c0_61, %c0_62, %c0_63] : memref<18x18x32xf32, #tpu.memory_space<vmem>>, vector<16x16x32xf32>
    %48 = vector.shape_cast %47 : vector<16x16x32xf32> to vector<256x32xf32>
    %c0_64 = arith.constant 0 : index
    %c0_65 = arith.constant 0 : index
    %49 = vector.load %arg18[%c0_64, %c0_65] : memref<256x288xf32, #tpu.memory_space<vmem>>, vector<256x32xf32>
    tpu.vector_store %arg18[%c0_64, %c0_65], %48 {strides = array<i32>} : memref<256x288xf32, #tpu.memory_space<vmem>>, vector<256x32xf32>,
    %c0_66 = arith.constant 0 : index
    %c1_67 = arith.constant 1 : index
    %c0_68 = arith.constant 0 : index
    %50 = vector.load %arg17[%c0_66, %c1_67, %c0_68] : memref<18x18x32xf32, #tpu.memory_space<vmem>>, vector<16x16x32xf32>
    %51 = vector.shape_cast %50 : vector<16x16x32xf32> to vector<256x32xf32>
    %c0_69 = arith.constant 0 : index
    %c32_70 = arith.constant 32 : index
    %52 = vector.load %arg18[%c0_69, %c32_70] : memref<256x288xf32, #tpu.memory_space<vmem>>, vector<256x32xf32>
    tpu.vector_store %arg18[%c0_69, %c32_70], %51 {strides = array<i32>} : memref<256x288xf32, #tpu.memory_space<vmem>>, vector<256x32xf32>,
    %c0_71 = arith.constant 0 : index
    %c2_72 = arith.constant 2 : index
    %c0_73 = arith.constant 0 : index
    %53 = vector.load %arg17[%c0_71, %c2_72, %c0_73] : memref<18x18x32xf32, #tpu.memory_space<vmem>>, vector<16x16x32xf32>
    %54 = vector.shape_cast %53 : vector<16x16x32xf32> to vector<256x32xf32>
    %c0_74 = arith.constant 0 : index
    %c64 = arith.constant 64 : index
    %55 = vector.load %arg18[%c0_74, %c64] : memref<256x288xf32, #tpu.memory_space<vmem>>, vector<256x32xf32>
    tpu.vector_store %arg18[%c0_74, %c64], %54 {strides = array<i32>} : memref<256x288xf32, #tpu.memory_space<vmem>>, vector<256x32xf32>,
    %c1_75 = arith.constant 1 : index
    %c0_76 = arith.constant 0 : index
    %c0_77 = arith.constant 0 : index
    %56 = vector.load %arg17[%c1_75, %c0_76, %c0_77] : memref<18x18x32xf32, #tpu.memory_space<vmem>>, vector<16x16x32xf32>
    %57 = vector.shape_cast %56 : vector<16x16x32xf32> to vector<256x32xf32>
    %c0_78 = arith.constant 0 : index
    %c96 = arith.constant 96 : index
    %58 = vector.load %arg18[%c0_78, %c96] : memref<256x288xf32, #tpu.memory_space<vmem>>, vector<256x32xf32>
    tpu.vector_store %arg18[%c0_78, %c96], %57 {strides = array<i32>} : memref<256x288xf32, #tpu.memory_space<vmem>>, vector<256x32xf32>,
    %c1_79 = arith.constant 1 : index
    %c1_80 = arith.constant 1 : index
    %c0_81 = arith.constant 0 : index
    %59 = vector.load %arg17[%c1_79, %c1_80, %c0_81] : memref<18x18x32xf32, #tpu.memory_space<vmem>>, vector<16x16x32xf32>
    %60 = vector.shape_cast %59 : vector<16x16x32xf32> to vector<256x32xf32>
    %c0_82 = arith.constant 0 : index
    %c128 = arith.constant 128 : index
    %61 = vector.load %arg18[%c0_82, %c128] : memref<256x288xf32, #tpu.memory_space<vmem>>, vector<256x32xf32>
    tpu.vector_store %arg18[%c0_82, %c128], %60 {strides = array<i32>} : memref<256x288xf32, #tpu.memory_space<vmem>>, vector<256x32xf32>,
    %c1_83 = arith.constant 1 : index
    %c2_84 = arith.constant 2 : index
    %c0_85 = arith.constant 0 : index
    %62 = vector.load %arg17[%c1_83, %c2_84, %c0_85] : memref<18x18x32xf32, #tpu.memory_space<vmem>>, vector<16x16x32xf32>
    %63 = vector.shape_cast %62 : vector<16x16x32xf32> to vector<256x32xf32>
    %c0_86 = arith.constant 0 : index
    %c160 = arith.constant 160 : index
    %64 = vector.load %arg18[%c0_86, %c160] : memref<256x288xf32, #tpu.memory_space<vmem>>, vector<256x32xf32>
    tpu.vector_store %arg18[%c0_86, %c160], %63 {strides = array<i32>} : memref<256x288xf32, #tpu.memory_space<vmem>>, vector<256x32xf32>,
    %c2_87 = arith.constant 2 : index
    %c0_88 = arith.constant 0 : index
    %c0_89 = arith.constant 0 : index
    %65 = vector.load %arg17[%c2_87, %c0_88, %c0_89] : memref<18x18x32xf32, #tpu.memory_space<vmem>>, vector<16x16x32xf32>
    %66 = vector.shape_cast %65 : vector<16x16x32xf32> to vector<256x32xf32>
    %c0_90 = arith.constant 0 : index
    %c192 = arith.constant 192 : index
    %67 = vector.load %arg18[%c0_90, %c192] : memref<256x288xf32, #tpu.memory_space<vmem>>, vector<256x32xf32>
    tpu.vector_store %arg18[%c0_90, %c192], %66 {strides = array<i32>} : memref<256x288xf32, #tpu.memory_space<vmem>>, vector<256x32xf32>,
    %c2_91 = arith.constant 2 : index
    %c1_92 = arith.constant 1 : index
    %c0_93 = arith.constant 0 : index
    %68 = vector.load %arg17[%c2_91, %c1_92, %c0_93] : memref<18x18x32xf32, #tpu.memory_space<vmem>>, vector<16x16x32xf32>
    %69 = vector.shape_cast %68 : vector<16x16x32xf32> to vector<256x32xf32>
    %c0_94 = arith.constant 0 : index
    %c224 = arith.constant 224 : index
    %70 = vector.load %arg18[%c0_94, %c224] : memref<256x288xf32, #tpu.memory_space<vmem>>, vector<256x32xf32>
    tpu.vector_store %arg18[%c0_94, %c224], %69 {strides = array<i32>} : memref<256x288xf32, #tpu.memory_space<vmem>>, vector<256x32xf32>,
    %c2_95 = arith.constant 2 : index
    %c2_96 = arith.constant 2 : index
    %c0_97 = arith.constant 0 : index
    %71 = vector.load %arg17[%c2_95, %c2_96, %c0_97] : memref<18x18x32xf32, #tpu.memory_space<vmem>>, vector<16x16x32xf32>
    %72 = vector.shape_cast %71 : vector<16x16x32xf32> to vector<256x32xf32>
    %c0_98 = arith.constant 0 : index
    %c256 = arith.constant 256 : index
    %73 = vector.load %arg18[%c0_98, %c256] : memref<256x288xf32, #tpu.memory_space<vmem>>, vector<256x32xf32>
    tpu.vector_store %arg18[%c0_98, %c256], %72 {strides = array<i32>} : memref<256x288xf32, #tpu.memory_space<vmem>>, vector<256x32xf32>,
    %c0_99 = arith.constant 0 : index
    %c0_100 = arith.constant 0 : index
    %74 = vector.load %arg18[%c0_99, %c0_100] : memref<256x288xf32, #tpu.memory_space<vmem>>, vector<256x288xf32>
    %c0_101 = arith.constant 0 : index
    %c0_102 = arith.constant 0 : index
    %75 = vector.load %arg5[%c0_101, %c0_102] : memref<288x64xf32, #tpu.memory_space<vmem>>, vector<288x64xf32>
    %cst_103 = arith.constant dense<0.000000e+00> : vector<256x64xf32>
    %76 = tpu.matmul %74, %75, %cst_103 {dimension_numbers = #tpu.dot_dimension_numbers<[1], [0], [0], [1], [0, 0, 1, 1], [], []>} : vector<256x288xf32>, vector<288x64xf32>, vector<256x64xf32> -> vector<256x64xf32>
    %c0_104 = arith.constant 0 : index
    %c0_105 = arith.constant 0 : index
    %77 = vector.load %arg6[%c0_104, %c0_105] : memref<1x64xf32, #tpu.memory_space<vmem>>, vector<1x64xf32>
    %78 = vector.broadcast %77 : vector<1x64xf32> to vector<256x64xf32>
    %79 = arith.mulf %76, %78 : vector<256x64xf32>
    %c0_106 = arith.constant 0 : index
    %c0_107 = arith.constant 0 : index
    %80 = vector.load %arg7[%c0_106, %c0_107] : memref<1x64xf32, #tpu.memory_space<vmem>>, vector<1x64xf32>
    %81 = vector.broadcast %80 : vector<1x64xf32> to vector<256x64xf32>
    %82 = arith.addf %79, %81 : vector<256x64xf32>
    %cst_108 = arith.constant 0.000000e+00 : f32
    %83 = vector.broadcast %cst_108 : f32 to vector<256x64xf32>
    %84 = arith.maximumf %82, %83 : vector<256x64xf32>
    %85 = vector.shape_cast %84 : vector<256x64xf32> to vector<16x16x64xf32>
    %cst_109 = arith.constant 0.000000e+00 : f32
    %86 = vector.broadcast %cst_109 : f32 to vector<18x18x64xf32>
    %c0_110 = arith.constant 0 : index
    %c0_111 = arith.constant 0 : index
    %c0_112 = arith.constant 0 : index
    %87 = vector.load %arg19[%c0_110, %c0_111, %c0_112] : memref<18x18x64xf32, #tpu.memory_space<vmem>>, vector<18x18x64xf32>
    tpu.vector_store %arg19[%c0_110, %c0_111, %c0_112], %86 {strides = array<i32>} : memref<18x18x64xf32, #tpu.memory_space<vmem>>, vector<18x18x64xf32>,
    %c1_113 = arith.constant 1 : index
    %c1_114 = arith.constant 1 : index
    %c0_115 = arith.constant 0 : index
    %88 = vector.load %arg19[%c1_113, %c1_114, %c0_115] : memref<18x18x64xf32, #tpu.memory_space<vmem>>, vector<16x16x64xf32>
    tpu.vector_store %arg19[%c1_113, %c1_114, %c0_115], %85 {strides = array<i32>} : memref<18x18x64xf32, #tpu.memory_space<vmem>>, vector<16x16x64xf32>,
    %c0_116 = arith.constant 0 : index
    %c0_117 = arith.constant 0 : index
    %c0_118 = arith.constant 0 : index
    %89 = vector.load %arg19[%c0_116, %c0_117, %c0_118] : memref<18x18x64xf32, #tpu.memory_space<vmem>>, vector<16x16x64xf32>
    %90 = vector.shape_cast %89 : vector<16x16x64xf32> to vector<256x64xf32>
    %c0_119 = arith.constant 0 : index
    %c0_120 = arith.constant 0 : index
    %91 = vector.load %arg20[%c0_119, %c0_120] : memref<256x576xf32, #tpu.memory_space<vmem>>, vector<256x64xf32>
    tpu.vector_store %arg20[%c0_119, %c0_120], %90 {strides = array<i32>} : memref<256x576xf32, #tpu.memory_space<vmem>>, vector<256x64xf32>,
    %c0_121 = arith.constant 0 : index
    %c1_122 = arith.constant 1 : index
    %c0_123 = arith.constant 0 : index
    %92 = vector.load %arg19[%c0_121, %c1_122, %c0_123] : memref<18x18x64xf32, #tpu.memory_space<vmem>>, vector<16x16x64xf32>
    %93 = vector.shape_cast %92 : vector<16x16x64xf32> to vector<256x64xf32>
    %c0_124 = arith.constant 0 : index
    %c64_125 = arith.constant 64 : index
    %94 = vector.load %arg20[%c0_124, %c64_125] : memref<256x576xf32, #tpu.memory_space<vmem>>, vector<256x64xf32>
    tpu.vector_store %arg20[%c0_124, %c64_125], %93 {strides = array<i32>} : memref<256x576xf32, #tpu.memory_space<vmem>>, vector<256x64xf32>,
    %c0_126 = arith.constant 0 : index
    %c2_127 = arith.constant 2 : index
    %c0_128 = arith.constant 0 : index
    %95 = vector.load %arg19[%c0_126, %c2_127, %c0_128] : memref<18x18x64xf32, #tpu.memory_space<vmem>>, vector<16x16x64xf32>
    %96 = vector.shape_cast %95 : vector<16x16x64xf32> to vector<256x64xf32>
    %c0_129 = arith.constant 0 : index
    %c128_130 = arith.constant 128 : index
    %97 = vector.load %arg20[%c0_129, %c128_130] : memref<256x576xf32, #tpu.memory_space<vmem>>, vector<256x64xf32>
    tpu.vector_store %arg20[%c0_129, %c128_130], %96 {strides = array<i32>} : memref<256x576xf32, #tpu.memory_space<vmem>>, vector<256x64xf32>,
    %c1_131 = arith.constant 1 : index
    %c0_132 = arith.constant 0 : index
    %c0_133 = arith.constant 0 : index
    %98 = vector.load %arg19[%c1_131, %c0_132, %c0_133] : memref<18x18x64xf32, #tpu.memory_space<vmem>>, vector<16x16x64xf32>
    %99 = vector.shape_cast %98 : vector<16x16x64xf32> to vector<256x64xf32>
    %c0_134 = arith.constant 0 : index
    %c192_135 = arith.constant 192 : index
    %100 = vector.load %arg20[%c0_134, %c192_135] : memref<256x576xf32, #tpu.memory_space<vmem>>, vector<256x64xf32>
    tpu.vector_store %arg20[%c0_134, %c192_135], %99 {strides = array<i32>} : memref<256x576xf32, #tpu.memory_space<vmem>>, vector<256x64xf32>,
    %c1_136 = arith.constant 1 : index
    %c1_137 = arith.constant 1 : index
    %c0_138 = arith.constant 0 : index
    %101 = vector.load %arg19[%c1_136, %c1_137, %c0_138] : memref<18x18x64xf32, #tpu.memory_space<vmem>>, vector<16x16x64xf32>
    %102 = vector.shape_cast %101 : vector<16x16x64xf32> to vector<256x64xf32>
    %c0_139 = arith.constant 0 : index
    %c256_140 = arith.constant 256 : index
    %103 = vector.load %arg20[%c0_139, %c256_140] : memref<256x576xf32, #tpu.memory_space<vmem>>, vector<256x64xf32>
    tpu.vector_store %arg20[%c0_139, %c256_140], %102 {strides = array<i32>} : memref<256x576xf32, #tpu.memory_space<vmem>>, vector<256x64xf32>,
    %c1_141 = arith.constant 1 : index
    %c2_142 = arith.constant 2 : index
    %c0_143 = arith.constant 0 : index
    %104 = vector.load %arg19[%c1_141, %c2_142, %c0_143] : memref<18x18x64xf32, #tpu.memory_space<vmem>>, vector<16x16x64xf32>
    %105 = vector.shape_cast %104 : vector<16x16x64xf32> to vector<256x64xf32>
    %c0_144 = arith.constant 0 : index
    %c320 = arith.constant 320 : index
    %106 = vector.load %arg20[%c0_144, %c320] : memref<256x576xf32, #tpu.memory_space<vmem>>, vector<256x64xf32>
    tpu.vector_store %arg20[%c0_144, %c320], %105 {strides = array<i32>} : memref<256x576xf32, #tpu.memory_space<vmem>>, vector<256x64xf32>,
    %c2_145 = arith.constant 2 : index
    %c0_146 = arith.constant 0 : index
    %c0_147 = arith.constant 0 : index
    %107 = vector.load %arg19[%c2_145, %c0_146, %c0_147] : memref<18x18x64xf32, #tpu.memory_space<vmem>>, vector<16x16x64xf32>
    %108 = vector.shape_cast %107 : vector<16x16x64xf32> to vector<256x64xf32>
    %c0_148 = arith.constant 0 : index
    %c384 = arith.constant 384 : index
    %109 = vector.load %arg20[%c0_148, %c384] : memref<256x576xf32, #tpu.memory_space<vmem>>, vector<256x64xf32>
    tpu.vector_store %arg20[%c0_148, %c384], %108 {strides = array<i32>} : memref<256x576xf32, #tpu.memory_space<vmem>>, vector<256x64xf32>,
    %c2_149 = arith.constant 2 : index
    %c1_150 = arith.constant 1 : index
    %c0_151 = arith.constant 0 : index
    %110 = vector.load %arg19[%c2_149, %c1_150, %c0_151] : memref<18x18x64xf32, #tpu.memory_space<vmem>>, vector<16x16x64xf32>
    %111 = vector.shape_cast %110 : vector<16x16x64xf32> to vector<256x64xf32>
    %c0_152 = arith.constant 0 : index
    %c448 = arith.constant 448 : index
    %112 = vector.load %arg20[%c0_152, %c448] : memref<256x576xf32, #tpu.memory_space<vmem>>, vector<256x64xf32>
    tpu.vector_store %arg20[%c0_152, %c448], %111 {strides = array<i32>} : memref<256x576xf32, #tpu.memory_space<vmem>>, vector<256x64xf32>,
    %c2_153 = arith.constant 2 : index
    %c2_154 = arith.constant 2 : index
    %c0_155 = arith.constant 0 : index
    %113 = vector.load %arg19[%c2_153, %c2_154, %c0_155] : memref<18x18x64xf32, #tpu.memory_space<vmem>>, vector<16x16x64xf32>
    %114 = vector.shape_cast %113 : vector<16x16x64xf32> to vector<256x64xf32>
    %c0_156 = arith.constant 0 : index
    %c512 = arith.constant 512 : index
    %115 = vector.load %arg20[%c0_156, %c512] : memref<256x576xf32, #tpu.memory_space<vmem>>, vector<256x64xf32>
    tpu.vector_store %arg20[%c0_156, %c512], %114 {strides = array<i32>} : memref<256x576xf32, #tpu.memory_space<vmem>>, vector<256x64xf32>,
    %c0_157 = arith.constant 0 : index
    %c0_158 = arith.constant 0 : index
    %116 = vector.load %arg20[%c0_157, %c0_158] : memref<256x576xf32, #tpu.memory_space<vmem>>, vector<256x576xf32>
    %c0_159 = arith.constant 0 : index
    %c0_160 = arith.constant 0 : index
    %117 = vector.load %arg8[%c0_159, %c0_160] : memref<576x128xf32, #tpu.memory_space<vmem>>, vector<576x128xf32>
    %cst_161 = arith.constant dense<0.000000e+00> : vector<256x128xf32>
    %118 = tpu.matmul %116, %117, %cst_161 {dimension_numbers = #tpu.dot_dimension_numbers<[1], [0], [0], [1], [0, 0, 1, 1], [], []>} : vector<256x576xf32>, vector<576x128xf32>, vector<256x128xf32> -> vector<256x128xf32>
    %c0_162 = arith.constant 0 : index
    %c0_163 = arith.constant 0 : index
    %119 = vector.load %arg9[%c0_162, %c0_163] : memref<1x128xf32, #tpu.memory_space<vmem>>, vector<1x128xf32>
    %120 = vector.broadcast %119 : vector<1x128xf32> to vector<256x128xf32>
    %121 = arith.mulf %118, %120 : vector<256x128xf32>
    %c0_164 = arith.constant 0 : index
    %c0_165 = arith.constant 0 : index
    %122 = vector.load %arg10[%c0_164, %c0_165] : memref<1x128xf32, #tpu.memory_space<vmem>>, vector<1x128xf32>
    %123 = vector.broadcast %122 : vector<1x128xf32> to vector<256x128xf32>
    %124 = arith.addf %121, %123 : vector<256x128xf32>
    %cst_166 = arith.constant 0.000000e+00 : f32
    %125 = vector.broadcast %cst_166 : f32 to vector<256x128xf32>
    %126 = arith.maximumf %124, %125 : vector<256x128xf32>
    %127 = vector.shape_cast %126 : vector<256x128xf32> to vector<16x16x128xf32>
    %128 = vector.shape_cast %127 : vector<16x16x128xf32> to vector<8x2x16x128xf32>
    %129 = vector.extract_strided_slice %128 {offsets = [0, 0, 0, 0], sizes = [8, 1, 16, 128], strides = [1, 1, 1, 1]} : vector<8x2x16x128xf32> to vector<8x1x16x128xf32>
    %130 = vector.shape_cast %129 : vector<8x1x16x128xf32> to vector<8x16x128xf32>
    %131 = vector.extract_strided_slice %128 {offsets = [0, 1, 0, 0], sizes = [8, 1, 16, 128], strides = [1, 1, 1, 1]} : vector<8x2x16x128xf32> to vector<8x1x16x128xf32>
    %132 = vector.shape_cast %131 : vector<8x1x16x128xf32> to vector<8x16x128xf32>
    %133 = arith.maximumf %130, %132 : vector<8x16x128xf32>
    %c0_167 = arith.constant 0 : index
    %c0_168 = arith.constant 0 : index
    %c0_169 = arith.constant 0 : index
    %134 = vector.load %arg21[%c0_167, %c0_168, %c0_169] : memref<8x16x128xf32, #tpu.memory_space<vmem>>, vector<8x16x128xf32>
    tpu.vector_store %arg21[%c0_167, %c0_168, %c0_169], %133 {strides = array<i32>} : memref<8x16x128xf32, #tpu.memory_space<vmem>>, vector<8x16x128xf32>,
    %c0_170 = arith.constant 0 : index
    %c0_171 = arith.constant 0 : index
    %c0_172 = arith.constant 0 : index
    %135 = vector.load %arg21[%c0_170, %c0_171, %c0_172] : memref<8x16x128xf32, #tpu.memory_space<vmem>>, vector<8x15x128xf32>
    %c0_173 = arith.constant 0 : index
    %c1_174 = arith.constant 1 : index
    %c0_175 = arith.constant 0 : index
    %136 = vector.load %arg21[%c0_173, %c1_174, %c0_175] : memref<8x16x128xf32, #tpu.memory_space<vmem>>, vector<8x15x128xf32>
    %137 = arith.maximumf %135, %136 : vector<8x15x128xf32>
    %c0_176 = arith.constant 0 : index
    %c0_177 = arith.constant 0 : index
    %c0_178 = arith.constant 0 : index
    %138 = vector.load %arg21[%c0_176, %c0_177, %c0_178] : memref<8x16x128xf32, #tpu.memory_space<vmem>>, vector<8x15x128xf32>
    tpu.vector_store %arg21[%c0_176, %c0_177, %c0_178], %137 {strides = array<i32>} : memref<8x16x128xf32, #tpu.memory_space<vmem>>, vector<8x15x128xf32>,
    %c0_179 = arith.constant 0 : index
    %c0_180 = arith.constant 0 : index
    %c0_181 = arith.constant 0 : index
    %139 = vector.load %arg21[%c0_179, %c0_180, %c0_181] : memref<8x16x128xf32, #tpu.memory_space<vmem>>, vector<8x16x128xf32>
    %140 = vector.shape_cast %139 : vector<8x16x128xf32> to vector<128x128xf32>
    %c0_182 = arith.constant 0 : index
    %c0_183 = arith.constant 0 : index
    %141 = vector.load %arg11[%c0_182, %c0_183] : memref<6x128xf32, #tpu.memory_space<vmem>>, vector<6x128xf32>
    %cst_184 = arith.constant dense<0.000000e+00> : vector<6x128xf32>
    %142 = tpu.matmul %141, %140, %cst_184 {dimension_numbers = #tpu.dot_dimension_numbers<[1], [1], [0], [0], [0, 0, 1, 0], [], []>} : vector<6x128xf32>, vector<128x128xf32>, vector<6x128xf32> -> vector<6x128xf32>
    %c0_185 = arith.constant 0 : index
    %c0_186 = arith.constant 0 : index
    %143 = vector.load %arg12[%c0_185, %c0_186] : memref<6x1xf32, #tpu.memory_space<vmem>>, vector<6x1xf32>
    %144 = vector.broadcast %143 : vector<6x1xf32> to vector<6x128xf32>
    %145 = arith.addf %142, %144 : vector<6x128xf32>
    %c0_187 = arith.constant 0 : index
    %c0_188 = arith.constant 0 : index
    %146 = vector.load %arg13[%c0_187, %c0_188] : memref<128x256xf32, #tpu.memory_space<vmem>>, vector<128x256xf32>
    %cst_189 = arith.constant dense<0.000000e+00> : vector<6x256xf32>
    %147 = tpu.matmul %145, %146, %cst_189 {dimension_numbers = #tpu.dot_dimension_numbers<[1], [0], [0], [1], [0, 0, 1, 1], [], []>} : vector<6x128xf32>, vector<128x256xf32>, vector<6x256xf32> -> vector<6x256xf32>
    %cst_190 = arith.constant dense<0xFF800000> : vector<256xf32>
    %148 = vector.multi_reduction <maximumf>, %147, %cst_190 [0] : vector<6x256xf32> to vector<256xf32>
    %149 = vector.shape_cast %148 : vector<256xf32> to vector<1x256xf32>
    %150 = vector.broadcast %149 : vector<1x256xf32> to vector<6x256xf32>
    %151 = arith.subf %147, %150 : vector<6x256xf32>
    %152 = math.exp %151 : vector<6x256xf32>
    %cst_191 = arith.constant dense<0.000000e+00> : vector<256xf32>
    %153 = vector.multi_reduction <add>, %152, %cst_191 [0] : vector<6x256xf32> to vector<256xf32>
    %154 = vector.shape_cast %153 : vector<256xf32> to vector<1x256xf32>
    %155 = vector.broadcast %154 : vector<1x256xf32> to vector<6x256xf32>
    %156 = arith.divf %152, %155 : vector<6x256xf32>
    %c0_192 = arith.constant 0 : index
    %c0_193 = arith.constant 0 : index
    %c0_194 = arith.constant 0 : index
    %157 = vector.load %arg14[%c0_192, %c0_193, %c0_194] : memref<1x6x256xf32, #tpu.memory_space<vmem>>, vector<1x6x256xf32>
    %158 = vector.shape_cast %157 : vector<1x6x256xf32> to vector<6x256xf32>
    %159 = vector.shape_cast %156 : vector<6x256xf32> to vector<1x6x256xf32>
    tpu.vector_store %arg14[%c0_192, %c0_193, %c0_194], %159 {strides = array<i32>} : memref<1x6x256xf32, #tpu.memory_space<vmem>>, vector<1x6x256xf32>,
    return
  }
  func.func @transform_0(%arg0: i32) -> (i32, i32, i32, i32) {
    %c0_i32 = arith.constant 0 : i32
    %c0_i32_0 = arith.constant 0 : i32
    %c0_i32_1 = arith.constant 0 : i32
    %c0_i32_2 = arith.constant 0 : i32
    return %arg0, %c0_i32, %c0_i32_0, %c0_i32_1 : i32, i32, i32, i32
  }
  func.func @transform_1(%arg0: i32) -> (i32, i32) {
    %c0_i32 = arith.constant 0 : i32
    %c0_i32_0 = arith.constant 0 : i32
    %c0_i32_1 = arith.constant 0 : i32
    return %c0_i32, %c0_i32_0 : i32, i32
  }
  func.func @transform_2(%arg0: i32) -> (i32, i32) {
    %c0_i32 = arith.constant 0 : i32
    %c0_i32_0 = arith.constant 0 : i32
    %c0_i32_1 = arith.constant 0 : i32
    return %c0_i32, %c0_i32_0 : i32, i32
  }
  func.func @transform_3(%arg0: i32) -> (i32, i32) {
    %c0_i32 = arith.constant 0 : i32
    %c0_i32_0 = arith.constant 0 : i32
    %c0_i32_1 = arith.constant 0 : i32
    return %c0_i32, %c0_i32_0 : i32, i32
  }
  func.func @transform_4(%arg0: i32) -> (i32, i32) {
    %c0_i32 = arith.constant 0 : i32
    %c0_i32_0 = arith.constant 0 : i32
    %c0_i32_1 = arith.constant 0 : i32
    return %c0_i32, %c0_i32_0 : i32, i32
  }
  func.func @transform_5(%arg0: i32) -> (i32, i32) {
    %c0_i32 = arith.constant 0 : i32
    %c0_i32_0 = arith.constant 0 : i32
    %c0_i32_1 = arith.constant 0 : i32
    return %c0_i32, %c0_i32_0 : i32, i32
  }
  func.func @transform_6(%arg0: i32) -> (i32, i32) {
    %c0_i32 = arith.constant 0 : i32
    %c0_i32_0 = arith.constant 0 : i32
    %c0_i32_1 = arith.constant 0 : i32
    return %c0_i32, %c0_i32_0 : i32, i32
  }
  func.func @transform_7(%arg0: i32) -> (i32, i32) {
    %c0_i32 = arith.constant 0 : i32
    %c0_i32_0 = arith.constant 0 : i32
    %c0_i32_1 = arith.constant 0 : i32
    return %c0_i32, %c0_i32_0 : i32, i32
  }
  func.func @transform_8(%arg0: i32) -> (i32, i32) {
    %c0_i32 = arith.constant 0 : i32
    %c0_i32_0 = arith.constant 0 : i32
    %c0_i32_1 = arith.constant 0 : i32
    return %c0_i32, %c0_i32_0 : i32, i32
  }
  func.func @transform_9(%arg0: i32) -> (i32, i32) {
    %c0_i32 = arith.constant 0 : i32
    %c0_i32_0 = arith.constant 0 : i32
    %c0_i32_1 = arith.constant 0 : i32
    return %c0_i32, %c0_i32_0 : i32, i32
  }
  func.func @transform_10(%arg0: i32) -> (i32, i32) {
    %c0_i32 = arith.constant 0 : i32
    %c0_i32_0 = arith.constant 0 : i32
    %c0_i32_1 = arith.constant 0 : i32
    return %c0_i32, %c0_i32_0 : i32, i32
  }
  func.func @transform_11(%arg0: i32) -> (i32, i32) {
    %c0_i32 = arith.constant 0 : i32
    %c0_i32_0 = arith.constant 0 : i32
    %c0_i32_1 = arith.constant 0 : i32
    return %c0_i32, %c0_i32_0 : i32, i32
  }
  func.func @transform_12(%arg0: i32) -> (i32, i32) {
    %c0_i32 = arith.constant 0 : i32
    %c0_i32_0 = arith.constant 0 : i32
    %c0_i32_1 = arith.constant 0 : i32
    return %c0_i32, %c0_i32_0 : i32, i32
  }
  func.func @transform_13(%arg0: i32) -> (i32, i32, i32) {
    %c0_i32 = arith.constant 0 : i32
    %c0_i32_0 = arith.constant 0 : i32
    %c0_i32_1 = arith.constant 0 : i32
    return %arg0, %c0_i32, %c0_i32_0 : i32, i32, i32
  }
}

</mosaic_0001>

<bundles_post_ra>
// kernel: simple_cnn_forward.1
= control target key start
LH: loop header
LB: loop body
LE: loop exit
PB: predicated region body
PF: predicated region fallthrough
CT: control target
= control target key end

     0   :  { %s8435_s25 = smov 0   ;;  %s12427_s0 = inlined_call_operand.vmem [shape: f32[2,16,16,4], index: 0, kind: input, shape index: {}]   ;;  %s12428_s1 = inlined_call_operand.vmem [shape: f32[36,32], index: 1, kind: input, shape index: {}]   ;;  %s12429_s2 = inlined_call_operand.vmem [shape: f32[1,32], index: 2, kind: input, shape index: {}]   ;;  %s12430_s3 = inlined_call_operand.vmem [shape: f32[1,32], index: 3, kind: input, shape index: {}]   ;;  %s12431_s4 = inlined_call_operand.vmem [shape: f32[288,64], index: 4, kind: input, shape index: {}]   ;;  %s12432_s5 = inlined_call_operand.vmem [shape: f32[1,64], index: 5, kind: input, shape index: {}]   ;;  %s12433_s6 = inlined_call_operand.vmem [shape: f32[1,64], index: 6, kind: input, shape index: {}]   ;;  %s12434_s7 = inlined_call_operand.vmem [shape: f32[576,128], index: 7, kind: input, shape index: {}]   ;;  %s12435_s8 = inlined_call_operand.vmem [shape: f32[1,128], index: 8, kind: input, shape index: {}]   ;;  %s12436_s9 = inlined_call_operand.vmem [shape: f32[1,128], index: 9, kind: input, shape index: {}]   ;;  %s12437_s10 = inlined_call_operand.vmem [shape: f32[6,128], index: 10, kind: input, shape index: {}]   ;;  %s12438_s11 = inlined_call_operand.vmem [shape: f32[6,1], index: 11, kind: input, shape index: {}]   ;;  %s12439_s12 = inlined_call_operand.vmem [shape: f32[128,256], index: 12, kind: input, shape index: {}]   ;;  %s12440_s13 = inlined_call_operand.vmem [shape: f32[2,6,256], index: 13, kind: output, shape index: {}]  }
   0x1 LB: > { %s7549_s26 = sadd.s32 4294967295, %s8349_s25   ;;  %p7553_p0 = scmp.ge.s32.totalorder %s8349_s25, 1  ;;  %s8349_s25 = sphi %s8435_s25, %s23_s25  }
   0x2   : > { %p387_p1 = scmp.lt.s32.totalorder %s8349_s25, 3 }
   0x4   : > { %p388_p2 = pnand %p7553_p0, %p387_p1 }
   0x6   : > { %391 = sbr.rel (%p388_p2) target bundleno = 2276 (0x8e4), region = 72 }
   0xd   : > { %vm473_vm0 = vcmask 31744   ;;  %vm476_vm1 = vcmask 25600   ;;  %v12445_v0 = vmov 0.0   ;;  %p431_p3 = scmp.lt.s32.totalorder %s7549_s26, 1  ;;  %s12441_s14 = smov 8   ;;  %v2203_v36 = vld [vmem:[%s12428_s1] sm:$0xff] }
   0xe   : > { %474 = vst.msk [vmem:[#allocation2] sm:$0xff] %vm473_vm0, %v12445_v0  ;;  %475 = vst.msk [vmem:[#allocation2 + $0x8] sm:$0xff] %vm473_vm0, %v12445_v0  ;;  %s8353_s15 = smov 4   ;;  %s8354_s16 = smov 12   ;;  %v2204_v37 = vld [vmem:[%s12428_s1 + $0x8] sm:$0xff]  ;;  %v2205_v39 = vld [vmem:[%s12428_s1 + $0x10] sm:$0xff] }
   0xf   : > { %478 = vst.msk [vmem:[#allocation2 + $0x18] sm:$0xff] %vm473_vm0, %v12445_v0  ;;  %479 = vst.msk [vmem:[#allocation2 + $0x20] sm:$0xff] %vm473_vm0, %v12445_v0  ;;  %s12453_s26 = smov (!%p431_p3, %s7549_s26), 1  ;;  %s8355_s17 = smov 16   ;;  %v8008_v38 = vpack.c.bf16 %v2204_v37, %v2203_v36  ;;  %v2206_v40 = vld [vmem:[%s12428_s1 + $0x18] sm:$0xff]  ;;  %vm2305_vm2 = vcmask 1043456  }
  0x10   : > { %481 = vst.msk [vmem:[#allocation2 + $0x30] sm:$0xff] %vm473_vm0, %v12445_v0  ;;  %482 = vst.msk [vmem:[#allocation2 + $0x38] sm:$0xff] %vm473_vm0, %v12445_v0  ;;  %s7663_s27 = sshll.u32 %s12453_s26, 8  ;;  %s8356_s18 = smov 20   ;;  %v8012_v41 = vpack.c.bf16 %v2206_v40, %v2205_v39  ;;  %v2207_v44 = vld [vmem:[%s12428_s1 + $0x20] sm:$0xf] }
  0x11   : > { %484 = vst.msk [vmem:[#allocation2 + $0x48] sm:$0xff] %vm473_vm0, %v12445_v0  ;;  %485 = vst.msk [vmem:[#allocation2 + $0x50] sm:$0xff] %vm473_vm0, %v12445_v0  ;;  %s8561_s30 = scalar_lea.vmem %s12427_s0, %s7663_s27  ;;  %s8357_s19 = smov 24   ;;  %8009 = vmatprep.subr.bf16.mxu1 %v8008_v38  ;;  %vm786_vm3 = vcmask 64544   ;;  %vm979_vm4 = vcmask 97344   ;;  %vm1172_vm5 = vcmask 130144  }
  0x12   : > { %487 = vst.msk [vmem:[#allocation2 + $0x60] sm:$0xff] %vm473_vm0, %v12445_v0  ;;  %488 = vst.msk [vmem:[#allocation2 + $0x68] sm:$0xff] %vm473_vm0, %v12445_v0  ;;  %v441_v1 = vld [vmem:[%s8561_s30] sm:$0xff]  ;;  %v442_v2 = vld [vmem:[%s8561_s30 + $0x8] sm:$0xff]  ;;  %s8358_s24 = smov 28   ;;  %8011 = vmatpush3.bf16.msra.mxu1 %v8008_v38  ;;  %s8359_s20 = smov 32  }
  0x13   : > { %490 = vst.msk [vmem:[#allocation2 + $0x78] sm:$0xff] %vm473_vm0, %v12445_v0  ;;  %491 = vst.msk [vmem:[#allocation2 + $0x80] sm:$0xff] %vm473_vm0, %v12445_v0  ;;  %v443_v3 = vld [vmem:[%s8561_s30 + $0x10] sm:$0xff]  ;;  %v444_v8 = vld [vmem:[%s8561_s30 + $0x18] sm:$0xff]  ;;  %8013 = vmatprep.subr.bf16.mxu1 %v8012_v41  ;;  %vm1365_vm6 = vcmask 162944   ;;  %vm1558_vm7 = vcmask 195744  }
  0x14   : > { %493 = vst.msk [vmem:[#allocation2 + $0x90] sm:$0xff] %vm473_vm0, %v12445_v0  ;;  %494 = vst.msk [vmem:[#allocation2 + $0x98] sm:$0xff] %vm473_vm0, %v12445_v0  ;;  %v445_v9 = vld [vmem:[%s8561_s30 + $0x20] sm:$0xff]  ;;  %v446_v10 = vld [vmem:[%s8561_s30 + $0x28] sm:$0xff]  ;;  %vm1752_vm8 = vcmask 228544   ;;  %vm1945_vm9 = vcmask 261344  }
  0x15   : > { %496 = vst.msk [vmem:[#allocation2 + $0xa8] sm:$0xff] %vm473_vm0, %v12445_v0  ;;  %497 = vst.msk [vmem:[#allocation2 + $0xb0] sm:$0xff] %vm473_vm0, %v12445_v0  ;;  %v819_v4 = vld [vmem:[#allocation2 + $0x2] sm:$0xff]  ;;  %v447_v11 = vld [vmem:[%s8561_s30 + $0x30] sm:$0xff]  ;;  %vm2138_vm10 = vcmask 294144   ;;  %vm2208_vm11 = vcmask 293888  }
  0x16   : > { %499 = vst.msk [vmem:[#allocation2 + $0xc0] sm:$0xff] %vm473_vm0, %v12445_v0  ;;  %500 = vst.msk [vmem:[#allocation2 + $0xc8] sm:$0xff] %vm473_vm0, %v12445_v0  ;;  %v626_v5 = vld [vmem:[#allocation2 + $0x1] sm:$0xff]  ;;  %883 = vrot.lane.b32.xlu1 %v819_v4, %s12441_s14  ;;  %v448_v12 = vld [vmem:[%s8561_s30 + $0x38] sm:$0xff]  ;;  %8015 = vmatpush3.bf16.msra.mxu1 %v8012_v41  ;;  %vm2644_vm12 = vcmask 261120   ;;  %vm2647_vm13 = vcmask 254976  }
  0x17   : > { %502 = vst.msk [vmem:[#allocation2 + $0xd8] sm:$0xff] %vm473_vm0, %v12445_v0  ;;  %503 = vst.msk [vmem:[#allocation2 + $0xe0] sm:$0xff] %vm473_vm0, %v12445_v0  ;;  %690 = vrot.lane.b32.xlu0 %v626_v5, %s8353_s15  ;;  %v562_v13 = vld [vmem:[#allocation2] sm:$0xff]  ;;  %v450_v15 = vld [vmem:[%s8561_s30 + $0x48] sm:$0xff]  ;;  %7803 = vmatprep.subr.msk.mxu1 %vm2305_vm2, %v2207_v44  ;;  %vm2957_vm14 = vcmask 523520   ;;  %vm3150_vm15 = vcmask 785920  }
  0x18   : > { %505 = vst.msk [vmem:[#allocation2 + $0xf0] sm:$0xff] %vm473_vm0, %v12445_v0  ;;  %506 = vst.msk [vmem:[#allocation2 + $0xf8] sm:$0xff] %vm473_vm0, %v12445_v0  ;;  %v449_v14 = vld [vmem:[%s8561_s30 + $0x40] sm:$0xff]  ;;  %v563_v16 = vld [vmem:[#allocation2 + $0x8] sm:$0xff]  ;;  %s7664_s22 = sshll.u32 %s12453_s26, 4 }
  0x19   : > { %508 = vst.msk [vmem:[#allocation2 + $0x108] sm:$0xff] %vm473_vm0, %v12445_v0  ;;  %509 = vst.msk [vmem:[#allocation2 + $0x110] sm:$0xff] %vm473_vm0, %v12445_v0  ;;  %v451_v30 = vld [vmem:[%s8561_s30 + $0x50] sm:$0xff]  ;;  %v452_v31 = vld [vmem:[%s8561_s30 + $0x58] sm:$0xff] }
  0x1a   : > { %511 = vst.msk [vmem:[#allocation2 + $0x120] sm:$0xff] %vm473_vm0, %v12445_v0  ;;  %512 = vst.msk [vmem:[#allocation2 + $0x128] sm:$0xff] %vm473_vm0, %v12445_v0  ;;  %7804 = vmatpush3.msk.msra.mxu1 %vm2305_vm2, %v2207_v44  ;;  %v453_v45 = vld [vmem:[%s8561_s30 + $0x60] sm:$0xff]  ;;  %v454_v46 = vld [vmem:[%s8561_s30 + $0x68] sm:$0xff]  ;;  %vm4872_vm2 = vcmask 517120  }
  0x1b   : > { %514 = vst.msk [vmem:[#allocation2 + $0x138] sm:$0xff] %vm473_vm0, %v12445_v0  ;;  %515 = vst.msk [vmem:[#allocation2 + $0x140] sm:$0xff] %vm473_vm0, %v12445_v0  ;;  %v455_v54 = vld [vmem:[%s8561_s30 + $0x70] sm:$0xff]  ;;  %v456_v55 = vld [vmem:[%s8561_s30 + $0x78] sm:$0xff] }
  0x1c   : > { %517 = vst.msk [vmem:[#allocation2 + $0x150] sm:$0xff] %vm473_vm0, %v12445_v0  ;;  %518 = vst.msk [vmem:[#allocation2 + $0x158] sm:$0xff] %vm473_vm0, %v12445_v0  ;;  %v457_v62 = vld [vmem:[%s8561_s30 + $0x80] sm:$0xff]  ;;  %v458_v63 = vld [vmem:[%s8561_s30 + $0x88] sm:$0xff] }
  0x1d   : > { %520 = vst.msk [vmem:[#allocation2 + $0x168] sm:$0xff] %vm473_vm0, %v12445_v0  ;;  %521 = vst.msk [vmem:[#allocation2 + $0x170] sm:$0xff] %vm473_vm0, %v12445_v0 }
  0x1e   : > { %523 = vst.msk [vmem:[#allocation2 + $0x180] sm:$0xff] %vm473_vm0, %v12445_v0  ;;  %524 = vst.msk [vmem:[#allocation2 + $0x188] sm:$0xff] %vm473_vm0, %v12445_v0 }
  0x1f   : > { %526 = vst.msk [vmem:[#allocation2 + $0x198] sm:$0xff] %vm473_vm0, %v12445_v0  ;;  %527 = vst.msk [vmem:[#allocation2 + $0x1a0] sm:$0xff] %vm473_vm0, %v12445_v0 }
  0x20   : > { %477 = vst.msk [vmem:[#allocation2 + $0x10] sm:$0x3] %vm476_vm1, %v12445_v0  ;;  %480 = vst.msk [vmem:[#allocation2 + $0x28] sm:$0x3] %vm476_vm1, %v12445_v0 }
  0x21   : > { %483 = vst.msk [vmem:[#allocation2 + $0x40] sm:$0x3] %vm476_vm1, %v12445_v0  ;;  %486 = vst.msk [vmem:[#allocation2 + $0x58] sm:$0x3] %vm476_vm1, %v12445_v0 }
  0x22   : > { %489 = vst.msk [vmem:[#allocation2 + $0x70] sm:$0x3] %vm476_vm1, %v12445_v0  ;;  %492 = vst.msk [vmem:[#allocation2 + $0x88] sm:$0x3] %vm476_vm1, %v12445_v0 }
  0x23   : > { %495 = vst.msk [vmem:[#allocation2 + $0xa0] sm:$0x3] %vm476_vm1, %v12445_v0  ;;  %498 = vst.msk [vmem:[#allocation2 + $0xb8] sm:$0x3] %vm476_vm1, %v12445_v0 }
  0x24   : > { %501 = vst.msk [vmem:[#allocation2 + $0xd0] sm:$0x3] %vm476_vm1, %v12445_v0  ;;  %504 = vst.msk [vmem:[#allocation2 + $0xe8] sm:$0x3] %vm476_vm1, %v12445_v0 }
  0x25   : > { %507 = vst.msk [vmem:[#allocation2 + $0x100] sm:$0x3] %vm476_vm1, %v12445_v0  ;;  %510 = vst.msk [vmem:[#allocation2 + $0x118] sm:$0x3] %vm476_vm1, %v12445_v0 }
  0x26   : > { %513 = vst.msk [vmem:[#allocation2 + $0x130] sm:$0x3] %vm476_vm1, %v12445_v0  ;;  %516 = vst.msk [vmem:[#allocation2 + $0x148] sm:$0x3] %vm476_vm1, %v12445_v0 }
  0x27   : > { %519 = vst.msk [vmem:[#allocation2 + $0x160] sm:$0x3] %vm476_vm1, %v12445_v0  ;;  %522 = vst.msk [vmem:[#allocation2 + $0x178] sm:$0x3] %vm476_vm1, %v12445_v0  ;;  %v820_v6 = vld [vmem:[#allocation2 + $0xa] sm:$0xff] }
  0x28   : > { %525 = vst.msk [vmem:[#allocation2 + $0x190] sm:$0x3] %vm476_vm1, %v12445_v0  ;;  %528 = vst.msk [vmem:[#allocation2 + $0x1a8] sm:$0x3] %vm476_vm1, %v12445_v0  ;;  %v627_v7 = vld [vmem:[#allocation2 + $0x9] sm:$0xff]  ;;  %885 = vrot.lane.b32.xlu1 %v820_v6, %s12441_s14  ;;  %vm4869_vm1 = vcmask 523264  }
  0x29   : > { %530 = vst.msk [vmem:[#allocation2 + $0x19] sm:$0xff] %vm473_vm0, %v441_v1  ;;  %531 = vst.msk [vmem:[#allocation2 + $0x21] sm:$0xff] %vm473_vm0, %v442_v2  ;;  %692 = vrot.lane.b32.xlu0 %v627_v7, %s8353_s15 }
  0x2a   : > { %532 = vst.msk [vmem:[#allocation2 + $0x31] sm:$0xff] %vm473_vm0, %v443_v3  ;;  %533 = vst.msk [vmem:[#allocation2 + $0x39] sm:$0xff] %vm473_vm0, %v444_v8 }
  0x2b   : > { %534 = vst.msk [vmem:[#allocation2 + $0x49] sm:$0xff] %vm473_vm0, %v445_v9  ;;  %535 = vst.msk [vmem:[#allocation2 + $0x51] sm:$0xff] %vm473_vm0, %v446_v10 }
  0x2c   : > { %536 = vst.msk [vmem:[#allocation2 + $0x61] sm:$0xff] %vm473_vm0, %v447_v11  ;;  %537 = vst.msk [vmem:[#allocation2 + $0x69] sm:$0xff] %vm473_vm0, %v448_v12 }
  0x2d   : > { %594 = vst.msk [vmem:[#allocation3] sm:$0xff] %vm473_vm0, %v562_v13  ;;  %538 = vst.msk [vmem:[#allocation2 + $0x79] sm:$0xff] %vm473_vm0, %v449_v14 }
  0x2e   : > { %539 = vst.msk [vmem:[#allocation2 + $0x81] sm:$0xff] %vm473_vm0, %v450_v15  ;;  %595 = vst.msk [vmem:[#allocation3 + $0x8] sm:$0xff] %vm473_vm0, %v563_v16 }
  0x2f   : > { %540 = vst.msk [vmem:[#allocation2 + $0x91] sm:$0xff] %vm473_vm0, %v451_v30  ;;  %541 = vst.msk [vmem:[#allocation2 + $0x99] sm:$0xff] %vm473_vm0, %v452_v31 }
  0x30   : > { %v1013_v17 = vld [vmem:[#allocation2 + $0x20] sm:$0xff]  ;;  %v1012_v18 = vld [vmem:[#allocation2 + $0x18] sm:$0xff]  ;;  %542 = vst.msk [vmem:[#allocation2 + $0xa9] sm:$0xff] %vm473_vm0, %v453_v45  ;;  %543 = vst.msk [vmem:[#allocation2 + $0xb1] sm:$0xff] %vm473_vm0, %v454_v46 }
  0x31   : > { %596 = vst.msk [vmem:[#allocation3 + $0x10] sm:$0xff] %vm473_vm0, %v1012_v18  ;;  %597 = vst.msk [vmem:[#allocation3 + $0x18] sm:$0xff] %vm473_vm0, %v1013_v17  ;;  %1078 = vrot.lane.b32.xlu1 %v1013_v17, %s8354_s16  ;;  %1076 = vrot.lane.b32.xlu0 %v1012_v18, %s8354_s16  ;;  %v1592_v19 = vld [vmem:[#allocation2 + $0x30] sm:$0xff]  ;;  %v1593_v20 = vld [vmem:[#allocation2 + $0x38] sm:$0xff] }
  0x32   : > { %v1205_v21 = vld [vmem:[#allocation2 + $0x19] sm:$0xff]  ;;  %598 = vst.msk [vmem:[#allocation3 + $0x20] sm:$0xff] %vm473_vm0, %v1592_v19  ;;  %599 = vst.msk [vmem:[#allocation3 + $0x28] sm:$0xff] %vm473_vm0, %v1593_v20  ;;  %v8595_v22 = vld [vmem:[#allocation2 + $0x48] sm:$0xff] }
  0x33   : > { %v8597_v23 = vld [vmem:[#allocation2 + $0x50] sm:$0xff]  ;;  %600 = vst.msk [vmem:[#allocation3 + $0x30] sm:$0xff] %vm473_vm0, %v8595_v22  ;;  %v8605_v24 = vld [vmem:[#allocation2 + $0x60] sm:$0xff]  ;;  %v8607_v25 = vld [vmem:[#allocation2 + $0x68] sm:$0xff] }
  0x34   : > { %601 = vst.msk [vmem:[#allocation3 + $0x38] sm:$0xff] %vm473_vm0, %v8597_v23  ;;  %v1206_v26 = vld [vmem:[#allocation2 + $0x21] sm:$0xff]  ;;  %602 = vst.msk [vmem:[#allocation3 + $0x40] sm:$0xff] %vm473_vm0, %v8605_v24  ;;  %v8613_v28 = vld [vmem:[#allocation2 + $0x78] sm:$0xff] }
  0x35   : > { %1269 = vrot.lane.b32.xlu0 %v1205_v21, %s8355_s17  ;;  %694 = vrot.lane.b32.xlu1 %v1205_v21, %s8353_s15  ;;  %v1398_v27 = vld [vmem:[#allocation2 + $0x1a] sm:$0xff]  ;;  %603 = vst.msk [vmem:[#allocation3 + $0x48] sm:$0xff] %vm473_vm0, %v8607_v25  ;;  %604 = vst.msk [vmem:[#allocation3 + $0x50] sm:$0xff] %vm473_vm0, %v8613_v28  ;;  %v1399_v32 = vld [vmem:[#allocation2 + $0x22] sm:$0xff] }
  0x36   : > { %v8615_v29 = vld [vmem:[#allocation2 + $0x80] sm:$0xff]  ;;  %v8631_v33 = vld [vmem:[#allocation2 + $0x90] sm:$0xff]  ;;  %v8633_v34 = vld [vmem:[#allocation2 + $0x98] sm:$0xff]  ;;  %544 = vst.msk [vmem:[#allocation2 + $0xc1] sm:$0xff] %vm473_vm0, %v455_v54 }
  0x37   : > { %605 = vst.msk [vmem:[#allocation3 + $0x58] sm:$0xff] %vm473_vm0, %v8615_v29  ;;  %606 = vst.msk [vmem:[#allocation3 + $0x60] sm:$0xff] %vm473_vm0, %v8631_v33  ;;  %v1785_v35 = vld [vmem:[#allocation2 + $0x31] sm:$0xff]  ;;  %v1786_v42 = vld [vmem:[#allocation2 + $0x39] sm:$0xff] }
  0x38   : > { %607 = vst.msk [vmem:[#allocation3 + $0x68] sm:$0xff] %vm473_vm0, %v8633_v34  ;;  %v1978_v43 = vld [vmem:[#allocation2 + $0x32] sm:$0xff]  ;;  %v1979_v47 = vld [vmem:[#allocation2 + $0x3a] sm:$0xff]  ;;  %v8670_v48 = vld [vmem:[#allocation2 + $0xa8] sm:$0xff] }
  0x39   : > { %1271 = vrot.lane.b32.xlu0 %v1206_v26, %s8355_s17  ;;  %1462 = vrot.lane.b32.xlu1 %v1398_v27, %s8356_s18  ;;  %v8672_v49 = vld [vmem:[#allocation2 + $0xb0] sm:$0xff]  ;;  %608 = vst.msk [vmem:[#allocation3 + $0x70] sm:$0xff] %vm473_vm0, %v8670_v48  ;;  %545 = vst.msk [vmem:[#allocation2 + $0xc9] sm:$0xff] %vm473_vm0, %v456_v55  ;;  %v1789_v58 = vld [vmem:[#allocation2 + $0x61] sm:$0xff] }
  0x3a   : > { %609 = vst.msk [vmem:[#allocation3 + $0x78] sm:$0xff] %vm473_vm0, %v8672_v49  ;;  %v1787_v50 = vld [vmem:[#allocation2 + $0x49] sm:$0xff]  ;;  %v1788_v51 = vld [vmem:[#allocation2 + $0x51] sm:$0xff]  ;;  %546 = vst.msk [vmem:[#allocation2 + $0xd9] sm:$0xff] %vm473_vm0, %v457_v62 }
  0x3b   : > { %v1980_v52 = vld [vmem:[#allocation2 + $0x4a] sm:$0xff]  ;;  %v1981_v53 = vld [vmem:[#allocation2 + $0x52] sm:$0xff]  ;;  %v1982_v60 = vld [vmem:[#allocation2 + $0x62] sm:$0xff]  ;;  %547 = vst.msk [vmem:[#allocation2 + $0xe1] sm:$0xff] %vm473_vm0, %v458_v63 }
  0x3c   : > { %v1790_v59 = vld [vmem:[#allocation2 + $0x69] sm:$0xff]  ;;  %v8748_v5 = vld [vmem:[#allocation2 + $0x79] sm:$0xff]  ;;  %v8750_v6 = vld [vmem:[#allocation2 + $0x81] sm:$0xff]  ;;  %2650 = vst.msk [vmem:[#allocation4 + $0x20] sm:$0xff] %vm2644_vm12, %v12445_v0 }
  0x3d   : > { %696 = vrot.lane.b32.xlu0 %v1206_v26, %s8353_s15  ;;  %887 = vrot.lane.b32.xlu1 %v1398_v27, %s12441_s14  ;;  %v8702_v56 = vld [vmem:[#allocation2 + $0xc0] sm:$0xff]  ;;  %v1983_v61 = vld [vmem:[#allocation2 + $0x6a] sm:$0xff]  ;;  %2651 = vst.msk [vmem:[#allocation4 + $0x28] sm:$0x3] %vm2647_vm13, %v12445_v0  ;;  %2648 = vst.msk [vmem:[#allocation4 + $0x10] sm:$0x3] %vm2647_vm13, %v12445_v0 }
  0x3e   : > { %610 = vst.msk [vmem:[#allocation3 + $0x80] sm:$0xff] %vm473_vm0, %v8702_v56  ;;  %v8758_v9 = vld [vmem:[#allocation2 + $0x7a] sm:$0xff]  ;;  %v8765_v12 = vld [vmem:[#allocation2 + $0x82] sm:$0xff]  ;;  %v459_v21 = vld [vmem:[%s8561_s30 + $0x90] sm:$0xff] }
  0x3f   : > { %548 = vst.msk [vmem:[#allocation2 + $0xf1] sm:$0xff] %vm473_vm0, %v459_v21  ;;  %v8814_v30 = vld [vmem:[#allocation2 + $0x99] sm:$0xff] }
  0x40   : > { %v8704_v57 = vld [vmem:[#allocation2 + $0xc8] sm:$0xff]  ;;  %v8830_v38 = vld [vmem:[#allocation2 + $0x9a] sm:$0xff]  ;;  %2645 = vst.msk [vmem:[#allocation4] sm:$0xff] %vm2644_vm12, %v12445_v0  ;;  %2646 = vst.msk [vmem:[#allocation4 + $0x8] sm:$0xff] %vm2644_vm12, %v12445_v0 }
  0x41   : > { %1464 = vrot.lane.b32.xlu0 %v1399_v32, %s8356_s18  ;;  %1656 = vrot.lane.b32.xlu1 %v1592_v19, %s8357_s19  ;;  %611 = vst.msk [vmem:[#allocation3 + $0x88] sm:$0xff] %vm473_vm0, %v8704_v57  ;;  %v8735_v3 = vld [vmem:[#allocation2 + $0xd8] sm:$0xff] }
  0x42   : > { %v8737_v4 = vld [vmem:[#allocation2 + $0xe0] sm:$0xff]  ;;  %612 = vst.msk [vmem:[#allocation3 + $0x90] sm:$0xff] %vm473_vm0, %v8735_v3 }
  0x43   : > { %613 = vst.msk [vmem:[#allocation3 + $0x98] sm:$0xff] %vm473_vm0, %v8737_v4 }
  0x44   : > { %2649 = vst.msk [vmem:[#allocation4 + $0x18] sm:$0xff] %vm2644_vm12, %v12445_v0  ;;  %2652 = vst.msk [vmem:[#allocation4 + $0x30] sm:$0xff] %vm2644_vm12, %v12445_v0 }
  0x45   : > { %889 = vrot.lane.b32.xlu0 %v1399_v32, %s12441_s14  ;;  %1080 = vrot.lane.b32.xlu1 %v1592_v19, %s8354_s16  ;;  %s12447_s14 = smov 8   ;;  %2653 = vst.msk [vmem:[#allocation4 + $0x38] sm:$0xff] %vm2644_vm12, %v12445_v0  ;;  %2655 = vst.msk [vmem:[#allocation4 + $0x48] sm:$0xff] %vm2644_vm12, %v12445_v0 }
  0x46   : > { %v8800_v27 = vld [vmem:[#allocation2 + $0xf0] sm:$0xff]  ;;  %2654 = vst.msk [vmem:[#allocation4 + $0x40] sm:$0x3] %vm2647_vm13, %v12445_v0  ;;  %2657 = vst.msk [vmem:[#allocation4 + $0x58] sm:$0x3] %vm2647_vm13, %v12445_v0 }
  0x47   : > { %614 = vst.msk [vmem:[#allocation3 + $0xa0] sm:$0xff] %vm473_vm0, %v8800_v27 }
  0x48   : > { %2656 = vst.msk [vmem:[#allocation4 + $0x50] sm:$0xff] %vm2644_vm12, %v12445_v0  ;;  %2658 = vst.msk [vmem:[#allocation4 + $0x60] sm:$0xff] %vm2644_vm12, %v12445_v0 }
  0x49   : > { %1658 = vrot.lane.b32.xlu0 %v1593_v20, %s8357_s19  ;;  %1849 = vrot.lane.b32.xlu1 %v1785_v35, %s8358_s24  ;;  %2659 = vst.msk [vmem:[#allocation4 + $0x68] sm:$0xff] %vm2644_vm12, %v12445_v0  ;;  %2661 = vst.msk [vmem:[#allocation4 + $0x78] sm:$0xff] %vm2644_vm12, %v12445_v0 }
  0x4a   : > { %2660 = vst.msk [vmem:[#allocation4 + $0x70] sm:$0x3] %vm2647_vm13, %v12445_v0  ;;  %2663 = vst.msk [vmem:[#allocation4 + $0x88] sm:$0x3] %vm2647_vm13, %v12445_v0 }
  0x4b   : > { %2662 = vst.msk [vmem:[#allocation4 + $0x80] sm:$0xff] %vm2644_vm12, %v12445_v0  ;;  %2664 = vst.msk [vmem:[#allocation4 + $0x90] sm:$0xff] %vm2644_vm12, %v12445_v0 }
  0x4c   : > { %2665 = vst.msk [vmem:[#allocation4 + $0x98] sm:$0xff] %vm2644_vm12, %v12445_v0  ;;  %2667 = vst.msk [vmem:[#allocation4 + $0xa8] sm:$0xff] %vm2644_vm12, %v12445_v0 }
  0x4d   : > { %1082 = vrot.lane.b32.xlu0 %v1593_v20, %s8354_s16  ;;  %1273 = vrot.lane.b32.xlu1 %v1785_v35, %s8355_s17  ;;  %2666 = vst.msk [vmem:[#allocation4 + $0xa0] sm:$0x3] %vm2647_vm13, %v12445_v0  ;;  %2669 = vst.msk [vmem:[#allocation4 + $0xb8] sm:$0x3] %vm2647_vm13, %v12445_v0 }
  0x4e   : > { %2668 = vst.msk [vmem:[#allocation4 + $0xb0] sm:$0xff] %vm2644_vm12, %v12445_v0  ;;  %2670 = vst.msk [vmem:[#allocation4 + $0xc0] sm:$0xff] %vm2644_vm12, %v12445_v0 }
  0x4f   : > { %2671 = vst.msk [vmem:[#allocation4 + $0xc8] sm:$0xff] %vm2644_vm12, %v12445_v0  ;;  %2673 = vst.msk [vmem:[#allocation4 + $0xd8] sm:$0xff] %vm2644_vm12, %v12445_v0 }
  0x50   : > { %2672 = vst.msk [vmem:[#allocation4 + $0xd0] sm:$0x3] %vm2647_vm13, %v12445_v0  ;;  %2675 = vst.msk [vmem:[#allocation4 + $0xe8] sm:$0x3] %vm2647_vm13, %v12445_v0 }
  0x51   : > { %1851 = vrot.lane.b32.xlu0 %v1786_v42, %s8358_s24  ;;  %2042 = vrot.lane.b32.xlu1 %v1978_v43, %s8359_s20  ;;  %2674 = vst.msk [vmem:[#allocation4 + $0xe0] sm:$0xff] %vm2644_vm12, %v12445_v0  ;;  %2676 = vst.msk [vmem:[#allocation4 + $0xf0] sm:$0xff] %vm2644_vm12, %v12445_v0 }
  0x52   : > { %2677 = vst.msk [vmem:[#allocation4 + $0xf8] sm:$0xff] %vm2644_vm12, %v12445_v0  ;;  %2679 = vst.msk [vmem:[#allocation4 + $0x108] sm:$0xff] %vm2644_vm12, %v12445_v0 }
  0x53   : > { %2678 = vst.msk [vmem:[#allocation4 + $0x100] sm:$0x3] %vm2647_vm13, %v12445_v0  ;;  %2681 = vst.msk [vmem:[#allocation4 + $0x118] sm:$0x3] %vm2647_vm13, %v12445_v0 }
  0x54   : > { %2680 = vst.msk [vmem:[#allocation4 + $0x110] sm:$0xff] %vm2644_vm12, %v12445_v0  ;;  %2682 = vst.msk [vmem:[#allocation4 + $0x120] sm:$0xff] %vm2644_vm12, %v12445_v0 }
  0x55   : > { %1275 = vrot.lane.b32.xlu0 %v1786_v42, %s8355_s17  ;;  %1466 = vrot.lane.b32.xlu1 %v1978_v43, %s8356_s18  ;;  %2683 = vst.msk [vmem:[#allocation4 + $0x128] sm:$0xff] %vm2644_vm12, %v12445_v0  ;;  %2685 = vst.msk [vmem:[#allocation4 + $0x138] sm:$0xff] %vm2644_vm12, %v12445_v0 }
  0x56   : > { %2684 = vst.msk [vmem:[#allocation4 + $0x130] sm:$0x3] %vm2647_vm13, %v12445_v0  ;;  %2687 = vst.msk [vmem:[#allocation4 + $0x148] sm:$0x3] %vm2647_vm13, %v12445_v0 }
  0x57   : > { %2686 = vst.msk [vmem:[#allocation4 + $0x140] sm:$0xff] %vm2644_vm12, %v12445_v0  ;;  %2688 = vst.msk [vmem:[#allocation4 + $0x150] sm:$0xff] %vm2644_vm12, %v12445_v0 }
  0x58   : > { %2689 = vst.msk [vmem:[#allocation4 + $0x158] sm:$0xff] %vm2644_vm12, %v12445_v0  ;;  %2691 = vst.msk [vmem:[#allocation4 + $0x168] sm:$0xff] %vm2644_vm12, %v12445_v0 }
  0x59   : > { %2044 = vrot.lane.b32.xlu0 %v1979_v47, %s8359_s20  ;;  %1468 = vrot.lane.b32.xlu1 %v1979_v47, %s8356_s18  ;;  %2690 = vst.msk [vmem:[#allocation4 + $0x160] sm:$0x3] %vm2647_vm13, %v12445_v0  ;;  %2693 = vst.msk [vmem:[#allocation4 + $0x178] sm:$0x3] %vm2647_vm13, %v12445_v0 }
  0x5a   : > { %2692 = vst.msk [vmem:[#allocation4 + $0x170] sm:$0xff] %vm2644_vm12, %v12445_v0  ;;  %2694 = vst.msk [vmem:[#allocation4 + $0x180] sm:$0xff] %vm2644_vm12, %v12445_v0 }
  0x5b   : > { %2695 = vst.msk [vmem:[#allocation4 + $0x188] sm:$0xff] %vm2644_vm12, %v12445_v0  ;;  %2697 = vst.msk [vmem:[#allocation4 + $0x198] sm:$0xff] %vm2644_vm12, %v12445_v0 }
  0x5c   : > { %2696 = vst.msk [vmem:[#allocation4 + $0x190] sm:$0x3] %vm2647_vm13, %v12445_v0  ;;  %2699 = vst.msk [vmem:[#allocation4 + $0x1a8] sm:$0x3] %vm2647_vm13, %v12445_v0 }
  0x5d   : > { %1660 = vrot.lane.b32.xlu0 %v8595_v22, %s8357_s19  ;;  %1662 = vrot.lane.b32.xlu1 %v8597_v23, %s8357_s19  ;;  %2698 = vst.msk [vmem:[#allocation4 + $0x1a0] sm:$0xff] %vm2644_vm12, %v12445_v0 }
  0x5e   : > { %4874 = vst.msk [vmem:[#allocation6 + $0x18] sm:$0xff] %vm4869_vm1, %v12445_v0  ;;  %4875 = vst.msk [vmem:[#allocation6 + $0x20] sm:$0xff] %vm4869_vm1, %v12445_v0 }
  0x5f   : > { %4870 = vst.msk [vmem:[#allocation6] sm:$0xff] %vm4869_vm1, %v12445_v0  ;;  %4871 = vst.msk [vmem:[#allocation6 + $0x8] sm:$0xff] %vm4869_vm1, %v12445_v0 }
  0x60   : > { %4877 = vst.msk [vmem:[#allocation6 + $0x30] sm:$0xff] %vm4869_vm1, %v12445_v0  ;;  %4878 = vst.msk [vmem:[#allocation6 + $0x38] sm:$0xff] %vm4869_vm1, %v12445_v0 }
  0x61   : > { %1853 = vrot.lane.b32.xlu0 %v1787_v50, %s8358_s24  ;;  %1855 = vrot.lane.b32.xlu1 %v1788_v51, %s8358_s24  ;;  %4880 = vst.msk [vmem:[#allocation6 + $0x48] sm:$0xff] %vm4869_vm1, %v12445_v0  ;;  %4881 = vst.msk [vmem:[#allocation6 + $0x50] sm:$0xff] %vm4869_vm1, %v12445_v0 }
  0x62   : > { %4883 = vst.msk [vmem:[#allocation6 + $0x60] sm:$0xff] %vm4869_vm1, %v12445_v0  ;;  %4884 = vst.msk [vmem:[#allocation6 + $0x68] sm:$0xff] %vm4869_vm1, %v12445_v0 }
  0x63   : > { %4886 = vst.msk [vmem:[#allocation6 + $0x78] sm:$0xff] %vm4869_vm1, %v12445_v0  ;;  %4887 = vst.msk [vmem:[#allocation6 + $0x80] sm:$0xff] %vm4869_vm1, %v12445_v0 }
  0x64   : > { %4889 = vst.msk [vmem:[#allocation6 + $0x90] sm:$0xff] %vm4869_vm1, %v12445_v0  ;;  %4890 = vst.msk [vmem:[#allocation6 + $0x98] sm:$0xff] %vm4869_vm1, %v12445_v0 }
  0x65   : > { %2046 = vrot.lane.b32.xlu0 %v1980_v52, %s8359_s20  ;;  %698 = vrot.lane.b32.xlu1 %v1785_v35, %s8353_s15  ;;  %v8822_v35 = vld [vmem:[#allocation2 + $0x92] sm:$0xff]  ;;  %4892 = vst.msk [vmem:[#allocation6 + $0xa8] sm:$0xff] %vm4869_vm1, %v12445_v0  ;;  %4893 = vst.msk [vmem:[#allocation6 + $0xb0] sm:$0xff] %vm4869_vm1, %v12445_v0 }
  0x66   : > { %4895 = vst.msk [vmem:[#allocation6 + $0xc0] sm:$0xff] %vm4869_vm1, %v12445_v0  ;;  %4896 = vst.msk [vmem:[#allocation6 + $0xc8] sm:$0xff] %vm4869_vm1, %v12445_v0 }
  0x67   : > { %4898 = vst.msk [vmem:[#allocation6 + $0xd8] sm:$0xff] %vm4869_vm1, %v12445_v0  ;;  %4899 = vst.msk [vmem:[#allocation6 + $0xe0] sm:$0xff] %vm4869_vm1, %v12445_v0 }
  0x68   : > { %4901 = vst.msk [vmem:[#allocation6 + $0xf0] sm:$0xff] %vm4869_vm1, %v12445_v0  ;;  %4902 = vst.msk [vmem:[#allocation6 + $0xf8] sm:$0xff] %vm4869_vm1, %v12445_v0 }
  0x69   : > { %2048 = vrot.lane.b32.xlu0 %v1981_v53, %s8359_s20  ;;  %700 = vrot.lane.b32.xlu1 %v1786_v42, %s8353_s15  ;;  %4904 = vst.msk [vmem:[#allocation6 + $0x108] sm:$0xff] %vm4869_vm1, %v12445_v0  ;;  %4905 = vst.msk [vmem:[#allocation6 + $0x110] sm:$0xff] %vm4869_vm1, %v12445_v0 }
  0x6a   : > { %4907 = vst.msk [vmem:[#allocation6 + $0x120] sm:$0xff] %vm4869_vm1, %v12445_v0  ;;  %4908 = vst.msk [vmem:[#allocation6 + $0x128] sm:$0xff] %vm4869_vm1, %v12445_v0 }
  0x6b   : > { %4910 = vst.msk [vmem:[#allocation6 + $0x138] sm:$0xff] %vm4869_vm1, %v12445_v0  ;;  %4911 = vst.msk [vmem:[#allocation6 + $0x140] sm:$0xff] %vm4869_vm1, %v12445_v0 }
  0x6c   : > { %4913 = vst.msk [vmem:[#allocation6 + $0x150] sm:$0xff] %vm4869_vm1, %v12445_v0  ;;  %4914 = vst.msk [vmem:[#allocation6 + $0x158] sm:$0xff] %vm4869_vm1, %v12445_v0 }
  0x6d   : > { %891 = vrot.lane.b32.xlu0 %v1978_v43, %s12447_s14  ;;  %893 = vrot.lane.b32.xlu1 %v1979_v47, %s12447_s14  ;;  %4916 = vst.msk [vmem:[#allocation6 + $0x168] sm:$0xff] %vm4869_vm1, %v12445_v0  ;;  %4917 = vst.msk [vmem:[#allocation6 + $0x170] sm:$0xff] %vm4869_vm1, %v12445_v0 }
  0x6e   : > { %4919 = vst.msk [vmem:[#allocation6 + $0x180] sm:$0xff] %vm4869_vm1, %v12445_v0  ;;  %4920 = vst.msk [vmem:[#allocation6 + $0x188] sm:$0xff] %vm4869_vm1, %v12445_v0 }
  0x6f   : > { %4922 = vst.msk [vmem:[#allocation6 + $0x198] sm:$0xff] %vm4869_vm1, %v12445_v0  ;;  %4923 = vst.msk [vmem:[#allocation6 + $0x1a0] sm:$0xff] %vm4869_vm1, %v12445_v0 }
  0x70   : > { %4876 = vst.msk [vmem:[#allocation6 + $0x28] sm:$0x3] %vm4872_vm2, %v12445_v0  ;;  %4873 = vst.msk [vmem:[#allocation6 + $0x10] sm:$0x3] %vm4872_vm2, %v12445_v0 }
  0x71   : > { %1084 = vrot.lane.b32.xlu0 %v8595_v22, %s8354_s16  ;;  %1086 = vrot.lane.b32.xlu1 %v8597_v23, %s8354_s16  ;;  %v460_v22 = vld [vmem:[%s8561_s30 + $0x98] sm:$0xff]  ;;  %4879 = vst.msk [vmem:[#allocation6 + $0x40] sm:$0x3] %vm4872_vm2, %v12445_v0  ;;  %4882 = vst.msk [vmem:[#allocation6 + $0x58] sm:$0x3] %vm4872_vm2, %v12445_v0 }
  0x72   : > { %549 = vst.msk [vmem:[#allocation2 + $0xf9] sm:$0xff] %vm473_vm0, %v460_v22  ;;  %v8952_v22 = vld [vmem:[#allocation2 + $0xc1] sm:$0xff] }
  0x73   : > { %4885 = vst.msk [vmem:[#allocation6 + $0x70] sm:$0x3] %vm4872_vm2, %v12445_v0  ;;  %4888 = vst.msk [vmem:[#allocation6 + $0x88] sm:$0x3] %vm4872_vm2, %v12445_v0 }
  0x74   : > { %4891 = vst.msk [vmem:[#allocation6 + $0xa0] sm:$0x3] %vm4872_vm2, %v12445_v0  ;;  %4894 = vst.msk [vmem:[#allocation6 + $0xb8] sm:$0x3] %vm4872_vm2, %v12445_v0 }
  0x75   : > { %1277 = vrot.lane.b32.xlu0 %v1787_v50, %s8355_s17  ;;  %1279 = vrot.lane.b32.xlu1 %v1788_v51, %s8355_s17  ;;  %4897 = vst.msk [vmem:[#allocation6 + $0xd0] sm:$0x3] %vm4872_vm2, %v12445_v0  ;;  %4900 = vst.msk [vmem:[#allocation6 + $0xe8] sm:$0x3] %vm4872_vm2, %v12445_v0 }
  0x76   : > { %4903 = vst.msk [vmem:[#allocation6 + $0x100] sm:$0x3] %vm4872_vm2, %v12445_v0  ;;  %4906 = vst.msk [vmem:[#allocation6 + $0x118] sm:$0x3] %vm4872_vm2, %v12445_v0 }
  0x77   : > { %4909 = vst.msk [vmem:[#allocation6 + $0x130] sm:$0x3] %vm4872_vm2, %v12445_v0  ;;  %4912 = vst.msk [vmem:[#allocation6 + $0x148] sm:$0x3] %vm4872_vm2, %v12445_v0 }
  0x78   : > { %4915 = vst.msk [vmem:[#allocation6 + $0x160] sm:$0x3] %vm4872_vm2, %v12445_v0  ;;  %4918 = vst.msk [vmem:[#allocation6 + $0x178] sm:$0x3] %vm4872_vm2, %v12445_v0 }
  0x79   : > { %1470 = vrot.lane.b32.xlu0 %v1980_v52, %s8356_s18  ;;  %1472 = vrot.lane.b32.xlu1 %v1981_v53, %s8356_s18  ;;  %4921 = vst.msk [vmem:[#allocation6 + $0x190] sm:$0x3] %vm4872_vm2, %v12445_v0  ;;  %4924 = vst.msk [vmem:[#allocation6 + $0x1a8] sm:$0x3] %vm4872_vm2, %v12445_v0 }
  0x7d   : > { %1664 = vrot.lane.b32.xlu0 %v8605_v24, %s8357_s19  ;;  %1666 = vrot.lane.b32.xlu1 %v8607_v25, %s8357_s19 }
  0x81   : > { %1857 = vrot.lane.b32.xlu0 %v1789_v58, %s8358_s24  ;;  %1859 = vrot.lane.b32.xlu1 %v1790_v59, %s8358_s24 }
  0x85   : > { %2050 = vrot.lane.b32.xlu0 %v1982_v60, %s8359_s20  ;;  %702 = vrot.lane.b32.xlu1 %v1787_v50, %s8353_s15 }
  0x88   : > { %v884_v1 = vpop.permute.xlu1 %883 }
  0x89   : > { %2052 = vrot.lane.b32.xlu0 %v1983_v61, %s8359_s20  ;;  %704 = vrot.lane.b32.xlu1 %v1788_v51, %s8353_s15  ;;  %v691_v2 = vpop.permute.xlu0 %690  ;;  %v461_v51 = vld [vmem:[%s8561_s30 + $0xa0] sm:$0xff] }
  0x8a   : > { %787 = vst.msk [vmem:[#allocation3] sm:$0xff] %vm786_vm3, %v691_v2 }
  0x8b   : > { %980 = vst.msk [vmem:[#allocation3] sm:$0xff] %vm979_vm4, %v884_v1  ;;  %v8893_v1 = vld [vmem:[#allocation2 + $0xaa] sm:$0xff] }
  0x8c   : > { %550 = vst.msk [vmem:[#allocation2 + $0x109] sm:$0xff] %vm473_vm0, %v461_v51  ;;  %v9018_v51 = vld [vmem:[#allocation2 + $0xd9] sm:$0xff] }
  0x8d   : > { %895 = vrot.lane.b32.xlu0 %v1980_v52, %s12447_s14  ;;  %897 = vrot.lane.b32.xlu1 %v1981_v53, %s12447_s14  ;;  %v462_v52 = vld [vmem:[%s8561_s30 + $0xa8] sm:$0xff] }
  0x8e   : > { %551 = vst.msk [vmem:[#allocation2 + $0x111] sm:$0xff] %vm473_vm0, %v462_v52  ;;  %v9020_v52 = vld [vmem:[#allocation2 + $0xe1] sm:$0xff] }
  0x91   : > { %1088 = vrot.lane.b32.xlu0 %v8605_v24, %s8354_s16  ;;  %1090 = vrot.lane.b32.xlu1 %v8607_v25, %s8354_s16 }
  0x93   : > { %v8870_v55 = vld [vmem:[#allocation2 + $0x108] sm:$0xff] }
  0x94   : > { %616 = vst.msk [vmem:[#allocation3 + $0xb0] sm:$0xff] %vm473_vm0, %v8870_v55 }
  0x95   : > { %1281 = vrot.lane.b32.xlu0 %v1789_v58, %s8355_s17  ;;  %1283 = vrot.lane.b32.xlu1 %v1790_v59, %s8355_s17 }
  0x99   : > { %1474 = vrot.lane.b32.xlu0 %v1982_v60, %s8356_s18  ;;  %1476 = vrot.lane.b32.xlu1 %v1983_v61, %s8356_s18 }
  0x9a   : > { %v886_v7 = vpop.permute.xlu1 %885 }
  0x9b   : > { %v693_v8 = vpop.permute.xlu0 %692 }
  0x9c   : > { %788 = vst.msk [vmem:[#allocation3 + $0x8] sm:$0xff] %vm786_vm3, %v693_v8 }
  0x9d   : > { %1668 = vrot.lane.b32.xlu0 %v8613_v28, %s8357_s19  ;;  %1670 = vrot.lane.b32.xlu1 %v8615_v29, %s8357_s19  ;;  %981 = vst.msk [vmem:[#allocation3 + $0x8] sm:$0xff] %vm979_vm4, %v886_v7  ;;  %v8902_v7 = vld [vmem:[#allocation2 + $0xb2] sm:$0xff] }
  0xa1   : > { %1861 = vrot.lane.b32.xlu0 %v8748_v5, %s8358_s24  ;;  %1863 = vrot.lane.b32.xlu1 %v8750_v6, %s8358_s24 }
  0xa3   : > { %v1079_v10 = vpop.permute.xlu1 %1078  ;;  %v1077_v11 = vpop.permute.xlu0 %1076 }
  0xa4   : > { %1174 = vst.msk [vmem:[#allocation3 + $0x8] sm:$0xff] %vm1172_vm5, %v1079_v10  ;;  %1173 = vst.msk [vmem:[#allocation3] sm:$0xff] %vm1172_vm5, %v1077_v11 }
  0xa5   : > { %2054 = vrot.lane.b32.xlu0 %v8758_v9, %s8359_s20  ;;  %706 = vrot.lane.b32.xlu1 %v1789_v58, %s8353_s15  ;;  %v8872_v58 = vld [vmem:[#allocation2 + $0x110] sm:$0xff] }
  0xa6   : > { %617 = vst.msk [vmem:[#allocation3 + $0xb8] sm:$0xff] %vm473_vm0, %v8872_v58 }
  0xa7   : > { %v1270_v13 = vpop.permute.xlu0 %1269  ;;  %v695_v14 = vpop.permute.xlu1 %694 }
  0xa8   : > { %1366 = vst.msk [vmem:[#allocation3] sm:$0xff] %vm1365_vm6, %v1270_v13 }
  0xa9   : > { %789 = vst.msk [vmem:[#allocation3 + $0x10] sm:$0xff] %vm786_vm3, %v695_v14  ;;  %2056 = vrot.lane.b32.xlu0 %v8765_v12, %s8359_s20  ;;  %708 = vrot.lane.b32.xlu1 %v1790_v59, %s8353_s15  ;;  %v8882_v59 = vld [vmem:[#allocation2 + $0xa9] sm:$0xff] }
  0xab   : > { %v1272_v15 = vpop.permute.xlu0 %1271  ;;  %v1463_v16 = vpop.permute.xlu1 %1462 }
  0xac   : > { %1367 = vst.msk [vmem:[#allocation3 + $0x8] sm:$0xff] %vm1365_vm6, %v1272_v15 }
  0xad   : > { %1559 = vst.msk [vmem:[#allocation3] sm:$0xff] %vm1558_vm7, %v1463_v16  ;;  %899 = vrot.lane.b32.xlu0 %v1982_v60, %s12447_s14  ;;  %901 = vrot.lane.b32.xlu1 %v1983_v61, %s12447_s14  ;;  %v8884_v60 = vld [vmem:[#allocation2 + $0xb1] sm:$0xff] }
  0xae   : > { %v463_v16 = vld [vmem:[%s8561_s30 + $0xb0] sm:$0xff] }
  0xaf   : > { %v697_v17 = vpop.permute.xlu0 %696  ;;  %v888_v18 = vpop.permute.xlu1 %887  ;;  %552 = vst.msk [vmem:[#allocation2 + $0x121] sm:$0xff] %vm473_vm0, %v463_v16  ;;  %v9192_v16 = vld [vmem:[#allocation2 + $0xf1] sm:$0xff] }
  0xb0   : > { %790 = vst.msk [vmem:[#allocation3 + $0x18] sm:$0xff] %vm786_vm3, %v697_v17  ;;  %v464_v17 = vld [vmem:[%s8561_s30 + $0xb8] sm:$0xff] }
  0xb1   : > { %982 = vst.msk [vmem:[#allocation3 + $0x10] sm:$0xff] %vm979_vm4, %v888_v18  ;;  %1092 = vrot.lane.b32.xlu0 %v8613_v28, %s8354_s16  ;;  %1094 = vrot.lane.b32.xlu1 %v8615_v29, %s8354_s16  ;;  %v8802_v28 = vld [vmem:[#allocation2 + $0xf8] sm:$0xff] }
  0xb2   : > { %615 = vst.msk [vmem:[#allocation3 + $0xa8] sm:$0xff] %vm473_vm0, %v8802_v28  ;;  %v8812_v29 = vld [vmem:[#allocation2 + $0x91] sm:$0xff]  ;;  %553 = vst.msk [vmem:[#allocation2 + $0x129] sm:$0xff] %vm473_vm0, %v464_v17  ;;  %v9194_v17 = vld [vmem:[#allocation2 + $0xf9] sm:$0xff] }
  0xb3   : > { %v1465_v19 = vpop.permute.xlu0 %1464  ;;  %v1657_v20 = vpop.permute.xlu1 %1656 }
  0xb4   : > { %1560 = vst.msk [vmem:[#allocation3 + $0x8] sm:$0xff] %vm1558_vm7, %v1465_v19 }
  0xb5   : > { %1753 = vst.msk [vmem:[#allocation3] sm:$0xff] %vm1752_vm8, %v1657_v20  ;;  %1285 = vrot.lane.b32.xlu0 %v8748_v5, %s8355_s17  ;;  %1287 = vrot.lane.b32.xlu1 %v8750_v6, %s8355_s17 }
  0xb6   : > { %v8940_v20 = vld [vmem:[#allocation2 + $0x120] sm:$0xff] }
  0xb7   : > { %v890_v23 = vpop.permute.xlu0 %889  ;;  %v1081_v24 = vpop.permute.xlu1 %1080  ;;  %618 = vst.msk [vmem:[#allocation3 + $0xc0] sm:$0xff] %vm473_vm0, %v8940_v20 }
  0xb8   : > { %983 = vst.msk [vmem:[#allocation3 + $0x18] sm:$0xff] %vm979_vm4, %v890_v23  ;;  %v8954_v23 = vld [vmem:[#allocation2 + $0xc9] sm:$0xff] }
  0xb9   : > { %1175 = vst.msk [vmem:[#allocation3 + $0x10] sm:$0xff] %vm1172_vm5, %v1081_v24  ;;  %1478 = vrot.lane.b32.xlu0 %v8758_v9, %s8356_s18  ;;  %1480 = vrot.lane.b32.xlu1 %v8765_v12, %s8356_s18  ;;  %v8942_v21 = vld [vmem:[#allocation2 + $0x128] sm:$0xff] }
  0xba   : > { %619 = vst.msk [vmem:[#allocation3 + $0xc8] sm:$0xff] %vm473_vm0, %v8942_v21 }
  0xbb   : > { %v1659_v25 = vpop.permute.xlu0 %1658  ;;  %v1850_v26 = vpop.permute.xlu1 %1849 }
  0xbc   : > { %1754 = vst.msk [vmem:[#allocation3 + $0x8] sm:$0xff] %vm1752_vm8, %v1659_v25 }
  0xbd   : > { %1946 = vst.msk [vmem:[#allocation3] sm:$0xff] %vm1945_vm9, %v1850_v26  ;;  %1672 = vrot.lane.b32.xlu0 %v8631_v33, %s8357_s19  ;;  %1674 = vrot.lane.b32.xlu1 %v8633_v34, %s8357_s19 }
  0xbf   : > { %v1083_v31 = vpop.permute.xlu0 %1082  ;;  %v1274_v32 = vpop.permute.xlu1 %1273 }
  0xc0   : > { %1176 = vst.msk [vmem:[#allocation3 + $0x18] sm:$0xff] %vm1172_vm5, %v1083_v31 }
  0xc1   : > { %1368 = vst.msk [vmem:[#allocation3 + $0x10] sm:$0xff] %vm1365_vm6, %v1274_v32  ;;  %1865 = vrot.lane.b32.xlu0 %v8812_v29, %s8358_s24  ;;  %1867 = vrot.lane.b32.xlu1 %v8814_v30, %s8358_s24 }
  0xc3   : > { %v1852_v36 = vpop.permute.xlu0 %1851  ;;  %v2043_v37 = vpop.permute.xlu1 %2042 }
  0xc4   : > { %1947 = vst.msk [vmem:[#allocation3 + $0x8] sm:$0xff] %vm1945_vm9, %v1852_v36 }
  0xc5   : > { %2139 = vst.msk [vmem:[#allocation3] sm:$0xff] %vm2138_vm10, %v2043_v37  ;;  %2058 = vrot.lane.b32.xlu0 %v8822_v35, %s8359_s20  ;;  %710 = vrot.lane.b32.xlu1 %v8748_v5, %s8353_s15 }
  0xc7   : > { %v1276_v39 = vpop.permute.xlu0 %1275  ;;  %v1467_v40 = vpop.permute.xlu1 %1466 }
  0xc8   : > { %1369 = vst.msk [vmem:[#allocation3 + $0x18] sm:$0xff] %vm1365_vm6, %v1276_v39 }
  0xc9   : > { %1561 = vst.msk [vmem:[#allocation3 + $0x10] sm:$0xff] %vm1558_vm7, %v1467_v40  ;;  %2060 = vrot.lane.b32.xlu0 %v8830_v38, %s8359_s20  ;;  %712 = vrot.lane.b32.xlu1 %v8750_v6, %s8353_s15 }
  0xcb   : > { %v2045_v41 = vpop.permute.xlu0 %2044  ;;  %v1469_v42 = vpop.permute.xlu1 %1468 }
  0xcc   : > { %v2171_v43 = vld [vmem:[#allocation3] sm:$0xff]  ;;  %2140 = vst.msk [vmem:[#allocation3 + $0x8] sm:$0xff] %vm2138_vm10, %v2045_v41 }
  0xcd   : > { %1562 = vst.msk [vmem:[#allocation3 + $0x18] sm:$0xff] %vm1558_vm7, %v1469_v42  ;;  %7805 = vmatprep.mubr.msk.f32.mxu1 %vm2208_vm11, %v2171_v43  ;;  %903 = vrot.lane.b32.xlu0 %v8758_v9, %s12447_s14 }
  0xce   : > { %905 = vrot.lane.b32.xlu1 %v8765_v12, %s12447_s14 }
  0xcf   : > { %v1661_v44 = vpop.permute.xlu0 %1660  ;;  %v1663_v45 = vpop.permute.xlu1 %1662 }
  0xd0   : > { %1755 = vst.msk [vmem:[#allocation3 + $0x10] sm:$0xff] %vm1752_vm8, %v1661_v44  ;;  %1756 = vst.msk [vmem:[#allocation3 + $0x18] sm:$0xff] %vm1752_vm8, %v1663_v45  ;;  %v465_v44 = vld [vmem:[%s8561_s30 + $0xc0] sm:$0xff]  ;;  %v466_v45 = vld [vmem:[%s8561_s30 + $0xc8] sm:$0xff] }
  0xd1   : > { %1096 = vrot.lane.b32.xlu0 %v8631_v33, %s8354_s16  ;;  %554 = vst.msk [vmem:[#allocation2 + $0x139] sm:$0xff] %vm473_vm0, %v465_v44  ;;  %555 = vst.msk [vmem:[#allocation2 + $0x141] sm:$0xff] %vm473_vm0, %v466_v45  ;;  %v469_v44 = vld [vmem:[%s8561_s30 + $0xe0] sm:$0xff]  ;;  %v470_v45 = vld [vmem:[%s8561_s30 + $0xe8] sm:$0xff] }
  0xd2   : > { %1098 = vrot.lane.b32.xlu1 %v8633_v34, %s8354_s16  ;;  %558 = vst.msk [vmem:[#allocation2 + $0x169] sm:$0xff] %vm473_vm0, %v469_v44  ;;  %559 = vst.msk [vmem:[#allocation2 + $0x171] sm:$0xff] %vm473_vm0, %v470_v45 }
  0xd3   : > { %v1854_v46 = vpop.permute.xlu0 %1853  ;;  %v1856_v47 = vpop.permute.xlu1 %1855  ;;  %v2172_v50 = vld [vmem:[#allocation3 + $0x8] sm:$0xff] }
  0xd4   : > { %1948 = vst.msk [vmem:[#allocation3 + $0x10] sm:$0xff] %vm1945_vm9, %v1854_v46  ;;  %1949 = vst.msk [vmem:[#allocation3 + $0x18] sm:$0xff] %vm1945_vm9, %v1856_v47  ;;  %7806 = vmatmul.mubr.msk.f32.vlgmr.msra.gmra.mrb[0].mxu1 %vm2208_vm11, %v2172_v50 }
  0xd5   : > { %1289 = vrot.lane.b32.xlu0 %v8812_v29, %s8355_s17 }
  0xd6   : > { %1291 = vrot.lane.b32.xlu1 %v8814_v30, %s8355_s17 }
  0xd7   : > { %v2047_v33 = vpop.permute.xlu0 %2046  ;;  %v699_v34 = vpop.permute.xlu1 %698 }
  0xd8   : > { %2141 = vst.msk [vmem:[#allocation3 + $0x10] sm:$0xff] %vm2138_vm10, %v2047_v33  ;;  %v9010_v50 = vld [vmem:[#allocation2 + $0x138] sm:$0xff] }
  0xd9   : > { %791 = vst.msk [vmem:[#allocation3 + $0x20] sm:$0xff] %vm786_vm3, %v699_v34  ;;  %1482 = vrot.lane.b32.xlu0 %v8822_v35, %s8356_s18  ;;  %v9408_v44 = vld [vmem:[#allocation2 + $0x13a] sm:$0xff] }
  0xda   : > { %1484 = vrot.lane.b32.xlu1 %v8830_v38, %s8356_s18  ;;  %620 = vst.msk [vmem:[#allocation3 + $0xd0] sm:$0xff] %vm473_vm0, %v9010_v50 }
  0xdb   : > { %v2049_v53 = vpop.permute.xlu0 %2048  ;;  %v701_v54 = vpop.permute.xlu1 %700 }
  0xdc   : > { %2142 = vst.msk [vmem:[#allocation3 + $0x18] sm:$0xff] %vm2138_vm10, %v2049_v53 }
  0xdd   : > { %792 = vst.msk [vmem:[#allocation3 + $0x28] sm:$0xff] %vm786_vm3, %v701_v54  ;;  %1676 = vrot.lane.b32.xlu0 %v8670_v48, %s8357_s19  ;;  %v9029_v54 = vld [vmem:[#allocation2 + $0xda] sm:$0xff] }
  0xde   : > { %1678 = vrot.lane.b32.xlu1 %v8672_v49, %s8357_s19 }
  0xdf   : > { %v892_v61 = vpop.permute.xlu0 %891  ;;  %v894_v62 = vpop.permute.xlu1 %893  ;;  %v2173_v63 = vld [vmem:[#allocation3 + $0x10] sm:$0xff] }
  0xe0   : > { %984 = vst.msk [vmem:[#allocation3 + $0x20] sm:$0xff] %vm979_vm4, %v892_v61  ;;  %985 = vst.msk [vmem:[#allocation3 + $0x28] sm:$0xff] %vm979_vm4, %v894_v62  ;;  %7808 = vmatprep.mubr.msk.f32.mxu1 %vm2208_vm11, %v2173_v63  ;;  %v9038_v62 = vld [vmem:[#allocation2 + $0xe2] sm:$0xff] }
  0xe1   : > { %1869 = vrot.lane.b32.xlu0 %v8882_v59, %s8358_s24 }
  0xe2   : > { %1871 = vrot.lane.b32.xlu1 %v8884_v60, %s8358_s24 }
  0xe3   : > { %v1085_v2 = vpop.permute.xlu0 %1084  ;;  %v1087_v5 = vpop.permute.xlu1 %1086  ;;  %v2174_v6 = vld [vmem:[#allocation3 + $0x18] sm:$0xff] }
  0xe4   : > { %1177 = vst.msk [vmem:[#allocation3 + $0x20] sm:$0xff] %vm1172_vm5, %v1085_v2  ;;  %1178 = vst.msk [vmem:[#allocation3 + $0x28] sm:$0xff] %vm1172_vm5, %v1087_v5  ;;  %7809 = vmatmul.mubr.msk.f32.gmra.mrb[2].mxu1 %vm2208_vm11, %v2174_v6 }
  0xe5   : > { %2062 = vrot.lane.b32.xlu0 %v8893_v1, %s8359_s20 }
  0xe6   : > { %714 = vrot.lane.b32.xlu1 %v8812_v29, %s8353_s15  ;;  %v8963_v29 = vld [vmem:[#allocation2 + $0xc2] sm:$0xff] }
  0xe7   : > { %v1278_v8 = vpop.permute.xlu0 %1277  ;;  %v1280_v9 = vpop.permute.xlu1 %1279 }
  0xe8   : > { %1370 = vst.msk [vmem:[#allocation3 + $0x20] sm:$0xff] %vm1365_vm6, %v1278_v8  ;;  %1371 = vst.msk [vmem:[#allocation3 + $0x28] sm:$0xff] %vm1365_vm6, %v1280_v9 }
  0xe9   : > { %2064 = vrot.lane.b32.xlu0 %v8902_v7, %s8359_s20 }
  0xea   : > { %716 = vrot.lane.b32.xlu1 %v8814_v30, %s8353_s15 }
  0xeb   : > { %v1471_v10 = vpop.permute.xlu0 %1470  ;;  %v1473_v11 = vpop.permute.xlu1 %1472 }
  0xec   : > { %1563 = vst.msk [vmem:[#allocation3 + $0x20] sm:$0xff] %vm1558_vm7, %v1471_v10  ;;  %1564 = vst.msk [vmem:[#allocation3 + $0x28] sm:$0xff] %vm1558_vm7, %v1473_v11  ;;  %v467_v10 = vld [vmem:[%s8561_s30 + $0xd0] sm:$0xff]  ;;  %v468_v11 = vld [vmem:[%s8561_s30 + $0xd8] sm:$0xff] }
  0xed   : > { %907 = vrot.lane.b32.xlu0 %v8822_v35, %s12447_s14  ;;  %v8972_v35 = vld [vmem:[#allocation2 + $0xca] sm:$0xff]  ;;  %556 = vst.msk [vmem:[#allocation2 + $0x151] sm:$0xff] %vm473_vm0, %v467_v10  ;;  %557 = vst.msk [vmem:[#allocation2 + $0x159] sm:$0xff] %vm473_vm0, %v468_v11  ;;  %v472_v11 = vld [vmem:[%s8561_s30 + $0xf8] sm:$0xff] }
  0xee   : > { %909 = vrot.lane.b32.xlu1 %v8830_v38, %s12447_s14  ;;  %v471_v10 = vld [vmem:[%s8561_s30 + $0xf0] sm:$0xff]  ;;  %561 = vst.msk [vmem:[#allocation2 + $0x189] sm:$0xff] %vm473_vm0, %v472_v11 }
  0xef   : > { %v1665_v12 = vpop.permute.xlu0 %1664  ;;  %v1667_v13 = vpop.permute.xlu1 %1666  ;;  %560 = vst.msk [vmem:[#allocation2 + $0x181] sm:$0xff] %vm473_vm0, %v471_v10 }
  0xf0   : > { %1757 = vst.msk [vmem:[#allocation3 + $0x20] sm:$0xff] %vm1752_vm8, %v1665_v12  ;;  %1758 = vst.msk [vmem:[#allocation3 + $0x28] sm:$0xff] %vm1752_vm8, %v1667_v13 }
  0xf1   : > { %1100 = vrot.lane.b32.xlu0 %v8670_v48, %s8354_s16 }
  0xf2   : > { %1102 = vrot.lane.b32.xlu1 %v8672_v49, %s8354_s16 }
  0xf3   : > { %v1858_v14 = vpop.permute.xlu0 %1857  ;;  %v1860_v15 = vpop.permute.xlu1 %1859 }
  0xf4   : > { %1950 = vst.msk [vmem:[#allocation3 + $0x20] sm:$0xff] %vm1945_vm9, %v1858_v14  ;;  %1951 = vst.msk [vmem:[#allocation3 + $0x28] sm:$0xff] %vm1945_vm9, %v1860_v15  ;;  %v9188_v14 = vld [vmem:[#allocation2 + $0x150] sm:$0xff]  ;;  %v9190_v15 = vld [vmem:[#allocation2 + $0x158] sm:$0xff] }
  0xf5   : > { %1293 = vrot.lane.b32.xlu0 %v8882_v59, %s8355_s17  ;;  %622 = vst.msk [vmem:[#allocation3 + $0xe0] sm:$0xff] %vm473_vm0, %v9188_v14  ;;  %623 = vst.msk [vmem:[#allocation3 + $0xe8] sm:$0xff] %vm473_vm0, %v9190_v15 }
  0xf6   : > { %1295 = vrot.lane.b32.xlu1 %v8884_v60, %s8355_s17 }
  0xf7   : > { %v2051_v48 = vpop.permute.xlu0 %2050  ;;  %v703_v49 = vpop.permute.xlu1 %702 }
  0xf8   : > { %2143 = vst.msk [vmem:[#allocation3 + $0x20] sm:$0xff] %vm2138_vm10, %v2051_v48 }
  0xf9   : > { %793 = vst.msk [vmem:[#allocation3 + $0x30] sm:$0xff] %vm786_vm3, %v703_v49  ;;  %1486 = vrot.lane.b32.xlu0 %v8893_v1, %s8356_s18 }
  0xfa   : > { %1488 = vrot.lane.b32.xlu1 %v8902_v7, %s8356_s18 }
  0xfb   : > { %v2053_v18 = vpop.permute.xlu0 %2052  ;;  %v705_v19 = vpop.permute.xlu1 %704 }
  0xfc   : > { %2144 = vst.msk [vmem:[#allocation3 + $0x28] sm:$0xff] %vm2138_vm10, %v2053_v18 }
  0xfd   : > { %794 = vst.msk [vmem:[#allocation3 + $0x38] sm:$0xff] %vm786_vm3, %v705_v19  ;;  %1680 = vrot.lane.b32.xlu0 %v8702_v56, %s8357_s19  ;;  %v9207_v19 = vld [vmem:[#allocation2 + $0xf2] sm:$0xff] }
  0xfe   : > { %1682 = vrot.lane.b32.xlu1 %v8704_v57, %s8357_s19 }
  0xff   : > { %v896_v24 = vpop.permute.xlu0 %895  ;;  %v898_v25 = vpop.permute.xlu1 %897  ;;  %v2175_v26 = vld [vmem:[#allocation3 + $0x20] sm:$0xff] }
 0x100   : > { %986 = vst.msk [vmem:[#allocation3 + $0x30] sm:$0xff] %vm979_vm4, %v896_v24  ;;  %987 = vst.msk [vmem:[#allocation3 + $0x38] sm:$0xff] %vm979_vm4, %v898_v25  ;;  %7811 = vmatprep.mubr.msk.f32.mxu1 %vm2208_vm11, %v2175_v26  ;;  %v9216_v25 = vld [vmem:[#allocation2 + $0xfa] sm:$0xff] }
 0x101   : > { %1873 = vrot.lane.b32.xlu0 %v8952_v22, %s8358_s24  ;;  %v4209_v26 = vld [vmem:[%s12431_s4 + $0x100] sm:$0xff] }
 0x102   : > { %1875 = vrot.lane.b32.xlu1 %v8954_v23, %s8358_s24 }
 0x103   : > { %v1089_v30 = vpop.permute.xlu0 %1088  ;;  %v1091_v31 = vpop.permute.xlu1 %1090  ;;  %v2176_v32 = vld [vmem:[#allocation3 + $0x28] sm:$0xff] }
 0x104   : > { %1179 = vst.msk [vmem:[#allocation3 + $0x30] sm:$0xff] %vm1172_vm5, %v1089_v30  ;;  %1180 = vst.msk [vmem:[#allocation3 + $0x38] sm:$0xff] %vm1172_vm5, %v1091_v31  ;;  %7812 = vmatmul.mubr.msk.f32.gmra.mrb[4].mxu1 %vm2208_vm11, %v2176_v32 }
 0x105   : > { %2066 = vrot.lane.b32.xlu0 %v8963_v29, %s8359_s20 }
 0x106   : > { %718 = vrot.lane.b32.xlu1 %v8882_v59, %s8353_s15 }
 0x107   : > { %v1282_v36 = vpop.permute.xlu0 %1281  ;;  %v1284_v37 = vpop.permute.xlu1 %1283 }
 0x108   : > { %1372 = vst.msk [vmem:[#allocation3 + $0x30] sm:$0xff] %vm1365_vm6, %v1282_v36  ;;  %1373 = vst.msk [vmem:[#allocation3 + $0x38] sm:$0xff] %vm1365_vm6, %v1284_v37  ;;  %v4212_v36 = vld [vmem:[%s12431_s4 + $0x118] sm:$0xff] }
 0x109   : > { %2068 = vrot.lane.b32.xlu0 %v8972_v35, %s8359_s20 }
 0x10a   : > { %720 = vrot.lane.b32.xlu1 %v8884_v60, %s8353_s15 }
 0x10b   : > { %v1475_v38 = vpop.permute.xlu0 %1474  ;;  %v1477_v39 = vpop.permute.xlu1 %1476 }
 0x10c   : > { %1565 = vst.msk [vmem:[#allocation3 + $0x30] sm:$0xff] %vm1558_vm7, %v1475_v38  ;;  %1566 = vst.msk [vmem:[#allocation3 + $0x38] sm:$0xff] %vm1558_vm7, %v1477_v39 }
 0x10d   : > { %911 = vrot.lane.b32.xlu0 %v8893_v1, %s12447_s14 }
 0x10e   : > { %913 = vrot.lane.b32.xlu1 %v8902_v7, %s12447_s14 }
 0x10f   : > { %v1669_v40 = vpop.permute.xlu0 %1668  ;;  %v1671_v41 = vpop.permute.xlu1 %1670 }
 0x110   : > { %1759 = vst.msk [vmem:[#allocation3 + $0x30] sm:$0xff] %vm1752_vm8, %v1669_v40  ;;  %1760 = vst.msk [vmem:[#allocation3 + $0x38] sm:$0xff] %vm1752_vm8, %v1671_v41 }
 0x111   : > { %1104 = vrot.lane.b32.xlu0 %v8702_v56, %s8354_s16 }
 0x112   : > { %1106 = vrot.lane.b32.xlu1 %v8704_v57, %s8354_s16 }
 0x113   : > { %v1862_v42 = vpop.permute.xlu0 %1861  ;;  %v1864_v43 = vpop.permute.xlu1 %1863 }
 0x114   : > { %1952 = vst.msk [vmem:[#allocation3 + $0x30] sm:$0xff] %vm1945_vm9, %v1862_v42  ;;  %1953 = vst.msk [vmem:[#allocation3 + $0x38] sm:$0xff] %vm1945_vm9, %v1864_v43 }
 0x115   : > { %1297 = vrot.lane.b32.xlu0 %v8952_v22, %s8355_s17 }
 0x116   : > { %1299 = vrot.lane.b32.xlu1 %v8954_v23, %s8355_s17 }
 0x117   : > { %v2055_v56 = vpop.permute.xlu0 %2054  ;;  %v707_v57 = vpop.permute.xlu1 %706 }
 0x118   : > { %2145 = vst.msk [vmem:[#allocation3 + $0x30] sm:$0xff] %vm2138_vm10, %v2055_v56 }
 0x119   : > { %795 = vst.msk [vmem:[#allocation3 + $0x40] sm:$0xff] %vm786_vm3, %v707_v57  ;;  %1490 = vrot.lane.b32.xlu0 %v8963_v29, %s8356_s18 }
 0x11a   : > { %1492 = vrot.lane.b32.xlu1 %v8972_v35, %s8356_s18 }
 0x11b   : > { %v2057_v46 = vpop.permute.xlu0 %2056  ;;  %v709_v47 = vpop.permute.xlu1 %708 }
 0x11c   : > { %2146 = vst.msk [vmem:[#allocation3 + $0x38] sm:$0xff] %vm2138_vm10, %v2057_v46  ;;  %v9270_v46 = vld [vmem:[#allocation2 + $0x168] sm:$0xff] }
 0x11d   : > { %796 = vst.msk [vmem:[#allocation3 + $0x48] sm:$0xff] %vm786_vm3, %v709_v47  ;;  %1684 = vrot.lane.b32.xlu0 %v8735_v3, %s8357_s19  ;;  %v9272_v47 = vld [vmem:[#allocation2 + $0x170] sm:$0xff] }
 0x11e   : > { %1686 = vrot.lane.b32.xlu1 %v8737_v4, %s8357_s19  ;;  %624 = vst.msk [vmem:[#allocation3 + $0xf0] sm:$0xff] %vm473_vm0, %v9270_v46  ;;  %625 = vst.msk [vmem:[#allocation3 + $0xf8] sm:$0xff] %vm473_vm0, %v9272_v47 }
 0x11f   : > { %v900_v33 = vpop.permute.xlu0 %899  ;;  %v902_v34 = vpop.permute.xlu1 %901  ;;  %v2177_v53 = vld [vmem:[#allocation3 + $0x30] sm:$0xff] }
 0x120   : > { %988 = vst.msk [vmem:[#allocation3 + $0x40] sm:$0xff] %vm979_vm4, %v900_v33  ;;  %989 = vst.msk [vmem:[#allocation3 + $0x48] sm:$0xff] %vm979_vm4, %v902_v34  ;;  %7814 = vmatprep.mubr.msk.f32.mxu1 %vm2208_vm11, %v2177_v53 }
 0x121   : > { %1877 = vrot.lane.b32.xlu0 %v9018_v51, %s8358_s24 }
 0x122   : > { %1879 = vrot.lane.b32.xlu1 %v9020_v52, %s8358_s24 }
 0x123   : > { %v1093_v59 = vpop.permute.xlu0 %1092  ;;  %v1095_v60 = vpop.permute.xlu1 %1094  ;;  %v2178_v61 = vld [vmem:[#allocation3 + $0x38] sm:$0xff] }
 0x124   : > { %1181 = vst.msk [vmem:[#allocation3 + $0x40] sm:$0xff] %vm1172_vm5, %v1093_v59  ;;  %1182 = vst.msk [vmem:[#allocation3 + $0x48] sm:$0xff] %vm1172_vm5, %v1095_v60  ;;  %7815 = vmatmul.mubr.msk.f32.gmra.mrb[6].mxu1 %vm2208_vm11, %v2178_v61 }
 0x125   : > { %2070 = vrot.lane.b32.xlu0 %v9029_v54, %s8359_s20 }
 0x126   : > { %722 = vrot.lane.b32.xlu1 %v8952_v22, %s8353_s15 }
 0x127   : > { %v1286_v63 = vpop.permute.xlu0 %1285  ;;  %v1288_v1 = vpop.permute.xlu1 %1287 }
 0x128   : > { %1374 = vst.msk [vmem:[#allocation3 + $0x40] sm:$0xff] %vm1365_vm6, %v1286_v63  ;;  %1375 = vst.msk [vmem:[#allocation3 + $0x48] sm:$0xff] %vm1365_vm6, %v1288_v1 }
 0x129   : > { %2072 = vrot.lane.b32.xlu0 %v9038_v62, %s8359_s20 }
 0x12a   : > { %724 = vrot.lane.b32.xlu1 %v8954_v23, %s8353_s15 }
 0x12b   : > { %v1479_v2 = vpop.permute.xlu0 %1478  ;;  %v1481_v5 = vpop.permute.xlu1 %1480 }
 0x12c   : > { %1567 = vst.msk [vmem:[#allocation3 + $0x40] sm:$0xff] %vm1558_vm7, %v1479_v2  ;;  %1568 = vst.msk [vmem:[#allocation3 + $0x48] sm:$0xff] %vm1558_vm7, %v1481_v5 }
 0x12d   : > { %915 = vrot.lane.b32.xlu0 %v8963_v29, %s12447_s14  ;;  %v4210_v29 = vld [vmem:[%s12431_s4 + $0x108] sm:$0xff] }
 0x12e   : > { %917 = vrot.lane.b32.xlu1 %v8972_v35, %s12447_s14  ;;  %v8064_v32 = vpack.c.bf16 %v4210_v29, %v4209_v26  ;;  %v4211_v35 = vld [vmem:[%s12431_s4 + $0x110] sm:$0xff] }
 0x12f   : > { %v1673_v6 = vpop.permute.xlu0 %1672  ;;  %v1675_v7 = vpop.permute.xlu1 %1674  ;;  %v8068_v39 = vpack.c.bf16 %v4212_v36, %v4211_v35 }
 0x130   : > { %1761 = vst.msk [vmem:[#allocation3 + $0x40] sm:$0xff] %vm1752_vm8, %v1673_v6  ;;  %1762 = vst.msk [vmem:[#allocation3 + $0x48] sm:$0xff] %vm1752_vm8, %v1675_v7  ;;  %8065 = vmatprep.subr.bf16.mxu0 %v8064_v32 }
 0x131   : > { %1108 = vrot.lane.b32.xlu0 %v8735_v3, %s8354_s16  ;;  %8067 = vmatpush3.bf16.msra.mxu0 %v8064_v32 }
 0x132   : > { %1110 = vrot.lane.b32.xlu1 %v8737_v4, %s8354_s16  ;;  %8069 = vmatprep.subr.bf16.mxu0 %v8068_v39 }
 0x133   : > { %v1866_v8 = vpop.permute.xlu0 %1865  ;;  %v1868_v9 = vpop.permute.xlu1 %1867 }
 0x134   : > { %1954 = vst.msk [vmem:[#allocation3 + $0x40] sm:$0xff] %vm1945_vm9, %v1866_v8  ;;  %1955 = vst.msk [vmem:[#allocation3 + $0x48] sm:$0xff] %vm1945_vm9, %v1868_v9 }
 0x135   : > { %1301 = vrot.lane.b32.xlu0 %v9018_v51, %s8355_s17  ;;  %8071 = vmatpush3.bf16.msra.mxu0 %v8068_v39  ;;  %v9397_v39 = vld [vmem:[#allocation2 + $0x139] sm:$0xff] }
 0x136   : > { %1303 = vrot.lane.b32.xlu1 %v9020_v52, %s8355_s17 }
 0x137   : > { %v2059_v3 = vpop.permute.xlu0 %2058  ;;  %v711_v4 = vpop.permute.xlu1 %710 }
 0x138   : > { %2147 = vst.msk [vmem:[#allocation3 + $0x40] sm:$0xff] %vm2138_vm10, %v2059_v3 }
 0x139   : > { %797 = vst.msk [vmem:[#allocation3 + $0x50] sm:$0xff] %vm786_vm3, %v711_v4  ;;  %1494 = vrot.lane.b32.xlu0 %v9029_v54, %s8356_s18 }
 0x13a   : > { %1496 = vrot.lane.b32.xlu1 %v9038_v62, %s8356_s18 }
 0x13b   : > { %v2061_v12 = vpop.permute.xlu0 %2060  ;;  %v713_v13 = vpop.permute.xlu1 %712 }
 0x13c   : > { %2148 = vst.msk [vmem:[#allocation3 + $0x48] sm:$0xff] %vm2138_vm10, %v2061_v12  ;;  %v9340_v12 = vld [vmem:[#allocation2 + $0x121] sm:$0xff] }
 0x13d   : > { %798 = vst.msk [vmem:[#allocation3 + $0x58] sm:$0xff] %vm786_vm3, %v713_v13  ;;  %1688 = vrot.lane.b32.xlu0 %v8800_v27, %s8357_s19  ;;  %v9342_v13 = vld [vmem:[#allocation2 + $0x129] sm:$0xff] }
 0x13e   : > { %1690 = vrot.lane.b32.xlu1 %v8802_v28, %s8357_s19 }
 0x13f   : > { %v904_v48 = vpop.permute.xlu0 %903  ;;  %v2179_v18 = vld [vmem:[#allocation3 + $0x40] sm:$0xff] }
 0x140   : > { %v906_v49 = vpop.permute.xlu1 %905  ;;  %990 = vst.msk [vmem:[#allocation3 + $0x50] sm:$0xff] %vm979_vm4, %v904_v48  ;;  %7817 = vmatprep.mubr.msk.f32.mxu1 %vm2208_vm11, %v2179_v18 }
 0x141   : > { %991 = vst.msk [vmem:[#allocation3 + $0x58] sm:$0xff] %vm979_vm4, %v906_v49  ;;  %1881 = vrot.lane.b32.xlu0 %v9192_v16, %s8358_s24  ;;  %v9351_v49 = vld [vmem:[#allocation2 + $0x122] sm:$0xff] }
 0x142   : > { %1883 = vrot.lane.b32.xlu1 %v9194_v17, %s8358_s24 }
 0x143   : > { %v1097_v22 = vpop.permute.xlu0 %1096  ;;  %v2180_v24 = vld [vmem:[#allocation3 + $0x48] sm:$0xff] }
 0x144   : > { %v1099_v23 = vpop.permute.xlu1 %1098  ;;  %1183 = vst.msk [vmem:[#allocation3 + $0x50] sm:$0xff] %vm1172_vm5, %v1097_v22  ;;  %7818 = vmatmul.mubr.msk.f32.gmra.mrb[8].mxu1 %vm2208_vm11, %v2180_v24 }
 0x145   : > { %1184 = vst.msk [vmem:[#allocation3 + $0x58] sm:$0xff] %vm1172_vm5, %v1099_v23  ;;  %2074 = vrot.lane.b32.xlu0 %v9207_v19, %s8359_s20  ;;  %v9360_v23 = vld [vmem:[#allocation2 + $0x12a] sm:$0xff] }
 0x146   : > { %726 = vrot.lane.b32.xlu1 %v9018_v51, %s8353_s15  ;;  %v9274_v51 = vld [vmem:[#allocation2 + $0x109] sm:$0xff] }
 0x147   : > { %v1290_v30 = vpop.permute.xlu0 %1289 }
 0x148   : > { %v1292_v31 = vpop.permute.xlu1 %1291  ;;  %1376 = vst.msk [vmem:[#allocation3 + $0x50] sm:$0xff] %vm1365_vm6, %v1290_v30 }
 0x149   : > { %1377 = vst.msk [vmem:[#allocation3 + $0x58] sm:$0xff] %vm1365_vm6, %v1292_v31  ;;  %2076 = vrot.lane.b32.xlu0 %v9216_v25, %s8359_s20 }
 0x14a   : > { %728 = vrot.lane.b32.xlu1 %v9020_v52, %s8353_s15  ;;  %v9276_v52 = vld [vmem:[#allocation2 + $0x111] sm:$0xff] }
 0x14b   : > { %v1483_v37 = vpop.permute.xlu0 %1482 }
 0x14c   : > { %v1485_v38 = vpop.permute.xlu1 %1484  ;;  %1569 = vst.msk [vmem:[#allocation3 + $0x50] sm:$0xff] %vm1558_vm7, %v1483_v37 }
 0x14d   : > { %1570 = vst.msk [vmem:[#allocation3 + $0x58] sm:$0xff] %vm1558_vm7, %v1485_v38  ;;  %919 = vrot.lane.b32.xlu0 %v9029_v54, %s12447_s14  ;;  %v9289_v54 = vld [vmem:[#allocation2 + $0x10a] sm:$0xff] }
 0x14e   : > { %921 = vrot.lane.b32.xlu1 %v9038_v62, %s12447_s14  ;;  %v9298_v62 = vld [vmem:[#allocation2 + $0x112] sm:$0xff] }
 0x14f   : > { %v1677_v40 = vpop.permute.xlu0 %1676 }
 0x150   : > { %v1679_v41 = vpop.permute.xlu1 %1678  ;;  %1763 = vst.msk [vmem:[#allocation3 + $0x50] sm:$0xff] %vm1752_vm8, %v1677_v40  ;;  %v9399_v40 = vld [vmem:[#allocation2 + $0x141] sm:$0xff] }
 0x151   : > { %1764 = vst.msk [vmem:[#allocation3 + $0x58] sm:$0xff] %vm1752_vm8, %v1679_v41  ;;  %1112 = vrot.lane.b32.xlu0 %v8800_v27, %s8354_s16 }
 0x152   : > { %1114 = vrot.lane.b32.xlu1 %v8802_v28, %s8354_s16 }
 0x153   : > { %v1870_v42 = vpop.permute.xlu0 %1869 }
 0x154   : > { %v1872_v43 = vpop.permute.xlu1 %1871  ;;  %1956 = vst.msk [vmem:[#allocation3 + $0x50] sm:$0xff] %vm1945_vm9, %v1870_v42 }
 0x155   : > { %1957 = vst.msk [vmem:[#allocation3 + $0x58] sm:$0xff] %vm1945_vm9, %v1872_v43  ;;  %1305 = vrot.lane.b32.xlu0 %v9192_v16, %s8355_s17 }
 0x156   : > { %1307 = vrot.lane.b32.xlu1 %v9194_v17, %s8355_s17 }
 0x157   : > { %v2063_v27 = vpop.permute.xlu0 %2062 }
 0x158   : > { %v715_v28 = vpop.permute.xlu1 %714  ;;  %2149 = vst.msk [vmem:[#allocation3 + $0x50] sm:$0xff] %vm2138_vm10, %v2063_v27 }
 0x159   : > { %799 = vst.msk [vmem:[#allocation3 + $0x60] sm:$0xff] %vm786_vm3, %v715_v28  ;;  %1498 = vrot.lane.b32.xlu0 %v9207_v19, %s8356_s18 }
 0x15a   : > { %1500 = vrot.lane.b32.xlu1 %v9216_v25, %s8356_s18 }
 0x15b   : > { %v2065_v56 = vpop.permute.xlu0 %2064 }
 0x15c   : > { %v717_v57 = vpop.permute.xlu1 %716  ;;  %2150 = vst.msk [vmem:[#allocation3 + $0x58] sm:$0xff] %vm2138_vm10, %v2065_v56  ;;  %v9420_v56 = vld [vmem:[%s12429_s2] ss:$0 sm:$0xff] }
 0x15d   : > { %800 = vst.msk [vmem:[#allocation3 + $0x68] sm:$0xff] %vm786_vm3, %v717_v57  ;;  %1692 = vrot.lane.b32.xlu0 %v8870_v55, %s8357_s19  ;;  %v9422_v57 = vld [vmem:[#allocation2 + $0x142] sm:$0xff] }
 0x15e   : > { %1694 = vrot.lane.b32.xlu1 %v8872_v58, %s8357_s19 }
 0x15f   : > { %v908_v33 = vpop.permute.xlu0 %907  ;;  %v2181_v53 = vld [vmem:[#allocation3 + $0x50] sm:$0xff] }
 0x160   : > { %v910_v34 = vpop.permute.xlu1 %909  ;;  %992 = vst.msk [vmem:[#allocation3 + $0x60] sm:$0xff] %vm979_vm4, %v908_v33  ;;  %7820 = vmatprep.mubr.msk.f32.mxu1 %vm2208_vm11, %v2181_v53  ;;  %v9427_v33 = vld [vmem:[%s12430_s3] ss:$0 sm:$0xff] }
 0x161   : > { %993 = vst.msk [vmem:[#allocation3 + $0x68] sm:$0xff] %vm979_vm4, %v910_v34  ;;  %1885 = vrot.lane.b32.xlu0 %v9274_v51, %s8358_s24 }
 0x162   : > { %1887 = vrot.lane.b32.xlu1 %v9276_v52, %s8358_s24 }
 0x163   : > { %v1101_v59 = vpop.permute.xlu0 %1100  ;;  %v2182_v61 = vld [vmem:[#allocation3 + $0x58] sm:$0xff] }
 0x164   : > { %v1103_v60 = vpop.permute.xlu1 %1102  ;;  %1185 = vst.msk [vmem:[#allocation3 + $0x60] sm:$0xff] %vm1172_vm5, %v1101_v59  ;;  %7821 = vmatmul.mubr.msk.f32.gmra.mrb[10].mxu1 %vm2208_vm11, %v2182_v61 }
 0x165   : > { %1186 = vst.msk [vmem:[#allocation3 + $0x68] sm:$0xff] %vm1172_vm5, %v1103_v60  ;;  %2078 = vrot.lane.b32.xlu0 %v9289_v54, %s8359_s20 }
 0x166   : > { %730 = vrot.lane.b32.xlu1 %v9192_v16, %s8353_s15 }
 0x167   : > { %v1294_v63 = vpop.permute.xlu0 %1293 }
 0x168   : > { %v1296_v1 = vpop.permute.xlu1 %1295  ;;  %1378 = vst.msk [vmem:[#allocation3 + $0x60] sm:$0xff] %vm1365_vm6, %v1294_v63 }
 0x169   : > { %1379 = vst.msk [vmem:[#allocation3 + $0x68] sm:$0xff] %vm1365_vm6, %v1296_v1  ;;  %2080 = vrot.lane.b32.xlu0 %v9298_v62, %s8359_s20 }
 0x16a   : > { %732 = vrot.lane.b32.xlu1 %v9194_v17, %s8353_s15 }
 0x16b   : > { %v1487_v2 = vpop.permute.xlu0 %1486 }
 0x16c   : > { %v1489_v5 = vpop.permute.xlu1 %1488  ;;  %1571 = vst.msk [vmem:[#allocation3 + $0x60] sm:$0xff] %vm1558_vm7, %v1487_v2 }
 0x16d   : > { %1572 = vst.msk [vmem:[#allocation3 + $0x68] sm:$0xff] %vm1558_vm7, %v1489_v5  ;;  %923 = vrot.lane.b32.xlu0 %v9207_v19, %s12447_s14 }
 0x16e   : > { %925 = vrot.lane.b32.xlu1 %v9216_v25, %s12447_s14 }
 0x16f   : > { %v1681_v6 = vpop.permute.xlu0 %1680 }
 0x170   : > { %v1683_v7 = vpop.permute.xlu1 %1682  ;;  %1765 = vst.msk [vmem:[#allocation3 + $0x60] sm:$0xff] %vm1752_vm8, %v1681_v6 }
 0x171   : > { %1766 = vst.msk [vmem:[#allocation3 + $0x68] sm:$0xff] %vm1752_vm8, %v1683_v7  ;;  %1116 = vrot.lane.b32.xlu0 %v8870_v55, %s8354_s16 }
 0x172   : > { %1118 = vrot.lane.b32.xlu1 %v8872_v58, %s8354_s16 }
 0x173   : > { %v1874_v8 = vpop.permute.xlu0 %1873 }
 0x174   : > { %v1876_v9 = vpop.permute.xlu1 %1875  ;;  %1958 = vst.msk [vmem:[#allocation3 + $0x60] sm:$0xff] %vm1945_vm9, %v1874_v8 }
 0x175   : > { %1959 = vst.msk [vmem:[#allocation3 + $0x68] sm:$0xff] %vm1945_vm9, %v1876_v9  ;;  %1309 = vrot.lane.b32.xlu0 %v9274_v51, %s8355_s17 }
 0x176   : > { %1311 = vrot.lane.b32.xlu1 %v9276_v52, %s8355_s17 }
 0x177   : > { %v2067_v55 = vpop.permute.xlu0 %2066 }
 0x178   : > { %v719_v58 = vpop.permute.xlu1 %718  ;;  %2151 = vst.msk [vmem:[#allocation3 + $0x60] sm:$0xff] %vm2138_vm10, %v2067_v55 }
 0x179   : > { %801 = vst.msk [vmem:[#allocation3 + $0x70] sm:$0xff] %vm786_vm3, %v719_v58  ;;  %1502 = vrot.lane.b32.xlu0 %v9289_v54, %s8356_s18 }
 0x17a   : > { %1504 = vrot.lane.b32.xlu1 %v9298_v62, %s8356_s18 }
 0x17b   : > { %v2069_v3 = vpop.permute.xlu0 %2068 }
 0x17c   : > { %v721_v4 = vpop.permute.xlu1 %720  ;;  %2152 = vst.msk [vmem:[#allocation3 + $0x68] sm:$0xff] %vm2138_vm10, %v2069_v3 }
 0x17d   : > { %802 = vst.msk [vmem:[#allocation3 + $0x78] sm:$0xff] %vm786_vm3, %v721_v4  ;;  %1696 = vrot.lane.b32.xlu0 %v8940_v20, %s8357_s19 }
 0x17e   : > { %1698 = vrot.lane.b32.xlu1 %v8942_v21, %s8357_s19 }
 0x17f   : > { %v912_v16 = vpop.permute.xlu0 %911  ;;  %v2183_v48 = vld [vmem:[#allocation3 + $0x60] sm:$0xff] }
 0x180   : > { %v914_v17 = vpop.permute.xlu1 %913  ;;  %994 = vst.msk [vmem:[#allocation3 + $0x70] sm:$0xff] %vm979_vm4, %v912_v16  ;;  %7823 = vmatprep.mubr.msk.f32.mxu1 %vm2208_vm11, %v2183_v48 }
 0x181   : > { %995 = vst.msk [vmem:[#allocation3 + $0x78] sm:$0xff] %vm979_vm4, %v914_v17  ;;  %1889 = vrot.lane.b32.xlu0 %v9340_v12, %s8358_s24 }
 0x182   : > { %1891 = vrot.lane.b32.xlu1 %v9342_v13, %s8358_s24 }
 0x183   : > { %v1105_v18 = vpop.permute.xlu0 %1104  ;;  %v2184_v22 = vld [vmem:[#allocation3 + $0x68] sm:$0xff] }
 0x184   : > { %v1107_v19 = vpop.permute.xlu1 %1106  ;;  %1187 = vst.msk [vmem:[#allocation3 + $0x70] sm:$0xff] %vm1172_vm5, %v1105_v18  ;;  %7824 = vmatmul.mubr.msk.f32.gmra.mrb[12].mxu1 %vm2208_vm11, %v2184_v22 }
 0x185   : > { %1188 = vst.msk [vmem:[#allocation3 + $0x78] sm:$0xff] %vm1172_vm5, %v1107_v19  ;;  %2082 = vrot.lane.b32.xlu0 %v9351_v49, %s8359_s20  ;;  %v589_v19 = vld [vmem:[#allocation2 + $0x140] sm:$0xff] }
 0x186   : > { %734 = vrot.lane.b32.xlu1 %v9274_v51, %s8353_s15  ;;  %621 = vst.msk [vmem:[#allocation3 + $0xd8] sm:$0xff] %vm473_vm0, %v589_v19  ;;  %vm3343_vm0 = vcmask 1048320  }
 0x187   : > { %v1298_v24 = vpop.permute.xlu0 %1297 }
 0x188   : > { %v1300_v25 = vpop.permute.xlu1 %1299  ;;  %1380 = vst.msk [vmem:[#allocation3 + $0x70] sm:$0xff] %vm1365_vm6, %v1298_v24  ;;  %v9494_v24 = vld [vmem:[#allocation2 + $0x159] sm:$0xff] }
 0x189   : > { %1381 = vst.msk [vmem:[#allocation3 + $0x78] sm:$0xff] %vm1365_vm6, %v1300_v25  ;;  %2084 = vrot.lane.b32.xlu0 %v9360_v23, %s8359_s20 }
 0x18a   : > { %736 = vrot.lane.b32.xlu1 %v9276_v52, %s8353_s15 }
 0x18b   : > { %v1491_v26 = vpop.permute.xlu0 %1490 }
 0x18c   : > { %v1493_v29 = vpop.permute.xlu1 %1492  ;;  %1573 = vst.msk [vmem:[#allocation3 + $0x70] sm:$0xff] %vm1558_vm7, %v1491_v26 }
 0x18d   : > { %1574 = vst.msk [vmem:[#allocation3 + $0x78] sm:$0xff] %vm1558_vm7, %v1493_v29  ;;  %927 = vrot.lane.b32.xlu0 %v9289_v54, %s12447_s14 }
 0x18e   : > { %929 = vrot.lane.b32.xlu1 %v9298_v62, %s12447_s14 }
 0x18f   : > { %v1685_v30 = vpop.permute.xlu0 %1684 }
 0x190   : > { %v1687_v31 = vpop.permute.xlu1 %1686  ;;  %1767 = vst.msk [vmem:[#allocation3 + $0x70] sm:$0xff] %vm1752_vm8, %v1685_v30  ;;  %v9504_v30 = vld [vmem:[#allocation2 + $0x152] sm:$0xff] }
 0x191   : > { %1768 = vst.msk [vmem:[#allocation3 + $0x78] sm:$0xff] %vm1752_vm8, %v1687_v31  ;;  %1120 = vrot.lane.b32.xlu0 %v8940_v20, %s8354_s16  ;;  %v1615_v20 = vld [vmem:[#allocation2 + $0x140] sm:$0xff] }
 0x192   : > { %1122 = vrot.lane.b32.xlu1 %v8942_v21, %s8354_s16 }
 0x193   : > { %v1878_v32 = vpop.permute.xlu0 %1877 }
 0x194   : > { %v1880_v35 = vpop.permute.xlu1 %1879  ;;  %1960 = vst.msk [vmem:[#allocation3 + $0x70] sm:$0xff] %vm1945_vm9, %v1878_v32 }
 0x195   : > { %1961 = vst.msk [vmem:[#allocation3 + $0x78] sm:$0xff] %vm1945_vm9, %v1880_v35  ;;  %1313 = vrot.lane.b32.xlu0 %v9340_v12, %s8355_s17 }
 0x196   : > { %1315 = vrot.lane.b32.xlu1 %v9342_v13, %s8355_s17 }
 0x197   : > { %v2071_v36 = vpop.permute.xlu0 %2070 }
 0x198   : > { %v723_v37 = vpop.permute.xlu1 %722  ;;  %2153 = vst.msk [vmem:[#allocation3 + $0x70] sm:$0xff] %vm2138_vm10, %v2071_v36 }
 0x199   : > { %803 = vst.msk [vmem:[#allocation3 + $0x80] sm:$0xff] %vm786_vm3, %v723_v37  ;;  %1506 = vrot.lane.b32.xlu0 %v9351_v49, %s8356_s18 }
 0x19a   : > { %1508 = vrot.lane.b32.xlu1 %v9360_v23, %s8356_s18 }
 0x19b   : > { %v2073_v21 = vpop.permute.xlu0 %2072 }
 0x19c   : > { %v725_v38 = vpop.permute.xlu1 %724  ;;  %2154 = vst.msk [vmem:[#allocation3 + $0x78] sm:$0xff] %vm2138_vm10, %v2073_v21 }
 0x19d   : > { %804 = vst.msk [vmem:[#allocation3 + $0x88] sm:$0xff] %vm786_vm3, %v725_v38  ;;  %1700 = vrot.lane.b32.xlu0 %v9010_v50, %s8357_s19 }
 0x19e   : > { %1702 = vrot.lane.b32.xlu1 %v1615_v20, %s8357_s19 }
 0x19f   : > { %v916_v41 = vpop.permute.xlu0 %915  ;;  %v2185_v43 = vld [vmem:[#allocation3 + $0x70] sm:$0xff] }
 0x1a0   : > { %v918_v42 = vpop.permute.xlu1 %917  ;;  %996 = vst.msk [vmem:[#allocation3 + $0x80] sm:$0xff] %vm979_vm4, %v916_v41  ;;  %7826 = vmatprep.mubr.msk.f32.mxu1 %vm2208_vm11, %v2185_v43 }
 0x1a1   : > { %997 = vst.msk [vmem:[#allocation3 + $0x88] sm:$0xff] %vm979_vm4, %v918_v42  ;;  %1893 = vrot.lane.b32.xlu0 %v9397_v39, %s8358_s24 }
 0x1a2   : > { %1895 = vrot.lane.b32.xlu1 %v9399_v40, %s8358_s24 }
 0x1a3   : > { %v1109_v45 = vpop.permute.xlu0 %1108  ;;  %v2186_v28 = vld [vmem:[#allocation3 + $0x78] sm:$0xff] }
 0x1a4   : > { %v1111_v27 = vpop.permute.xlu1 %1110  ;;  %1189 = vst.msk [vmem:[#allocation3 + $0x80] sm:$0xff] %vm1172_vm5, %v1109_v45  ;;  %7827 = vmatmul.mubr.msk.f32.gmra.mrb[14].mxu1 %vm2208_vm11, %v2186_v28 }
 0x1a5   : > { %1190 = vst.msk [vmem:[#allocation3 + $0x88] sm:$0xff] %vm1172_vm5, %v1111_v27  ;;  %2086 = vrot.lane.b32.xlu0 %v9408_v44, %s8359_s20 }
 0x1a6   : > { %738 = vrot.lane.b32.xlu1 %v9340_v12, %s8353_s15 }
 0x1a7   : > { %v1302_v51 = vpop.permute.xlu0 %1301  ;;  %v7807_v52 = vpop.f32.mrb[0].mxu1 }
 0x1a8   : > { %1382 = vst.msk [vmem:[#allocation3 + $0x80] sm:$0xff] %vm1365_vm6, %v1302_v51  ;;  %v2542_v34 = vmul.f32 %v7807_v52, %v9420_v56  ;;  %v1304_v53 = vpop.permute.xlu1 %1303  ;;  %v2375_v54 = vpop.f32.mrb[1].mxu1 }
 0x1a9   : > { %1383 = vst.msk [vmem:[#allocation3 + $0x88] sm:$0xff] %vm1365_vm6, %v1304_v53  ;;  %v2541_v59 = vmul.f32 %v9420_v56, %v2375_v54  ;;  %2088 = vrot.lane.b32.xlu0 %v9422_v57, %s8359_s20 }
 0x1aa   : > { %740 = vrot.lane.b32.xlu1 %v9342_v13, %s8353_s15  ;;  %v2581_v60 = vadd.f32 %v9427_v33, %v2542_v34 }
 0x1ab   : > { %v2580_v61 = vadd.f32 %v9427_v33, %v2541_v59  ;;  %v1495_v62 = vpop.permute.xlu0 %1494 }
 0x1ac   : > { %v2613_v63 = vmax.f32 %v2581_v60, 0.0  ;;  %1575 = vst.msk [vmem:[#allocation3 + $0x80] sm:$0xff] %vm1558_vm7, %v1495_v62  ;;  %v1497_v1 = vpop.permute.xlu1 %1496 }
 0x1ad   : > { %v2612_v2 = vmax.f32 %v2580_v61, 0.0  ;;  %1576 = vst.msk [vmem:[#allocation3 + $0x88] sm:$0xff] %vm1558_vm7, %v1497_v1  ;;  %931 = vrot.lane.b32.xlu0 %v9351_v49, %s12447_s14 }
 0x1ae   : > { %933 = vrot.lane.b32.xlu1 %v9360_v23, %s12447_s14  ;;  %2702 = vst.msk [vmem:[#allocation4 + $0x21] sm:$0xff] %vm2644_vm12, %v2613_v63  ;;  %v9492_v23 = vld [vmem:[#allocation2 + $0x151] sm:$0xff] }
 0x1af   : > { %2701 = vst.msk [vmem:[#allocation4 + $0x19] sm:$0xff] %vm2644_vm12, %v2612_v2  ;;  %v1689_v5 = vpop.permute.xlu0 %1688 }
 0x1b0   : > { %1769 = vst.msk [vmem:[#allocation3 + $0x80] sm:$0xff] %vm1752_vm8, %v1689_v5  ;;  %v1691_v6 = vpop.permute.xlu1 %1690  ;;  %v9576_v5 = vld [vmem:[#allocation2 + $0x169] sm:$0xff] }
 0x1b1   : > { %1770 = vst.msk [vmem:[#allocation3 + $0x88] sm:$0xff] %vm1752_vm8, %v1691_v6  ;;  %1124 = vrot.lane.b32.xlu0 %v9010_v50, %s8354_s16  ;;  %v9578_v6 = vld [vmem:[#allocation2 + $0x171] sm:$0xff] }
 0x1b2   : > { %1126 = vrot.lane.b32.xlu1 %v1615_v20, %s8354_s16  ;;  %v9517_v20 = vld [vmem:[#allocation2 + $0x15a] sm:$0xff] }
 0x1b3   : > { %v1882_v7 = vpop.permute.xlu0 %1881 }
 0x1b4   : > { %1962 = vst.msk [vmem:[#allocation3 + $0x80] sm:$0xff] %vm1945_vm9, %v1882_v7  ;;  %v1884_v8 = vpop.permute.xlu1 %1883 }
 0x1b5   : > { %1963 = vst.msk [vmem:[#allocation3 + $0x88] sm:$0xff] %vm1945_vm9, %v1884_v8  ;;  %1317 = vrot.lane.b32.xlu0 %v9397_v39, %s8355_s17  ;;  %v9458_v9 = vld [vmem:[#allocation4 + $0x21] sm:$0xff] }
 0x1b6   : > { %1319 = vrot.lane.b32.xlu1 %v9399_v40, %s8355_s17  ;;  %v9460_v10 = vld [vmem:[#allocation4 + $0x18] sm:$0xff]  ;;  %v9462_v11 = vld [vmem:[#allocation4 + $0x20] sm:$0xff]  ;;  %3409 = vst.msk [vmem:[#allocation5 + $0x20] sm:$0xff] %vm2644_vm12, %v9458_v9 }
 0x1b7   : > { %v2075_v50 = vpop.permute.xlu0 %2074  ;;  %v7810_v55 = vpop.f32.mrb[2].mxu1  ;;  %v9466_v58 = vld [vmem:[#allocation4 + $0x19] sm:$0xff]  ;;  %2767 = vst.msk [vmem:[#allocation5 + $0x30] sm:$0xff] %vm2644_vm12, %v9460_v10  ;;  %2768 = vst.msk [vmem:[#allocation5 + $0x48] sm:$0xff] %vm2644_vm12, %v9462_v11 }
 0x1b8   : > { %2155 = vst.msk [vmem:[#allocation3 + $0x80] sm:$0xff] %vm2138_vm10, %v2075_v50  ;;  %v727_v3 = vpop.permute.xlu1 %726  ;;  %v2544_v4 = vmul.f32 %v7810_v55, %v9420_v56  ;;  %v2385_v12 = vpop.f32.mrb[3].mxu1  ;;  %v9588_v55 = vld [vmem:[#allocation2 + $0x16a] sm:$0xff] }
 0x1b9   : > { %3408 = vst.msk [vmem:[#allocation5 + $0x8] sm:$0xff] %vm2644_vm12, %v9466_v58  ;;  %v2543_v13 = vmul.f32 %v9420_v56, %v2385_v12  ;;  %1510 = vrot.lane.b32.xlu0 %v9408_v44, %s8356_s18 }
 0x1ba   : > { %805 = vst.msk [vmem:[#allocation3 + $0x90] sm:$0xff] %vm786_vm3, %v727_v3  ;;  %1512 = vrot.lane.b32.xlu1 %v9422_v57, %s8356_s18  ;;  %v2583_v16 = vadd.f32 %v9427_v33, %v2544_v4 }
 0x1bb   : > { %v2582_v17 = vadd.f32 %v9427_v33, %v2543_v13  ;;  %v2077_v48 = vpop.permute.xlu0 %2076 }
 0x1bc   : > { %v2615_v49 = vmax.f32 %v2583_v16, 0.0  ;;  %2156 = vst.msk [vmem:[#allocation3 + $0x88] sm:$0xff] %vm2138_vm10, %v2077_v48  ;;  %v729_v18 = vpop.permute.xlu1 %728 }
 0x1bd   : > { %v2614_v22 = vmax.f32 %v2582_v17, 0.0  ;;  %806 = vst.msk [vmem:[#allocation3 + $0x98] sm:$0xff] %vm786_vm3, %v729_v18  ;;  %1704 = vrot.lane.b32.xlu0 %v9188_v14, %s8357_s19  ;;  %v9601_v17 = vld [vmem:[#allocation2 + $0x172] sm:$0xff] }
 0x1be   : > { %1706 = vrot.lane.b32.xlu1 %v9190_v15, %s8357_s19  ;;  %2704 = vst.msk [vmem:[#allocation4 + $0x39] sm:$0xff] %vm2644_vm12, %v2615_v49 }
 0x1bf   : > { %2703 = vst.msk [vmem:[#allocation4 + $0x31] sm:$0xff] %vm2644_vm12, %v2614_v22  ;;  %v920_v25 = vpop.permute.xlu0 %919  ;;  %v2187_v26 = vld [vmem:[#allocation3 + $0x80] sm:$0xff] }
 0x1c0   : > { %998 = vst.msk [vmem:[#allocation3 + $0x90] sm:$0xff] %vm979_vm4, %v920_v25  ;;  %v922_v29 = vpop.permute.xlu1 %921  ;;  %7829 = vmatprep.mubr.msk.f32.mxu1 %vm2208_vm11, %v2187_v26 }
 0x1c1   : > { %999 = vst.msk [vmem:[#allocation3 + $0x98] sm:$0xff] %vm979_vm4, %v922_v29  ;;  %1897 = vrot.lane.b32.xlu0 %v9492_v23, %s8358_s24  ;;  %v4177_v29 = vld [vmem:[%s12431_s4] sm:$0xff] }
 0x1c2   : > { %1899 = vrot.lane.b32.xlu1 %v9494_v24, %s8358_s24 }
 0x1c3   : > { %v1113_v31 = vpop.permute.xlu0 %1112  ;;  %v2188_v32 = vld [vmem:[#allocation3 + $0x88] sm:$0xff] }
 0x1c4   : > { %1191 = vst.msk [vmem:[#allocation3 + $0x90] sm:$0xff] %vm1172_vm5, %v1113_v31  ;;  %v1115_v35 = vpop.permute.xlu1 %1114  ;;  %7830 = vmatmul.mubr.msk.f32.gmra.mrb[16].mxu1 %vm2208_vm11, %v2188_v32  ;;  %v4178_v31 = vld [vmem:[%s12431_s4 + $0x8] sm:$0xff] }
 0x1c5   : > { %1192 = vst.msk [vmem:[#allocation3 + $0x98] sm:$0xff] %vm1172_vm5, %v1115_v35  ;;  %2090 = vrot.lane.b32.xlu0 %v9504_v30, %s8359_s20  ;;  %v9513_v36 = vld [vmem:[#allocation4 + $0x3a] sm:$0xff]  ;;  %v12443_v35 = vmov 0.0|0.0  }
 0x1c6   : > { %742 = vrot.lane.b32.xlu1 %v9397_v39, %s8353_s15  ;;  %v9515_v37 = vld [vmem:[#allocation4 + $0x39] sm:$0xff]  ;;  %4050 = vst.msk [vmem:[#allocation5 + $0x28] sm:$0xff] %vm2644_vm12, %v9513_v36  ;;  %v9523_v38 = vld [vmem:[#allocation4 + $0x31] sm:$0xff]  ;;  %8016 = vmatprep.subr.bf16.mxu1 %v12443_v35 }
 0x1c7   : > { %v9519_v21 = vld [vmem:[#allocation4 + $0x32] sm:$0xff]  ;;  %3411 = vst.msk [vmem:[#allocation5 + $0x50] sm:$0xff] %vm2644_vm12, %v9515_v37  ;;  %v1306_v41 = vpop.permute.xlu0 %1305  ;;  %3410 = vst.msk [vmem:[#allocation5 + $0x38] sm:$0xff] %vm2644_vm12, %v9523_v38  ;;  %8072 = vmatprep.subr.bf16.mxu0 %v12443_v35 }
 0x1c8   : > { %4049 = vst.msk [vmem:[#allocation5 + $0x10] sm:$0xff] %vm2644_vm12, %v9519_v21  ;;  %v2737_v39 = vld [vmem:[#allocation4 + $0x30] sm:$0xff]  ;;  %v2738_v42 = vld [vmem:[#allocation4 + $0x38] sm:$0xff]  ;;  %v1308_v43 = vpop.permute.xlu1 %1307 }
 0x1c9   : > { %1384 = vst.msk [vmem:[#allocation3 + $0x90] sm:$0xff] %vm1365_vm6, %v1306_v41  ;;  %1385 = vst.msk [vmem:[#allocation3 + $0x98] sm:$0xff] %vm1365_vm6, %v1308_v43  ;;  %2092 = vrot.lane.b32.xlu0 %v9517_v20, %s8359_s20 }
 0x1ca   : > { %2769 = vst.msk [vmem:[#allocation5 + $0x60] sm:$0xff] %vm2644_vm12, %v2737_v39  ;;  %2770 = vst.msk [vmem:[#allocation5 + $0x78] sm:$0xff] %vm2644_vm12, %v2738_v42  ;;  %744 = vrot.lane.b32.xlu1 %v9399_v40, %s8353_s15 }
 0x1cb   : > { %v1499_v45 = vpop.permute.xlu0 %1498 }
 0x1cc   : > { %1577 = vst.msk [vmem:[#allocation3 + $0x90] sm:$0xff] %vm1558_vm7, %v1499_v45  ;;  %v1501_v27 = vpop.permute.xlu1 %1500 }
 0x1cd   : > { %1578 = vst.msk [vmem:[#allocation3 + $0x98] sm:$0xff] %vm1558_vm7, %v1501_v27  ;;  %935 = vrot.lane.b32.xlu0 %v9408_v44, %s12447_s14  ;;  %v4086_v52 = vld [vmem:[#allocation5 + $0x28] sm:$0xff] }
 0x1ce   : > { %937 = vrot.lane.b32.xlu1 %v9422_v57, %s12447_s14 }
 0x1cf   : > { %v4083_v28 = vld [vmem:[#allocation5 + $0x10] sm:$0xff]  ;;  %v1693_v51 = vpop.permute.xlu0 %1692 }
 0x1d0   : > { %7861 = vmatprep.mubr.msk.f32.mxu0 %vm2644_vm12, %v4083_v28  ;;  %1771 = vst.msk [vmem:[#allocation3 + $0x90] sm:$0xff] %vm1752_vm8, %v1693_v51  ;;  %v1695_v40 = vpop.permute.xlu1 %1694  ;;  %v4181_v28 = vld [vmem:[%s12431_s4 + $0x20] sm:$0xff]  ;;  %v4182_v51 = vld [vmem:[%s12431_s4 + $0x28] sm:$0xff] }
 0x1d1   : > { %7862 = vmatmul.mubr.msk.f32.vlgmr.msra.gmra.mrb[0].mxu0 %vm2644_vm12, %v4086_v52  ;;  %1772 = vst.msk [vmem:[#allocation3 + $0x98] sm:$0xff] %vm1752_vm8, %v1695_v40  ;;  %1128 = vrot.lane.b32.xlu0 %v9188_v14, %s8354_s16 }
 0x1d2   : > { %1130 = vrot.lane.b32.xlu1 %v9190_v15, %s8354_s16 }
 0x1d3   : > { %v1886_v44 = vpop.permute.xlu0 %1885 }
 0x1d4   : > { %1964 = vst.msk [vmem:[#allocation3 + $0x90] sm:$0xff] %vm1945_vm9, %v1886_v44  ;;  %v1888_v57 = vpop.permute.xlu1 %1887 }
 0x1d5   : > { %1965 = vst.msk [vmem:[#allocation3 + $0x98] sm:$0xff] %vm1945_vm9, %v1888_v57  ;;  %1321 = vrot.lane.b32.xlu0 %v9492_v23, %s8355_s17 }
 0x1d6   : > { %1323 = vrot.lane.b32.xlu1 %v9494_v24, %s8355_s17 }
 0x1d7   : > { %v2079_v34 = vpop.permute.xlu0 %2078  ;;  %v7813_v53 = vpop.f32.mrb[4].mxu1 }
 0x1d8   : > { %2157 = vst.msk [vmem:[#allocation3 + $0x90] sm:$0xff] %vm2138_vm10, %v2079_v34  ;;  %v731_v14 = vpop.permute.xlu1 %730  ;;  %v2546_v54 = vmul.f32 %v7813_v53, %v9420_v56  ;;  %v2395_v15 = vpop.f32.mrb[5].mxu1  ;;  %v4183_v34 = vld [vmem:[%s12431_s4 + $0x30] sm:$0xff]  ;;  %v4184_v53 = vld [vmem:[%s12431_s4 + $0x38] sm:$0xff] }
 0x1d9   : > { %807 = vst.msk [vmem:[#allocation3 + $0xa0] sm:$0xff] %vm786_vm3, %v731_v14  ;;  %v2545_v59 = vmul.f32 %v9420_v56, %v2395_v15  ;;  %1514 = vrot.lane.b32.xlu0 %v9504_v30, %s8356_s18 }
 0x1da   : > { %1516 = vrot.lane.b32.xlu1 %v9517_v20, %s8356_s18  ;;  %v2585_v60 = vadd.f32 %v9427_v33, %v2546_v54  ;;  %v8026_v54 = vpack.c.bf16 %v4184_v53, %v4183_v34  ;;  %v4194_v34 = vld [vmem:[%s12431_s4 + $0x88] sm:$0xff] }
 0x1db   : > { %v2584_v61 = vadd.f32 %v9427_v33, %v2545_v59  ;;  %v2081_v62 = vpop.permute.xlu0 %2080  ;;  %v9681_v59 = vld [vmem:[#allocation2 + $0x180] sm:$0xff] }
 0x1dc   : > { %v2617_v63 = vmax.f32 %v2585_v60, 0.0  ;;  %2158 = vst.msk [vmem:[#allocation3 + $0x98] sm:$0xff] %vm2138_vm10, %v2081_v62  ;;  %v733_v1 = vpop.permute.xlu1 %732  ;;  %v9683_v60 = vld [vmem:[#allocation2 + $0x188] sm:$0xff] }
 0x1dd   : > { %v2616_v2 = vmax.f32 %v2584_v61, 0.0  ;;  %808 = vst.msk [vmem:[#allocation3 + $0xa8] sm:$0xff] %vm786_vm3, %v733_v1  ;;  %1708 = vrot.lane.b32.xlu0 %v9270_v46, %s8357_s19 }
 0x1de   : > { %1710 = vrot.lane.b32.xlu1 %v9272_v47, %s8357_s19  ;;  %2706 = vst.msk [vmem:[#allocation4 + $0x51] sm:$0xff] %vm2644_vm12, %v2617_v63 }
 0x1df   : > { %2705 = vst.msk [vmem:[#allocation4 + $0x49] sm:$0xff] %vm2644_vm12, %v2616_v2  ;;  %v924_v7 = vpop.permute.xlu0 %923  ;;  %v2189_v8 = vld [vmem:[#allocation3 + $0x90] sm:$0xff] }
 0x1e0   : > { %1000 = vst.msk [vmem:[#allocation3 + $0xa0] sm:$0xff] %vm979_vm4, %v924_v7  ;;  %v926_v50 = vpop.permute.xlu1 %925  ;;  %7832 = vmatprep.mubr.msk.f32.mxu1 %vm2208_vm11, %v2189_v8  ;;  %v4185_v2 = vld [vmem:[%s12431_s4 + $0x40] sm:$0xff]  ;;  %v4186_v7 = vld [vmem:[%s12431_s4 + $0x48] sm:$0xff] }
 0x1e1   : > { %1001 = vst.msk [vmem:[#allocation3 + $0xa8] sm:$0xff] %vm979_vm4, %v926_v50  ;;  %1901 = vrot.lane.b32.xlu0 %v9576_v5, %s8358_s24  ;;  %v8029_v50 = vpack.c.bf16 %v4186_v7, %v4185_v2  ;;  %v4198_v2 = vld [vmem:[%s12431_s4 + $0xa8] sm:$0xff] }
 0x1e2   : > { %1903 = vrot.lane.b32.xlu1 %v9578_v6, %s8358_s24 }
 0x1e3   : > { %v1117_v3 = vpop.permute.xlu0 %1116  ;;  %v2190_v4 = vld [vmem:[#allocation3 + $0x98] sm:$0xff] }
 0x1e4   : > { %1193 = vst.msk [vmem:[#allocation3 + $0xa0] sm:$0xff] %vm1172_vm5, %v1117_v3  ;;  %v1119_v12 = vpop.permute.xlu1 %1118  ;;  %7833 = vmatmul.mubr.msk.f32.gmra.mrb[18].mxu1 %vm2208_vm11, %v2190_v4  ;;  %v9700_v3 = vld [vmem:[#allocation2 + $0x181] sm:$0xff]  ;;  %v9702_v4 = vld [vmem:[#allocation2 + $0x189] sm:$0xff] }
 0x1e5   : > { %1194 = vst.msk [vmem:[#allocation3 + $0xa8] sm:$0xff] %vm1172_vm5, %v1119_v12  ;;  %2094 = vrot.lane.b32.xlu0 %v9588_v55, %s8359_s20  ;;  %v9597_v13 = vld [vmem:[#allocation4 + $0x52] sm:$0xff] }
 0x1e6   : > { %746 = vrot.lane.b32.xlu1 %v9492_v23, %s8353_s15  ;;  %v9599_v16 = vld [vmem:[#allocation4 + $0x51] sm:$0xff]  ;;  %4052 = vst.msk [vmem:[#allocation5 + $0x58] sm:$0xff] %vm2644_vm12, %v9597_v13  ;;  %v9607_v49 = vld [vmem:[#allocation4 + $0x49] sm:$0xff] }
 0x1e7   : > { %v9603_v48 = vld [vmem:[#allocation4 + $0x4a] sm:$0xff]  ;;  %3413 = vst.msk [vmem:[#allocation5 + $0x80] sm:$0xff] %vm2644_vm12, %v9599_v16  ;;  %v1310_v18 = vpop.permute.xlu0 %1309  ;;  %3412 = vst.msk [vmem:[#allocation5 + $0x68] sm:$0xff] %vm2644_vm12, %v9607_v49 }
 0x1e8   : > { %4051 = vst.msk [vmem:[#allocation5 + $0x40] sm:$0xff] %vm2644_vm12, %v9603_v48  ;;  %v2739_v19 = vld [vmem:[#allocation4 + $0x48] sm:$0xff]  ;;  %v2740_v22 = vld [vmem:[#allocation4 + $0x50] sm:$0xff]  ;;  %v1312_v23 = vpop.permute.xlu1 %1311 }
 0x1e9   : > { %1386 = vst.msk [vmem:[#allocation3 + $0xa0] sm:$0xff] %vm1365_vm6, %v1310_v18  ;;  %1387 = vst.msk [vmem:[#allocation3 + $0xa8] sm:$0xff] %vm1365_vm6, %v1312_v23  ;;  %2096 = vrot.lane.b32.xlu0 %v9601_v17, %s8359_s20  ;;  %v4188_v23 = vld [vmem:[%s12431_s4 + $0x58] sm:$0xff] }
 0x1ea   : > { %2771 = vst.msk [vmem:[#allocation5 + $0x90] sm:$0xff] %vm2644_vm12, %v2739_v19  ;;  %2772 = vst.msk [vmem:[#allocation5 + $0xa8] sm:$0xff] %vm2644_vm12, %v2740_v22  ;;  %748 = vrot.lane.b32.xlu1 %v9494_v24, %s8353_s15  ;;  %v8017_v24 = vpack.c.bf16 %v4178_v31, %v4177_v29  ;;  %v4187_v22 = vld [vmem:[%s12431_s4 + $0x50] sm:$0xff] }
 0x1eb   : > { %v1503_v25 = vpop.permute.xlu0 %1502 }
 0x1ec   : > { %1579 = vst.msk [vmem:[#allocation3 + $0xa0] sm:$0xff] %vm1558_vm7, %v1503_v25  ;;  %v1505_v26 = vpop.permute.xlu1 %1504  ;;  %8018 = vmatpush1.bf16.msra.mxu1 %v8017_v24  ;;  %v8032_v25 = vpack.c.bf16 %v4188_v23, %v4187_v22  ;;  %v1622_v23 = vld [vmem:[#allocation2 + $0x198] sm:$0xff] }
 0x1ed   : > { %1580 = vst.msk [vmem:[#allocation3 + $0xa8] sm:$0xff] %vm1558_vm7, %v1505_v26  ;;  %939 = vrot.lane.b32.xlu0 %v9504_v30, %s12447_s14  ;;  %v4092_v39 = vld [vmem:[#allocation5 + $0x58] sm:$0xff]  ;;  %8019 = vmatprep.subr.bf16.mxu1 %v12443_v35  ;;  %v4179_v30 = vld [vmem:[%s12431_s4 + $0x10] sm:$0xff]  ;;  %v9719_v26 = vld [vmem:[#allocation2 + $0x182] sm:$0xff] }
 0x1ee   : > { %941 = vrot.lane.b32.xlu1 %v9517_v20, %s12447_s14  ;;  %v4180_v20 = vld [vmem:[%s12431_s4 + $0x18] sm:$0xff] }
 0x1ef   : > { %v4089_v32 = vld [vmem:[#allocation5 + $0x40] sm:$0xff]  ;;  %v1697_v41 = vpop.permute.xlu0 %1696  ;;  %v8020_v43 = vpack.c.bf16 %v4180_v20, %v4179_v30  ;;  %v9739_v20 = vld [vmem:[#allocation2 + $0x18a] sm:$0xff] }
 0x1f0   : > { %7864 = vmatprep.mubr.msk.f32.mxu0 %vm2644_vm12, %v4089_v32  ;;  %1773 = vst.msk [vmem:[#allocation3 + $0xa0] sm:$0xff] %vm1752_vm8, %v1697_v41  ;;  %v1699_v42 = vpop.permute.xlu1 %1698  ;;  %v4189_v32 = vld [vmem:[%s12431_s4 + $0x60] sm:$0xff]  ;;  %v4190_v41 = vld [vmem:[%s12431_s4 + $0x68] sm:$0xff] }
 0x1f1   : > { %7865 = vmatmul.mubr.msk.f32.gmra.mrb[2].mxu0 %vm2644_vm12, %v4092_v39  ;;  %1774 = vst.msk [vmem:[#allocation3 + $0xa8] sm:$0xff] %vm1752_vm8, %v1699_v42  ;;  %1132 = vrot.lane.b32.xlu0 %v9270_v46, %s8354_s16  ;;  %v8023_v46 = vpack.c.bf16 %v4182_v51, %v4181_v28  ;;  %v8035_v30 = vpack.c.bf16 %v4190_v41, %v4189_v32  ;;  %v4202_v41 = vld [vmem:[%s12431_s4 + $0xc8] sm:$0xff] }
 0x1f2   : > { %1134 = vrot.lane.b32.xlu1 %v9272_v47, %s8354_s16  ;;  %8021 = vmatpush1.bf16.msra.mxu1 %v8020_v43 }
 0x1f3   : > { %v1890_v45 = vpop.permute.xlu0 %1889  ;;  %8022 = vmatprep.subr.bf16.mxu1 %v12443_v35 }
 0x1f4   : > { %1966 = vst.msk [vmem:[#allocation3 + $0xa0] sm:$0xff] %vm1945_vm9, %v1890_v45  ;;  %v1892_v27 = vpop.permute.xlu1 %1891 }
 0x1f5   : > { %1967 = vst.msk [vmem:[#allocation3 + $0xa8] sm:$0xff] %vm1945_vm9, %v1892_v27  ;;  %1325 = vrot.lane.b32.xlu0 %v9576_v5, %s8355_s17 }
 0x1f6   : > { %1327 = vrot.lane.b32.xlu1 %v9578_v6, %s8355_s17  ;;  %8024 = vmatpush1.bf16.msra.mxu1 %v8023_v46  ;;  %v4191_v46 = vld [vmem:[%s12431_s4 + $0x70] sm:$0xff] }
 0x1f7   : > { %v2083_v47 = vpop.permute.xlu0 %2082  ;;  %v7816_v52 = vpop.f32.mrb[6].mxu1  ;;  %8025 = vmatprep.subr.bf16.mxu1 %v12443_v35 }
 0x1f8   : > { %2159 = vst.msk [vmem:[#allocation3 + $0xa0] sm:$0xff] %vm2138_vm10, %v2083_v47  ;;  %v735_v40 = vpop.permute.xlu1 %734  ;;  %v2548_v44 = vmul.f32 %v7816_v52, %v9420_v56  ;;  %v2405_v57 = vpop.f32.mrb[7].mxu1  ;;  %v4192_v47 = vld [vmem:[%s12431_s4 + $0x78] sm:$0xff] }
 0x1f9   : > { %809 = vst.msk [vmem:[#allocation3 + $0xb0] sm:$0xff] %vm786_vm3, %v735_v40  ;;  %v2547_v14 = vmul.f32 %v9420_v56, %v2405_v57  ;;  %1518 = vrot.lane.b32.xlu0 %v9588_v55, %s8356_s18  ;;  %v8038_v52 = vpack.c.bf16 %v4192_v47, %v4191_v46  ;;  %v4193_v57 = vld [vmem:[%s12431_s4 + $0x80] sm:$0xff]  ;;  %v2733_v46 = vld [vmem:[#allocation4] sm:$0xff] }
 0x1fa   : > { %1520 = vrot.lane.b32.xlu1 %v9601_v17, %s8356_s18  ;;  %v2587_v15 = vadd.f32 %v9427_v33, %v2548_v44  ;;  %8027 = vmatpush1.bf16.msra.mxu1 %v8026_v54  ;;  %2765 = vst.msk [vmem:[#allocation5] sm:$0xff] %vm2644_vm12, %v2733_v46  ;;  %v9921_v46 = vld [vmem:[#allocation4 + $0x38] sm:$0xff] }
 0x1fb   : > { %v2586_v61 = vadd.f32 %v9427_v33, %v2547_v14  ;;  %v2085_v62 = vpop.permute.xlu0 %2084  ;;  %8028 = vmatprep.subr.bf16.mxu1 %v12443_v35 }
 0x1fc   : > { %v2619_v63 = vmax.f32 %v2587_v15, 0.0  ;;  %2160 = vst.msk [vmem:[#allocation3 + $0xa8] sm:$0xff] %vm2138_vm10, %v2085_v62  ;;  %v737_v1 = vpop.permute.xlu1 %736 }
 0x1fd   : > { %v2618_v8 = vmax.f32 %v2586_v61, 0.0  ;;  %810 = vst.msk [vmem:[#allocation3 + $0xb8] sm:$0xff] %vm786_vm3, %v737_v1  ;;  %1712 = vrot.lane.b32.xlu0 %v9681_v59, %s8357_s19  ;;  %v4197_v1 = vld [vmem:[%s12431_s4 + $0xa0] sm:$0xff] }
 0x1fe   : > { %1714 = vrot.lane.b32.xlu1 %v9683_v60, %s8357_s19  ;;  %2708 = vst.msk [vmem:[#allocation4 + $0x69] sm:$0xff] %vm2644_vm12, %v2619_v63  ;;  %8030 = vmatpush1.bf16.msra.mxu1 %v8029_v50 }
 0x1ff   : > { %2707 = vst.msk [vmem:[#allocation4 + $0x61] sm:$0xff] %vm2644_vm12, %v2618_v8  ;;  %v928_v12 = vpop.permute.xlu0 %927  ;;  %v2191_v18 = vld [vmem:[#allocation3 + $0xa0] sm:$0xff]  ;;  %8031 = vmatprep.subr.bf16.mxu1 %v12443_v35 }
 0x200   : > { %1002 = vst.msk [vmem:[#allocation3 + $0xb0] sm:$0xff] %vm979_vm4, %v928_v12  ;;  %v930_v19 = vpop.permute.xlu1 %929  ;;  %7835 = vmatprep.mubr.msk.f32.mxu1 %vm2208_vm11, %v2191_v18  ;;  %v4199_v18 = vld [vmem:[%s12431_s4 + $0xb0] sm:$0xff] }
 0x201   : > { %1003 = vst.msk [vmem:[#allocation3 + $0xb8] sm:$0xff] %vm979_vm4, %v930_v19  ;;  %1905 = vrot.lane.b32.xlu0 %v9700_v3, %s8358_s24 }
 0x202   : > { %1907 = vrot.lane.b32.xlu1 %v9702_v4, %s8358_s24  ;;  %8033 = vmatpush1.bf16.msra.mxu1 %v8032_v25  ;;  %v1623_v25 = vld [vmem:[#allocation2 + $0x1a0] sm:$0xff] }
 0x203   : > { %v1121_v29 = vpop.permute.xlu0 %1120  ;;  %v2192_v31 = vld [vmem:[#allocation3 + $0xa8] sm:$0xff]  ;;  %8034 = vmatprep.subr.bf16.mxu1 %v12443_v35 }
 0x204   : > { %1195 = vst.msk [vmem:[#allocation3 + $0xb0] sm:$0xff] %vm1172_vm5, %v1121_v29  ;;  %v1123_v24 = vpop.permute.xlu1 %1122  ;;  %7836 = vmatmul.mubr.msk.f32.gmra.mrb[20].mxu1 %vm2208_vm11, %v2192_v31 }
 0x205   : > { %1196 = vst.msk [vmem:[#allocation3 + $0xb8] sm:$0xff] %vm1172_vm5, %v1123_v24  ;;  %2098 = vrot.lane.b32.xlu0 %v9719_v26, %s8359_s20  ;;  %v9735_v39 = vld [vmem:[#allocation4 + $0x6a] sm:$0xff] }
 0x206   : > { %750 = vrot.lane.b32.xlu1 %v9576_v5, %s8353_s15  ;;  %v9737_v42 = vld [vmem:[#allocation4 + $0x69] sm:$0xff]  ;;  %4054 = vst.msk [vmem:[#allocation5 + $0x88] sm:$0xff] %vm2644_vm12, %v9735_v39  ;;  %v9745_v45 = vld [vmem:[#allocation4 + $0x61] sm:$0xff]  ;;  %8036 = vmatpush1.bf16.msra.mxu1 %v8035_v30 }
 0x207   : > { %v9741_v43 = vld [vmem:[#allocation4 + $0x62] sm:$0xff]  ;;  %3415 = vst.msk [vmem:[#allocation5 + $0xb0] sm:$0xff] %vm2644_vm12, %v9737_v42  ;;  %v1314_v27 = vpop.permute.xlu0 %1313  ;;  %3414 = vst.msk [vmem:[#allocation5 + $0x98] sm:$0xff] %vm2644_vm12, %v9745_v45  ;;  %8037 = vmatprep.subr.bf16.mxu1 %v12443_v35 }
 0x208   : > { %4053 = vst.msk [vmem:[#allocation5 + $0x70] sm:$0xff] %vm2644_vm12, %v9741_v43  ;;  %v2741_v5 = vld [vmem:[#allocation4 + $0x60] sm:$0xff]  ;;  %v2742_v28 = vld [vmem:[#allocation4 + $0x68] sm:$0xff]  ;;  %v1316_v51 = vpop.permute.xlu1 %1315 }
 0x209   : > { %1388 = vst.msk [vmem:[#allocation3 + $0xb0] sm:$0xff] %vm1365_vm6, %v1314_v27  ;;  %1389 = vst.msk [vmem:[#allocation3 + $0xb8] sm:$0xff] %vm1365_vm6, %v1316_v51  ;;  %2100 = vrot.lane.b32.xlu0 %v9739_v20, %s8359_s20  ;;  %v1815_v27 = vld [vmem:[#allocation2 + $0x199] sm:$0xff] }
 0x20a   : > { %2773 = vst.msk [vmem:[#allocation5 + $0xc0] sm:$0xff] %vm2644_vm12, %v2741_v5  ;;  %2774 = vst.msk [vmem:[#allocation5 + $0xd8] sm:$0xff] %vm2644_vm12, %v2742_v28  ;;  %752 = vrot.lane.b32.xlu1 %v9578_v6, %s8353_s15  ;;  %8039 = vmatpush1.bf16.msra.mxu1 %v8038_v52  ;;  %v8041_v6 = vpack.c.bf16 %v4194_v34, %v4193_v57  ;;  %v1816_v5 = vld [vmem:[#allocation2 + $0x1a1] sm:$0xff]  ;;  %v4203_v52 = vld [vmem:[%s12431_s4 + $0xd0] sm:$0xff] }
 0x20b   : > { %v1507_v40 = vpop.permute.xlu0 %1506  ;;  %8040 = vmatprep.subr.bf16.mxu1 %v12443_v35  ;;  %v2008_v57 = vld [vmem:[#allocation2 + $0x19a] sm:$0xff]  ;;  %v2009_v34 = vld [vmem:[#allocation2 + $0x1a2] sm:$0xff] }
 0x20c   : > { %1581 = vst.msk [vmem:[#allocation3 + $0xb0] sm:$0xff] %vm1558_vm7, %v1507_v40  ;;  %v1509_v44 = vpop.permute.xlu1 %1508  ;;  %v4204_v40 = vld [vmem:[%s12431_s4 + $0xd8] sm:$0xff] }
 0x20d   : > { %1582 = vst.msk [vmem:[#allocation3 + $0xb8] sm:$0xff] %vm1558_vm7, %v1509_v44  ;;  %943 = vrot.lane.b32.xlu0 %v9588_v55, %s12447_s14  ;;  %v4098_v54 = vld [vmem:[#allocation5 + $0x88] sm:$0xff]  ;;  %v4195_v55 = vld [vmem:[%s12431_s4 + $0x90] sm:$0xff]  ;;  %v8056_v44 = vpack.c.bf16 %v4204_v40, %v4203_v52 }
 0x20e   : > { %945 = vrot.lane.b32.xlu1 %v9601_v17, %s12447_s14  ;;  %8042 = vmatpush1.bf16.msra.mxu1 %v8041_v6  ;;  %v4196_v17 = vld [vmem:[%s12431_s4 + $0x98] sm:$0xff]  ;;  %s8362_s14 = smov 96  }
 0x20f   : > { %v4095_v53 = vld [vmem:[#allocation5 + $0x70] sm:$0xff]  ;;  %v1701_v14 = vpop.permute.xlu0 %1700  ;;  %8043 = vmatprep.subr.bf16.mxu1 %v12443_v35  ;;  %v8044_v61 = vpack.c.bf16 %v4196_v17, %v4195_v55 }
 0x210   : > { %7867 = vmatprep.mubr.msk.f32.mxu0 %vm2644_vm12, %v4095_v53  ;;  %1775 = vst.msk [vmem:[#allocation3 + $0xb0] sm:$0xff] %vm1752_vm8, %v1701_v14  ;;  %v1703_v15 = vpop.permute.xlu1 %1702 }
 0x211   : > { %7868 = vmatmul.mubr.msk.f32.gmra.mrb[4].mxu0 %vm2644_vm12, %v4098_v54  ;;  %1776 = vst.msk [vmem:[#allocation3 + $0xb8] sm:$0xff] %vm1752_vm8, %v1703_v15  ;;  %1136 = vrot.lane.b32.xlu0 %v9681_v59, %s8354_s16  ;;  %v8047_v59 = vpack.c.bf16 %v4198_v2, %v4197_v1  ;;  %v4205_v54 = vld [vmem:[%s12431_s4 + $0xe0] sm:$0xff]  ;;  %v4206_v15 = vld [vmem:[%s12431_s4 + $0xe8] sm:$0xff] }
 0x212   : > { %1138 = vrot.lane.b32.xlu1 %v9683_v60, %s8354_s16  ;;  %8045 = vmatpush1.bf16.msra.mxu1 %v8044_v61  ;;  %v8059_v61 = vpack.c.bf16 %v4206_v15, %v4205_v54  ;;  %v9947_v15 = vld [vmem:[#allocation4 + $0x48] sm:$0xff] }
 0x213   : > { %v1894_v62 = vpop.permute.xlu0 %1893  ;;  %8046 = vmatprep.subr.bf16.mxu1 %v12443_v35 }
 0x214   : > { %1968 = vst.msk [vmem:[#allocation3 + $0xb0] sm:$0xff] %vm1945_vm9, %v1894_v62  ;;  %v1896_v63 = vpop.permute.xlu1 %1895  ;;  %v2797_v62 = vld [vmem:[#allocation4 + $0x1] sm:$0xff] }
 0x215   : > { %1969 = vst.msk [vmem:[#allocation3 + $0xb8] sm:$0xff] %vm1945_vm9, %v1896_v63  ;;  %1329 = vrot.lane.b32.xlu0 %v9700_v3, %s8355_s17  ;;  %v4200_v3 = vld [vmem:[%s12431_s4 + $0xb8] sm:$0xff] }
 0x216   : > { %1331 = vrot.lane.b32.xlu1 %v9702_v4, %s8355_s17  ;;  %8048 = vmatpush1.bf16.msra.mxu1 %v8047_v59  ;;  %v8050_v19 = vpack.c.bf16 %v4200_v3, %v4199_v18  ;;  %v9876_v59 = vld [vmem:[#allocation4 + $0x1a] sm:$0xff] }
 0x217   : > { %v2087_v60 = vpop.permute.xlu0 %2086  ;;  %v7819_v7 = vpop.f32.mrb[8].mxu1  ;;  %8049 = vmatprep.subr.bf16.mxu1 %v12443_v35 }
 0x218   : > { %2161 = vst.msk [vmem:[#allocation3 + $0xb0] sm:$0xff] %vm2138_vm10, %v2087_v60  ;;  %v739_v8 = vpop.permute.xlu1 %738  ;;  %v2550_v50 = vmul.f32 %v7819_v7, %v9420_v56  ;;  %v2415_v12 = vpop.f32.mrb[9].mxu1  ;;  %v2734_v60 = vld [vmem:[#allocation4 + $0x8] sm:$0xff] }
 0x219   : > { %811 = vst.msk [vmem:[#allocation3 + $0xc0] sm:$0xff] %vm786_vm3, %v739_v8  ;;  %v2549_v4 = vmul.f32 %v9420_v56, %v2415_v12  ;;  %1522 = vrot.lane.b32.xlu0 %v9719_v26, %s8356_s18  ;;  %v4201_v26 = vld [vmem:[%s12431_s4 + $0xc0] sm:$0xff]  ;;  %v4208_v12 = vld [vmem:[%s12431_s4 + $0xf8] sm:$0xff] }
 0x21a   : > { %1524 = vrot.lane.b32.xlu1 %v9739_v20, %s8356_s18  ;;  %v2589_v22 = vadd.f32 %v9427_v33, %v2550_v50  ;;  %8051 = vmatpush1.bf16.msra.mxu1 %v8050_v19  ;;  %v8053_v20 = vpack.c.bf16 %v4202_v41, %v4201_v26  ;;  %2766 = vst.msk [vmem:[#allocation5 + $0x18] sm:$0xff] %vm2644_vm12, %v2734_v60  ;;  %v4207_v50 = vld [vmem:[%s12431_s4 + $0xf0] sm:$0xff]  ;;  %s8361_s18 = smov 64  }
 0x21b   : > { %v2588_v29 = vadd.f32 %v9427_v33, %v2549_v4  ;;  %v2089_v31 = vpop.permute.xlu0 %2088  ;;  %8052 = vmatprep.subr.bf16.mxu1 %v12443_v35  ;;  %v8062_v3 = vpack.c.bf16 %v4208_v12, %v4207_v50  ;;  %v2990_v4 = vld [vmem:[#allocation4 + $0x2] sm:$0xff] }
 0x21c   : > { %v2621_v24 = vmax.f32 %v2589_v22, 0.0  ;;  %2162 = vst.msk [vmem:[#allocation3 + $0xb8] sm:$0xff] %vm2138_vm10, %v2089_v31  ;;  %v741_v32 = vpop.permute.xlu1 %740 }
 0x21d   : > { %v2620_v30 = vmax.f32 %v2588_v29, 0.0  ;;  %812 = vst.msk [vmem:[#allocation3 + $0xc8] sm:$0xff] %vm786_vm3, %v741_v32  ;;  %1716 = vrot.lane.b32.xlu0 %v1622_v23, %s8357_s19  ;;  %v9898_v23 = vld [vmem:[#allocation4 + $0x30] sm:$0xff] }
 0x21e   : > { %1718 = vrot.lane.b32.xlu1 %v1623_v25, %s8357_s19  ;;  %2710 = vst.msk [vmem:[#allocation4 + $0x81] sm:$0xff] %vm2644_vm12, %v2621_v24  ;;  %8054 = vmatpush1.bf16.msra.mxu1 %v8053_v20  ;;  %v2798_v32 = vld [vmem:[#allocation4 + $0x9] sm:$0xff] }
 0x21f   : > { %2709 = vst.msk [vmem:[#allocation4 + $0x79] sm:$0xff] %vm2644_vm12, %v2620_v30  ;;  %v932_v28 = vpop.permute.xlu0 %931  ;;  %v2193_v51 = vld [vmem:[#allocation3 + $0xb0] sm:$0xff]  ;;  %8055 = vmatprep.subr.bf16.mxu1 %v12443_v35  ;;  %v9913_v30 = vld [vmem:[#allocation4 + $0x22] sm:$0xff] }
 0x220   : > { %1004 = vst.msk [vmem:[#allocation3 + $0xc0] sm:$0xff] %vm979_vm4, %v932_v28  ;;  %v934_v47 = vpop.permute.xlu1 %933  ;;  %7838 = vmatprep.mubr.msk.f32.mxu1 %vm2208_vm11, %v2193_v51  ;;  %v2991_v20 = vld [vmem:[#allocation4 + $0xa] sm:$0xff] }
 0x221   : > { %1005 = vst.msk [vmem:[#allocation3 + $0xc8] sm:$0xff] %vm979_vm4, %v934_v47  ;;  %1909 = vrot.lane.b32.xlu0 %v1815_v27, %s8358_s24 }
 0x222   : > { %1911 = vrot.lane.b32.xlu1 %v1816_v5, %s8358_s24  ;;  %8057 = vmatpush1.bf16.msra.mxu1 %v8056_v44 }
 0x223   : > { %v1125_v6 = vpop.permute.xlu0 %1124  ;;  %v2194_v53 = vld [vmem:[#allocation3 + $0xb8] sm:$0xff]  ;;  %8058 = vmatprep.subr.bf16.mxu1 %v12443_v35 }
 0x224   : > { %1197 = vst.msk [vmem:[#allocation3 + $0xc0] sm:$0xff] %vm1172_vm5, %v1125_v6  ;;  %v1127_v14 = vpop.permute.xlu1 %1126  ;;  %7839 = vmatmul.mubr.msk.f32.gmra.mrb[22].mxu1 %vm2208_vm11, %v2194_v53 }
 0x225   : > { %1198 = vst.msk [vmem:[#allocation3 + $0xc8] sm:$0xff] %vm1172_vm5, %v1127_v14  ;;  %2102 = vrot.lane.b32.xlu0 %v2008_v57, %s8359_s20  ;;  %v9864_v55 = vld [vmem:[#allocation4 + $0x82] sm:$0xff] }
 0x226   : > { %2104 = vrot.lane.b32.xlu1 %v2009_v34, %s8359_s20  ;;  %v9866_v17 = vld [vmem:[#allocation4 + $0x81] sm:$0xff]  ;;  %4056 = vst.msk [vmem:[#allocation5 + $0xb8] sm:$0xff] %vm2644_vm12, %v9864_v55  ;;  %v9872_v1 = vld [vmem:[#allocation4 + $0x79] sm:$0xff]  ;;  %8060 = vmatpush1.bf16.msra.mxu1 %v8059_v61 }
 0x227   : > { %v9868_v63 = vld [vmem:[#allocation4 + $0x7a] sm:$0xff]  ;;  %3417 = vst.msk [vmem:[#allocation5 + $0xe0] sm:$0xff] %vm2644_vm12, %v9866_v17  ;;  %v1318_v2 = vpop.permute.xlu0 %1317  ;;  %3416 = vst.msk [vmem:[#allocation5 + $0xc8] sm:$0xff] %vm2644_vm12, %v9872_v1  ;;  %8061 = vmatprep.subr.bf16.mxu1 %v12443_v35 }
 0x228   : > { %4055 = vst.msk [vmem:[#allocation5 + $0xa0] sm:$0xff] %vm2644_vm12, %v9868_v63  ;;  %v2743_v7 = vld [vmem:[#allocation4 + $0x78] sm:$0xff]  ;;  %v1320_v8 = vpop.permute.xlu1 %1319  ;;  %v2744_v18 = vld [vmem:[#allocation4 + $0x80] sm:$0xff] }
 0x229   : > { %1390 = vst.msk [vmem:[#allocation3 + $0xc0] sm:$0xff] %vm1365_vm6, %v1318_v2  ;;  %1391 = vst.msk [vmem:[#allocation3 + $0xc8] sm:$0xff] %vm1365_vm6, %v1320_v8  ;;  %3504 = vrot.lane.b32.xlu0 %v9876_v59, %s8359_s20 }
 0x22a   : > { %2775 = vst.msk [vmem:[#allocation5 + $0xf0] sm:$0xff] %vm2644_vm12, %v2743_v7  ;;  %2861 = vrot.lane.b32.xlu1 %v2797_v62, %s8359_s20  ;;  %2776 = vst.msk [vmem:[#allocation5 + $0x108] sm:$0xff] %vm2644_vm12, %v2744_v18  ;;  %8063 = vmatpush1.bf16.msra.mxu1 %v8062_v3 }
 0x22b   : > { %v1511_v19 = vpop.permute.xlu0 %1510 }
 0x22c   : > { %1583 = vst.msk [vmem:[#allocation3 + $0xc0] sm:$0xff] %vm1558_vm7, %v1511_v19  ;;  %v1513_v22 = vpop.permute.xlu1 %1512 }
 0x22d   : > { %1584 = vst.msk [vmem:[#allocation3 + $0xc8] sm:$0xff] %vm1558_vm7, %v1513_v22  ;;  %3697 = vrot.lane.b32.xlu0 %v9898_v23, %s8361_s18  ;;  %v4104_v31 = vld [vmem:[#allocation5 + $0xb8] sm:$0xff]  ;;  %v9987_v22 = vld [vmem:[#allocation4 + $0x50] sm:$0xff] }
 0x22e   : > { %3054 = vrot.lane.b32.xlu1 %v2990_v4, %s8361_s18 }
 0x22f   : > { %v4101_v25 = vld [vmem:[#allocation5 + $0xa0] sm:$0xff]  ;;  %v1705_v29 = vpop.permute.xlu0 %1704 }
 0x230   : > { %7870 = vmatprep.mubr.msk.f32.mxu0 %vm2644_vm12, %v4101_v25  ;;  %1777 = vst.msk [vmem:[#allocation3 + $0xc0] sm:$0xff] %vm1752_vm8, %v1705_v29  ;;  %v1707_v24 = vpop.permute.xlu1 %1706 }
 0x231   : > { %7871 = vmatmul.mubr.msk.f32.gmra.mrb[6].mxu0 %vm2644_vm12, %v4104_v31  ;;  %1778 = vst.msk [vmem:[#allocation3 + $0xc8] sm:$0xff] %vm1752_vm8, %v1707_v24  ;;  %3889 = vrot.lane.b32.xlu0 %v9523_v38, %s8362_s14  ;;  %v10004_v24 = vld [vmem:[%s12429_s2] ss:$0 sm:$0xff] }
 0x232   : > { %3247 = vrot.lane.b32.xlu1 %v9460_v10, %s8362_s14 }
 0x233   : > { %v1898_v26 = vpop.permute.xlu0 %1897 }
 0x234   : > { %1970 = vst.msk [vmem:[#allocation3 + $0xc0] sm:$0xff] %vm1945_vm9, %v1898_v26  ;;  %v1900_v41 = vpop.permute.xlu1 %1899 }
 0x235   : > { %1971 = vst.msk [vmem:[#allocation3 + $0xc8] sm:$0xff] %vm1945_vm9, %v1900_v41  ;;  %3506 = vrot.lane.b32.xlu0 %v9913_v30, %s8359_s20 }
 0x236   : > { %2863 = vrot.lane.b32.xlu1 %v2798_v32, %s8359_s20 }
 0x237   : > { %v2091_v27 = vpop.permute.xlu0 %2090  ;;  %v7822_v10 = vpop.f32.mrb[10].mxu1 }
 0x238   : > { %2163 = vst.msk [vmem:[#allocation3 + $0xc0] sm:$0xff] %vm2138_vm10, %v2091_v27  ;;  %v743_v5 = vpop.permute.xlu1 %742  ;;  %v2552_v28 = vmul.f32 %v7822_v10, %v9420_v56  ;;  %v2425_v51 = vpop.f32.mrb[11].mxu1 }
 0x239   : > { %813 = vst.msk [vmem:[#allocation3 + $0xd0] sm:$0xff] %vm786_vm3, %v743_v5  ;;  %v2551_v47 = vmul.f32 %v9420_v56, %v2425_v51  ;;  %3699 = vrot.lane.b32.xlu0 %v9921_v46, %s8361_s18  ;;  %v10021_v51 = vld [vmem:[#allocation4 + $0x60] sm:$0xff] }
 0x23a   : > { %3056 = vrot.lane.b32.xlu1 %v2991_v20, %s8361_s18  ;;  %v2591_v52 = vadd.f32 %v9427_v33, %v2552_v28 }
 0x23b   : > { %v2590_v40 = vadd.f32 %v9427_v33, %v2551_v47  ;;  %v2093_v44 = vpop.permute.xlu0 %2092 }
 0x23c   : > { %v2623_v57 = vmax.f32 %v2591_v52, 0.0  ;;  %2164 = vst.msk [vmem:[#allocation3 + $0xc8] sm:$0xff] %vm2138_vm10, %v2093_v44  ;;  %v745_v34 = vpop.permute.xlu1 %744 }
 0x23d   : > { %v2622_v6 = vmax.f32 %v2590_v40, 0.0  ;;  %814 = vst.msk [vmem:[#allocation3 + $0xd8] sm:$0xff] %vm786_vm3, %v745_v34  ;;  %3891 = vrot.lane.b32.xlu0 %v9515_v37, %s8362_s14 }
 0x23e   : > { %3249 = vrot.lane.b32.xlu1 %v9462_v11, %s8362_s14  ;;  %2712 = vst.msk [vmem:[#allocation4 + $0x99] sm:$0xff] %vm2644_vm12, %v2623_v57 }
 0x23f   : > { %2711 = vst.msk [vmem:[#allocation4 + $0x91] sm:$0xff] %vm2644_vm12, %v2622_v6  ;;  %v936_v56 = vpop.permute.xlu0 %935  ;;  %v2195_v33 = vld [vmem:[#allocation3 + $0xc0] sm:$0xff] }
 0x240   : > { %1006 = vst.msk [vmem:[#allocation3 + $0xd0] sm:$0xff] %vm979_vm4, %v936_v56  ;;  %v938_v53 = vpop.permute.xlu1 %937  ;;  %7841 = vmatprep.mubr.msk.f32.mxu1 %vm2208_vm11, %v2195_v33 }
 0x241   : > { %1007 = vst.msk [vmem:[#allocation3 + $0xd8] sm:$0xff] %vm979_vm4, %v938_v53  ;;  %3508 = vrot.lane.b32.xlu0 %v9519_v21, %s8359_s20 }
 0x242   : > { %2865 = vrot.lane.b32.xlu1 %v9466_v58, %s8359_s20 }
 0x243   : > { %v1129_v11 = vpop.permute.xlu0 %1128  ;;  %v2196_v14 = vld [vmem:[#allocation3 + $0xc8] sm:$0xff] }
 0x244   : > { %1199 = vst.msk [vmem:[#allocation3 + $0xd0] sm:$0xff] %vm1172_vm5, %v1129_v11  ;;  %v1131_v54 = vpop.permute.xlu1 %1130  ;;  %7842 = vmatmul.mubr.msk.f32.gmra.mrb[24].mxu1 %vm2208_vm11, %v2196_v14  ;;  %v10063_v14 = vld [vmem:[#allocation4 + $0x68] sm:$0xff] }
 0x245   : > { %1200 = vst.msk [vmem:[#allocation3 + $0xd8] sm:$0xff] %vm1172_vm5, %v1131_v54  ;;  %3701 = vrot.lane.b32.xlu0 %v9947_v15, %s8361_s18  ;;  %v9954_v58 = vld [vmem:[#allocation4 + $0x9a] sm:$0xff] }
 0x246   : > { %3058 = vrot.lane.b32.xlu1 %v9876_v59, %s8361_s18  ;;  %v9956_v61 = vld [vmem:[#allocation4 + $0x99] sm:$0xff]  ;;  %4058 = vst.msk [vmem:[#allocation5 + $0xe8] sm:$0xff] %vm2644_vm12, %v9954_v58  ;;  %v9962_v2 = vld [vmem:[#allocation4 + $0x91] sm:$0xff] }
 0x247   : > { %v9958_v62 = vld [vmem:[#allocation4 + $0x92] sm:$0xff]  ;;  %3419 = vst.msk [vmem:[#allocation5 + $0x110] sm:$0xff] %vm2644_vm12, %v9956_v61  ;;  %v1322_v60 = vpop.permute.xlu0 %1321  ;;  %3418 = vst.msk [vmem:[#allocation5 + $0xf8] sm:$0xff] %vm2644_vm12, %v9962_v2 }
 0x248   : > { %4057 = vst.msk [vmem:[#allocation5 + $0xd0] sm:$0xff] %vm2644_vm12, %v9958_v62  ;;  %v2745_v59 = vld [vmem:[#allocation4 + $0x90] sm:$0xff]  ;;  %v2746_v7 = vld [vmem:[#allocation4 + $0x98] sm:$0xff]  ;;  %v1324_v8 = vpop.permute.xlu1 %1323 }
 0x249   : > { %1392 = vst.msk [vmem:[#allocation3 + $0xd0] sm:$0xff] %vm1365_vm6, %v1322_v60  ;;  %1393 = vst.msk [vmem:[#allocation3 + $0xd8] sm:$0xff] %vm1365_vm6, %v1324_v8  ;;  %3893 = vrot.lane.b32.xlu0 %v9607_v49, %s8362_s14 }
 0x24a   : > { %2777 = vst.msk [vmem:[#allocation5 + $0x120] sm:$0xff] %vm2644_vm12, %v2745_v59  ;;  %2778 = vst.msk [vmem:[#allocation5 + $0x138] sm:$0xff] %vm2644_vm12, %v2746_v7  ;;  %3251 = vrot.lane.b32.xlu1 %v9898_v23, %s8362_s14 }
 0x24b   : > { %v1515_v50 = vpop.permute.xlu0 %1514 }
 0x24c   : > { %1585 = vst.msk [vmem:[#allocation3 + $0xd0] sm:$0xff] %vm1558_vm7, %v1515_v50  ;;  %v1517_v12 = vpop.permute.xlu1 %1516 }
 0x24d   : > { %1586 = vst.msk [vmem:[#allocation3 + $0xd8] sm:$0xff] %vm1558_vm7, %v1517_v12  ;;  %3510 = vrot.lane.b32.xlu0 %v9513_v36, %s8359_s20  ;;  %v4110_v4 = vld [vmem:[#allocation5 + $0xe8] sm:$0xff] }
 0x24e   : > { %2867 = vrot.lane.b32.xlu1 %v9458_v9, %s8359_s20  ;;  %v10088_v12 = vld [vmem:[#allocation4 + $0x78] sm:$0xff] }
 0x24f   : > { %v4107_v18 = vld [vmem:[#allocation5 + $0xd0] sm:$0xff]  ;;  %v1709_v3 = vpop.permute.xlu0 %1708 }
 0x250   : > { %7873 = vmatprep.mubr.msk.f32.mxu0 %vm2644_vm12, %v4107_v18  ;;  %1779 = vst.msk [vmem:[#allocation3 + $0xd0] sm:$0xff] %vm1752_vm8, %v1709_v3  ;;  %v1711_v19 = vpop.permute.xlu1 %1710 }
 0x251   : > { %7874 = vmatmul.mubr.msk.f32.gmra.mrb[8].mxu0 %vm2644_vm12, %v4110_v4  ;;  %1780 = vst.msk [vmem:[#allocation3 + $0xd8] sm:$0xff] %vm1752_vm8, %v1711_v19  ;;  %3703 = vrot.lane.b32.xlu0 %v9987_v22, %s8361_s18 }
 0x252   : > { %3060 = vrot.lane.b32.xlu1 %v9913_v30, %s8361_s18  ;;  %v10016_v30 = vld [vmem:[%s12430_s3] ss:$0 sm:$0xff] }
 0x253   : > { %v1902_v9 = vpop.permute.xlu0 %1901 }
 0x254   : > { %1972 = vst.msk [vmem:[#allocation3 + $0xd0] sm:$0xff] %vm1945_vm9, %v1902_v9  ;;  %v1904_v23 = vpop.permute.xlu1 %1903 }
 0x255   : > { %1973 = vst.msk [vmem:[#allocation3 + $0xd8] sm:$0xff] %vm1945_vm9, %v1904_v23  ;;  %3895 = vrot.lane.b32.xlu0 %v9599_v16, %s8362_s14 }
 0x256   : > { %3253 = vrot.lane.b32.xlu1 %v9921_v46, %s8362_s14 }
 0x257   : > { %v2095_v25 = vpop.permute.xlu0 %2094  ;;  %v7825_v29 = vpop.f32.mrb[12].mxu1 }
 0x258   : > { %2165 = vst.msk [vmem:[#allocation3 + $0xd0] sm:$0xff] %vm2138_vm10, %v2095_v25  ;;  %v747_v31 = vpop.permute.xlu1 %746  ;;  %v2554_v32 = vmul.f32 %v10004_v24, %v7825_v29  ;;  %v2435_v26 = vpop.f32.mrb[13].mxu1 }
 0x259   : > { %815 = vst.msk [vmem:[#allocation3 + $0xe0] sm:$0xff] %vm786_vm3, %v747_v31  ;;  %v2553_v41 = vmul.f32 %v10004_v24, %v2435_v26  ;;  %3512 = vrot.lane.b32.xlu0 %v9603_v48, %s8359_s20 }
 0x25a   : > { %2869 = vrot.lane.b32.xlu1 %v9523_v38, %s8359_s20  ;;  %v2593_v20 = vadd.f32 %v10016_v30, %v2554_v32 }
 0x25b   : > { %v2592_v27 = vadd.f32 %v10016_v30, %v2553_v41  ;;  %v2097_v10 = vpop.permute.xlu0 %2096 }
 0x25c   : > { %v2625_v5 = vmax.f32 %v2593_v20, 0.0  ;;  %2166 = vst.msk [vmem:[#allocation3 + $0xd8] sm:$0xff] %vm2138_vm10, %v2097_v10  ;;  %v749_v28 = vpop.permute.xlu1 %748  ;;  %v10115_v20 = vld [vmem:[#allocation4 + $0x80] sm:$0xff] }
 0x25d   : > { %v2624_v38 = vmax.f32 %v2592_v27, 0.0  ;;  %816 = vst.msk [vmem:[#allocation3 + $0xe8] sm:$0xff] %vm786_vm3, %v749_v28  ;;  %3705 = vrot.lane.b32.xlu0 %v10021_v51, %s8361_s18 }
 0x25e   : > { %3062 = vrot.lane.b32.xlu1 %v9519_v21, %s8361_s18  ;;  %2714 = vst.msk [vmem:[#allocation4 + $0xb1] sm:$0xff] %vm2644_vm12, %v2625_v5 }
 0x25f   : > { %2713 = vst.msk [vmem:[#allocation4 + $0xa9] sm:$0xff] %vm2644_vm12, %v2624_v38  ;;  %v940_v46 = vpop.permute.xlu0 %939  ;;  %v2197_v47 = vld [vmem:[#allocation3 + $0xd0] sm:$0xff] }
 0x260   : > { %1008 = vst.msk [vmem:[#allocation3 + $0xe0] sm:$0xff] %vm979_vm4, %v940_v46  ;;  %v942_v52 = vpop.permute.xlu1 %941  ;;  %7844 = vmatprep.mubr.msk.f32.mxu1 %vm2208_vm11, %v2197_v47 }
 0x261   : > { %1009 = vst.msk [vmem:[#allocation3 + $0xe8] sm:$0xff] %vm979_vm4, %v942_v52  ;;  %3897 = vrot.lane.b32.xlu0 %v9745_v45, %s8362_s14 }
 0x262   : > { %3255 = vrot.lane.b32.xlu1 %v9947_v15, %s8362_s14 }
 0x263   : > { %v1133_v21 = vpop.permute.xlu0 %1132  ;;  %v2198_v40 = vld [vmem:[#allocation3 + $0xd8] sm:$0xff] }
 0x264   : > { %1201 = vst.msk [vmem:[#allocation3 + $0xe0] sm:$0xff] %vm1172_vm5, %v1133_v21  ;;  %v1135_v44 = vpop.permute.xlu1 %1134  ;;  %7845 = vmatmul.mubr.msk.f32.gmra.mrb[26].mxu1 %vm2208_vm11, %v2198_v40 }
 0x265   : > { %1202 = vst.msk [vmem:[#allocation3 + $0xe8] sm:$0xff] %vm1172_vm5, %v1135_v44  ;;  %3514 = vrot.lane.b32.xlu0 %v9597_v13, %s8359_s20  ;;  %v10044_v57 = vld [vmem:[#allocation4 + $0xb2] sm:$0xff] }
 0x266   : > { %2871 = vrot.lane.b32.xlu1 %v9515_v37, %s8359_s20  ;;  %v10046_v34 = vld [vmem:[#allocation4 + $0xb1] sm:$0xff]  ;;  %4060 = vst.msk [vmem:[#allocation5 + $0x118] sm:$0xff] %vm2644_vm12, %v10044_v57  ;;  %v10052_v56 = vld [vmem:[#allocation4 + $0xa9] sm:$0xff] }
 0x267   : > { %v10048_v6 = vld [vmem:[#allocation4 + $0xaa] sm:$0xff]  ;;  %3421 = vst.msk [vmem:[#allocation5 + $0x140] sm:$0xff] %vm2644_vm12, %v10046_v34  ;;  %v1326_v33 = vpop.permute.xlu0 %1325  ;;  %3420 = vst.msk [vmem:[#allocation5 + $0x128] sm:$0xff] %vm2644_vm12, %v10052_v56 }
 0x268   : > { %4059 = vst.msk [vmem:[#allocation5 + $0x100] sm:$0xff] %vm2644_vm12, %v10048_v6  ;;  %v10058_v37 = vld [vmem:[#allocation4 + $0xb0] sm:$0xff]  ;;  %v2747_v53 = vld [vmem:[#allocation4 + $0xa8] sm:$0xff]  ;;  %v1328_v11 = vpop.permute.xlu1 %1327 }
 0x269   : > { %1394 = vst.msk [vmem:[#allocation3 + $0xe0] sm:$0xff] %vm1365_vm6, %v1326_v33  ;;  %1395 = vst.msk [vmem:[#allocation3 + $0xe8] sm:$0xff] %vm1365_vm6, %v1328_v11  ;;  %3707 = vrot.lane.b32.xlu0 %v10063_v14, %s8361_s18  ;;  %v10154_v44 = vld [vmem:[#allocation4 + $0x90] sm:$0xff] }
 0x26a   : > { %2779 = vst.msk [vmem:[#allocation5 + $0x150] sm:$0xff] %vm2644_vm12, %v2747_v53  ;;  %2780 = vst.msk [vmem:[#allocation5 + $0x168] sm:$0xff] %vm2644_vm12, %v10058_v37  ;;  %3064 = vrot.lane.b32.xlu1 %v9513_v36, %s8361_s18 }
 0x26b   : > { %v1519_v54 = vpop.permute.xlu0 %1518 }
 0x26c   : > { %1587 = vst.msk [vmem:[#allocation3 + $0xe0] sm:$0xff] %vm1558_vm7, %v1519_v54  ;;  %v1521_v15 = vpop.permute.xlu1 %1520 }
 0x26d   : > { %1588 = vst.msk [vmem:[#allocation3 + $0xe8] sm:$0xff] %vm1558_vm7, %v1521_v15  ;;  %3899 = vrot.lane.b32.xlu0 %v9737_v42, %s8362_s14  ;;  %v4116_v36 = vld [vmem:[#allocation5 + $0x118] sm:$0xff] }
 0x26e   : > { %3257 = vrot.lane.b32.xlu1 %v9987_v22, %s8362_s14 }
 0x26f   : > { %v4113_v60 = vld [vmem:[#allocation5 + $0x100] sm:$0xff]  ;;  %v1713_v59 = vpop.permute.xlu0 %1712 }
 0x270   : > { %7876 = vmatprep.mubr.msk.f32.mxu0 %vm2644_vm12, %v4113_v60  ;;  %1781 = vst.msk [vmem:[#allocation3 + $0xe0] sm:$0xff] %vm1752_vm8, %v1713_v59  ;;  %v1715_v7 = vpop.permute.xlu1 %1714 }
 0x271   : > { %7877 = vmatmul.mubr.msk.f32.gmra.mrb[10].mxu0 %vm2644_vm12, %v4116_v36  ;;  %1782 = vst.msk [vmem:[#allocation3 + $0xe8] sm:$0xff] %vm1752_vm8, %v1715_v7  ;;  %3516 = vrot.lane.b32.xlu0 %v9741_v43, %s8359_s20  ;;  %v10177_v7 = vld [vmem:[#allocation4 + $0x98] sm:$0xff] }
 0x272   : > { %2873 = vrot.lane.b32.xlu1 %v9607_v49, %s8359_s20 }
 0x273   : > { %v1906_v8 = vpop.permute.xlu0 %1905 }
 0x274   : > { %1974 = vst.msk [vmem:[#allocation3 + $0xe0] sm:$0xff] %vm1945_vm9, %v1906_v8  ;;  %v1908_v50 = vpop.permute.xlu1 %1907 }
 0x275   : > { %1975 = vst.msk [vmem:[#allocation3 + $0xe8] sm:$0xff] %vm1945_vm9, %v1908_v50  ;;  %3709 = vrot.lane.b32.xlu0 %v10088_v12, %s8361_s18 }
 0x276   : > { %3066 = vrot.lane.b32.xlu1 %v9603_v48, %s8361_s18 }
 0x277   : > { %v2099_v18 = vpop.permute.xlu0 %2098  ;;  %v7828_v3 = vpop.f32.mrb[14].mxu1 }
 0x278   : > { %2167 = vst.msk [vmem:[#allocation3 + $0xe0] sm:$0xff] %vm2138_vm10, %v2099_v18  ;;  %v751_v49 = vpop.permute.xlu1 %750  ;;  %v2556_v4 = vmul.f32 %v10004_v24, %v7828_v3  ;;  %v2445_v19 = vpop.f32.mrb[15].mxu1 }
 0x279   : > { %817 = vst.msk [vmem:[#allocation3 + $0xf0] sm:$0xff] %vm786_vm3, %v751_v49  ;;  %v2555_v22 = vmul.f32 %v10004_v24, %v2445_v19  ;;  %3901 = vrot.lane.b32.xlu0 %v9872_v1, %s8362_s14 }
 0x27a   : > { %3259 = vrot.lane.b32.xlu1 %v10021_v51, %s8362_s14  ;;  %v2595_v48 = vadd.f32 %v10016_v30, %v2556_v4 }
 0x27b   : > { %v2594_v9 = vadd.f32 %v10016_v30, %v2555_v22  ;;  %v2101_v23 = vpop.permute.xlu0 %2100 }
 0x27c   : > { %v2627_v25 = vmax.f32 %v2595_v48, 0.0  ;;  %2168 = vst.msk [vmem:[#allocation3 + $0xe8] sm:$0xff] %vm2138_vm10, %v2101_v23  ;;  %v753_v29 = vpop.permute.xlu1 %752 }
 0x27d   : > { %v2626_v31 = vmax.f32 %v2594_v9, 0.0  ;;  %818 = vst.msk [vmem:[#allocation3 + $0xf8] sm:$0xff] %vm786_vm3, %v753_v29  ;;  %3518 = vrot.lane.b32.xlu0 %v9735_v39, %s8359_s20  ;;  %v10211_v29 = vld [vmem:[#allocation4 + $0xa8] sm:$0xff]  ;;  %vm5182_vm3 = vcmask 1048064  }
 0x27e   : > { %2875 = vrot.lane.b32.xlu1 %v9599_v16, %s8359_s20  ;;  %2716 = vst.msk [vmem:[#allocation4 + $0xc9] sm:$0xff] %vm2644_vm12, %v2627_v25 }
 0x27f   : > { %2715 = vst.msk [vmem:[#allocation4 + $0xc1] sm:$0xff] %vm2644_vm12, %v2626_v31  ;;  %v944_v32 = vpop.permute.xlu0 %943  ;;  %v2199_v26 = vld [vmem:[#allocation3 + $0xe0] sm:$0xff] }
 0x280   : > { %1010 = vst.msk [vmem:[#allocation3 + $0xf0] sm:$0xff] %vm979_vm4, %v944_v32  ;;  %v946_v41 = vpop.permute.xlu1 %945  ;;  %7847 = vmatprep.mubr.msk.f32.mxu1 %vm2208_vm11, %v2199_v26 }
 0x281   : > { %1011 = vst.msk [vmem:[#allocation3 + $0xf8] sm:$0xff] %vm979_vm4, %v946_v41  ;;  %3711 = vrot.lane.b32.xlu0 %v10115_v20, %s8361_s18  ;;  %vm8363_vm4 = vmmov 0  }
 0x282   : > { %3068 = vrot.lane.b32.xlu1 %v9597_v13, %s8361_s18 }
 0x283   : > { %v1137_v16 = vpop.permute.xlu0 %1136  ;;  %v2200_v27 = vld [vmem:[#allocation3 + $0xe8] sm:$0xff] }
 0x284   : > { %1203 = vst.msk [vmem:[#allocation3 + $0xf0] sm:$0xff] %vm1172_vm5, %v1137_v16  ;;  %v1139_v10 = vpop.permute.xlu1 %1138  ;;  %7848 = vmatmul.mubr.msk.f32.gmra.mrb[28].mxu1 %vm2208_vm11, %v2200_v27 }
 0x285   : > { %1204 = vst.msk [vmem:[#allocation3 + $0xf8] sm:$0xff] %vm1172_vm5, %v1139_v10  ;;  %3903 = vrot.lane.b32.xlu0 %v9866_v17, %s8362_s14  ;;  %v10129_v5 = vld [vmem:[#allocation4 + $0xca] sm:$0xff]  ;;  %vm7453_vm5 = vcmask 1045504  }
 0x286   : > { %3261 = vrot.lane.b32.xlu1 %v10063_v14, %s8362_s14  ;;  %v10131_v13 = vld [vmem:[#allocation4 + $0xc9] sm:$0xff]  ;;  %4062 = vst.msk [vmem:[#allocation5 + $0x148] sm:$0xff] %vm2644_vm12, %v10129_v5  ;;  %v10137_v51 = vld [vmem:[#allocation4 + $0xc1] sm:$0xff] }
 0x287   : > { %v10133_v28 = vld [vmem:[#allocation4 + $0xc2] sm:$0xff]  ;;  %3423 = vst.msk [vmem:[#allocation5 + $0x170] sm:$0xff] %vm2644_vm12, %v10131_v13  ;;  %v1330_v38 = vpop.permute.xlu0 %1329  ;;  %3422 = vst.msk [vmem:[#allocation5 + $0x158] sm:$0xff] %vm2644_vm12, %v10137_v51 }
 0x288   : > { %4061 = vst.msk [vmem:[#allocation5 + $0x130] sm:$0xff] %vm2644_vm12, %v10133_v28  ;;  %v2749_v46 = vld [vmem:[#allocation4 + $0xc0] sm:$0xff]  ;;  %v2750_v47 = vld [vmem:[#allocation4 + $0xc8] sm:$0xff]  ;;  %v1332_v52 = vpop.permute.xlu1 %1331 }
 0x289   : > { %1396 = vst.msk [vmem:[#allocation3 + $0xf0] sm:$0xff] %vm1365_vm6, %v1330_v38  ;;  %1397 = vst.msk [vmem:[#allocation3 + $0xf8] sm:$0xff] %vm1365_vm6, %v1332_v52  ;;  %3520 = vrot.lane.b32.xlu0 %v9868_v63, %s8359_s20 }
 0x28a   : > { %2781 = vst.msk [vmem:[#allocation5 + $0x180] sm:$0xff] %vm2644_vm12, %v2749_v46  ;;  %2782 = vst.msk [vmem:[#allocation5 + $0x198] sm:$0xff] %vm2644_vm12, %v2750_v47  ;;  %2877 = vrot.lane.b32.xlu1 %v9745_v45, %s8359_s20 }
 0x28b   : > { %v1523_v21 = vpop.permute.xlu0 %1522 }
 0x28c   : > { %1589 = vst.msk [vmem:[#allocation3 + $0xf0] sm:$0xff] %vm1558_vm7, %v1523_v21  ;;  %v1525_v40 = vpop.permute.xlu1 %1524 }
 0x28d   : > { %1590 = vst.msk [vmem:[#allocation3 + $0xf8] sm:$0xff] %vm1558_vm7, %v1525_v40  ;;  %3713 = vrot.lane.b32.xlu0 %v10154_v44, %s8361_s18  ;;  %v4122_v45 = vld [vmem:[#allocation5 + $0x148] sm:$0xff] }
 0x28e   : > { %3070 = vrot.lane.b32.xlu1 %v9741_v43, %s8361_s18 }
 0x28f   : > { %v4119_v33 = vld [vmem:[#allocation5 + $0x130] sm:$0xff]  ;;  %v1717_v53 = vpop.permute.xlu0 %1716 }
 0x290   : > { %7879 = vmatprep.mubr.msk.f32.mxu0 %vm2644_vm12, %v4119_v33  ;;  %1783 = vst.msk [vmem:[#allocation3 + $0xf0] sm:$0xff] %vm1752_vm8, %v1717_v53  ;;  %v1719_v11 = vpop.permute.xlu1 %1718 }
 0x291   : > { %7880 = vmatmul.mubr.msk.f32.gmra.mrb[12].mxu0 %vm2644_vm12, %v4122_v45  ;;  %1784 = vst.msk [vmem:[#allocation3 + $0xf8] sm:$0xff] %vm1752_vm8, %v1719_v11  ;;  %3905 = vrot.lane.b32.xlu0 %v9962_v2, %s8362_s14 }
 0x292   : > { %3263 = vrot.lane.b32.xlu1 %v10088_v12, %s8362_s14 }
 0x293   : > { %v1910_v43 = vpop.permute.xlu0 %1909 }
 0x294   : > { %1976 = vst.msk [vmem:[#allocation3 + $0xf0] sm:$0xff] %vm1945_vm9, %v1910_v43  ;;  %v1912_v14 = vpop.permute.xlu1 %1911 }
 0x295   : > { %1977 = vst.msk [vmem:[#allocation3 + $0xf8] sm:$0xff] %vm1945_vm9, %v1912_v14  ;;  %3522 = vrot.lane.b32.xlu0 %v9864_v55, %s8359_s20 }
 0x296   : > { %2879 = vrot.lane.b32.xlu1 %v9737_v42, %s8359_s20 }
 0x297   : > { %v2103_v54 = vpop.permute.xlu0 %2102  ;;  %v7831_v15 = vpop.f32.mrb[16].mxu1 }
 0x298   : > { %2169 = vst.msk [vmem:[#allocation3 + $0xf0] sm:$0xff] %vm2138_vm10, %v2103_v54  ;;  %v2105_v60 = vpop.permute.xlu1 %2104  ;;  %v2558_v59 = vmul.f32 %v10004_v24, %v7831_v15  ;;  %v2455_v36 = vpop.f32.mrb[17].mxu1 }
 0x299   : > { %2170 = vst.msk [vmem:[#allocation3 + $0xf8] sm:$0xff] %vm2138_vm10, %v2105_v60  ;;  %v2557_v8 = vmul.f32 %v10004_v24, %v2455_v36  ;;  %3715 = vrot.lane.b32.xlu0 %v10177_v7, %s8361_s18 }
 0x29a   : > { %3072 = vrot.lane.b32.xlu1 %v9735_v39, %s8361_s18  ;;  %v2597_v42 = vadd.f32 %v10016_v30, %v2558_v59 }
 0x29b   : > { %v2596_v50 = vadd.f32 %v10016_v30, %v2557_v8  ;;  %v3505_v12 = vpop.permute.xlu0 %3504 }
 0x29c   : > { %v2629_v18 = vmax.f32 %v2597_v42, 0.0  ;;  %3600 = vst.msk [vmem:[#allocation5 + $0x8] sm:$0xff] %vm2957_vm14, %v3505_v12  ;;  %v2862_v3 = vpop.permute.xlu1 %2861  ;;  %v10273_v42 = vld [vmem:[#allocation4 + $0xc0] sm:$0xff] }
 0x29d   : > { %v2628_v49 = vmax.f32 %v2596_v50, 0.0  ;;  %2958 = vst.msk [vmem:[#allocation5] sm:$0xff] %vm2957_vm14, %v2862_v3  ;;  %3907 = vrot.lane.b32.xlu0 %v9956_v61, %s8362_s14 }
 0x29e   : > { %3265 = vrot.lane.b32.xlu1 %v10115_v20, %s8362_s14  ;;  %2718 = vst.msk [vmem:[#allocation4 + $0xe1] sm:$0xff] %vm2644_vm12, %v2629_v18 }
 0x29f   : > { %2717 = vst.msk [vmem:[#allocation4 + $0xd9] sm:$0xff] %vm2644_vm12, %v2628_v49  ;;  %v3698_v39 = vpop.permute.xlu0 %3697  ;;  %v2201_v4 = vld [vmem:[#allocation3 + $0xf0] sm:$0xff] }
 0x2a0   : > { %v3055_v19 = vpop.permute.xlu1 %3054  ;;  %3793 = vst.msk [vmem:[#allocation5 + $0x8] sm:$0xff] %vm3150_vm15, %v3698_v39  ;;  %7850 = vmatprep.mubr.msk.f32.mxu1 %vm2208_vm11, %v2201_v4  ;;  %v2202_v22 = vld [vmem:[#allocation3 + $0xf8] sm:$0xff] }
 0x2a1   : > { %3151 = vst.msk [vmem:[#allocation5] sm:$0xff] %vm3150_vm15, %v3055_v19  ;;  %7851 = vmatmul.mubr.msk.f32.gmra.mrb[30].mxu1 %vm2208_vm11, %v2202_v22  ;;  %3524 = vrot.lane.b32.xlu0 %v9958_v62, %s8359_s20 }
 0x2a2   : > { %2881 = vrot.lane.b32.xlu1 %v9872_v1, %s8359_s20 }
 0x2a3   : > { %v3890_v9 = vpop.permute.xlu0 %3889 }
 0x2a4   : > { %v10203_v48 = vpop.f32.mrb[0].mxu0  ;;  %v3248_v23 = vpop.permute.xlu1 %3247  ;;  %3985 = vst.msk [vmem:[#allocation5 + $0x8] sm:$0xff] %vm3343_vm0, %v3890_v9 }
 0x2a5   : > { %v10206_v25 = vpop.f32.mrb[1].mxu0  ;;  %3344 = vst.msk [vmem:[#allocation5] sm:$0xff] %vm3343_vm0, %v3248_v23  ;;  %v10213_v1 = vld [vmem:[#allocation4 + $0xe2] sm:$0xff]  ;;  %3717 = vrot.lane.b32.xlu0 %v10211_v29, %s8361_s18 }
 0x2a6   : > { %3074 = vrot.lane.b32.xlu1 %v9868_v63, %s8361_s18  ;;  %v10215_v31 = vld [vmem:[#allocation4 + $0xe1] sm:$0xff]  ;;  %4064 = vst.msk [vmem:[#allocation5 + $0x178] sm:$0xff] %vm2644_vm12, %v10213_v1  ;;  %v10223_v26 = vld [vmem:[#allocation4 + $0xd9] sm:$0xff] }
 0x2a7   : > { %v10219_v32 = vld [vmem:[#allocation4 + $0xda] sm:$0xff]  ;;  %3425 = vst.msk [vmem:[#allocation5 + $0x1a0] sm:$0xff] %vm2644_vm12, %v10215_v31  ;;  %v3507_v63 = vpop.permute.xlu0 %3506  ;;  %3424 = vst.msk [vmem:[#allocation5 + $0x188] sm:$0xff] %vm2644_vm12, %v10223_v26 }
 0x2a8   : > { %4063 = vst.msk [vmem:[#allocation5 + $0x160] sm:$0xff] %vm2644_vm12, %v10219_v32  ;;  %v2751_v41 = vld [vmem:[#allocation4 + $0xd8] sm:$0xff]  ;;  %v2752_v20 = vld [vmem:[#allocation4 + $0xe0] sm:$0xff]  ;;  %v2864_v16 = vpop.permute.xlu1 %2863 }
 0x2a9   : > { %3601 = vst.msk [vmem:[#allocation5 + $0x20] sm:$0xff] %vm2957_vm14, %v3507_v63  ;;  %2959 = vst.msk [vmem:[#allocation5 + $0x18] sm:$0xff] %vm2957_vm14, %v2864_v16  ;;  %3909 = vrot.lane.b32.xlu0 %v10052_v56, %s8362_s14 }
 0x2aa   : > { %2783 = vst.msk [vmem:[#allocation5 + $0x1b0] sm:$0xff] %vm2644_vm12, %v2751_v41  ;;  %2784 = vst.msk [vmem:[#allocation5 + $0x1c8] sm:$0xff] %vm2644_vm12, %v2752_v20  ;;  %3267 = vrot.lane.b32.xlu1 %v10154_v44, %s8362_s14  ;;  %v10317_v41 = vld [vmem:[#allocation4 + $0xc8] sm:$0xff] }
 0x2ab   : > { %v3700_v27 = vpop.permute.xlu0 %3699  ;;  %v4082_v10 = vld [vmem:[#allocation5 + $0x8] sm:$0xff] }
 0x2ac   : > { %v3057_v38 = vpop.permute.xlu1 %3056  ;;  %3794 = vst.msk [vmem:[#allocation5 + $0x20] sm:$0xff] %vm3150_vm15, %v3700_v27  ;;  %4373 = vmatprep.mubr.f32.mxu1 %v4082_v10  ;;  %v4081_v46 = vld [vmem:[#allocation5] sm:$0xff] }
 0x2ad   : > { %3152 = vst.msk [vmem:[#allocation5 + $0x18] sm:$0xff] %vm3150_vm15, %v3057_v38  ;;  %4374 = vmatmul.mubr.f32.vlgmr.msra.gmra.mrb[32].mxu1 %v4081_v46  ;;  %3526 = vrot.lane.b32.xlu0 %v9954_v58, %s8359_s20  ;;  %v4128_v21 = vld [vmem:[#allocation5 + $0x178] sm:$0xff] }
 0x2ae   : > { %2883 = vrot.lane.b32.xlu1 %v9866_v17, %s8359_s20 }
 0x2af   : > { %v4125_v47 = vld [vmem:[#allocation5 + $0x160] sm:$0xff]  ;;  %v3892_v52 = vpop.permute.xlu0 %3891 }
 0x2b0   : > { %7882 = vmatprep.mubr.msk.f32.mxu0 %vm2644_vm12, %v4125_v47  ;;  %v3250_v40 = vpop.permute.xlu1 %3249  ;;  %3986 = vst.msk [vmem:[#allocation5 + $0x20] sm:$0xff] %vm3343_vm0, %v3892_v52 }
 0x2b1   : > { %7883 = vmatmul.mubr.msk.f32.gmra.mrb[14].mxu0 %vm2644_vm12, %v4128_v21  ;;  %3345 = vst.msk [vmem:[#allocation5 + $0x18] sm:$0xff] %vm3343_vm0, %v3250_v40  ;;  %3719 = vrot.lane.b32.xlu0 %v10058_v37, %s8361_s18  ;;  %v10339_v21 = vld [vmem:[#allocation4 + $0xd8] sm:$0xff] }
 0x2b2   : > { %3076 = vrot.lane.b32.xlu1 %v9864_v55, %s8361_s18 }
 0x2b3   : > { %v3509_v17 = vpop.permute.xlu0 %3508 }
 0x2b4   : > { %v2866_v44 = vpop.permute.xlu1 %2865  ;;  %3602 = vst.msk [vmem:[#allocation5 + $0x38] sm:$0xff] %vm2957_vm14, %v3509_v17 }
 0x2b5   : > { %2960 = vst.msk [vmem:[#allocation5 + $0x30] sm:$0xff] %vm2957_vm14, %v2866_v44  ;;  %3911 = vrot.lane.b32.xlu0 %v10046_v34, %s8362_s14 }
 0x2b6   : > { %3269 = vrot.lane.b32.xlu1 %v10177_v7, %s8362_s14 }
 0x2b7   : > { %v3702_v33 = vpop.permute.xlu0 %3701  ;;  %v7834_v53 = vpop.f32.mrb[18].mxu1  ;;  %v4085_v45 = vld [vmem:[#allocation5 + $0x20] sm:$0xff] }
 0x2b8   : > { %v3059_v11 = vpop.permute.xlu1 %3058  ;;  %3795 = vst.msk [vmem:[#allocation5 + $0x38] sm:$0xff] %vm3150_vm15, %v3702_v33  ;;  %v2560_v55 = vmul.f32 %v10004_v24, %v7834_v53  ;;  %v2465_v43 = vpop.f32.mrb[19].mxu1  ;;  %4378 = vmatprep.mubr.f32.mxu1 %v4085_v45  ;;  %v4084_v14 = vld [vmem:[#allocation5 + $0x18] sm:$0xff] }
 0x2b9   : > { %3153 = vst.msk [vmem:[#allocation5 + $0x30] sm:$0xff] %vm3150_vm15, %v3059_v11  ;;  %v2559_v54 = vmul.f32 %v10004_v24, %v2465_v43  ;;  %4379 = vmatmul.mubr.f32.gmra.mrb[34].mxu1 %v4084_v14  ;;  %3528 = vrot.lane.b32.xlu0 %v10048_v6, %s8359_s20 }
 0x2ba   : > { %2885 = vrot.lane.b32.xlu1 %v9962_v2, %s8359_s20  ;;  %v2599_v15 = vadd.f32 %v10016_v30, %v2560_v55 }
 0x2bb   : > { %v2598_v60 = vadd.f32 %v10016_v30, %v2559_v54  ;;  %v3894_v59 = vpop.permute.xlu0 %3893 }
 0x2bc   : > { %v2631_v36 = vmax.f32 %v2599_v15, 0.0  ;;  %v3252_v7 = vpop.permute.xlu1 %3251  ;;  %3987 = vst.msk [vmem:[#allocation5 + $0x38] sm:$0xff] %vm3343_vm0, %v3894_v59 }
 0x2bd   : > { %v2630_v8 = vmax.f32 %v2598_v60, 0.0  ;;  %3346 = vst.msk [vmem:[#allocation5 + $0x30] sm:$0xff] %vm3343_vm0, %v3252_v7  ;;  %3721 = vrot.lane.b32.xlu0 %v10273_v42, %s8361_s18 }
 0x2be   : > { %3078 = vrot.lane.b32.xlu1 %v9958_v62, %s8361_s18  ;;  %2720 = vst.msk [vmem:[#allocation4 + $0xf9] sm:$0xff] %vm2644_vm12, %v2631_v36  ;;  %v10365_v36 = vld [vmem:[#allocation4 + $0xe0] sm:$0xff] }
 0x2bf   : > { %2719 = vst.msk [vmem:[#allocation4 + $0xf1] sm:$0xff] %vm2644_vm12, %v2630_v8  ;;  %v3511_v2 = vpop.permute.xlu0 %3510 }
 0x2c0   : > { %v2868_v50 = vpop.permute.xlu1 %2867  ;;  %3603 = vst.msk [vmem:[#allocation5 + $0x50] sm:$0xff] %vm2957_vm14, %v3511_v2 }
 0x2c1   : > { %2961 = vst.msk [vmem:[#allocation5 + $0x48] sm:$0xff] %vm2957_vm14, %v2868_v50  ;;  %3913 = vrot.lane.b32.xlu0 %v10137_v51, %s8362_s14 }
 0x2c2   : > { %3271 = vrot.lane.b32.xlu1 %v10211_v29, %s8362_s14 }
 0x2c3   : > { %v3704_v12 = vpop.permute.xlu0 %3703  ;;  %v4088_v18 = vld [vmem:[#allocation5 + $0x38] sm:$0xff] }
 0x2c4   : > { %v10285_v62 = vpop.f32.mrb[2].mxu0  ;;  %v3061_v3 = vpop.permute.xlu1 %3060  ;;  %3796 = vst.msk [vmem:[#allocation5 + $0x50] sm:$0xff] %vm3150_vm15, %v3704_v12  ;;  %4383 = vmatprep.mubr.f32.mxu1 %v4088_v18  ;;  %v4087_v39 = vld [vmem:[#allocation5 + $0x30] sm:$0xff] }
 0x2c5   : > { %v10288_v49 = vpop.f32.mrb[3].mxu0  ;;  %3154 = vst.msk [vmem:[#allocation5 + $0x48] sm:$0xff] %vm3150_vm15, %v3061_v3  ;;  %4384 = vmatmul.mubr.f32.gmra.mrb[36].mxu1 %v4087_v39  ;;  %v10293_v4 = vld [vmem:[#allocation4 + $0xfa] sm:$0xff]  ;;  %3530 = vrot.lane.b32.xlu0 %v10044_v57, %s8359_s20 }
 0x2c6   : > { %2887 = vrot.lane.b32.xlu1 %v9956_v61, %s8359_s20  ;;  %v10295_v19 = vld [vmem:[#allocation4 + $0xf9] sm:$0xff]  ;;  %4066 = vst.msk [vmem:[#allocation5 + $0x1a8] sm:$0xff] %vm2644_vm12, %v10293_v4  ;;  %v10303_v9 = vld [vmem:[#allocation4 + $0xf1] sm:$0xff] }
 0x2c7   : > { %v10299_v22 = vld [vmem:[#allocation4 + $0xf2] sm:$0xff]  ;;  %3427 = vst.msk [vmem:[#allocation5 + $0x1d0] sm:$0xff] %vm2644_vm12, %v10295_v19  ;;  %v3896_v23 = vpop.permute.xlu0 %3895  ;;  %3426 = vst.msk [vmem:[#allocation5 + $0x1b8] sm:$0xff] %vm2644_vm12, %v10303_v9 }
 0x2c8   : > { %4065 = vst.msk [vmem:[#allocation5 + $0x190] sm:$0xff] %vm2644_vm12, %v10299_v22  ;;  %v2753_v61 = vld [vmem:[#allocation4 + $0xf0] sm:$0xff]  ;;  %v2754_v29 = vld [vmem:[#allocation4 + $0xf8] sm:$0xff]  ;;  %v3254_v63 = vpop.permute.xlu1 %3253 }
 0x2c9   : > { %3988 = vst.msk [vmem:[#allocation5 + $0x50] sm:$0xff] %vm3343_vm0, %v3896_v23  ;;  %3347 = vst.msk [vmem:[#allocation5 + $0x48] sm:$0xff] %vm3343_vm0, %v3254_v63  ;;  %3723 = vrot.lane.b32.xlu0 %v10317_v41, %s8361_s18 }
 0x2ca   : > { %2785 = vst.msk [vmem:[#allocation5 + $0x1e0] sm:$0xff] %vm2644_vm12, %v2753_v61  ;;  %2786 = vst.msk [vmem:[#allocation5 + $0x1f8] sm:$0xff] %vm2644_vm12, %v2754_v29  ;;  %3080 = vrot.lane.b32.xlu1 %v9954_v58, %s8361_s18 }
 0x2cb   : > { %v3513_v20 = vpop.permute.xlu0 %3512 }
 0x2cc   : > { %v2870_v16 = vpop.permute.xlu1 %2869  ;;  %3604 = vst.msk [vmem:[#allocation5 + $0x68] sm:$0xff] %vm2957_vm14, %v3513_v20  ;;  %v10407_v20 = vld [vmem:[#allocation4 + $0xf0] sm:$0xff] }
 0x2cd   : > { %2962 = vst.msk [vmem:[#allocation5 + $0x60] sm:$0xff] %vm2957_vm14, %v2870_v16  ;;  %3915 = vrot.lane.b32.xlu0 %v10131_v13, %s8362_s14  ;;  %v4134_v38 = vld [vmem:[#allocation5 + $0x1a8] sm:$0xff] }
 0x2ce   : > { %3273 = vrot.lane.b32.xlu1 %v10058_v37, %s8362_s14 }
 0x2cf   : > { %v4131_v27 = vld [vmem:[#allocation5 + $0x190] sm:$0xff]  ;;  %v3706_v10 = vpop.permute.xlu0 %3705 }
 0x2d0   : > { %7885 = vmatprep.mubr.msk.f32.mxu0 %vm2644_vm12, %v4131_v27  ;;  %v4091_v58 = vld [vmem:[#allocation5 + $0x50] sm:$0xff]  ;;  %v3063_v46 = vpop.permute.xlu1 %3062  ;;  %3797 = vst.msk [vmem:[#allocation5 + $0x68] sm:$0xff] %vm3150_vm15, %v3706_v10  ;;  %v4090_v47 = vld [vmem:[#allocation5 + $0x48] sm:$0xff] }
 0x2d1   : > { %4388 = vmatprep.mubr.f32.mxu1 %v4091_v58  ;;  %7886 = vmatmul.mubr.msk.f32.gmra.mrb[16].mxu0 %vm2644_vm12, %v4134_v38  ;;  %3155 = vst.msk [vmem:[#allocation5 + $0x60] sm:$0xff] %vm3150_vm15, %v3063_v46 }
 0x2d2   : > { %4389 = vmatmul.mubr.f32.gmra.mrb[38].mxu1 %v4090_v47  ;;  %2889 = vrot.lane.b32.xlu1 %v10052_v56, %s8359_s20 }
 0x2d3   : > { %3532 = vrot.lane.b32.xlu0 %v10133_v28, %s8359_s20  ;;  %v3898_v37 = vpop.permute.xlu0 %3897 }
 0x2d4   : > { %v3256_v52 = vpop.permute.xlu1 %3255  ;;  %3989 = vst.msk [vmem:[#allocation5 + $0x68] sm:$0xff] %vm3343_vm0, %v3898_v37 }
 0x2d5   : > { %3348 = vst.msk [vmem:[#allocation5 + $0x60] sm:$0xff] %vm3343_vm0, %v3256_v52 }
 0x2d6   : > { %3082 = vrot.lane.b32.xlu1 %v10048_v6, %s8361_s18 }
 0x2d7   : > { %3725 = vrot.lane.b32.xlu0 %v10339_v21, %s8361_s18  ;;  %v3515_v40 = vpop.permute.xlu0 %3514  ;;  %v7837_v17 = vpop.f32.mrb[20].mxu1 }
 0x2d8   : > { %v2872_v56 = vpop.permute.xlu1 %2871  ;;  %3605 = vst.msk [vmem:[#allocation5 + $0x80] sm:$0xff] %vm2957_vm14, %v3515_v40  ;;  %v2562_v44 = vmul.f32 %v10004_v24, %v7837_v17  ;;  %v2475_v33 = vpop.f32.mrb[21].mxu1 }
 0x2d9   : > { %2963 = vst.msk [vmem:[#allocation5 + $0x78] sm:$0xff] %vm2957_vm14, %v2872_v56  ;;  %v2561_v53 = vmul.f32 %v10004_v24, %v2475_v33  ;;  %v10431_v56 = vld [vmem:[#allocation4 + $0xf8] sm:$0xff] }
 0x2da   : > { %3275 = vrot.lane.b32.xlu1 %v10273_v42, %s8362_s14  ;;  %v2601_v6 = vadd.f32 %v10016_v30, %v2562_v44 }
 0x2db   : > { %3917 = vrot.lane.b32.xlu0 %v10223_v26, %s8362_s14  ;;  %v2600_v45 = vadd.f32 %v10016_v30, %v2561_v53  ;;  %v3708_v11 = vpop.permute.xlu0 %3707  ;;  %v4094_v55 = vld [vmem:[#allocation5 + $0x68] sm:$0xff] }
 0x2dc   : > { %v2633_v43 = vmax.f32 %v2601_v6, 0.0  ;;  %v3065_v14 = vpop.permute.xlu1 %3064  ;;  %3798 = vst.msk [vmem:[#allocation5 + $0x80] sm:$0xff] %vm3150_vm15, %v3708_v11  ;;  %4393 = vmatprep.mubr.f32.mxu1 %v4094_v55  ;;  %v4093_v54 = vld [vmem:[#allocation5 + $0x60] sm:$0xff] }
 0x2dd   : > { %v2632_v15 = vmax.f32 %v2600_v45, 0.0  ;;  %3156 = vst.msk [vmem:[#allocation5 + $0x78] sm:$0xff] %vm3150_vm15, %v3065_v14  ;;  %4394 = vmatmul.mubr.f32.gmra.mrb[40].mxu1 %v4093_v54 }
 0x2de   : > { %2891 = vrot.lane.b32.xlu1 %v10046_v34, %s8359_s20  ;;  %2722 = vst.msk [vmem:[#allocation4 + $0x111] sm:$0xff] %vm2644_vm12, %v2633_v43 }
 0x2df   : > { %3534 = vrot.lane.b32.xlu0 %v10129_v5, %s8359_s20  ;;  %2721 = vst.msk [vmem:[#allocation4 + $0x109] sm:$0xff] %vm2644_vm12, %v2632_v15  ;;  %v3900_v60 = vpop.permute.xlu0 %3899 }
 0x2e0   : > { %v3258_v59 = vpop.permute.xlu1 %3257  ;;  %3990 = vst.msk [vmem:[#allocation5 + $0x80] sm:$0xff] %vm3343_vm0, %v3900_v60 }
 0x2e1   : > { %3349 = vst.msk [vmem:[#allocation5 + $0x78] sm:$0xff] %vm3343_vm0, %v3258_v59 }
 0x2e2   : > { %3084 = vrot.lane.b32.xlu1 %v10044_v57, %s8361_s18 }
 0x2e3   : > { %3727 = vrot.lane.b32.xlu0 %v10365_v36, %s8361_s18  ;;  %v3517_v7 = vpop.permute.xlu0 %3516 }
 0x2e4   : > { %v10369_v34 = vpop.f32.mrb[4].mxu0  ;;  %v2874_v8 = vpop.permute.xlu1 %2873  ;;  %3606 = vst.msk [vmem:[#allocation5 + $0x98] sm:$0xff] %vm2957_vm14, %v3517_v7 }
 0x2e5   : > { %v10372_v42 = vpop.f32.mrb[5].mxu0  ;;  %2964 = vst.msk [vmem:[#allocation5 + $0x90] sm:$0xff] %vm2957_vm14, %v2874_v8  ;;  %v10377_v2 = vld [vmem:[#allocation4 + $0x112] sm:$0xff] }
 0x2e6   : > { %3277 = vrot.lane.b32.xlu1 %v10317_v41, %s8362_s14  ;;  %v10379_v57 = vld [vmem:[#allocation4 + $0x111] sm:$0xff]  ;;  %4068 = vst.msk [vmem:[#allocation5 + $0x1d8] sm:$0xff] %vm2644_vm12, %v10377_v2  ;;  %v10387_v12 = vld [vmem:[#allocation4 + $0x109] sm:$0xff] }
 0x2e7   : > { %3919 = vrot.lane.b32.xlu0 %v10215_v31, %s8362_s14  ;;  %v10383_v50 = vld [vmem:[#allocation4 + $0x10a] sm:$0xff]  ;;  %3429 = vst.msk [vmem:[#allocation5 + $0x200] sm:$0xff] %vm2644_vm12, %v10379_v57  ;;  %v3710_v18 = vpop.permute.xlu0 %3709  ;;  %3428 = vst.msk [vmem:[#allocation5 + $0x1e8] sm:$0xff] %vm2644_vm12, %v10387_v12 }
 0x2e8   : > { %v4097_v3 = vld [vmem:[#allocation5 + $0x80] sm:$0xff]  ;;  %4067 = vst.msk [vmem:[#allocation5 + $0x1c0] sm:$0xff] %vm2644_vm12, %v10383_v50  ;;  %v2755_v39 = vld [vmem:[#allocation4 + $0x108] sm:$0xff]  ;;  %v3067_v23 = vpop.permute.xlu1 %3066 }
 0x2e9   : > { %3799 = vst.msk [vmem:[#allocation5 + $0x98] sm:$0xff] %vm3150_vm15, %v3710_v18  ;;  %4398 = vmatprep.mubr.f32.mxu1 %v4097_v3  ;;  %v4096_v61 = vld [vmem:[#allocation5 + $0x78] sm:$0xff]  ;;  %v2756_v29 = vld [vmem:[#allocation4 + $0x110] sm:$0xff]  ;;  %3157 = vst.msk [vmem:[#allocation5 + $0x90] sm:$0xff] %vm3150_vm15, %v3067_v23 }
 0x2ea   : > { %2787 = vst.msk [vmem:[#allocation5 + $0x210] sm:$0xff] %vm2644_vm12, %v2755_v39  ;;  %4399 = vmatmul.mubr.f32.gmra.mrb[42].mxu1 %v4096_v61  ;;  %2893 = vrot.lane.b32.xlu1 %v10137_v51, %s8359_s20  ;;  %2788 = vst.msk [vmem:[#allocation5 + $0x228] sm:$0xff] %vm2644_vm12, %v2756_v29  ;;  %v10459_v15 = vld [vmem:[#allocation4 + $0x108] sm:$0xff] }
 0x2eb   : > { %3536 = vrot.lane.b32.xlu0 %v10219_v32, %s8359_s20  ;;  %v3902_v63 = vpop.permute.xlu0 %3901 }
 0x2ec   : > { %v3260_v41 = vpop.permute.xlu1 %3259  ;;  %3991 = vst.msk [vmem:[#allocation5 + $0x98] sm:$0xff] %vm3343_vm0, %v3902_v63 }
 0x2ed   : > { %3350 = vst.msk [vmem:[#allocation5 + $0x90] sm:$0xff] %vm3343_vm0, %v3260_v41  ;;  %v4140_v27 = vld [vmem:[#allocation5 + $0x1d8] sm:$0xff] }
 0x2ee   : > { %3086 = vrot.lane.b32.xlu1 %v10133_v28, %s8361_s18 }
 0x2ef   : > { %3729 = vrot.lane.b32.xlu0 %v10407_v20, %s8361_s18  ;;  %v4137_v51 = vld [vmem:[#allocation5 + $0x1c0] sm:$0xff]  ;;  %v3519_v16 = vpop.permute.xlu0 %3518 }
 0x2f0   : > { %7888 = vmatprep.mubr.msk.f32.mxu0 %vm2644_vm12, %v4137_v51  ;;  %v2876_v10 = vpop.permute.xlu1 %2875  ;;  %3607 = vst.msk [vmem:[#allocation5 + $0xb0] sm:$0xff] %vm2957_vm14, %v3519_v16  ;;  %v10571_v51 = vld [vmem:[#allocation4 + $0x110] sm:$0xff] }
 0x2f1   : > { %7889 = vmatmul.mubr.msk.f32.gmra.mrb[18].mxu0 %vm2644_vm12, %v4140_v27  ;;  %2965 = vst.msk [vmem:[#allocation5 + $0xa8] sm:$0xff] %vm2957_vm14, %v2876_v10 }
 0x2f2   : > { %3279 = vrot.lane.b32.xlu1 %v10339_v21, %s8362_s14 }
 0x2f3   : > { %3921 = vrot.lane.b32.xlu0 %v10303_v9, %s8362_s14  ;;  %v3712_v28 = vpop.permute.xlu0 %3711  ;;  %v4100_v58 = vld [vmem:[#allocation5 + $0x98] sm:$0xff] }
 0x2f4   : > { %v3069_v38 = vpop.permute.xlu1 %3068  ;;  %3800 = vst.msk [vmem:[#allocation5 + $0xb0] sm:$0xff] %vm3150_vm15, %v3712_v28  ;;  %4403 = vmatprep.mubr.f32.mxu1 %v4100_v58  ;;  %v4099_v46 = vld [vmem:[#allocation5 + $0x90] sm:$0xff]  ;;  %v10620_v58 = vld [vmem:[%s12429_s2] ss:$0 sm:$0xff] }
 0x2f5   : > { %3158 = vst.msk [vmem:[#allocation5 + $0xa8] sm:$0xff] %vm3150_vm15, %v3069_v38  ;;  %4404 = vmatmul.mubr.f32.gmra.mrb[44].mxu1 %v4099_v46 }
 0x2f6   : > { %2895 = vrot.lane.b32.xlu1 %v10131_v13, %s8359_s20 }
 0x2f7   : > { %3538 = vrot.lane.b32.xlu0 %v10213_v1, %s8359_s20  ;;  %v3904_v47 = vpop.permute.xlu0 %3903  ;;  %v7840_v37 = vpop.f32.mrb[22].mxu1 }
 0x2f8   : > { %v3262_v52 = vpop.permute.xlu1 %3261  ;;  %3992 = vst.msk [vmem:[#allocation5 + $0xb0] sm:$0xff] %vm3343_vm0, %v3904_v47  ;;  %v2564_v21 = vmul.f32 %v10004_v24, %v7840_v37  ;;  %v2485_v40 = vpop.f32.mrb[23].mxu1  ;;  %v10630_v37 = vld [vmem:[%s12430_s3] ss:$0 sm:$0xff] }
 0x2f9   : > { %3351 = vst.msk [vmem:[#allocation5 + $0xa8] sm:$0xff] %vm3343_vm0, %v3262_v52  ;;  %v2563_v17 = vmul.f32 %v10004_v24, %v2485_v40 }
 0x2fa   : > { %3088 = vrot.lane.b32.xlu1 %v10129_v5, %s8361_s18  ;;  %v2603_v13 = vadd.f32 %v10016_v30, %v2564_v21 }
 0x2fb   : > { %3731 = vrot.lane.b32.xlu0 %v10431_v56, %s8361_s18  ;;  %v2602_v44 = vadd.f32 %v10016_v30, %v2563_v17  ;;  %v3521_v33 = vpop.permute.xlu0 %3520 }
 0x2fc   : > { %v2635_v53 = vmax.f32 %v2603_v13, 0.0  ;;  %v2878_v6 = vpop.permute.xlu1 %2877  ;;  %3608 = vst.msk [vmem:[#allocation5 + $0xc8] sm:$0xff] %vm2957_vm14, %v3521_v33 }
 0x2fd   : > { %v2634_v45 = vmax.f32 %v2602_v44, 0.0  ;;  %2966 = vst.msk [vmem:[#allocation5 + $0xc0] sm:$0xff] %vm2957_vm14, %v2878_v6 }
 0x2fe   : > { %3281 = vrot.lane.b32.xlu1 %v10365_v36, %s8362_s14  ;;  %2724 = vst.msk [vmem:[#allocation4 + $0x129] sm:$0xff] %vm2644_vm12, %v2635_v53 }
 0x2ff   : > { %3923 = vrot.lane.b32.xlu0 %v10295_v19, %s8362_s14  ;;  %2723 = vst.msk [vmem:[#allocation4 + $0x121] sm:$0xff] %vm2644_vm12, %v2634_v45  ;;  %v3714_v24 = vpop.permute.xlu0 %3713  ;;  %v4103_v30 = vld [vmem:[#allocation5 + $0xb0] sm:$0xff] }
 0x300   : > { %v3071_v5 = vpop.permute.xlu1 %3070  ;;  %3801 = vst.msk [vmem:[#allocation5 + $0xc8] sm:$0xff] %vm3150_vm15, %v3714_v24  ;;  %4408 = vmatprep.mubr.f32.mxu1 %v4103_v30  ;;  %v4102_v11 = vld [vmem:[#allocation5 + $0xa8] sm:$0xff] }
 0x301   : > { %3159 = vst.msk [vmem:[#allocation5 + $0xc0] sm:$0xff] %vm3150_vm15, %v3071_v5  ;;  %4409 = vmatmul.mubr.f32.gmra.mrb[46].mxu1 %v4102_v11 }
 0x302   : > { %2897 = vrot.lane.b32.xlu1 %v10223_v26, %s8359_s20 }
 0x303   : > { %3540 = vrot.lane.b32.xlu0 %v10299_v22, %s8359_s20  ;;  %v3906_v43 = vpop.permute.xlu0 %3905 }
 0x304   : > { %v10451_v55 = vpop.f32.mrb[6].mxu0  ;;  %v3264_v14 = vpop.permute.xlu1 %3263  ;;  %3993 = vst.msk [vmem:[#allocation5 + $0xc8] sm:$0xff] %vm3343_vm0, %v3906_v43 }
 0x305   : > { %v10454_v54 = vpop.f32.mrb[7].mxu0  ;;  %3352 = vst.msk [vmem:[#allocation5 + $0xc0] sm:$0xff] %vm3343_vm0, %v3264_v14  ;;  %v10461_v60 = vld [vmem:[#allocation4 + $0x12a] sm:$0xff] }
 0x306   : > { %3090 = vrot.lane.b32.xlu1 %v10219_v32, %s8361_s18  ;;  %v10463_v26 = vld [vmem:[#allocation4 + $0x129] sm:$0xff]  ;;  %4070 = vst.msk [vmem:[#allocation5 + $0x208] sm:$0xff] %vm2644_vm12, %v10461_v60  ;;  %v10471_v36 = vld [vmem:[#allocation4 + $0x121] sm:$0xff] }
 0x307   : > { %3733 = vrot.lane.b32.xlu0 %v10459_v15, %s8361_s18  ;;  %v10467_v59 = vld [vmem:[#allocation4 + $0x122] sm:$0xff]  ;;  %3431 = vst.msk [vmem:[#allocation5 + $0x230] sm:$0xff] %vm2644_vm12, %v10463_v26  ;;  %v3523_v32 = vpop.permute.xlu0 %3522  ;;  %3430 = vst.msk [vmem:[#allocation5 + $0x218] sm:$0xff] %vm2644_vm12, %v10471_v36 }
 0x308   : > { %4069 = vst.msk [vmem:[#allocation5 + $0x1f0] sm:$0xff] %vm2644_vm12, %v10467_v59  ;;  %v2757_v7 = vld [vmem:[#allocation4 + $0x120] sm:$0xff]  ;;  %v2758_v8 = vld [vmem:[#allocation4 + $0x128] sm:$0xff]  ;;  %v2880_v18 = vpop.permute.xlu1 %2879 }
 0x309   : > { %3609 = vst.msk [vmem:[#allocation5 + $0xe0] sm:$0xff] %vm2957_vm14, %v3523_v32  ;;  %2967 = vst.msk [vmem:[#allocation5 + $0xd8] sm:$0xff] %vm2957_vm14, %v2880_v18  ;;  %v10683_v18 = vld [vmem:[#allocation4 + $0x128] sm:$0xff] }
 0x30a   : > { %2789 = vst.msk [vmem:[#allocation5 + $0x240] sm:$0xff] %vm2644_vm12, %v2757_v7  ;;  %2790 = vst.msk [vmem:[#allocation5 + $0x258] sm:$0xff] %vm2644_vm12, %v2758_v8  ;;  %3283 = vrot.lane.b32.xlu1 %v10407_v20, %s8362_s14 }
 0x30b   : > { %3925 = vrot.lane.b32.xlu0 %v10387_v12, %s8362_s14  ;;  %v3716_v3 = vpop.permute.xlu0 %3715  ;;  %v4106_v39 = vld [vmem:[#allocation5 + $0xc8] sm:$0xff] }
 0x30c   : > { %v3073_v23 = vpop.permute.xlu1 %3072  ;;  %3802 = vst.msk [vmem:[#allocation5 + $0xe0] sm:$0xff] %vm3150_vm15, %v3716_v3  ;;  %4413 = vmatprep.mubr.f32.mxu1 %v4106_v39  ;;  %v4105_v61 = vld [vmem:[#allocation5 + $0xc0] sm:$0xff] }
 0x30d   : > { %3160 = vst.msk [vmem:[#allocation5 + $0xd8] sm:$0xff] %vm3150_vm15, %v3073_v23  ;;  %4414 = vmatmul.mubr.f32.gmra.mrb[48].mxu1 %v4105_v61  ;;  %v4146_v41 = vld [vmem:[#allocation5 + $0x208] sm:$0xff] }
 0x30e   : > { %2899 = vrot.lane.b32.xlu1 %v10215_v31, %s8359_s20 }
 0x30f   : > { %3542 = vrot.lane.b32.xlu0 %v10293_v4, %s8359_s20  ;;  %v4143_v29 = vld [vmem:[#allocation5 + $0x1f0] sm:$0xff]  ;;  %v3908_v63 = vpop.permute.xlu0 %3907 }
 0x310   : > { %7891 = vmatprep.mubr.msk.f32.mxu0 %vm2644_vm12, %v4143_v29  ;;  %v3266_v20 = vpop.permute.xlu1 %3265  ;;  %3994 = vst.msk [vmem:[#allocation5 + $0xe0] sm:$0xff] %vm3343_vm0, %v3908_v63 }
 0x311   : > { %7892 = vmatmul.mubr.msk.f32.gmra.mrb[20].mxu0 %vm2644_vm12, %v4146_v41  ;;  %3353 = vst.msk [vmem:[#allocation5 + $0xd8] sm:$0xff] %vm3343_vm0, %v3266_v20 }
 0x312   : > { %3092 = vrot.lane.b32.xlu1 %v10213_v1, %s8361_s18 }
 0x313   : > { %3735 = vrot.lane.b32.xlu0 %v10571_v51, %s8361_s18  ;;  %v3525_v16 = vpop.permute.xlu0 %3524 }
 0x314   : > { %v2882_v31 = vpop.permute.xlu1 %2881  ;;  %3610 = vst.msk [vmem:[#allocation5 + $0xf8] sm:$0xff] %vm2957_vm14, %v3525_v16 }
 0x315   : > { %2968 = vst.msk [vmem:[#allocation5 + $0xf0] sm:$0xff] %vm2957_vm14, %v2882_v31 }
 0x316   : > { %3285 = vrot.lane.b32.xlu1 %v10431_v56, %s8362_s14 }
 0x317   : > { %3927 = vrot.lane.b32.xlu0 %v10379_v57, %s8362_s14  ;;  %v7843_v1 = vpop.f32.mrb[24].mxu1  ;;  %v4109_v27 = vld [vmem:[#allocation5 + $0xe0] sm:$0xff]  ;;  %v3718_v28 = vpop.permute.xlu0 %3717 }
 0x318   : > { %v3075_v10 = vpop.permute.xlu1 %3074  ;;  %v2566_v38 = vmul.f32 %v10620_v58, %v7843_v1  ;;  %4418 = vmatprep.mubr.f32.mxu1 %v4109_v27  ;;  %v4108_v46 = vld [vmem:[#allocation5 + $0xd8] sm:$0xff]  ;;  %3803 = vst.msk [vmem:[#allocation5 + $0xf8] sm:$0xff] %vm3150_vm15, %v3718_v28  ;;  %v2495_v47 = vpop.f32.mrb[25].mxu1 }
 0x319   : > { %3161 = vst.msk [vmem:[#allocation5 + $0xf0] sm:$0xff] %vm3150_vm15, %v3075_v10  ;;  %4419 = vmatmul.mubr.f32.gmra.mrb[50].mxu1 %v4108_v46  ;;  %v2565_v21 = vmul.f32 %v10620_v58, %v2495_v47 }
 0x31a   : > { %2901 = vrot.lane.b32.xlu1 %v10303_v9, %s8359_s20  ;;  %v2605_v52 = vadd.f32 %v10630_v37, %v2566_v38  ;;  %v10641_v9 = vld [vmem:[#allocation4 + $0x120] sm:$0xff] }
 0x31b   : > { %3544 = vrot.lane.b32.xlu0 %v10383_v50, %s8359_s20  ;;  %v2604_v17 = vadd.f32 %v10630_v37, %v2565_v21  ;;  %v3910_v13 = vpop.permute.xlu0 %3909 }
 0x31c   : > { %v2637_v40 = vmax.f32 %v2605_v52, 0.0  ;;  %v3268_v56 = vpop.permute.xlu1 %3267  ;;  %3995 = vst.msk [vmem:[#allocation5 + $0xf8] sm:$0xff] %vm3343_vm0, %v3910_v13 }
 0x31d   : > { %3354 = vst.msk [vmem:[#allocation5 + $0xf0] sm:$0xff] %vm3343_vm0, %v3268_v56  ;;  %v2636_v44 = vmax.f32 %v2604_v17, 0.0 }
 0x31e   : > { %3094 = vrot.lane.b32.xlu1 %v10299_v22, %s8361_s18  ;;  %2726 = vst.msk [vmem:[#allocation4 + $0x141] sm:$0xff] %vm2644_vm12, %v2637_v40 }
 0x31f   : > { %3737 = vrot.lane.b32.xlu0 %v10641_v9, %s8361_s18  ;;  %2725 = vst.msk [vmem:[#allocation4 + $0x139] sm:$0xff] %vm2644_vm12, %v2636_v44  ;;  %v3527_v53 = vpop.permute.xlu0 %3526 }
 0x320   : > { %v2884_v33 = vpop.permute.xlu1 %2883  ;;  %3611 = vst.msk [vmem:[#allocation5 + $0x110] sm:$0xff] %vm2957_vm14, %v3527_v53 }
 0x321   : > { %2969 = vst.msk [vmem:[#allocation5 + $0x108] sm:$0xff] %vm2957_vm14, %v2884_v33 }
 0x322   : > { %3287 = vrot.lane.b32.xlu1 %v10459_v15, %s8362_s14 }
 0x323   : > { %3929 = vrot.lane.b32.xlu0 %v10471_v36, %s8362_s14  ;;  %v3720_v45 = vpop.permute.xlu0 %3719  ;;  %v4112_v24 = vld [vmem:[#allocation5 + $0xf8] sm:$0xff] }
 0x324   : > { %v10653_v22 = vpop.f32.mrb[8].mxu0  ;;  %v3077_v6 = vpop.permute.xlu1 %3076  ;;  %v4111_v30 = vld [vmem:[#allocation5 + $0xf0] sm:$0xff]  ;;  %3804 = vst.msk [vmem:[#allocation5 + $0x110] sm:$0xff] %vm3150_vm15, %v3720_v45  ;;  %4423 = vmatprep.mubr.f32.mxu1 %v4112_v24 }
 0x325   : > { %3162 = vst.msk [vmem:[#allocation5 + $0x108] sm:$0xff] %vm3150_vm15, %v3077_v6  ;;  %v10657_v5 = vpop.f32.mrb[9].mxu0  ;;  %v10661_v11 = vld [vmem:[#allocation4 + $0x142] sm:$0xff]  ;;  %4424 = vmatmul.mubr.f32.gmra.mrb[52].mxu1 %v4111_v30 }
 0x326   : > { %2903 = vrot.lane.b32.xlu1 %v10295_v19, %s8359_s20  ;;  %v10663_v43 = vld [vmem:[#allocation4 + $0x141] sm:$0xff]  ;;  %4072 = vst.msk [vmem:[#allocation5 + $0x238] sm:$0xff] %vm2644_vm12, %v10661_v11  ;;  %v10673_v15 = vld [vmem:[#allocation4 + $0x139] sm:$0xff] }
 0x327   : > { %3546 = vrot.lane.b32.xlu0 %v10377_v2, %s8359_s20  ;;  %3433 = vst.msk [vmem:[#allocation5 + $0x260] sm:$0xff] %vm2644_vm12, %v10663_v43  ;;  %v10671_v14 = vld [vmem:[#allocation4 + $0x13a] sm:$0xff]  ;;  %v3912_v19 = vpop.permute.xlu0 %3911  ;;  %3432 = vst.msk [vmem:[#allocation5 + $0x248] sm:$0xff] %vm2644_vm12, %v10673_v15 }
 0x328   : > { %v3270_v32 = vpop.permute.xlu1 %3269  ;;  %4071 = vst.msk [vmem:[#allocation5 + $0x220] sm:$0xff] %vm2644_vm12, %v10671_v14  ;;  %v2759_v7 = vld [vmem:[#allocation4 + $0x138] sm:$0xff]  ;;  %v2760_v8 = vld [vmem:[#allocation4 + $0x140] sm:$0xff] }
 0x329   : > { %3355 = vst.msk [vmem:[#allocation5 + $0x108] sm:$0xff] %vm3343_vm0, %v3270_v32  ;;  %3996 = vst.msk [vmem:[#allocation5 + $0x110] sm:$0xff] %vm3343_vm0, %v3912_v19  ;;  %v10707_v31 = vld [vmem:[#allocation4 + $0x138] sm:$0xff] }
 0x32a   : > { %3096 = vrot.lane.b32.xlu1 %v10293_v4, %s8361_s18  ;;  %2791 = vst.msk [vmem:[#allocation5 + $0x270] sm:$0xff] %vm2644_vm12, %v2759_v7  ;;  %2792 = vst.msk [vmem:[#allocation5 + $0x288] sm:$0xff] %vm2644_vm12, %v2760_v8 }
 0x32b   : > { %3739 = vrot.lane.b32.xlu0 %v10683_v18, %s8361_s18  ;;  %v3529_v39 = vpop.permute.xlu0 %3528 }
 0x32c   : > { %v2886_v3 = vpop.permute.xlu1 %2885  ;;  %3612 = vst.msk [vmem:[#allocation5 + $0x128] sm:$0xff] %vm2957_vm14, %v3529_v39 }
 0x32d   : > { %2970 = vst.msk [vmem:[#allocation5 + $0x120] sm:$0xff] %vm2957_vm14, %v2886_v3  ;;  %v4152_v63 = vld [vmem:[#allocation5 + $0x238] sm:$0xff] }
 0x32e   : > { %3289 = vrot.lane.b32.xlu1 %v10571_v51, %s8362_s14 }
 0x32f   : > { %3931 = vrot.lane.b32.xlu0 %v10463_v26, %s8362_s14  ;;  %v4149_v4 = vld [vmem:[#allocation5 + $0x220] sm:$0xff]  ;;  %v3722_v61 = vpop.permute.xlu0 %3721 }
 0x330   : > { %v3079_v23 = vpop.permute.xlu1 %3078  ;;  %7894 = vmatprep.mubr.msk.f32.mxu0 %vm2644_vm12, %v4149_v4  ;;  %v4115_v29 = vld [vmem:[#allocation5 + $0x110] sm:$0xff]  ;;  %v4114_v41 = vld [vmem:[#allocation5 + $0x108] sm:$0xff]  ;;  %3805 = vst.msk [vmem:[#allocation5 + $0x128] sm:$0xff] %vm3150_vm15, %v3722_v61 }
 0x331   : > { %3163 = vst.msk [vmem:[#allocation5 + $0x120] sm:$0xff] %vm3150_vm15, %v3079_v23  ;;  %4428 = vmatprep.mubr.f32.mxu1 %v4115_v29  ;;  %7895 = vmatmul.mubr.msk.f32.gmra.mrb[22].mxu0 %vm2644_vm12, %v4152_v63 }
 0x332   : > { %4429 = vmatmul.mubr.f32.gmra.mrb[54].mxu1 %v4114_v41  ;;  %2905 = vrot.lane.b32.xlu1 %v10387_v12, %s8359_s20 }
 0x333   : > { %3548 = vrot.lane.b32.xlu0 %v10467_v59, %s8359_s20  ;;  %v3914_v51 = vpop.permute.xlu0 %3913 }
 0x334   : > { %v3272_v20 = vpop.permute.xlu1 %3271  ;;  %3997 = vst.msk [vmem:[#allocation5 + $0x128] sm:$0xff] %vm3343_vm0, %v3914_v51 }
 0x335   : > { %3356 = vst.msk [vmem:[#allocation5 + $0x120] sm:$0xff] %vm3343_vm0, %v3272_v20 }
 0x336   : > { %3098 = vrot.lane.b32.xlu1 %v10383_v50, %s8361_s18 }
 0x337   : > { %3741 = vrot.lane.b32.xlu0 %v10707_v31, %s8361_s18  ;;  %v7846_v16 = vpop.f32.mrb[26].mxu1  ;;  %v3531_v12 = vpop.permute.xlu0 %3530 }
 0x338   : > { %v2888_v1 = vpop.permute.xlu1 %2887  ;;  %v2568_v27 = vmul.f32 %v10620_v58, %v7846_v16  ;;  %3613 = vst.msk [vmem:[#allocation5 + $0x140] sm:$0xff] %vm2957_vm14, %v3531_v12  ;;  %v2505_v10 = vpop.f32.mrb[27].mxu1 }
 0x339   : > { %2971 = vst.msk [vmem:[#allocation5 + $0x138] sm:$0xff] %vm2957_vm14, %v2888_v1  ;;  %v2567_v38 = vmul.f32 %v10620_v58, %v2505_v10 }
 0x33a   : > { %v2607_v28 = vadd.f32 %v10630_v37, %v2568_v27  ;;  %3291 = vrot.lane.b32.xlu1 %v10641_v9, %s8362_s14  ;;  %v10733_v9 = vld [vmem:[#allocation4 + $0x140] sm:$0xff] }
 0x33b   : > { %3933 = vrot.lane.b32.xlu0 %v10673_v15, %s8362_s14  ;;  %v2606_v46 = vadd.f32 %v10630_v37, %v2567_v38  ;;  %v3724_v52 = vpop.permute.xlu0 %3723  ;;  %v4118_v21 = vld [vmem:[#allocation5 + $0x128] sm:$0xff] }
 0x33c   : > { %v2639_v50 = vmax.f32 %v2607_v28, 0.0  ;;  %v3081_v47 = vpop.permute.xlu1 %3080  ;;  %v4117_v40 = vld [vmem:[#allocation5 + $0x120] sm:$0xff]  ;;  %3806 = vst.msk [vmem:[#allocation5 + $0x140] sm:$0xff] %vm3150_vm15, %v3724_v52  ;;  %4433 = vmatprep.mubr.f32.mxu1 %v4118_v21 }
 0x33d   : > { %3164 = vst.msk [vmem:[#allocation5 + $0x138] sm:$0xff] %vm3150_vm15, %v3081_v47  ;;  %v2638_v17 = vmax.f32 %v2606_v46, 0.0  ;;  %4434 = vmatmul.mubr.f32.gmra.mrb[56].mxu1 %v4117_v40 }
 0x33e   : > { %2728 = vst.msk [vmem:[#allocation4 + $0x159] sm:$0xff] %vm2644_vm12, %v2639_v50  ;;  %2907 = vrot.lane.b32.xlu1 %v10379_v57, %s8359_s20 }
 0x33f   : > { %3550 = vrot.lane.b32.xlu0 %v10461_v60, %s8359_s20  ;;  %2727 = vst.msk [vmem:[#allocation4 + $0x151] sm:$0xff] %vm2644_vm12, %v2638_v17  ;;  %v3916_v13 = vpop.permute.xlu0 %3915 }
 0x340   : > { %v3274_v56 = vpop.permute.xlu1 %3273  ;;  %3998 = vst.msk [vmem:[#allocation5 + $0x140] sm:$0xff] %vm3343_vm0, %v3916_v13 }
 0x341   : > { %3357 = vst.msk [vmem:[#allocation5 + $0x138] sm:$0xff] %vm3343_vm0, %v3274_v56 }
 0x342   : > { %3100 = vrot.lane.b32.xlu1 %v10377_v2, %s8361_s18 }
 0x343   : > { %3743 = vrot.lane.b32.xlu0 %v10733_v9, %s8361_s18 }
 0x344   : > { %v10737_v57 = vpop.f32.mrb[10].mxu0  ;;  %v2890_v44 = vpop.permute.xlu1 %2889 }
 0x345   : > { %v3533_v33 = vpop.permute.xlu0 %3532  ;;  %2972 = vst.msk [vmem:[#allocation5 + $0x150] sm:$0xff] %vm2957_vm14, %v2890_v44  ;;  %v10741_v53 = vpop.f32.mrb[11].mxu0  ;;  %v10743_v6 = vld [vmem:[#allocation4 + $0x15a] sm:$0xff] }
 0x346   : > { %3614 = vst.msk [vmem:[#allocation5 + $0x158] sm:$0xff] %vm2957_vm14, %v3533_v33  ;;  %v10745_v45 = vld [vmem:[#allocation4 + $0x159] sm:$0xff]  ;;  %3293 = vrot.lane.b32.xlu1 %v10683_v18, %s8362_s14  ;;  %v10757_v24 = vld [vmem:[#allocation4 + $0x151] sm:$0xff] }
 0x347   : > { %4074 = vst.msk [vmem:[#allocation5 + $0x268] sm:$0xff] %vm2644_vm12, %v10743_v6  ;;  %3435 = vst.msk [vmem:[#allocation5 + $0x290] sm:$0xff] %vm2644_vm12, %v10745_v45  ;;  %3935 = vrot.lane.b32.xlu0 %v10663_v43, %s8362_s14  ;;  %v10755_v2 = vld [vmem:[#allocation4 + $0x152] sm:$0xff] }
 0x348   : > { %v3083_v30 = vpop.permute.xlu1 %3082  ;;  %v4121_v19 = vld [vmem:[#allocation5 + $0x140] sm:$0xff]  ;;  %v4120_v7 = vld [vmem:[#allocation5 + $0x138] sm:$0xff]  ;;  %4073 = vst.msk [vmem:[#allocation5 + $0x250] sm:$0xff] %vm2644_vm12, %v10755_v2  ;;  %3434 = vst.msk [vmem:[#allocation5 + $0x278] sm:$0xff] %vm2644_vm12, %v10757_v24 }
 0x349   : > { %v3726_v32 = vpop.permute.xlu0 %3725  ;;  %3165 = vst.msk [vmem:[#allocation5 + $0x150] sm:$0xff] %vm3150_vm15, %v3083_v30  ;;  %4438 = vmatprep.mubr.f32.mxu1 %v4121_v19  ;;  %v2761_v8 = vld [vmem:[#allocation4 + $0x150] sm:$0xff]  ;;  %v2762_v18 = vld [vmem:[#allocation4 + $0x158] sm:$0xff] }
 0x34a   : > { %3807 = vst.msk [vmem:[#allocation5 + $0x158] sm:$0xff] %vm3150_vm15, %v3726_v32  ;;  %4439 = vmatmul.mubr.f32.gmra.mrb[58].mxu1 %v4120_v7  ;;  %2909 = vrot.lane.b32.xlu1 %v10471_v36, %s8359_s20  ;;  %v10775_v4 = vld [vmem:[#allocation4 + $0x150] sm:$0xff] }
 0x34b   : > { %2793 = vst.msk [vmem:[#allocation5 + $0x2a0] sm:$0xff] %vm2644_vm12, %v2761_v8  ;;  %2794 = vst.msk [vmem:[#allocation5 + $0x2b8] sm:$0xff] %vm2644_vm12, %v2762_v18  ;;  %3552 = vrot.lane.b32.xlu0 %v10671_v14, %s8359_s20 }
 0x34c   : > { %v3276_v3 = vpop.permute.xlu1 %3275 }
 0x34d   : > { %v3918_v39 = vpop.permute.xlu0 %3917  ;;  %3358 = vst.msk [vmem:[#allocation5 + $0x150] sm:$0xff] %vm3343_vm0, %v3276_v3 }
 0x34e   : > { %3999 = vst.msk [vmem:[#allocation5 + $0x158] sm:$0xff] %vm3343_vm0, %v3918_v39  ;;  %3102 = vrot.lane.b32.xlu1 %v10467_v59, %s8361_s18  ;;  %v4158_v29 = vld [vmem:[#allocation5 + $0x268] sm:$0xff] }
 0x34f   : > { %3745 = vrot.lane.b32.xlu0 %v10775_v4, %s8361_s18  ;;  %v4155_v36 = vld [vmem:[#allocation5 + $0x250] sm:$0xff] }
 0x350   : > { %v2892_v23 = vpop.permute.xlu1 %2891  ;;  %7897 = vmatprep.mubr.msk.f32.mxu0 %vm2644_vm12, %v4155_v36 }
 0x351   : > { %v3535_v61 = vpop.permute.xlu0 %3534  ;;  %2973 = vst.msk [vmem:[#allocation5 + $0x168] sm:$0xff] %vm2957_vm14, %v2892_v23  ;;  %7898 = vmatmul.mubr.msk.f32.gmra.mrb[24].mxu0 %vm2644_vm12, %v4158_v29  ;;  %v6208_v23 = vld [vmem:[%s12434_s7] sm:$0xff] }
 0x352   : > { %3615 = vst.msk [vmem:[#allocation5 + $0x170] sm:$0xff] %vm2957_vm14, %v3535_v61  ;;  %3295 = vrot.lane.b32.xlu1 %v10707_v31, %s8362_s14 }
 0x353   : > { %3937 = vrot.lane.b32.xlu0 %v10757_v24, %s8362_s14 }
 0x354   : > { %v3085_v59 = vpop.permute.xlu1 %3084  ;;  %v4123_v20 = vld [vmem:[#allocation5 + $0x150] sm:$0xff] }
 0x355   : > { %v3728_v63 = vpop.permute.xlu0 %3727  ;;  %v4124_v41 = vld [vmem:[#allocation5 + $0x158] sm:$0xff]  ;;  %3166 = vst.msk [vmem:[#allocation5 + $0x168] sm:$0xff] %vm3150_vm15, %v3085_v59 }
 0x356   : > { %3808 = vst.msk [vmem:[#allocation5 + $0x170] sm:$0xff] %vm3150_vm15, %v3728_v63  ;;  %4443 = vmatprep.mubr.f32.mxu1 %v4124_v41  ;;  %2911 = vrot.lane.b32.xlu1 %v10463_v26, %s8359_s20  ;;  %v10800_v26 = vld [vmem:[#allocation4 + $0x158] sm:$0xff] }
 0x357   : > { %4444 = vmatmul.mubr.f32.gmra.mrb[60].mxu1 %v4123_v20  ;;  %3554 = vrot.lane.b32.xlu0 %v10661_v11, %s8359_s20  ;;  %v7849_v51 = vpop.f32.mrb[28].mxu1  ;;  %v6211_v20 = vld [vmem:[%s12434_s7 + $0x18] sm:$0xff] }
 0x358   : > { %v3278_v31 = vpop.permute.xlu1 %3277  ;;  %v2570_v1 = vmul.f32 %v10620_v58, %v7849_v51  ;;  %v2515_v12 = vpop.f32.mrb[29].mxu1 }
 0x359   : > { %v3920_v16 = vpop.permute.xlu0 %3919  ;;  %3359 = vst.msk [vmem:[#allocation5 + $0x168] sm:$0xff] %vm3343_vm0, %v3278_v31  ;;  %v2569_v10 = vmul.f32 %v10620_v58, %v2515_v12 }
 0x35a   : > { %4000 = vst.msk [vmem:[#allocation5 + $0x170] sm:$0xff] %vm3343_vm0, %v3920_v16  ;;  %v2609_v27 = vadd.f32 %v10630_v37, %v2570_v1  ;;  %3104 = vrot.lane.b32.xlu1 %v10461_v60, %s8361_s18 }
 0x35b   : > { %3747 = vrot.lane.b32.xlu0 %v10800_v26, %s8361_s18  ;;  %v2608_v38 = vadd.f32 %v10630_v37, %v2569_v10 }
 0x35c   : > { %v2641_v28 = vmax.f32 %v2609_v27, 0.0  ;;  %v2894_v50 = vpop.permute.xlu1 %2893  ;;  %v6213_v27 = vld [vmem:[%s12434_s7 + $0x28] sm:$0xff] }
 0x35d   : > { %v3537_v46 = vpop.permute.xlu0 %3536  ;;  %2974 = vst.msk [vmem:[#allocation5 + $0x180] sm:$0xff] %vm2957_vm14, %v2894_v50  ;;  %v2640_v47 = vmax.f32 %v2608_v38, 0.0 }
 0x35e   : > { %3616 = vst.msk [vmem:[#allocation5 + $0x188] sm:$0xff] %vm2957_vm14, %v3537_v46  ;;  %3297 = vrot.lane.b32.xlu1 %v10733_v9, %s8362_s14 }
 0x35f   : > { %2730 = vst.msk [vmem:[#allocation4 + $0x171] sm:$0xff] %vm2644_vm12, %v2641_v28  ;;  %3939 = vrot.lane.b32.xlu0 %v10745_v45, %s8362_s14  ;;  %2729 = vst.msk [vmem:[#allocation4 + $0x169] sm:$0xff] %vm2644_vm12, %v2640_v47 }
 0x360   : > { %v3087_v60 = vpop.permute.xlu1 %3086  ;;  %v4126_v40 = vld [vmem:[#allocation5 + $0x168] sm:$0xff] }
 0x361   : > { %v3730_v52 = vpop.permute.xlu0 %3729  ;;  %v4127_v21 = vld [vmem:[#allocation5 + $0x170] sm:$0xff]  ;;  %3167 = vst.msk [vmem:[#allocation5 + $0x180] sm:$0xff] %vm3150_vm15, %v3087_v60 }
 0x362   : > { %3809 = vst.msk [vmem:[#allocation5 + $0x188] sm:$0xff] %vm3150_vm15, %v3730_v52  ;;  %4448 = vmatprep.mubr.f32.mxu1 %v4127_v21  ;;  %2913 = vrot.lane.b32.xlu1 %v10673_v15, %s8359_s20 }
 0x363   : > { %4449 = vmatmul.mubr.f32.gmra.mrb[62].mxu1 %v4126_v40  ;;  %3556 = vrot.lane.b32.xlu0 %v10755_v2, %s8359_s20 }
 0x364   : > { %v10819_v17 = vpop.f32.mrb[12].mxu0  ;;  %v3280_v56 = vpop.permute.xlu1 %3279 }
 0x365   : > { %v3922_v13 = vpop.permute.xlu0 %3921  ;;  %3360 = vst.msk [vmem:[#allocation5 + $0x180] sm:$0xff] %vm3343_vm0, %v3280_v56  ;;  %v10823_v9 = vpop.f32.mrb[13].mxu0 }
 0x366   : > { %4001 = vst.msk [vmem:[#allocation5 + $0x188] sm:$0xff] %vm3343_vm0, %v3922_v13  ;;  %v10825_v44 = vld [vmem:[#allocation4 + $0x172] sm:$0xff]  ;;  %3106 = vrot.lane.b32.xlu1 %v10671_v14, %s8361_s18  ;;  %v10835_v15 = vld [vmem:[#allocation4 + $0x168] sm:$0xff] }
 0x367   : > { %v10827_v33 = vld [vmem:[#allocation4 + $0x171] sm:$0xff]  ;;  %4076 = vst.msk [vmem:[#allocation5 + $0x298] sm:$0xff] %vm2644_vm12, %v10825_v44  ;;  %v10837_v30 = vld [vmem:[#allocation4 + $0x169] sm:$0xff]  ;;  %3749 = vrot.lane.b32.xlu0 %v10835_v15, %s8361_s18 }
 0x368   : > { %3437 = vst.msk [vmem:[#allocation5 + $0x2c0] sm:$0xff] %vm2644_vm12, %v10827_v33  ;;  %v10839_v32 = vld [vmem:[#allocation4 + $0x16a] sm:$0xff]  ;;  %v2896_v19 = vpop.permute.xlu1 %2895  ;;  %3436 = vst.msk [vmem:[#allocation5 + $0x2a8] sm:$0xff] %vm2644_vm12, %v10837_v30 }
 0x369   : > { %v3539_v7 = vpop.permute.xlu0 %3538  ;;  %4075 = vst.msk [vmem:[#allocation5 + $0x280] sm:$0xff] %vm2644_vm12, %v10839_v32  ;;  %v2763_v14 = vld [vmem:[#allocation4 + $0x168] sm:$0xff]  ;;  %v2764_v8 = vld [vmem:[#allocation4 + $0x170] sm:$0xff] }
 0x36a   : > { %2975 = vst.msk [vmem:[#allocation5 + $0x198] sm:$0xff] %vm2957_vm14, %v2896_v19  ;;  %3617 = vst.msk [vmem:[#allocation5 + $0x1a0] sm:$0xff] %vm2957_vm14, %v3539_v7  ;;  %3299 = vrot.lane.b32.xlu1 %v10775_v4, %s8362_s14  ;;  %v6209_v4 = vld [vmem:[%s12434_s7 + $0x8] sm:$0xff]  ;;  %v10879_v31 = vld [vmem:[#allocation4 + $0x170] sm:$0xff] }
 0x36b   : > { %2795 = vst.msk [vmem:[#allocation5 + $0x2d0] sm:$0xff] %vm2644_vm12, %v2763_v14  ;;  %2796 = vst.msk [vmem:[#allocation5 + $0x2e8] sm:$0xff] %vm2644_vm12, %v2764_v8  ;;  %3941 = vrot.lane.b32.xlu0 %v10837_v30, %s8362_s14  ;;  %v8073_v61 = vpack.c.bf16 %v6209_v4, %v6208_v23  ;;  %v6217_v14 = vld [vmem:[%s12434_s7 + $0x48] sm:$0xff]  ;;  %v6219_v23 = vld [vmem:[%s12434_s7 + $0x58] sm:$0xff] }
 0x36c   : > { %v3089_v18 = vpop.permute.xlu1 %3088  ;;  %v4129_v36 = vld [vmem:[#allocation5 + $0x180] sm:$0xff] }
 0x36d   : > { %v3732_v3 = vpop.permute.xlu0 %3731  ;;  %v4130_v39 = vld [vmem:[#allocation5 + $0x188] sm:$0xff]  ;;  %3168 = vst.msk [vmem:[#allocation5 + $0x198] sm:$0xff] %vm3150_vm15, %v3089_v18  ;;  %8074 = vmatpush1.bf16.msra.mxu0 %v8073_v61 }
 0x36e   : > { %3810 = vst.msk [vmem:[#allocation5 + $0x1a0] sm:$0xff] %vm3150_vm15, %v3732_v3  ;;  %4453 = vmatprep.mubr.f32.mxu1 %v4130_v39  ;;  %2915 = vrot.lane.b32.xlu1 %v10663_v43, %s8359_s20  ;;  %v4164_v41 = vld [vmem:[#allocation5 + $0x298] sm:$0xff]  ;;  %v6210_v43 = vld [vmem:[%s12434_s7 + $0x10] sm:$0xff] }
 0x36f   : > { %4454 = vmatmul.mubr.f32.gmra.mrb[64].mxu1 %v4129_v36  ;;  %3558 = vrot.lane.b32.xlu0 %v10743_v6, %s8359_s20  ;;  %v8076_v51 = vpack.c.bf16 %v6211_v20, %v6210_v43  ;;  %v10932_v36 = vld [vmem:[%s12432_s5] ss:$0 sm:$0xff] }
 0x370   : > { %v4161_v29 = vld [vmem:[#allocation5 + $0x280] sm:$0xff]  ;;  %v3282_v59 = vpop.permute.xlu1 %3281  ;;  %8075 = vmatprep.subr.bf16.mxu0 %v12443_v35 }
 0x371   : > { %v3924_v63 = vpop.permute.xlu0 %3923  ;;  %7900 = vmatprep.mubr.msk.f32.mxu0 %vm2644_vm12, %v4161_v29  ;;  %3361 = vst.msk [vmem:[#allocation5 + $0x198] sm:$0xff] %vm3343_vm0, %v3282_v59  ;;  %8077 = vmatpush1.bf16.msra.mxu0 %v8076_v51  ;;  %v10946_v29 = vld [vmem:[%s12433_s6] ss:$0 sm:$0xff] }
 0x372   : > { %4002 = vst.msk [vmem:[#allocation5 + $0x1a0] sm:$0xff] %vm3343_vm0, %v3924_v63  ;;  %7901 = vmatmul.mubr.msk.f32.gmra.mrb[26].mxu0 %vm2644_vm12, %v4164_v41  ;;  %3108 = vrot.lane.b32.xlu1 %v10661_v11, %s8361_s18  ;;  %v6212_v11 = vld [vmem:[%s12434_s7 + $0x20] sm:$0xff] }
 0x373   : > { %3751 = vrot.lane.b32.xlu0 %v10879_v31, %s8361_s18  ;;  %8078 = vmatprep.subr.bf16.mxu0 %v12443_v35  ;;  %v8079_v50 = vpack.c.bf16 %v6213_v27, %v6212_v11 }
 0x374   : > { %v2898_v16 = vpop.permute.xlu1 %2897  ;;  %v7852_v12 = vpop.f32.mrb[30].mxu1 }
 0x375   : > { %v3541_v1 = vpop.permute.xlu0 %3540  ;;  %2976 = vst.msk [vmem:[#allocation5 + $0x1b0] sm:$0xff] %vm2957_vm14, %v2898_v16  ;;  %v2572_v10 = vmul.f32 %v10620_v58, %v7852_v12  ;;  %v2525_v28 = vpop.f32.mrb[31].mxu1  ;;  %8080 = vmatpush1.bf16.msra.mxu0 %v8079_v50 }
 0x376   : > { %3618 = vst.msk [vmem:[#allocation5 + $0x1b8] sm:$0xff] %vm2957_vm14, %v3541_v1  ;;  %3301 = vrot.lane.b32.xlu1 %v10800_v26, %s8362_s14  ;;  %v2571_v38 = vmul.f32 %v10620_v58, %v2525_v28  ;;  %v6214_v58 = vld [vmem:[%s12434_s7 + $0x30] sm:$0xff]  ;;  %v6215_v26 = vld [vmem:[%s12434_s7 + $0x38] sm:$0xff]  ;;  %8081 = vmatprep.subr.bf16.mxu0 %v12443_v35  ;;  %v6220_v28 = vld [vmem:[%s12434_s7 + $0x60] sm:$0xff] }
 0x377   : > { %v2611_v46 = vadd.f32 %v10630_v37, %v2572_v10  ;;  %3943 = vrot.lane.b32.xlu0 %v10827_v33, %s8362_s14 }
 0x378   : > { %v3091_v47 = vpop.permute.xlu1 %3090  ;;  %v4132_v21 = vld [vmem:[#allocation5 + $0x198] sm:$0xff]  ;;  %v2610_v40 = vadd.f32 %v10630_v37, %v2571_v38  ;;  %v8082_v37 = vpack.c.bf16 %v6215_v26, %v6214_v58  ;;  %v6221_v38 = vld [vmem:[%s12434_s7 + $0x68] sm:$0xff] }
 0x379   : > { %v3734_v60 = vpop.permute.xlu0 %3733  ;;  %v4133_v52 = vld [vmem:[#allocation5 + $0x1a0] sm:$0xff]  ;;  %3169 = vst.msk [vmem:[#allocation5 + $0x1b0] sm:$0xff] %vm3150_vm15, %v3091_v47  ;;  %v2643_v56 = vmax.f32 %v2611_v46, 0.0  ;;  %v8091_v50 = vpack.c.bf16 %v6221_v38, %v6220_v28 }
 0x37a   : > { %3811 = vst.msk [vmem:[#allocation5 + $0x1b8] sm:$0xff] %vm3150_vm15, %v3734_v60  ;;  %4458 = vmatprep.mubr.f32.mxu1 %v4133_v52  ;;  %2917 = vrot.lane.b32.xlu1 %v10757_v24, %s8359_s20  ;;  %v2642_v13 = vmax.f32 %v2610_v40, 0.0  ;;  %v6216_v24 = vld [vmem:[%s12434_s7 + $0x40] sm:$0xff]  ;;  %v6223_v52 = vld [vmem:[%s12434_s7 + $0x78] sm:$0xff] }
 0x37b   : > { %4459 = vmatmul.mubr.f32.gmra.mrb[66].mxu1 %v4132_v21  ;;  %2732 = vst.msk [vmem:[#allocation4 + $0x189] sm:$0xff] %vm2644_vm12, %v2643_v56  ;;  %3560 = vrot.lane.b32.xlu0 %v10839_v32, %s8359_s20  ;;  %v8085_v8 = vpack.c.bf16 %v6217_v14, %v6216_v24 }
 0x37c   : > { %v3284_v19 = vpop.permute.xlu1 %3283  ;;  %2731 = vst.msk [vmem:[#allocation4 + $0x181] sm:$0xff] %vm2644_vm12, %v2642_v13  ;;  %8083 = vmatpush1.bf16.msra.mxu0 %v8082_v37  ;;  %v6224_v13 = vld [vmem:[%s12434_s7 + $0x80] sm:$0xff] }
 0x37d   : > { %v3926_v7 = vpop.permute.xlu0 %3925  ;;  %3362 = vst.msk [vmem:[#allocation5 + $0x1b0] sm:$0xff] %vm3343_vm0, %v3284_v19  ;;  %8084 = vmatprep.subr.bf16.mxu0 %v12443_v35 }
 0x37e   : > { %4003 = vst.msk [vmem:[#allocation5 + $0x1b8] sm:$0xff] %vm3343_vm0, %v3926_v7  ;;  %3110 = vrot.lane.b32.xlu1 %v10755_v2, %s8361_s18  ;;  %v6218_v2 = vld [vmem:[%s12434_s7 + $0x50] sm:$0xff] }
 0x37f   : > { %v8088_v43 = vpack.c.bf16 %v6219_v23, %v6218_v2 }
 0x380   : > { %v2900_v18 = vpop.permute.xlu1 %2899  ;;  %v4375_v39 = vpop.f32.mrb[32].mxu1  ;;  %8086 = vmatpush1.bf16.msra.mxu0 %v8085_v8 }
 0x381   : > { %v3543_v3 = vpop.permute.xlu0 %3542  ;;  %2977 = vst.msk [vmem:[#allocation5 + $0x1c8] sm:$0xff] %vm2957_vm14, %v2900_v18  ;;  %v4601_v4 = vadd.f32 %v10206_v25, %v4375_v39  ;;  %v4377_v61 = vpop.f32.mrb[33].mxu1  ;;  %8087 = vmatprep.subr.bf16.mxu0 %v12443_v35 }
 0x382   : > { %3619 = vst.msk [vmem:[#allocation5 + $0x1d0] sm:$0xff] %vm2957_vm14, %v3543_v3  ;;  %3303 = vrot.lane.b32.xlu1 %v10835_v15, %s8362_s14  ;;  %v10950_v63 = vld [vmem:[#allocation4 + $0x18a] sm:$0xff] }
 0x383   : > { %v10952_v41 = vld [vmem:[#allocation4 + $0x189] sm:$0xff]  ;;  %v4766_v20 = vmul.f32 %v10932_v36, %v4601_v4  ;;  %v10955_v15 = vld [vmem:[#allocation4 + $0x180] sm:$0xff]  ;;  %4078 = vst.msk [vmem:[#allocation5 + $0x2c8] sm:$0xff] %vm2644_vm12, %v10950_v63 }
 0x384   : > { %v10948_v59 = vpop.f32.mrb[14].mxu0  ;;  %v3093_v25 = vpop.permute.xlu1 %3092  ;;  %v4135_v1 = vld [vmem:[#allocation5 + $0x1b0] sm:$0xff]  ;;  %3439 = vst.msk [vmem:[#allocation5 + $0x2f0] sm:$0xff] %vm2644_vm12, %v10952_v41  ;;  %3753 = vrot.lane.b32.xlu0 %v10955_v15, %s8361_s18  ;;  %8089 = vmatpush1.bf16.msra.mxu0 %v8088_v43  ;;  %v11012_v3 = vld [vmem:[#allocation4 + $0x188] sm:$0xff] }
 0x385   : > { %v3736_v51 = vpop.permute.xlu0 %3735  ;;  %v4136_v16 = vld [vmem:[#allocation5 + $0x1b8] sm:$0xff]  ;;  %3170 = vst.msk [vmem:[#allocation5 + $0x1c8] sm:$0xff] %vm3150_vm15, %v3093_v25  ;;  %v10964_v12 = vpop.f32.mrb[15].mxu0  ;;  %v4805_v10 = vadd.f32 %v10946_v29, %v4766_v20  ;;  %8090 = vmatprep.subr.bf16.mxu0 %v12443_v35 }
 0x386   : > { %3812 = vst.msk [vmem:[#allocation5 + $0x1d0] sm:$0xff] %vm3150_vm15, %v3736_v51  ;;  %4463 = vmatprep.mubr.f32.mxu1 %v4136_v16  ;;  %v3853_v11 = vld [vmem:[#allocation4 + $0x181] sm:$0xff]  ;;  %2919 = vrot.lane.b32.xlu1 %v10745_v45, %s8359_s20 }
 0x387   : > { %v10968_v27 = vld [vmem:[#allocation4 + $0x182] sm:$0xff]  ;;  %4464 = vmatmul.mubr.f32.gmra.mrb[68].mxu1 %v4135_v1  ;;  %3438 = vst.msk [vmem:[#allocation5 + $0x2d8] sm:$0xff] %vm2644_vm12, %v3853_v11  ;;  %v4837_v46 = vmax.f32 %v4805_v10, 0.0  ;;  %v4047_v16 = vld [vmem:[#allocation4 + $0x19a] sm:$0xff] }
 0x388   : > { %4077 = vst.msk [vmem:[#allocation5 + $0x2b0] sm:$0xff] %vm2644_vm12, %v10968_v27  ;;  %v3286_v47 = vpop.permute.xlu1 %3285  ;;  %3945 = vrot.lane.b32.xlu0 %v3853_v11, %s8362_s14  ;;  %v6222_v45 = vld [vmem:[%s12434_s7 + $0x70] sm:$0xff]  ;;  %8092 = vmatpush1.bf16.msra.mxu0 %v8091_v50  ;;  %v6227_v4 = vld [vmem:[%s12434_s7 + $0x98] sm:$0xff]  ;;  %v6229_v1 = vld [vmem:[%s12434_s7 + $0xa8] sm:$0xff] }
 0x389   : > { %v3928_v60 = vpop.permute.xlu0 %3927  ;;  %3363 = vst.msk [vmem:[#allocation5 + $0x1c8] sm:$0xff] %vm3343_vm0, %v3286_v47  ;;  %8093 = vmatprep.subr.bf16.mxu0 %v12443_v35  ;;  %v8094_v58 = vpack.c.bf16 %v6223_v52, %v6222_v45  ;;  %v4048_v11 = vld [vmem:[#allocation4 + $0x1a2] sm:$0xff] }
 0x38a   : > { %4004 = vst.msk [vmem:[#allocation5 + $0x1d0] sm:$0xff] %vm3343_vm0, %v3928_v60  ;;  %3112 = vrot.lane.b32.xlu1 %v10743_v6, %s8361_s18  ;;  %v6225_v6 = vld [vmem:[%s12434_s7 + $0x88] sm:$0xff]  ;;  %v6231_v50 = vld [vmem:[%s12434_s7 + $0xb8] sm:$0xff] }
 0x38b   : > { %4926 = vst.msk [vmem:[#allocation6 + $0x19] sm:$0xff] %vm4869_vm1, %v4837_v46  ;;  %v4170_v7 = vld [vmem:[#allocation5 + $0x2c8] sm:$0xff]  ;;  %v8097_v2 = vpack.c.bf16 %v6225_v6, %v6224_v13  ;;  %v4958_v6 = vld [vmem:[#allocation6] sm:$0xff] }
 0x38c   : > { %v2902_v21 = vpop.permute.xlu1 %2901  ;;  %v4380_v26 = vpop.f32.mrb[34].mxu1  ;;  %3562 = vrot.lane.b32.xlu0 %v10825_v44, %s8359_s20  ;;  %8095 = vmatpush1.bf16.msra.mxu0 %v8094_v58  ;;  %4079 = vst.msk [vmem:[#allocation5 + $0x2e0] sm:$0xff] %vm2644_vm12, %v4047_v16  ;;  %4080 = vst.msk [vmem:[#allocation5 + $0x2f8] sm:$0xff] %vm2644_vm12, %v4048_v11  ;;  %v3663_v60 = vld [vmem:[#allocation4 + $0x198] sm:$0xff] }
 0x38d   : > { %v3545_v40 = vpop.permute.xlu0 %3544  ;;  %2978 = vst.msk [vmem:[#allocation5 + $0x1e0] sm:$0xff] %vm2957_vm14, %v2902_v21  ;;  %v4606_v37 = vadd.f32 %v10203_v48, %v4380_v26  ;;  %v4382_v19 = vpop.f32.mrb[35].mxu1  ;;  %8096 = vmatprep.subr.bf16.mxu0 %v12443_v35  ;;  %v5215_v11 = vld [vmem:[#allocation6 + $0x2] sm:$0xff] }
 0x38e   : > { %3620 = vst.msk [vmem:[#allocation5 + $0x1e8] sm:$0xff] %vm2957_vm14, %v3545_v40  ;;  %3305 = vrot.lane.b32.xlu1 %v10879_v31, %s8362_s14  ;;  %v6226_v31 = vld [vmem:[%s12434_s7 + $0x90] sm:$0xff]  ;;  %v6273_v19 = vld [vmem:[%s12434_s7 + $0x208] sm:$0xff] }
 0x38f   : > { %v4167_v56 = vld [vmem:[#allocation5 + $0x2b0] sm:$0xff]  ;;  %v4767_v24 = vmul.f32 %v10932_v36, %v4606_v37  ;;  %v8100_v51 = vpack.c.bf16 %v6227_v4, %v6226_v31  ;;  %v6272_v37 = vld [vmem:[%s12434_s7 + $0x200] sm:$0xff]  ;;  %4990 = vst.msk [vmem:[#allocation7] sm:$0xff] %vm4869_vm1, %v4958_v6  ;;  %5247 = vst.msk [vmem:[#allocation7 + $0x8] sm:$0xff] %vm4869_vm1, %v5215_v11 }
 0x390   : > { %7903 = vmatprep.mubr.msk.f32.mxu0 %vm2644_vm12, %v4167_v56  ;;  %v3095_v14 = vpop.permute.xlu1 %3094  ;;  %v4138_v39 = vld [vmem:[#allocation5 + $0x1c8] sm:$0xff]  ;;  %3755 = vrot.lane.b32.xlu0 %v11012_v3, %s8361_s18  ;;  %v6274_v31 = vld [vmem:[%s12434_s7 + $0x210] sm:$0xff]  ;;  %v6279_v6 = vld [vmem:[%s12434_s7 + $0x238] sm:$0xff] }
 0x391   : > { %7904 = vmatmul.mubr.msk.f32.gmra.mrb[28].mxu0 %vm2644_vm12, %v4170_v7  ;;  %v3738_v8 = vpop.permute.xlu0 %3737  ;;  %v4139_v18 = vld [vmem:[#allocation5 + $0x1d0] sm:$0xff]  ;;  %3171 = vst.msk [vmem:[#allocation5 + $0x1e0] sm:$0xff] %vm3150_vm15, %v3095_v14  ;;  %v4806_v23 = vadd.f32 %v10946_v29, %v4767_v24  ;;  %v8168_v7 = vpack.c.bf16 %v6273_v19, %v6272_v37  ;;  %v6233_v24 = vld [vmem:[%s12434_s7 + $0xc8] sm:$0xff] }
 0x392   : > { %3813 = vst.msk [vmem:[#allocation5 + $0x1e8] sm:$0xff] %vm3150_vm15, %v3738_v8  ;;  %4468 = vmatprep.mubr.f32.mxu1 %v4139_v18  ;;  %v11018_v48 = vld [vmem:[#allocation6 + $0x18] sm:$0xff]  ;;  %2921 = vrot.lane.b32.xlu1 %v10837_v30, %s8359_s20  ;;  %v6228_v30 = vld [vmem:[%s12434_s7 + $0xa0] sm:$0xff]  ;;  %v6238_v19 = vld [vmem:[%s12434_s7 + $0xf0] sm:$0xff] }
 0x393   : > { %4469 = vmatmul.mubr.f32.gmra.mrb[70].mxu1 %v4138_v39  ;;  %4992 = vst.msk [vmem:[#allocation7 + $0x50] sm:$0xff] %vm4869_vm1, %v11018_v48  ;;  %v5471_v61 = vld [vmem:[#allocation6 + $0x19] sm:$0xff]  ;;  %v4838_v43 = vmax.f32 %v4806_v23, 0.0  ;;  %8098 = vmatpush1.bf16.msra.mxu0 %v8097_v2  ;;  %v8103_v28 = vpack.c.bf16 %v6229_v1, %v6228_v30 }
 0x394   : > { %5503 = vst.msk [vmem:[#allocation7 + $0x10] sm:$0xff] %vm4869_vm1, %v5471_v61  ;;  %v3288_v20 = vpop.permute.xlu1 %3287  ;;  %3947 = vrot.lane.b32.xlu0 %v10952_v41, %s8362_s14  ;;  %8099 = vmatprep.subr.bf16.mxu0 %v12443_v35  ;;  %v4173_v26 = vld [vmem:[#allocation5 + $0x2e0] sm:$0xff]  ;;  %v6275_v23 = vld [vmem:[%s12434_s7 + $0x218] sm:$0xff]  ;;  %v6234_v61 = vld [vmem:[%s12434_s7 + $0xd0] sm:$0xff] }
 0x395   : > { %v3930_v25 = vpop.permute.xlu0 %3929  ;;  %3364 = vst.msk [vmem:[#allocation5 + $0x1e0] sm:$0xff] %vm3343_vm0, %v3288_v20  ;;  %7906 = vmatprep.mubr.msk.f32.mxu0 %vm2644_vm12, %v4173_v26  ;;  %v8172_v20 = vpack.c.bf16 %v6275_v23, %v6274_v31  ;;  %8169 = vmatprep.subr.bf16.mxu1 %v8168_v7 }
 0x396   : > { %4005 = vst.msk [vmem:[#allocation5 + $0x1e8] sm:$0xff] %vm3343_vm0, %v3930_v25  ;;  %3114 = vrot.lane.b32.xlu1 %v10839_v32, %s8361_s18  ;;  %v6230_v32 = vld [vmem:[%s12434_s7 + $0xb0] sm:$0xff]  ;;  %8171 = vmatpush3.bf16.msra.mxu1 %v8168_v7  ;;  %v6239_v7 = vld [vmem:[%s12434_s7 + $0xf8] sm:$0xff] }
 0x397   : > { %4927 = vst.msk [vmem:[#allocation6 + $0x21] sm:$0xff] %vm4869_vm1, %v4838_v43  ;;  %8101 = vmatpush1.bf16.msra.mxu0 %v8100_v51  ;;  %v8106_v58 = vpack.c.bf16 %v6231_v50, %v6230_v32  ;;  %v6235_v43 = vld [vmem:[%s12434_s7 + $0xd8] sm:$0xff]  ;;  %v6236_v32 = vld [vmem:[%s12434_s7 + $0xe0] sm:$0xff]  ;;  %v6237_v50 = vld [vmem:[%s12434_s7 + $0xe8] sm:$0xff]  ;;  %8173 = vmatprep.subr.bf16.mxu1 %v8172_v20 }
 0x398   : > { %v2904_v41 = vpop.permute.xlu1 %2903  ;;  %v4385_v38 = vpop.f32.mrb[36].mxu1  ;;  %3564 = vrot.lane.b32.xlu0 %v10968_v27, %s8359_s20  ;;  %8102 = vmatprep.subr.bf16.mxu0 %v12443_v35  ;;  %v8112_v1 = vpack.c.bf16 %v6235_v43, %v6234_v61 }
 0x399   : > { %v3547_v10 = vpop.permute.xlu0 %3546  ;;  %2979 = vst.msk [vmem:[#allocation5 + $0x1f8] sm:$0xff] %vm2957_vm14, %v2904_v41  ;;  %v4611_v46 = vadd.f32 %v10288_v49, %v4385_v38  ;;  %v4387_v47 = vpop.f32.mrb[37].mxu1  ;;  %v3855_v49 = vld [vmem:[#allocation4 + $0x199] sm:$0xff]  ;;  %v6276_v41 = vld [vmem:[%s12434_s7 + $0x220] sm:$0xff] }
 0x39a   : > { %3621 = vst.msk [vmem:[#allocation5 + $0x200] sm:$0xff] %vm2957_vm14, %v3547_v10  ;;  %3307 = vrot.lane.b32.xlu1 %v10955_v15, %s8362_s14  ;;  %v4176_v15 = vld [vmem:[#allocation5 + $0x2f8] sm:$0xff]  ;;  %v5216_v47 = vld [vmem:[#allocation6 + $0xa] sm:$0xff]  ;;  %8175 = vmatpush3.bf16.msra.mxu1 %v8172_v20 }
 0x39b   : > { %v4768_v45 = vmul.f32 %v10932_v36, %v4611_v46  ;;  %8104 = vmatpush1.bf16.msra.mxu0 %v8103_v28  ;;  %v3664_v46 = vld [vmem:[#allocation4 + $0x1a0] sm:$0xff]  ;;  %5248 = vst.msk [vmem:[#allocation7 + $0x30] sm:$0xff] %vm4869_vm1, %v5216_v47 }
 0x39c   : > { %v3097_v27 = vpop.permute.xlu1 %3096  ;;  %v4141_v40 = vld [vmem:[#allocation5 + $0x1e0] sm:$0xff]  ;;  %3757 = vrot.lane.b32.xlu0 %v3663_v60, %s8361_s18  ;;  %8105 = vmatprep.subr.bf16.mxu0 %v12443_v35 }
 0x39d   : > { %v3740_v52 = vpop.permute.xlu0 %3739  ;;  %v4142_v21 = vld [vmem:[#allocation5 + $0x1e8] sm:$0xff]  ;;  %3172 = vst.msk [vmem:[#allocation5 + $0x1f8] sm:$0xff] %vm3150_vm15, %v3097_v27  ;;  %v4807_v13 = vadd.f32 %v10946_v29, %v4768_v45  ;;  %7907 = vmatmul.mubr.msk.f32.gmra.mrb[30].mxu0 %vm2644_vm12, %v4176_v15  ;;  %v3856_v15 = vld [vmem:[#allocation4 + $0x1a1] sm:$0xff] }
 0x39e   : > { %3814 = vst.msk [vmem:[#allocation5 + $0x200] sm:$0xff] %vm3150_vm15, %v3740_v52  ;;  %4473 = vmatprep.mubr.f32.mxu1 %v4142_v21  ;;  %v11067_v56 = vld [vmem:[#allocation6 + $0x20] sm:$0xff]  ;;  %2923 = vrot.lane.b32.xlu1 %v10827_v33, %s8359_s20 }
 0x39f   : > { %4474 = vmatmul.mubr.f32.gmra.mrb[72].mxu1 %v4141_v40  ;;  %4993 = vst.msk [vmem:[#allocation7 + $0x78] sm:$0xff] %vm4869_vm1, %v11067_v56  ;;  %v6232_v33 = vld [vmem:[%s12434_s7 + $0xc0] sm:$0xff]  ;;  %v4839_v8 = vmax.f32 %v4807_v13, 0.0  ;;  %8107 = vmatpush1.bf16.msra.mxu0 %v8106_v58  ;;  %v8115_v58 = vpack.c.bf16 %v6237_v50, %v6236_v32 }
 0x3a0   : > { %v5217_v14 = vld [vmem:[#allocation6 + $0x1a] sm:$0xff]  ;;  %v3290_v18 = vpop.permute.xlu1 %3289  ;;  %v8109_v2 = vpack.c.bf16 %v6233_v24, %v6232_v33  ;;  %v11096_v4 = vld [vmem:[#allocation6 + $0x22] sm:$0xff]  ;;  %3949 = vrot.lane.b32.xlu0 %v3855_v49, %s8362_s14  ;;  %8108 = vmatprep.subr.bf16.mxu0 %v12443_v35 }
 0x3a1   : > { %v3932_v39 = vpop.permute.xlu0 %3931  ;;  %5249 = vst.msk [vmem:[#allocation7 + $0x58] sm:$0xff] %vm4869_vm1, %v5217_v14  ;;  %5250 = vst.msk [vmem:[#allocation7 + $0x80] sm:$0xff] %vm4869_vm1, %v11096_v4  ;;  %v5472_v25 = vld [vmem:[#allocation6 + $0x21] sm:$0xff]  ;;  %v5023_v14 = vld [vmem:[#allocation6 + $0x9] sm:$0xff] }
 0x3a2   : > { %3365 = vst.msk [vmem:[#allocation5 + $0x1f8] sm:$0xff] %vm3343_vm0, %v3290_v18  ;;  %4006 = vst.msk [vmem:[#allocation5 + $0x200] sm:$0xff] %vm3343_vm0, %v3932_v39  ;;  %3116 = vrot.lane.b32.xlu1 %v10825_v44, %s8361_s18  ;;  %v6277_v44 = vld [vmem:[%s12434_s7 + $0x228] sm:$0xff]  ;;  %v8118_v39 = vpack.c.bf16 %v6239_v7, %v6238_v19 }
 0x3a3   : > { %4928 = vst.msk [vmem:[#allocation6 + $0x31] sm:$0xff] %vm4869_vm1, %v4839_v8  ;;  %5504 = vst.msk [vmem:[#allocation7 + $0x38] sm:$0xff] %vm4869_vm1, %v5472_v25  ;;  %8110 = vmatpush1.bf16.msra.mxu0 %v8109_v2  ;;  %v5022_v45 = vld [vmem:[#allocation6 + $0x1] sm:$0xff]  ;;  %v8176_v27 = vpack.c.bf16 %v6277_v44, %v6276_v41  ;;  %v5024_v25 = vld [vmem:[#allocation6 + $0x19] sm:$0xff] }
 0x3a4   : > { %v11114_v51 = vpop.f32.mrb[16].mxu0  ;;  %v2906_v16 = vpop.permute.xlu1 %2905  ;;  %3566 = vrot.lane.b32.xlu0 %v10950_v63, %s8359_s20  ;;  %8111 = vmatprep.subr.bf16.mxu0 %v12443_v35  ;;  %v4959_v63 = vld [vmem:[#allocation6 + $0x8] sm:$0xff] }
 0x3a5   : > { %v4390_v30 = vpop.f32.mrb[38].mxu1  ;;  %2980 = vst.msk [vmem:[#allocation5 + $0x210] sm:$0xff] %vm2957_vm14, %v2906_v16  ;;  %v3549_v10 = vpop.permute.xlu0 %3548  ;;  %8177 = vmatprep.subr.bf16.mxu1 %v8176_v27  ;;  %v5025_v11 = vld [vmem:[#allocation6 + $0x21] sm:$0xff] }
 0x3a6   : > { %v4616_v28 = vadd.f32 %v10285_v62, %v4390_v30  ;;  %v11125_v38 = vpop.f32.mrb[17].mxu0  ;;  %3622 = vst.msk [vmem:[#allocation5 + $0x218] sm:$0xff] %vm2957_vm14, %v3549_v10  ;;  %v4392_v62 = vpop.f32.mrb[39].mxu1  ;;  %3309 = vrot.lane.b32.xlu1 %v11012_v3, %s8362_s14  ;;  %v6278_v3 = vld [vmem:[%s12434_s7 + $0x230] sm:$0xff]  ;;  %8179 = vmatpush3.bf16.msra.mxu1 %v8176_v27 }
 0x3a7   : > { %4991 = vst.msk [vmem:[#allocation7 + $0x28] sm:$0xff] %vm4869_vm1, %v4959_v63  ;;  %8113 = vmatpush1.bf16.msra.mxu0 %v8112_v1  ;;  %v8180_v37 = vpack.c.bf16 %v6279_v6, %v6278_v3 }
 0x3a8   : > { %v4769_v60 = vmul.f32 %v10932_v36, %v4616_v28  ;;  %v3099_v52 = vpop.permute.xlu1 %3098  ;;  %3759 = vrot.lane.b32.xlu0 %v3664_v46, %s8361_s18  ;;  %8114 = vmatprep.subr.bf16.mxu0 %v12443_v35 }
 0x3a9   : > { %v4145_v21 = vld [vmem:[#allocation5 + $0x200] sm:$0xff]  ;;  %v4144_v40 = vld [vmem:[#allocation5 + $0x1f8] sm:$0xff]  ;;  %3173 = vst.msk [vmem:[#allocation5 + $0x210] sm:$0xff] %vm3150_vm15, %v3099_v52  ;;  %v3742_v49 = vpop.permute.xlu0 %3741  ;;  %8181 = vmatprep.subr.bf16.mxu1 %v8180_v37 }
 0x3aa   : > { %v4808_v26 = vadd.f32 %v10946_v29, %v4769_v60  ;;  %4478 = vmatprep.mubr.f32.mxu1 %v4145_v21  ;;  %v11149_v13 = vld [vmem:[#allocation6 + $0x30] sm:$0xff]  ;;  %3815 = vst.msk [vmem:[#allocation5 + $0x218] sm:$0xff] %vm3150_vm15, %v3742_v49  ;;  %5086 = vrot.lane.b32.xlu1 %v5022_v45, %s8361_s18 }
 0x3ab   : > { %4479 = vmatmul.mubr.f32.gmra.mrb[74].mxu1 %v4144_v40  ;;  %4994 = vst.msk [vmem:[#allocation7 + $0xa0] sm:$0xff] %vm4869_vm1, %v11149_v13  ;;  %v11164_v33 = vld [vmem:[#allocation6 + $0x31] sm:$0xff]  ;;  %8116 = vmatpush1.bf16.msra.mxu0 %v8115_v58 }
 0x3ac   : > { %v4840_v24 = vmax.f32 %v4808_v26, 0.0  ;;  %5505 = vst.msk [vmem:[#allocation7 + $0x60] sm:$0xff] %vm4869_vm1, %v11164_v33  ;;  %v5728_v8 = vld [vmem:[#allocation6 + $0x30] sm:$0xff]  ;;  %v3292_v18 = vpop.permute.xlu1 %3291  ;;  %3951 = vrot.lane.b32.xlu0 %v3856_v15, %s8362_s14  ;;  %8117 = vmatprep.subr.bf16.mxu0 %v12443_v35 }
 0x3ad   : > { %5760 = vst.msk [vmem:[#allocation7 + $0x18] sm:$0xff] %vm4869_vm1, %v5728_v8  ;;  %v3934_v2 = vpop.permute.xlu0 %3933  ;;  %8183 = vmatpush3.bf16.msra.mxu1 %v8180_v37  ;;  %v5026_v63 = vld [vmem:[#allocation6 + $0x31] sm:$0xff] }
 0x3ae   : > { %4929 = vst.msk [vmem:[#allocation6 + $0x39] sm:$0xff] %vm4869_vm1, %v4840_v24  ;;  %5088 = vrot.lane.b32.xlu1 %v5023_v14, %s8361_s18  ;;  %8184 = vmatprep.subr.bf16.mxu1 %v12443_v35 }
 0x3af   : > { %3366 = vst.msk [vmem:[#allocation5 + $0x210] sm:$0xff] %vm3343_vm0, %v3292_v18  ;;  %4007 = vst.msk [vmem:[#allocation5 + $0x218] sm:$0xff] %vm3343_vm0, %v3934_v2  ;;  %8119 = vmatpush1.bf16.msra.mxu0 %v8118_v39 }
 0x3b0   : > { %v2908_v31 = vpop.permute.xlu1 %2907  ;;  %v4395_v23 = vpop.f32.mrb[40].mxu1  ;;  %5343 = vrot.lane.b32.xlu0 %v11018_v48, %s8361_s18  ;;  %8120 = vmatprep.subr.bf16.mxu0 %v12443_v35 }
 0x3b1   : > { %2981 = vst.msk [vmem:[#allocation5 + $0x228] sm:$0xff] %vm2957_vm14, %v2908_v31  ;;  %v3551_v61 = vpop.permute.xlu0 %3550  ;;  %v4621_v43 = vadd.f32 %v10372_v42, %v4395_v23  ;;  %v4397_v20 = vpop.f32.mrb[41].mxu1 }
 0x3b2   : > { %3623 = vst.msk [vmem:[#allocation5 + $0x230] sm:$0xff] %vm2957_vm14, %v3551_v61  ;;  %5090 = vrot.lane.b32.xlu1 %v5024_v25, %s8361_s18 }
 0x3b3   : > { %v4770_v16 = vmul.f32 %v10932_v36, %v4621_v43 }
 0x3b4   : > { %v3101_v30 = vpop.permute.xlu1 %3100  ;;  %5345 = vrot.lane.b32.xlu0 %v11067_v56, %s8361_s18 }
 0x3b5   : > { %v5282_v41 = vld [vmem:[#allocation6 + $0x38] sm:$0xff]  ;;  %v4809_v42 = vadd.f32 %v10946_v29, %v4770_v16  ;;  %3174 = vst.msk [vmem:[#allocation5 + $0x228] sm:$0xff] %vm3150_vm15, %v3101_v30  ;;  %v3744_v48 = vpop.permute.xlu0 %3743 }
 0x3b6   : > { %v4147_v1 = vld [vmem:[#allocation5 + $0x210] sm:$0xff]  ;;  %v4148_v44 = vld [vmem:[#allocation5 + $0x218] sm:$0xff]  ;;  %4995 = vst.msk [vmem:[#allocation7 + $0xc8] sm:$0xff] %vm4869_vm1, %v5282_v41  ;;  %5092 = vrot.lane.b32.xlu1 %v5025_v11, %s8361_s18 }
 0x3b7   : > { %v5984_v10 = vld [vmem:[#allocation6 + $0x32] sm:$0xff]  ;;  %v5985_v28 = vld [vmem:[#allocation6 + $0x3a] sm:$0xff]  ;;  %3816 = vst.msk [vmem:[#allocation5 + $0x230] sm:$0xff] %vm3150_vm15, %v3744_v48  ;;  %4483 = vmatprep.mubr.f32.mxu1 %v4148_v44  ;;  %v4841_v56 = vmax.f32 %v4809_v42, 0.0 }
 0x3b8   : > { %6016 = vst.msk [vmem:[#allocation7 + $0x20] sm:$0xff] %vm4869_vm1, %v5984_v10  ;;  %6017 = vst.msk [vmem:[#allocation7 + $0x48] sm:$0xff] %vm4869_vm1, %v5985_v28  ;;  %v11196_v32 = vld [vmem:[#allocation6 + $0x39] sm:$0xff]  ;;  %4484 = vmatmul.mubr.f32.gmra.mrb[76].mxu1 %v4147_v1  ;;  %v3294_v62 = vpop.permute.xlu1 %3293  ;;  %5347 = vrot.lane.b32.xlu0 %v11149_v13, %s8361_s18 }
 0x3b9   : > { %5251 = vst.msk [vmem:[#allocation7 + $0xa8] sm:$0xff] %vm4869_vm1, %v5984_v10  ;;  %5252 = vst.msk [vmem:[#allocation7 + $0xd0] sm:$0xff] %vm4869_vm1, %v5985_v28  ;;  %v5729_v50 = vld [vmem:[#allocation6 + $0x38] sm:$0xff]  ;;  %v3936_v46 = vpop.permute.xlu0 %3935 }
 0x3ba   : > { %5506 = vst.msk [vmem:[#allocation7 + $0x88] sm:$0xff] %vm4869_vm1, %v11196_v32  ;;  %5761 = vst.msk [vmem:[#allocation7 + $0x40] sm:$0xff] %vm4869_vm1, %v5729_v50  ;;  %5094 = vrot.lane.b32.xlu1 %v5026_v63, %s8361_s18  ;;  %v5027_v21 = vld [vmem:[#allocation6 + $0x39] sm:$0xff] }
 0x3bb   : > { %4930 = vst.msk [vmem:[#allocation6 + $0x49] sm:$0xff] %vm4869_vm1, %v4841_v56 }
 0x3bc   : > { %3367 = vst.msk [vmem:[#allocation5 + $0x228] sm:$0xff] %vm3343_vm0, %v3294_v62  ;;  %4008 = vst.msk [vmem:[#allocation5 + $0x230] sm:$0xff] %vm3343_vm0, %v3936_v46  ;;  %v2910_v47 = vpop.permute.xlu1 %2909  ;;  %5349 = vrot.lane.b32.xlu0 %v5282_v41, %s8361_s18 }
 0x3bd   : > { %v4400_v60 = vpop.f32.mrb[42].mxu1  ;;  %2982 = vst.msk [vmem:[#allocation5 + $0x240] sm:$0xff] %vm2957_vm14, %v2910_v47  ;;  %v3553_v45 = vpop.permute.xlu0 %3552 }
 0x3be   : > { %v4626_v27 = vadd.f32 %v10369_v34, %v4400_v60  ;;  %v4402_v52 = vpop.f32.mrb[43].mxu1  ;;  %3624 = vst.msk [vmem:[#allocation5 + $0x248] sm:$0xff] %vm2957_vm14, %v3553_v45  ;;  %5096 = vrot.lane.b32.xlu1 %v5027_v21, %s8361_s18 }
 0x3c0   : > { %v4771_v40 = vmul.f32 %v10932_v36, %v4626_v27  ;;  %v3103_v58 = vpop.permute.xlu1 %3102 }
 0x3c1   : > { %3175 = vst.msk [vmem:[#allocation5 + $0x240] sm:$0xff] %vm3150_vm15, %v3103_v58  ;;  %v3746_v13 = vpop.permute.xlu0 %3745 }
 0x3c2   : > { %v5283_v26 = vld [vmem:[#allocation6 + $0x48] sm:$0xff]  ;;  %v4810_v15 = vadd.f32 %v10946_v29, %v4771_v40  ;;  %3817 = vst.msk [vmem:[#allocation5 + $0x248] sm:$0xff] %vm3150_vm15, %v3746_v13 }
 0x3c3   : > { %v4150_v3 = vld [vmem:[#allocation5 + $0x228] sm:$0xff]  ;;  %v4151_v34 = vld [vmem:[#allocation5 + $0x230] sm:$0xff]  ;;  %5351 = vrot.lane.b32.xlu0 %v5283_v26, %s8361_s18  ;;  %4996 = vst.msk [vmem:[#allocation7 + $0xf0] sm:$0xff] %vm4869_vm1, %v5283_v26 }
 0x3c4   : > { %v5028_v49 = vld [vmem:[#allocation6 + $0x49] sm:$0xff]  ;;  %4488 = vmatprep.mubr.f32.mxu1 %v4151_v34  ;;  %v4842_v19 = vmax.f32 %v4810_v15, 0.0  ;;  %v11224_v7 = vpop.f32.mrb[18].mxu0  ;;  %v3296_v24 = vpop.permute.xlu1 %3295 }
 0x3c5   : > { %v11217_v6 = vld [vmem:[#allocation6 + $0x49] sm:$0xff]  ;;  %5098 = vrot.lane.b32.xlu1 %v5028_v49, %s8361_s18  ;;  %4489 = vmatmul.mubr.f32.gmra.mrb[78].mxu1 %v4150_v3  ;;  %v11226_v14 = vpop.f32.mrb[19].mxu0  ;;  %3368 = vst.msk [vmem:[#allocation5 + $0x240] sm:$0xff] %vm3343_vm0, %v3296_v24  ;;  %v3938_v8 = vpop.permute.xlu0 %3937 }
 0x3c6   : > { %v5730_v37 = vld [vmem:[#allocation6 + $0x48] sm:$0xff]  ;;  %5507 = vst.msk [vmem:[#allocation7 + $0xb0] sm:$0xff] %vm4869_vm1, %v11217_v6  ;;  %4931 = vst.msk [vmem:[#allocation6 + $0x51] sm:$0xff] %vm4869_vm1, %v4842_v19 }
 0x3c7   : > { %5762 = vst.msk [vmem:[#allocation7 + $0x68] sm:$0xff] %vm4869_vm1, %v5730_v37 }
 0x3c8   : > { %4009 = vst.msk [vmem:[#allocation5 + $0x248] sm:$0xff] %vm3343_vm0, %v3938_v8  ;;  %v2912_v18 = vpop.permute.xlu1 %2911  ;;  %v4405_v39 = vpop.f32.mrb[44].mxu1 }
 0x3c9   : > { %2983 = vst.msk [vmem:[#allocation5 + $0x258] sm:$0xff] %vm2957_vm14, %v2912_v18  ;;  %v3555_v2 = vpop.permute.xlu0 %3554  ;;  %v4631_v31 = vadd.f32 %v10454_v54, %v4405_v39  ;;  %v4407_v23 = vpop.f32.mrb[45].mxu1 }
 0x3ca   : > { %3625 = vst.msk [vmem:[#allocation5 + $0x260] sm:$0xff] %vm2957_vm14, %v3555_v2 }
 0x3cb   : > { %v4772_v61 = vmul.f32 %v10932_v36, %v4631_v31 }
 0x3cc   : > { %v3105_v43 = vpop.permute.xlu1 %3104  ;;  %v4153_v20 = vld [vmem:[#allocation5 + $0x240] sm:$0xff] }
 0x3cd   : > { %v5284_v25 = vld [vmem:[#allocation6 + $0x50] sm:$0xff]  ;;  %v4811_v30 = vadd.f32 %v10946_v29, %v4772_v61  ;;  %3176 = vst.msk [vmem:[#allocation5 + $0x258] sm:$0xff] %vm3150_vm15, %v3105_v43  ;;  %v3748_v1 = vpop.permute.xlu0 %3747 }
 0x3ce   : > { %v5029_v16 = vld [vmem:[#allocation6 + $0x51] sm:$0xff]  ;;  %5353 = vrot.lane.b32.xlu0 %v5284_v25, %s8361_s18  ;;  %4997 = vst.msk [vmem:[#allocation7 + $0x118] sm:$0xff] %vm4869_vm1, %v5284_v25 }
 0x3cf   : > { %v4154_v11 = vld [vmem:[#allocation5 + $0x248] sm:$0xff]  ;;  %5100 = vrot.lane.b32.xlu1 %v5029_v16, %s8361_s18  ;;  %v5987_v41 = vld [vmem:[#allocation6 + $0x52] sm:$0xff]  ;;  %3818 = vst.msk [vmem:[#allocation5 + $0x260] sm:$0xff] %vm3150_vm15, %v3748_v1  ;;  %v4843_v48 = vmax.f32 %v4811_v30, 0.0 }
 0x3d0   : > { %v5986_v54 = vld [vmem:[#allocation6 + $0x4a] sm:$0xff]  ;;  %4493 = vmatprep.mubr.f32.mxu1 %v4154_v11  ;;  %6019 = vst.msk [vmem:[#allocation7 + $0x98] sm:$0xff] %vm4869_vm1, %v5987_v41  ;;  %5254 = vst.msk [vmem:[#allocation7 + $0x120] sm:$0xff] %vm4869_vm1, %v5987_v41  ;;  %v3298_v10 = vpop.permute.xlu1 %3297 }
 0x3d1   : > { %6018 = vst.msk [vmem:[#allocation7 + $0x70] sm:$0xff] %vm4869_vm1, %v5986_v54  ;;  %5253 = vst.msk [vmem:[#allocation7 + $0xf8] sm:$0xff] %vm4869_vm1, %v5986_v54  ;;  %v11245_v42 = vld [vmem:[#allocation6 + $0x51] sm:$0xff]  ;;  %4494 = vmatmul.mubr.f32.gmra.mrb[80].mxu1 %v4153_v20  ;;  %v3940_v28 = vpop.permute.xlu0 %3939 }
 0x3d2   : > { %5508 = vst.msk [vmem:[#allocation7 + $0xd8] sm:$0xff] %vm4869_vm1, %v11245_v42  ;;  %v5731_v44 = vld [vmem:[#allocation6 + $0x50] sm:$0xff]  ;;  %4932 = vst.msk [vmem:[#allocation6 + $0x61] sm:$0xff] %vm4869_vm1, %v4843_v48 }
 0x3d3   : > { %5763 = vst.msk [vmem:[#allocation7 + $0x90] sm:$0xff] %vm4869_vm1, %v5731_v44 }
 0x3d4   : > { %3369 = vst.msk [vmem:[#allocation5 + $0x258] sm:$0xff] %vm3343_vm0, %v3298_v10  ;;  %4010 = vst.msk [vmem:[#allocation5 + $0x260] sm:$0xff] %vm3343_vm0, %v3940_v28  ;;  %v2914_v56 = vpop.permute.xlu1 %2913  ;;  %v4410_v50 = vpop.f32.mrb[46].mxu1 }
 0x3d5   : > { %2984 = vst.msk [vmem:[#allocation5 + $0x270] sm:$0xff] %vm2957_vm14, %v2914_v56  ;;  %v3557_v62 = vpop.permute.xlu0 %3556  ;;  %v4636_v46 = vadd.f32 %v10451_v55, %v4410_v50  ;;  %v4412_v63 = vpop.f32.mrb[47].mxu1 }
 0x3d6   : > { %3626 = vst.msk [vmem:[#allocation5 + $0x278] sm:$0xff] %vm2957_vm14, %v3557_v62 }
 0x3d7   : > { %v4773_v47 = vmul.f32 %v10932_v36, %v4636_v46 }
 0x3d8   : > { %v3107_v60 = vpop.permute.xlu1 %3106 }
 0x3d9   : > { %v5285_v27 = vld [vmem:[#allocation6 + $0x60] sm:$0xff]  ;;  %v4812_v21 = vadd.f32 %v10946_v29, %v4773_v47  ;;  %3177 = vst.msk [vmem:[#allocation5 + $0x270] sm:$0xff] %vm3150_vm15, %v3107_v60  ;;  %v3750_v3 = vpop.permute.xlu0 %3749 }
 0x3da   : > { %v5030_v52 = vld [vmem:[#allocation6 + $0x61] sm:$0xff]  ;;  %5355 = vrot.lane.b32.xlu0 %v5285_v27, %s8361_s18  ;;  %4998 = vst.msk [vmem:[#allocation7 + $0x140] sm:$0xff] %vm4869_vm1, %v5285_v27 }
 0x3db   : > { %v4156_v45 = vld [vmem:[#allocation5 + $0x258] sm:$0xff]  ;;  %v4157_v40 = vld [vmem:[#allocation5 + $0x260] sm:$0xff]  ;;  %5102 = vrot.lane.b32.xlu1 %v5030_v52, %s8361_s18  ;;  %v4844_v26 = vmax.f32 %v4812_v21, 0.0  ;;  %3819 = vst.msk [vmem:[#allocation5 + $0x278] sm:$0xff] %vm3150_vm15, %v3750_v3 }
 0x3dc   : > { %v11262_v55 = vld [vmem:[#allocation6 + $0x61] sm:$0xff]  ;;  %4498 = vmatprep.mubr.f32.mxu1 %v4157_v40  ;;  %v3300_v49 = vpop.permute.xlu1 %3299 }
 0x3dd   : > { %v5732_v58 = vld [vmem:[#allocation6 + $0x60] sm:$0xff]  ;;  %5509 = vst.msk [vmem:[#allocation7 + $0x100] sm:$0xff] %vm4869_vm1, %v11262_v55  ;;  %4499 = vmatmul.mubr.f32.gmra.mrb[82].mxu1 %v4156_v45  ;;  %4933 = vst.msk [vmem:[#allocation6 + $0x69] sm:$0xff] %vm4869_vm1, %v4844_v26  ;;  %v3942_v15 = vpop.permute.xlu0 %3941 }
 0x3de   : > { %5764 = vst.msk [vmem:[#allocation7 + $0xb8] sm:$0xff] %vm4869_vm1, %v5732_v58 }
 0x3df   : > { %3370 = vst.msk [vmem:[#allocation5 + $0x270] sm:$0xff] %vm3343_vm0, %v3300_v49  ;;  %4011 = vst.msk [vmem:[#allocation5 + $0x278] sm:$0xff] %vm3343_vm0, %v3942_v15 }
 0x3e0   : > { %v2916_v13 = vpop.permute.xlu1 %2915  ;;  %v4415_v34 = vpop.f32.mrb[48].mxu1 }
 0x3e1   : > { %2985 = vst.msk [vmem:[#allocation5 + $0x288] sm:$0xff] %vm2957_vm14, %v2916_v13  ;;  %v4641_v37 = vadd.f32 %v10657_v5, %v4415_v34  ;;  %v4417_v19 = vpop.f32.mrb[49].mxu1  ;;  %v3559_v24 = vpop.permute.xlu0 %3558 }
 0x3e2   : > { %3627 = vst.msk [vmem:[#allocation5 + $0x290] sm:$0xff] %vm2957_vm14, %v3559_v24 }
 0x3e3   : > { %v4774_v8 = vmul.f32 %v10932_v36, %v4641_v37 }
 0x3e4   : > { %v11275_v18 = vpop.f32.mrb[20].mxu0  ;;  %v3109_v39 = vpop.permute.xlu1 %3108  ;;  %v5286_v31 = vld [vmem:[#allocation6 + $0x68] sm:$0xff] }
 0x3e5   : > { %v11277_v2 = vpop.f32.mrb[21].mxu0  ;;  %v5031_v23 = vld [vmem:[#allocation6 + $0x69] sm:$0xff]  ;;  %v4813_v61 = vadd.f32 %v10946_v29, %v4774_v8  ;;  %3178 = vst.msk [vmem:[#allocation5 + $0x288] sm:$0xff] %vm3150_vm15, %v3109_v39  ;;  %5357 = vrot.lane.b32.xlu0 %v5286_v31, %s8361_s18  ;;  %v3752_v20 = vpop.permute.xlu0 %3751 }
 0x3e6   : > { %5104 = vrot.lane.b32.xlu1 %v5031_v23, %s8361_s18  ;;  %v5988_v5 = vld [vmem:[#allocation6 + $0x62] sm:$0xff]  ;;  %v5989_v43 = vld [vmem:[#allocation6 + $0x6a] sm:$0xff]  ;;  %4999 = vst.msk [vmem:[#allocation7 + $0x168] sm:$0xff] %vm4869_vm1, %v5286_v31  ;;  %v4160_v25 = vld [vmem:[#allocation5 + $0x278] sm:$0xff] }
 0x3e7   : > { %6020 = vst.msk [vmem:[#allocation7 + $0xc0] sm:$0xff] %vm4869_vm1, %v5988_v5  ;;  %6021 = vst.msk [vmem:[#allocation7 + $0xe8] sm:$0xff] %vm4869_vm1, %v5989_v43  ;;  %v11288_v16 = vld [vmem:[#allocation6 + $0x69] sm:$0xff]  ;;  %v4845_v30 = vmax.f32 %v4813_v61, 0.0  ;;  %4503 = vmatprep.mubr.f32.mxu1 %v4160_v25 }
 0x3e8   : > { %5255 = vst.msk [vmem:[#allocation7 + $0x148] sm:$0xff] %vm4869_vm1, %v5988_v5  ;;  %5256 = vst.msk [vmem:[#allocation7 + $0x170] sm:$0xff] %vm4869_vm1, %v5989_v43  ;;  %v4159_v1 = vld [vmem:[#allocation5 + $0x270] sm:$0xff]  ;;  %v5733_v11 = vld [vmem:[#allocation6 + $0x68] sm:$0xff]  ;;  %v3302_v54 = vpop.permute.xlu1 %3301 }
 0x3e9   : > { %3820 = vst.msk [vmem:[#allocation5 + $0x290] sm:$0xff] %vm3150_vm15, %v3752_v20  ;;  %4504 = vmatmul.mubr.f32.gmra.mrb[84].mxu1 %v4159_v1  ;;  %v3944_v41 = vpop.permute.xlu0 %3943 }
 0x3ea   : > { %5510 = vst.msk [vmem:[#allocation7 + $0x128] sm:$0xff] %vm4869_vm1, %v11288_v16  ;;  %5765 = vst.msk [vmem:[#allocation7 + $0xe0] sm:$0xff] %vm4869_vm1, %v5733_v11 }
 0x3eb   : > { %4934 = vst.msk [vmem:[#allocation6 + $0x79] sm:$0xff] %vm4869_vm1, %v4845_v30 }
 0x3ec   : > { %3371 = vst.msk [vmem:[#allocation5 + $0x288] sm:$0xff] %vm3343_vm0, %v3302_v54  ;;  %4012 = vst.msk [vmem:[#allocation5 + $0x290] sm:$0xff] %vm3343_vm0, %v3944_v41  ;;  %v2918_v48 = vpop.permute.xlu1 %2917  ;;  %v4420_v44 = vpop.f32.mrb[50].mxu1 }
 0x3ed   : > { %2986 = vst.msk [vmem:[#allocation5 + $0x2a0] sm:$0xff] %vm2957_vm14, %v2918_v48  ;;  %v4646_v10 = vadd.f32 %v10653_v22, %v4420_v44  ;;  %v4422_v28 = vpop.f32.mrb[51].mxu1  ;;  %v3561_v56 = vpop.permute.xlu0 %3560  ;;  %v11345_v48 = vld [vmem:[%s12432_s5] ss:$0 sm:$0xff] }
 0x3ee   : > { %3628 = vst.msk [vmem:[#allocation5 + $0x2a8] sm:$0xff] %vm2957_vm14, %v3561_v56 }
 0x3ef   : > { %v4775_v50 = vmul.f32 %v10932_v36, %v4646_v10 }
 0x3f0   : > { %v3111_v62 = vpop.permute.xlu1 %3110 }
 0x3f1   : > { %v4814_v47 = vadd.f32 %v10946_v29, %v4775_v50  ;;  %3179 = vst.msk [vmem:[#allocation5 + $0x2a0] sm:$0xff] %vm3150_vm15, %v3111_v62 }
 0x3f2   : > { %v5287_v46 = vld [vmem:[#allocation6 + $0x78] sm:$0xff] }
 0x3f3   : > { %v5032_v63 = vld [vmem:[#allocation6 + $0x79] sm:$0xff]  ;;  %5359 = vrot.lane.b32.xlu0 %v5287_v46, %s8361_s18  ;;  %5000 = vst.msk [vmem:[#allocation7 + $0x190] sm:$0xff] %vm4869_vm1, %v5287_v46  ;;  %v4163_v45 = vld [vmem:[#allocation5 + $0x290] sm:$0xff]  ;;  %v4846_v27 = vmax.f32 %v4814_v47, 0.0  ;;  %v4162_v52 = vld [vmem:[#allocation5 + $0x288] sm:$0xff] }
 0x3f4   : > { %5106 = vrot.lane.b32.xlu1 %v5032_v63, %s8361_s18  ;;  %v11306_v22 = vld [vmem:[#allocation6 + $0x79] sm:$0xff]  ;;  %4508 = vmatprep.mubr.f32.mxu1 %v4163_v45  ;;  %v3304_v21 = vpop.permute.xlu1 %3303 }
 0x3f5   : > { %v5734_v60 = vld [vmem:[#allocation6 + $0x78] sm:$0xff]  ;;  %5511 = vst.msk [vmem:[#allocation7 + $0x150] sm:$0xff] %vm4869_vm1, %v11306_v22  ;;  %4509 = vmatmul.mubr.f32.gmra.mrb[86].mxu1 %v4162_v52  ;;  %4935 = vst.msk [vmem:[#allocation6 + $0x81] sm:$0xff] %vm4869_vm1, %v4846_v27 }
 0x3f6   : > { %5766 = vst.msk [vmem:[#allocation7 + $0x108] sm:$0xff] %vm4869_vm1, %v5734_v60  ;;  %v3754_v40 = vpop.permute.xlu0 %3753 }
 0x3f7   : > { %3372 = vst.msk [vmem:[#allocation5 + $0x2a0] sm:$0xff] %vm3343_vm0, %v3304_v21 }
 0x3f8   : > { %3821 = vst.msk [vmem:[#allocation5 + $0x2a8] sm:$0xff] %vm3150_vm15, %v3754_v40  ;;  %v2920_v58 = vpop.permute.xlu1 %2919  ;;  %v4425_v3 = vpop.f32.mrb[52].mxu1 }
 0x3f9   : > { %2987 = vst.msk [vmem:[#allocation5 + $0x2b8] sm:$0xff] %vm2957_vm14, %v2920_v58  ;;  %v4651_v26 = vadd.f32 %v10741_v53, %v4425_v3  ;;  %v4427_v49 = vpop.f32.mrb[53].mxu1 }
 0x3fa   : > { %v3946_v15 = vpop.permute.xlu0 %3945 }
 0x3fb   : > { %v4776_v13 = vmul.f32 %v10932_v36, %v4651_v26  ;;  %4013 = vst.msk [vmem:[#allocation5 + $0x2a8] sm:$0xff] %vm3343_vm0, %v3946_v15 }
 0x3fc   : > { %v3113_v34 = vpop.permute.xlu1 %3112  ;;  %v5288_v37 = vld [vmem:[#allocation6 + $0x80] sm:$0xff] }
 0x3fd   : > { %v5033_v19 = vld [vmem:[#allocation6 + $0x81] sm:$0xff]  ;;  %3180 = vst.msk [vmem:[#allocation5 + $0x2b8] sm:$0xff] %vm3150_vm15, %v3113_v34  ;;  %5361 = vrot.lane.b32.xlu0 %v5288_v37, %s8361_s18  ;;  %v4815_v53 = vadd.f32 %v10946_v29, %v4776_v13 }
 0x3fe   : > { %5108 = vrot.lane.b32.xlu1 %v5033_v19, %s8361_s18  ;;  %v5990_v24 = vld [vmem:[#allocation6 + $0x7a] sm:$0xff]  ;;  %v5991_v8 = vld [vmem:[#allocation6 + $0x82] sm:$0xff]  ;;  %5001 = vst.msk [vmem:[#allocation7 + $0x1b8] sm:$0xff] %vm4869_vm1, %v5288_v37  ;;  %v3563_v31 = vpop.permute.xlu0 %3562 }
 0x3ff   : > { %6022 = vst.msk [vmem:[#allocation7 + $0x110] sm:$0xff] %vm4869_vm1, %v5990_v24  ;;  %6023 = vst.msk [vmem:[#allocation7 + $0x138] sm:$0xff] %vm4869_vm1, %v5991_v8  ;;  %v11327_v36 = vld [vmem:[#allocation6 + $0x81] sm:$0xff]  ;;  %v4847_v23 = vmax.f32 %v4815_v53, 0.0 }
 0x400   : > { %5257 = vst.msk [vmem:[#allocation7 + $0x198] sm:$0xff] %vm4869_vm1, %v5990_v24  ;;  %5258 = vst.msk [vmem:[#allocation7 + $0x1c0] sm:$0xff] %vm4869_vm1, %v5991_v8  ;;  %v5735_v39 = vld [vmem:[#allocation6 + $0x80] sm:$0xff]  ;;  %v3306_v29 = vpop.permute.xlu1 %3305 }
 0x401   : > { %5512 = vst.msk [vmem:[#allocation7 + $0x178] sm:$0xff] %vm4869_vm1, %v11327_v36  ;;  %5767 = vst.msk [vmem:[#allocation7 + $0x130] sm:$0xff] %vm4869_vm1, %v5735_v39  ;;  %v4165_v25 = vld [vmem:[#allocation5 + $0x2a0] sm:$0xff] }
 0x402   : > { %3629 = vst.msk [vmem:[#allocation5 + $0x2c0] sm:$0xff] %vm2957_vm14, %v3563_v31  ;;  %v3756_v61 = vpop.permute.xlu0 %3755  ;;  %v4166_v5 = vld [vmem:[#allocation5 + $0x2a8] sm:$0xff] }
 0x403   : > { %3373 = vst.msk [vmem:[#allocation5 + $0x2b8] sm:$0xff] %vm3343_vm0, %v3306_v29  ;;  %4513 = vmatprep.mubr.f32.mxu1 %v4166_v5 }
 0x404   : > { %4936 = vst.msk [vmem:[#allocation6 + $0x91] sm:$0xff] %vm4869_vm1, %v4847_v23  ;;  %v11336_v43 = vpop.f32.mrb[22].mxu0  ;;  %v2922_v20 = vpop.permute.xlu1 %2921  ;;  %4514 = vmatmul.mubr.f32.gmra.mrb[88].mxu1 %v4165_v25 }
 0x405   : > { %3822 = vst.msk [vmem:[#allocation5 + $0x2c0] sm:$0xff] %vm3150_vm15, %v3756_v61  ;;  %v4430_v30 = vpop.f32.mrb[54].mxu1  ;;  %v11339_v1 = vpop.f32.mrb[23].mxu0 }
 0x406   : > { %2988 = vst.msk [vmem:[#allocation5 + $0x2d0] sm:$0xff] %vm2957_vm14, %v2922_v20  ;;  %v4656_v11 = vadd.f32 %v10737_v57, %v4430_v30  ;;  %v4432_v54 = vpop.f32.mrb[55].mxu1  ;;  %v3948_v41 = vpop.permute.xlu0 %3947  ;;  %v11355_v57 = vld [vmem:[%s12433_s6] ss:$0 sm:$0xff] }
 0x407   : > { %4014 = vst.msk [vmem:[#allocation5 + $0x2c0] sm:$0xff] %vm3343_vm0, %v3948_v41 }
 0x408   : > { %v4777_v44 = vmul.f32 %v11345_v48, %v4656_v11  ;;  %v3115_v10 = vpop.permute.xlu1 %3114 }
 0x409   : > { %3181 = vst.msk [vmem:[#allocation5 + $0x2d0] sm:$0xff] %vm3150_vm15, %v3115_v10 }
 0x40a   : > { %v4816_v62 = vadd.f32 %v11355_v57, %v4777_v44  ;;  %v3565_v63 = vpop.permute.xlu0 %3564  ;;  %v4168_v21 = vld [vmem:[#allocation5 + $0x2b8] sm:$0xff] }
 0x40b   : > { %v5289_v28 = vld [vmem:[#allocation6 + $0x90] sm:$0xff]  ;;  %3630 = vst.msk [vmem:[#allocation5 + $0x2d8] sm:$0xff] %vm2957_vm14, %v3565_v63 }
 0x40c   : > { %v5034_v56 = vld [vmem:[#allocation6 + $0x91] sm:$0xff]  ;;  %5363 = vrot.lane.b32.xlu0 %v5289_v28, %s8361_s18  ;;  %5002 = vst.msk [vmem:[#allocation7 + $0x1e0] sm:$0xff] %vm4869_vm1, %v5289_v28  ;;  %v4848_v47 = vmax.f32 %v4816_v62, 0.0  ;;  %v3308_v60 = vpop.permute.xlu1 %3307 }
 0x40d   : > { %v11350_v50 = vld [vmem:[#allocation6 + $0x91] sm:$0xff]  ;;  %5110 = vrot.lane.b32.xlu1 %v5034_v56, %s8361_s18  ;;  %3374 = vst.msk [vmem:[#allocation5 + $0x2d0] sm:$0xff] %vm3343_vm0, %v3308_v60 }
 0x40e   : > { %5513 = vst.msk [vmem:[#allocation7 + $0x1a0] sm:$0xff] %vm4869_vm1, %v11350_v50  ;;  %v5736_v46 = vld [vmem:[#allocation6 + $0x90] sm:$0xff]  ;;  %4937 = vst.msk [vmem:[#allocation6 + $0x99] sm:$0xff] %vm4869_vm1, %v4848_v47  ;;  %v3758_v45 = vpop.permute.xlu0 %3757  ;;  %v4169_v27 = vld [vmem:[#allocation5 + $0x2c0] sm:$0xff] }
 0x40f   : > { %5768 = vst.msk [vmem:[#allocation7 + $0x158] sm:$0xff] %vm4869_vm1, %v5736_v46  ;;  %4518 = vmatprep.mubr.f32.mxu1 %v4169_v27 }
 0x410   : > { %3823 = vst.msk [vmem:[#allocation5 + $0x2d8] sm:$0xff] %vm3150_vm15, %v3758_v45  ;;  %v2924_v52 = vpop.permute.xlu1 %2923  ;;  %v4435_v40 = vpop.f32.mrb[56].mxu1  ;;  %4519 = vmatmul.mubr.f32.gmra.mrb[90].mxu1 %v4168_v21 }
 0x411   : > { %2989 = vst.msk [vmem:[#allocation5 + $0x2e8] sm:$0xff] %vm2957_vm14, %v2924_v52  ;;  %v4661_v58 = vadd.f32 %v10823_v9, %v4435_v40  ;;  %v4437_v3 = vpop.f32.mrb[57].mxu1 }
 0x412   : > { %v3950_v26 = vpop.permute.xlu0 %3949 }
 0x413   : > { %v4778_v49 = vmul.f32 %v11345_v48, %v4661_v58  ;;  %4015 = vst.msk [vmem:[#allocation5 + $0x2d8] sm:$0xff] %vm3343_vm0, %v3950_v26  ;;  %v6052_v58 = vld [vmem:[#allocation7 + $0x20] sm:$0xff] }
 0x414   : > { %v3117_v15 = vpop.permute.xlu1 %3116  ;;  %v4171_v5 = vld [vmem:[#allocation5 + $0x2d0] sm:$0xff] }
 0x415   : > { %3182 = vst.msk [vmem:[#allocation5 + $0x2e8] sm:$0xff] %vm3150_vm15, %v3117_v15  ;;  %v5290_v13 = vld [vmem:[#allocation6 + $0x98] sm:$0xff]  ;;  %v4817_v19 = vadd.f32 %v11355_v57, %v4778_v49 }
 0x416   : > { %v5035_v34 = vld [vmem:[#allocation6 + $0x99] sm:$0xff]  ;;  %5365 = vrot.lane.b32.xlu0 %v5290_v13, %s8361_s18  ;;  %5003 = vst.msk [vmem:[#allocation7 + $0x208] sm:$0xff] %vm4869_vm1, %v5290_v13  ;;  %v3567_v24 = vpop.permute.xlu0 %3566 }
 0x417   : > { %v5992_v37 = vld [vmem:[#allocation6 + $0x92] sm:$0xff]  ;;  %5112 = vrot.lane.b32.xlu1 %v5035_v34, %s8361_s18  ;;  %v5993_v9 = vld [vmem:[#allocation6 + $0x9a] sm:$0xff]  ;;  %v4849_v39 = vmax.f32 %v4817_v19, 0.0  ;;  %3631 = vst.msk [vmem:[#allocation5 + $0x2f0] sm:$0xff] %vm2957_vm14, %v3567_v24 }
 0x418   : > { %6024 = vst.msk [vmem:[#allocation7 + $0x160] sm:$0xff] %vm4869_vm1, %v5992_v37  ;;  %5259 = vst.msk [vmem:[#allocation7 + $0x1e8] sm:$0xff] %vm4869_vm1, %v5992_v37  ;;  %v11381_v8 = vld [vmem:[#allocation6 + $0x99] sm:$0xff]  ;;  %v3310_v31 = vpop.permute.xlu1 %3309 }
 0x419   : > { %6025 = vst.msk [vmem:[#allocation7 + $0x188] sm:$0xff] %vm4869_vm1, %v5993_v9  ;;  %5260 = vst.msk [vmem:[#allocation7 + $0x210] sm:$0xff] %vm4869_vm1, %v5993_v9  ;;  %v5737_v53 = vld [vmem:[#allocation6 + $0x98] sm:$0xff] }
 0x41a   : > { %5514 = vst.msk [vmem:[#allocation7 + $0x1c8] sm:$0xff] %vm4869_vm1, %v11381_v8  ;;  %5769 = vst.msk [vmem:[#allocation7 + $0x180] sm:$0xff] %vm4869_vm1, %v5737_v53  ;;  %v3760_v23 = vpop.permute.xlu0 %3759  ;;  %v4172_v29 = vld [vmem:[#allocation5 + $0x2d8] sm:$0xff] }
 0x41b   : > { %3375 = vst.msk [vmem:[#allocation5 + $0x2e8] sm:$0xff] %vm3343_vm0, %v3310_v31  ;;  %4523 = vmatprep.mubr.f32.mxu1 %v4172_v29  ;;  %v6057_v19 = vld [vmem:[#allocation7 + $0x48] sm:$0xff] }
 0x41c   : > { %4938 = vst.msk [vmem:[#allocation6 + $0xa9] sm:$0xff] %vm4869_vm1, %v4849_v39  ;;  %v5087_v61 = vpop.permute.xlu1 %5086  ;;  %4524 = vmatmul.mubr.f32.gmra.mrb[92].mxu1 %v4171_v5  ;;  %v6062_v39 = vld [vmem:[#allocation7 + $0x70] sm:$0xff] }
 0x41d   : > { %3824 = vst.msk [vmem:[#allocation5 + $0x2f0] sm:$0xff] %vm3150_vm15, %v3760_v23  ;;  %v4440_v20 = vpop.f32.mrb[58].mxu1 }
 0x41e   : > { %5183 = vst.msk [vmem:[#allocation7] sm:$0xff] %vm5182_vm3, %v5087_v61  ;;  %v4666_v25 = vadd.f32 %v10819_v17, %v4440_v20  ;;  %v4442_v30 = vpop.f32.mrb[59].mxu1  ;;  %v3952_v11 = vpop.permute.xlu0 %3951 }
 0x41f   : > { %4016 = vst.msk [vmem:[#allocation5 + $0x2f0] sm:$0xff] %vm3343_vm0, %v3952_v11  ;;  %v6067_v11 = vld [vmem:[#allocation7 + $0x98] sm:$0xff] }
 0x420   : > { %v4779_v54 = vmul.f32 %v11345_v48, %v4666_v25  ;;  %v5089_v41 = vpop.permute.xlu1 %5088 }
 0x421   : > { %5184 = vst.msk [vmem:[#allocation7 + $0x28] sm:$0xff] %vm5182_vm3, %v5089_v41 }
 0x422   : > { %v4818_v56 = vadd.f32 %v11355_v57, %v4779_v54  ;;  %v5344_v62 = vpop.permute.xlu0 %5343  ;;  %v4174_v21 = vld [vmem:[#allocation5 + $0x2e8] sm:$0xff]  ;;  %v6072_v54 = vld [vmem:[#allocation7 + $0xc0] sm:$0xff] }
 0x423   : > { %v5291_v44 = vld [vmem:[#allocation6 + $0xa8] sm:$0xff]  ;;  %5439 = vst.msk [vmem:[#allocation7 + $0x8] sm:$0xff] %vm5182_vm3, %v5344_v62 }
 0x424   : > { %v5036_v10 = vld [vmem:[#allocation6 + $0xa9] sm:$0xff]  ;;  %5367 = vrot.lane.b32.xlu0 %v5291_v44, %s8361_s18  ;;  %5004 = vst.msk [vmem:[#allocation7 + $0x230] sm:$0xff] %vm4869_vm1, %v5291_v44  ;;  %v4850_v46 = vmax.f32 %v4818_v56, 0.0  ;;  %v11405_v63 = vpop.f32.mrb[24].mxu0  ;;  %v5091_v47 = vpop.permute.xlu1 %5090 }
 0x425   : > { %v11395_v28 = vld [vmem:[#allocation6 + $0xa9] sm:$0xff]  ;;  %5114 = vrot.lane.b32.xlu1 %v5036_v10, %s8361_s18  ;;  %5185 = vst.msk [vmem:[#allocation7 + $0x50] sm:$0xff] %vm5182_vm3, %v5091_v47  ;;  %v11408_v60 = vpop.f32.mrb[25].mxu0 }
 0x426   : > { %5515 = vst.msk [vmem:[#allocation7 + $0x1f0] sm:$0xff] %vm4869_vm1, %v11395_v28  ;;  %v5738_v17 = vld [vmem:[#allocation6 + $0xa8] sm:$0xff]  ;;  %4939 = vst.msk [vmem:[#allocation6 + $0xb1] sm:$0xff] %vm4869_vm1, %v4850_v46  ;;  %v5346_v45 = vpop.permute.xlu0 %5345  ;;  %v4175_v27 = vld [vmem:[#allocation5 + $0x2f0] sm:$0xff] }
 0x427   : > { %5770 = vst.msk [vmem:[#allocation7 + $0x1a8] sm:$0xff] %vm4869_vm1, %v5738_v17  ;;  %4528 = vmatprep.mubr.f32.mxu1 %v4175_v27  ;;  %v6048_v49 = vld [vmem:[#allocation7] sm:$0xff]  ;;  %v6077_v17 = vld [vmem:[#allocation7 + $0xe8] sm:$0xff]  ;;  %v6082_v46 = vld [vmem:[#allocation7 + $0x110] sm:$0xff] }
 0x428   : > { %5440 = vst.msk [vmem:[#allocation7 + $0x30] sm:$0xff] %vm5182_vm3, %v5346_v45  ;;  %v5093_v52 = vpop.permute.xlu1 %5092  ;;  %4529 = vmatmul.mubr.f32.gmra.mrb[94].mxu1 %v4174_v21  ;;  %v6053_v31 = vld [vmem:[#allocation7 + $0x28] sm:$0xff] }
 0x429   : > { %5186 = vst.msk [vmem:[#allocation7 + $0x78] sm:$0xff] %vm5182_vm3, %v5093_v52  ;;  %7925 = vmatprep.mubr.msk.f32.mxu1 %vm4869_vm1, %v6052_v58 }
 0x42a   : > { %v4445_v40 = vpop.f32.mrb[60].mxu1  ;;  %v5348_v15 = vpop.permute.xlu0 %5347  ;;  %v6049_v13 = vld [vmem:[#allocation7 + $0x8] sm:$0xff] }
 0x42b   : > { %v4671_v3 = vadd.f32 %v10964_v12, %v4445_v40  ;;  %v4447_v26 = vpop.f32.mrb[61].mxu1  ;;  %5441 = vst.msk [vmem:[#allocation7 + $0x58] sm:$0xff] %vm5182_vm3, %v5348_v15  ;;  %6440 = vmatprep.mubr.f32.mxu0 %v6049_v13  ;;  %v6087_v40 = vld [vmem:[#allocation7 + $0x138] sm:$0xff] }
 0x42c   : > { %v5095_v37 = vpop.permute.xlu1 %5094  ;;  %6441 = vmatmul.mubr.f32.vlgmr.msra.gmra.mrb[32].mxu0 %v6048_v49  ;;  %7926 = vmatmul.mubr.msk.f32.vlgmr.msra.gmra.mrb[96].mxu1 %vm4869_vm1, %v6057_v19  ;;  %v6058_v56 = vld [vmem:[#allocation7 + $0x50] sm:$0xff] }
 0x42d   : > { %v4780_v34 = vmul.f32 %v11345_v48, %v4671_v3  ;;  %5187 = vst.msk [vmem:[#allocation7 + $0xa0] sm:$0xff] %vm5182_vm3, %v5095_v37  ;;  %v5292_v9 = vld [vmem:[#allocation6 + $0xb0] sm:$0xff]  ;;  %7928 = vmatprep.mubr.msk.f32.mxu1 %vm4869_vm1, %v6062_v39  ;;  %v6097_v37 = vld [vmem:[#allocation7 + $0x188] sm:$0xff] }
 0x42e   : > { %v5037_v12 = vld [vmem:[#allocation6 + $0xb1] sm:$0xff]  ;;  %5369 = vrot.lane.b32.xlu0 %v5292_v9, %s8361_s18  ;;  %5005 = vst.msk [vmem:[#allocation7 + $0x258] sm:$0xff] %vm4869_vm1, %v5292_v9  ;;  %v5350_v29 = vpop.permute.xlu0 %5349 }
 0x42f   : > { %v5994_v24 = vld [vmem:[#allocation6 + $0xaa] sm:$0xff]  ;;  %v4819_v53 = vadd.f32 %v11355_v57, %v4780_v34  ;;  %5116 = vrot.lane.b32.xlu1 %v5037_v12, %s8361_s18  ;;  %v5995_v23 = vld [vmem:[#allocation6 + $0xb2] sm:$0xff]  ;;  %v6054_v61 = vld [vmem:[#allocation7 + $0x30] sm:$0xff]  ;;  %5442 = vst.msk [vmem:[#allocation7 + $0x80] sm:$0xff] %vm5182_vm3, %v5350_v29 }
 0x430   : > { %6026 = vst.msk [vmem:[#allocation7 + $0x1b0] sm:$0xff] %vm4869_vm1, %v5994_v24  ;;  %5261 = vst.msk [vmem:[#allocation7 + $0x238] sm:$0xff] %vm4869_vm1, %v5994_v24  ;;  %v11428_v5 = vld [vmem:[#allocation6 + $0xb1] sm:$0xff]  ;;  %6445 = vmatprep.mubr.f32.mxu0 %v6054_v61  ;;  %v5097_v30 = vpop.permute.xlu1 %5096  ;;  %7929 = vmatmul.mubr.msk.f32.gmra.mrb[98].mxu1 %vm4869_vm1, %v6067_v11  ;;  %v6063_v21 = vld [vmem:[#allocation7 + $0x78] sm:$0xff] }
 0x431   : > { %6027 = vst.msk [vmem:[#allocation7 + $0x1d8] sm:$0xff] %vm4869_vm1, %v5995_v23  ;;  %5262 = vst.msk [vmem:[#allocation7 + $0x260] sm:$0xff] %vm4869_vm1, %v5995_v23  ;;  %v5739_v20 = vld [vmem:[#allocation6 + $0xb0] sm:$0xff]  ;;  %v4851_v25 = vmax.f32 %v4819_v53, 0.0  ;;  %6446 = vmatmul.mubr.f32.gmra.mrb[34].mxu0 %v6053_v31  ;;  %7931 = vmatprep.mubr.msk.f32.mxu1 %vm4869_vm1, %v6072_v54 }
 0x432   : > { %5516 = vst.msk [vmem:[#allocation7 + $0x218] sm:$0xff] %vm4869_vm1, %v11428_v5  ;;  %5771 = vst.msk [vmem:[#allocation7 + $0x1d0] sm:$0xff] %vm4869_vm1, %v5739_v20  ;;  %v6059_v44 = vld [vmem:[#allocation7 + $0x58] sm:$0xff] }
 0x433   : > { %5188 = vst.msk [vmem:[#allocation7 + $0xc8] sm:$0xff] %vm5182_vm3, %v5097_v30  ;;  %6450 = vmatprep.mubr.f32.mxu0 %v6059_v44 }
 0x434   : > { %4940 = vst.msk [vmem:[#allocation6 + $0xc1] sm:$0xff] %vm4869_vm1, %v4851_v25  ;;  %7932 = vmatmul.mubr.msk.f32.gmra.mrb[100].mxu1 %vm4869_vm1, %v6077_v17  ;;  %v6068_v19 = vld [vmem:[#allocation7 + $0xa0] sm:$0xff] }
 0x435   : > { %v5352_v41 = vpop.permute.xlu0 %5351  ;;  %6451 = vmatmul.mubr.f32.gmra.mrb[36].mxu0 %v6058_v56  ;;  %7934 = vmatprep.mubr.msk.f32.mxu1 %vm4869_vm1, %v6082_v46 }
 0x436   : > { %5443 = vst.msk [vmem:[#allocation7 + $0xa8] sm:$0xff] %vm5182_vm3, %v5352_v41  ;;  %v4450_v62 = vpop.f32.mrb[62].mxu1  ;;  %v6064_v27 = vld [vmem:[#allocation7 + $0x80] sm:$0xff] }
 0x437   : > { %v5099_v10 = vpop.permute.xlu1 %5098  ;;  %v4676_v47 = vadd.f32 %v10948_v59, %v4450_v62  ;;  %v4452_v45 = vpop.f32.mrb[63].mxu1  ;;  %6455 = vmatprep.mubr.f32.mxu0 %v6064_v27  ;;  %v6092_v59 = vld [vmem:[#allocation7 + $0x160] sm:$0xff]  ;;  %v6102_v9 = vld [vmem:[#allocation7 + $0x1b0] sm:$0xff] }
 0x438   : > { %5189 = vst.msk [vmem:[#allocation7 + $0xf0] sm:$0xff] %vm5182_vm3, %v5099_v10  ;;  %7935 = vmatmul.mubr.msk.f32.gmra.mrb[102].mxu1 %vm4869_vm1, %v6087_v40  ;;  %v6107_v53 = vld [vmem:[#allocation7 + $0x1d8] sm:$0xff] }
 0x439   : > { %v4781_v52 = vmul.f32 %v11345_v48, %v4676_v47  ;;  %6456 = vmatmul.mubr.f32.gmra.mrb[38].mxu0 %v6063_v21  ;;  %7937 = vmatprep.mubr.msk.f32.mxu1 %vm4869_vm1, %v6092_v59 }
 0x43a   : > { %v6073_v56 = vld [vmem:[#allocation7 + $0xc8] sm:$0xff] }
 0x43b   : > { %v5293_v58 = vld [vmem:[#allocation6 + $0xc0] sm:$0xff]  ;;  %v4820_v49 = vadd.f32 %v11355_v57, %v4781_v52 }
 0x43c   : > { %v5038_v3 = vld [vmem:[#allocation6 + $0xc1] sm:$0xff]  ;;  %5371 = vrot.lane.b32.xlu0 %v5293_v58, %s8361_s18  ;;  %5006 = vst.msk [vmem:[#allocation7 + $0x280] sm:$0xff] %vm4869_vm1, %v5293_v58  ;;  %7938 = vmatmul.mubr.msk.f32.gmra.mrb[104].mxu1 %vm4869_vm1, %v6097_v37 }
 0x43d   : > { %v11445_v26 = vld [vmem:[#allocation6 + $0xc1] sm:$0xff]  ;;  %5118 = vrot.lane.b32.xlu1 %v5038_v3, %s8361_s18  ;;  %v6069_v13 = vld [vmem:[#allocation7 + $0xa8] sm:$0xff]  ;;  %v4852_v34 = vmax.f32 %v4820_v49, 0.0  ;;  %7940 = vmatprep.mubr.msk.f32.mxu1 %vm4869_vm1, %v6102_v9 }
 0x43e   : > { %5517 = vst.msk [vmem:[#allocation7 + $0x240] sm:$0xff] %vm4869_vm1, %v11445_v26  ;;  %v5740_v15 = vld [vmem:[#allocation6 + $0xc0] sm:$0xff]  ;;  %6460 = vmatprep.mubr.f32.mxu0 %v6069_v13 }
 0x43f   : > { %5772 = vst.msk [vmem:[#allocation7 + $0x1f8] sm:$0xff] %vm4869_vm1, %v5740_v15  ;;  %6461 = vmatmul.mubr.f32.gmra.mrb[40].mxu0 %v6068_v19  ;;  %4941 = vst.msk [vmem:[#allocation6 + $0xc9] sm:$0xff] %vm4869_vm1, %v4852_v34  ;;  %v6078_v34 = vld [vmem:[#allocation7 + $0xf0] sm:$0xff] }
 0x440   : > { %v5354_v12 = vpop.permute.xlu0 %5353  ;;  %7941 = vmatmul.mubr.msk.f32.gmra.mrb[106].mxu1 %vm4869_vm1, %v6107_v53 }
 0x441   : > { %v5101_v24 = vpop.permute.xlu1 %5100  ;;  %5444 = vst.msk [vmem:[#allocation7 + $0xd0] sm:$0xff] %vm5182_vm3, %v5354_v12 }
 0x442   : > { %5190 = vst.msk [vmem:[#allocation7 + $0x118] sm:$0xff] %vm5182_vm3, %v5101_v24  ;;  %v4455_v39 = vpop.f32.mrb[64].mxu1 }
 0x443   : > { %v4681_v31 = vadd.f32 %v11125_v38, %v4455_v39  ;;  %v4457_v23 = vpop.f32.mrb[65].mxu1 }
 0x445   : > { %v4782_v29 = vmul.f32 %v11345_v48, %v4681_v31  ;;  %v11463_v61 = vpop.f32.mrb[26].mxu0 }
 0x446   : > { %v11465_v20 = vpop.f32.mrb[27].mxu0  ;;  %v5294_v25 = vld [vmem:[#allocation6 + $0xc8] sm:$0xff] }
 0x447   : > { %v5039_v30 = vld [vmem:[#allocation6 + $0xc9] sm:$0xff]  ;;  %v4821_v54 = vadd.f32 %v11355_v57, %v4782_v29  ;;  %5373 = vrot.lane.b32.xlu0 %v5294_v25, %s8361_s18  ;;  %5007 = vst.msk [vmem:[#allocation7 + $0x2a8] sm:$0xff] %vm4869_vm1, %v5294_v25 }
 0x448   : > { %v5996_v11 = vld [vmem:[#allocation6 + $0xc2] sm:$0xff]  ;;  %5120 = vrot.lane.b32.xlu1 %v5039_v30, %s8361_s18  ;;  %v5997_v41 = vld [vmem:[#allocation6 + $0xca] sm:$0xff] }
 0x449   : > { %6028 = vst.msk [vmem:[#allocation7 + $0x200] sm:$0xff] %vm4869_vm1, %v5996_v11  ;;  %5263 = vst.msk [vmem:[#allocation7 + $0x288] sm:$0xff] %vm4869_vm1, %v5996_v11  ;;  %v6074_v38 = vld [vmem:[#allocation7 + $0xd0] sm:$0xff]  ;;  %v11475_v44 = vld [vmem:[#allocation6 + $0xc9] sm:$0xff]  ;;  %v4853_v10 = vmax.f32 %v4821_v54, 0.0 }
 0x44a   : > { %6029 = vst.msk [vmem:[#allocation7 + $0x228] sm:$0xff] %vm4869_vm1, %v5997_v41  ;;  %5264 = vst.msk [vmem:[#allocation7 + $0x2b0] sm:$0xff] %vm4869_vm1, %v5997_v41  ;;  %6465 = vmatprep.mubr.f32.mxu0 %v6074_v38  ;;  %v5741_v17 = vld [vmem:[#allocation6 + $0xc8] sm:$0xff] }
 0x44b   : > { %5518 = vst.msk [vmem:[#allocation7 + $0x268] sm:$0xff] %vm4869_vm1, %v11475_v44  ;;  %6466 = vmatmul.mubr.f32.gmra.mrb[42].mxu0 %v6073_v56  ;;  %5773 = vst.msk [vmem:[#allocation7 + $0x220] sm:$0xff] %vm4869_vm1, %v5741_v17  ;;  %v6083_v41 = vld [vmem:[#allocation7 + $0x118] sm:$0xff] }
 0x44c   : > { %4942 = vst.msk [vmem:[#allocation6 + $0xd9] sm:$0xff] %vm4869_vm1, %v4853_v10  ;;  %v5356_v62 = vpop.permute.xlu0 %5355 }
 0x44d   : > { %v5103_v46 = vpop.permute.xlu1 %5102  ;;  %5445 = vst.msk [vmem:[#allocation7 + $0xf8] sm:$0xff] %vm5182_vm3, %v5356_v62 }
 0x44e   : > { %5191 = vst.msk [vmem:[#allocation7 + $0x140] sm:$0xff] %vm5182_vm3, %v5103_v46  ;;  %v4460_v47 = vpop.f32.mrb[66].mxu1 }
 0x44f   : > { %v4686_v27 = vadd.f32 %v11114_v51, %v4460_v47  ;;  %v4462_v52 = vpop.f32.mrb[67].mxu1 }
 0x450   : > { %v6112_v45 = vld [vmem:[#allocation7 + $0x200] sm:$0xff] }
 0x451   : > { %7943 = vmatprep.mubr.msk.f32.mxu1 %vm4869_vm1, %v6112_v45  ;;  %v6117_v21 = vld [vmem:[#allocation7 + $0x228] sm:$0xff]  ;;  %v4783_v40 = vmul.f32 %v11345_v48, %v4686_v27 }
 0x452   : > { %7944 = vmatmul.mubr.msk.f32.gmra.mrb[108].mxu1 %vm4869_vm1, %v6117_v21 }
 0x453   : > { %v5295_v58 = vld [vmem:[#allocation6 + $0xd8] sm:$0xff]  ;;  %v4822_v59 = vadd.f32 %v11355_v57, %v4783_v40 }
 0x454   : > { %v5040_v3 = vld [vmem:[#allocation6 + $0xd9] sm:$0xff]  ;;  %5375 = vrot.lane.b32.xlu0 %v5295_v58, %s8361_s18  ;;  %5008 = vst.msk [vmem:[#allocation7 + $0x2d0] sm:$0xff] %vm4869_vm1, %v5295_v58  ;;  %v6079_v15 = vld [vmem:[#allocation7 + $0xf8] sm:$0xff] }
 0x455   : > { %v11487_v49 = vld [vmem:[#allocation6 + $0xd9] sm:$0xff]  ;;  %5122 = vrot.lane.b32.xlu1 %v5040_v3, %s8361_s18  ;;  %v4854_v13 = vmax.f32 %v4822_v59, 0.0  ;;  %6470 = vmatprep.mubr.f32.mxu0 %v6079_v15  ;;  %v6088_v15 = vld [vmem:[#allocation7 + $0x140] sm:$0xff] }
 0x456   : > { %5519 = vst.msk [vmem:[#allocation7 + $0x290] sm:$0xff] %vm4869_vm1, %v11487_v49  ;;  %v5742_v51 = vld [vmem:[#allocation6 + $0xd8] sm:$0xff]  ;;  %6471 = vmatmul.mubr.f32.gmra.mrb[44].mxu0 %v6078_v34 }
 0x457   : > { %5774 = vst.msk [vmem:[#allocation7 + $0x248] sm:$0xff] %vm4869_vm1, %v5742_v51  ;;  %4943 = vst.msk [vmem:[#allocation6 + $0xe1] sm:$0xff] %vm4869_vm1, %v4854_v13  ;;  %v5358_v37 = vpop.permute.xlu0 %5357 }
 0x458   : > { %v5105_v19 = vpop.permute.xlu1 %5104  ;;  %5446 = vst.msk [vmem:[#allocation7 + $0x120] sm:$0xff] %vm5182_vm3, %v5358_v37 }
 0x459   : > { %5192 = vst.msk [vmem:[#allocation7 + $0x168] sm:$0xff] %vm5182_vm3, %v5105_v19 }
 0x45a   : > { %v4465_v9 = vpop.f32.mrb[68].mxu1 }
 0x45b   : > { %v4691_v12 = vadd.f32 %v11226_v14, %v4465_v9  ;;  %v4467_v24 = vpop.f32.mrb[69].mxu1 }
 0x45d   : > { %v4784_v53 = vmul.f32 %v11345_v48, %v4691_v12 }
 0x45e   : > { %v5296_v39 = vld [vmem:[#allocation6 + $0xe0] sm:$0xff] }
 0x45f   : > { %v5041_v31 = vld [vmem:[#allocation6 + $0xe1] sm:$0xff]  ;;  %v4823_v29 = vadd.f32 %v11355_v57, %v4784_v53  ;;  %5377 = vrot.lane.b32.xlu0 %v5296_v39, %s8361_s18  ;;  %5009 = vst.msk [vmem:[#allocation7 + $0x2f8] sm:$0xff] %vm4869_vm1, %v5296_v39  ;;  %v6084_v11 = vld [vmem:[#allocation7 + $0x120] sm:$0xff] }
 0x460   : > { %v11501_v23 = vld [vmem:[#allocation6 + $0xda] sm:$0xff]  ;;  %5124 = vrot.lane.b32.xlu1 %v5041_v31, %s8361_s18  ;;  %v11508_v25 = vld [vmem:[#allocation6 + $0xe2] sm:$0xff]  ;;  %6475 = vmatprep.mubr.f32.mxu0 %v6084_v11 }
 0x461   : > { %6030 = vst.msk [vmem:[#allocation7 + $0x250] sm:$0xff] %vm4869_vm1, %v11501_v23  ;;  %5265 = vst.msk [vmem:[#allocation7 + $0x2d8] sm:$0xff] %vm4869_vm1, %v11501_v23  ;;  %v11513_v14 = vld [vmem:[#allocation6 + $0xe1] sm:$0xff]  ;;  %v4855_v54 = vmax.f32 %v4823_v29, 0.0  ;;  %6476 = vmatmul.mubr.f32.gmra.mrb[46].mxu0 %v6083_v41 }
 0x462   : > { %v5743_v30 = vld [vmem:[#allocation6 + $0xe0] sm:$0xff]  ;;  %6031 = vst.msk [vmem:[#allocation7 + $0x278] sm:$0xff] %vm4869_vm1, %v11508_v25  ;;  %5266 = vst.msk [vmem:[#allocation7 + $0x300] sm:$0xff] %vm4869_vm1, %v11508_v25 }
 0x463   : > { %5520 = vst.msk [vmem:[#allocation7 + $0x2b8] sm:$0xff] %vm4869_vm1, %v11513_v14  ;;  %5775 = vst.msk [vmem:[#allocation7 + $0x270] sm:$0xff] %vm4869_vm1, %v5743_v30 }
 0x464   : > { %4944 = vst.msk [vmem:[#allocation6 + $0xf1] sm:$0xff] %vm4869_vm1, %v4855_v54  ;;  %v11523_v38 = vpop.f32.mrb[28].mxu0 }
 0x465   : > { %v11525_v10 = vpop.f32.mrb[29].mxu0  ;;  %v5360_v56 = vpop.permute.xlu0 %5359 }
 0x466   : > { %5447 = vst.msk [vmem:[#allocation7 + $0x148] sm:$0xff] %vm5182_vm3, %v5360_v56  ;;  %v5107_v17 = vpop.permute.xlu1 %5106  ;;  %v4470_v62 = vpop.f32.mrb[70].mxu1 }
 0x467   : > { %5193 = vst.msk [vmem:[#allocation7 + $0x190] sm:$0xff] %vm5182_vm3, %v5107_v17  ;;  %v4696_v47 = vadd.f32 %v11224_v7, %v4470_v62  ;;  %v4472_v45 = vpop.f32.mrb[71].mxu1  ;;  %v6093_v17 = vld [vmem:[#allocation7 + $0x168] sm:$0xff] }
 0x468   : > { %v6122_v46 = vld [vmem:[#allocation7 + $0x250] sm:$0xff] }
 0x469   : > { %7946 = vmatprep.mubr.msk.f32.mxu1 %vm4869_vm1, %v6122_v46  ;;  %v6127_v27 = vld [vmem:[#allocation7 + $0x278] sm:$0xff]  ;;  %v4785_v52 = vmul.f32 %v11345_v48, %v4696_v47 }
 0x46a   : > { %7947 = vmatmul.mubr.msk.f32.gmra.mrb[110].mxu1 %vm4869_vm1, %v6127_v27 }
 0x46b   : > { %v5297_v21 = vld [vmem:[#allocation6 + $0xf0] sm:$0xff]  ;;  %v4824_v3 = vadd.f32 %v11355_v57, %v4785_v52 }
 0x46c   : > { %v5042_v40 = vld [vmem:[#allocation6 + $0xf1] sm:$0xff]  ;;  %5379 = vrot.lane.b32.xlu0 %v5297_v21, %s8361_s18  ;;  %5010 = vst.msk [vmem:[#allocation7 + $0x320] sm:$0xff] %vm4869_vm1, %v5297_v21 }
 0x46d   : > { %v11533_v58 = vld [vmem:[#allocation6 + $0xf1] sm:$0xff]  ;;  %5126 = vrot.lane.b32.xlu1 %v5042_v40, %s8361_s18  ;;  %v4856_v51 = vmax.f32 %v4824_v3, 0.0 }
 0x46e   : > { %5521 = vst.msk [vmem:[#allocation7 + $0x2e0] sm:$0xff] %vm4869_vm1, %v11533_v58  ;;  %v5744_v7 = vld [vmem:[#allocation6 + $0xf0] sm:$0xff]  ;;  %v6089_v59 = vld [vmem:[#allocation7 + $0x148] sm:$0xff] }
 0x46f   : > { %5776 = vst.msk [vmem:[#allocation7 + $0x298] sm:$0xff] %vm4869_vm1, %v5744_v7  ;;  %6480 = vmatprep.mubr.f32.mxu0 %v6089_v59  ;;  %4945 = vst.msk [vmem:[#allocation6 + $0xf9] sm:$0xff] %vm4869_vm1, %v4856_v51  ;;  %v5362_v13 = vpop.permute.xlu0 %5361 }
 0x470   : > { %6481 = vmatmul.mubr.f32.gmra.mrb[48].mxu0 %v6088_v15  ;;  %v5109_v34 = vpop.permute.xlu1 %5108  ;;  %5448 = vst.msk [vmem:[#allocation7 + $0x170] sm:$0xff] %vm5182_vm3, %v5362_v13  ;;  %v11547_v24 = vpop.f32.mrb[30].mxu0 }
 0x471   : > { %5194 = vst.msk [vmem:[#allocation7 + $0x1b8] sm:$0xff] %vm5182_vm3, %v5109_v34  ;;  %v11551_v29 = vpop.f32.mrb[31].mxu0  ;;  %v6098_v34 = vld [vmem:[#allocation7 + $0x190] sm:$0xff] }
 0x472   : > { %v4475_v37 = vpop.f32.mrb[72].mxu1 }
 0x473   : > { %v4701_v19 = vadd.f32 %v11277_v2, %v4475_v37  ;;  %v4477_v9 = vpop.f32.mrb[73].mxu1 }
 0x475   : > { %v4786_v12 = vmul.f32 %v11345_v48, %v4701_v19 }
 0x476   : > { %v5298_v53 = vld [vmem:[#allocation6 + $0xf8] sm:$0xff] }
 0x477   : > { %v5043_v39 = vld [vmem:[#allocation6 + $0xf9] sm:$0xff]  ;;  %v4825_v30 = vadd.f32 %v11355_v57, %v4786_v12  ;;  %5381 = vrot.lane.b32.xlu0 %v5298_v53, %s8361_s18  ;;  %5011 = vst.msk [vmem:[#allocation7 + $0x348] sm:$0xff] %vm4869_vm1, %v5298_v53 }
 0x478   : > { %v11549_v31 = vld [vmem:[#allocation6 + $0xf2] sm:$0xff]  ;;  %5128 = vrot.lane.b32.xlu1 %v5043_v39, %s8361_s18  ;;  %v11558_v2 = vld [vmem:[#allocation6 + $0xfa] sm:$0xff] }
 0x479   : > { %6032 = vst.msk [vmem:[#allocation7 + $0x2a0] sm:$0xff] %vm4869_vm1, %v11549_v31  ;;  %5267 = vst.msk [vmem:[#allocation7 + $0x328] sm:$0xff] %vm4869_vm1, %v11549_v31  ;;  %v11563_v11 = vld [vmem:[#allocation6 + $0xf9] sm:$0xff]  ;;  %v4857_v56 = vmax.f32 %v4825_v30, 0.0 }
 0x47a   : > { %v5745_v54 = vld [vmem:[#allocation6 + $0xf8] sm:$0xff]  ;;  %v6094_v41 = vld [vmem:[#allocation7 + $0x170] sm:$0xff]  ;;  %6033 = vst.msk [vmem:[#allocation7 + $0x2c8] sm:$0xff] %vm4869_vm1, %v11558_v2  ;;  %5268 = vst.msk [vmem:[#allocation7 + $0x350] sm:$0xff] %vm4869_vm1, %v11558_v2 }
 0x47b   : > { %5522 = vst.msk [vmem:[#allocation7 + $0x308] sm:$0xff] %vm4869_vm1, %v11563_v11  ;;  %5777 = vst.msk [vmem:[#allocation7 + $0x2c0] sm:$0xff] %vm4869_vm1, %v5745_v54  ;;  %6485 = vmatprep.mubr.f32.mxu0 %v6094_v41 }
 0x47c   : > { %6486 = vmatmul.mubr.f32.gmra.mrb[50].mxu0 %v6093_v17  ;;  %4946 = vst.msk [vmem:[#allocation6 + $0x109] sm:$0xff] %vm4869_vm1, %v4857_v56  ;;  %v6241_v17 = vld [vmem:[%s12434_s7 + $0x108] sm:$0xff] }
 0x47e   : > { %v5364_v62 = vpop.permute.xlu0 %5363  ;;  %v4480_v47 = vpop.f32.mrb[74].mxu1 }
 0x47f   : > { %v5111_v46 = vpop.permute.xlu1 %5110  ;;  %5449 = vst.msk [vmem:[#allocation7 + $0x198] sm:$0xff] %vm5182_vm3, %v5364_v62  ;;  %v4706_v27 = vadd.f32 %v11275_v18, %v4480_v47  ;;  %v4482_v52 = vpop.f32.mrb[75].mxu1 }
 0x480   : > { %5195 = vst.msk [vmem:[#allocation7 + $0x1e0] sm:$0xff] %vm5182_vm3, %v5111_v46  ;;  %v6132_v45 = vld [vmem:[#allocation7 + $0x2a0] sm:$0xff] }
 0x481   : > { %7949 = vmatprep.mubr.msk.f32.mxu1 %vm4869_vm1, %v6132_v45  ;;  %v6137_v21 = vld [vmem:[#allocation7 + $0x2c8] sm:$0xff]  ;;  %v4787_v40 = vmul.f32 %v11345_v48, %v4706_v27 }
 0x482   : > { %7950 = vmatmul.mubr.msk.f32.gmra.mrb[112].mxu1 %vm4869_vm1, %v6137_v21  ;;  %v6103_v21 = vld [vmem:[#allocation7 + $0x1b8] sm:$0xff] }
 0x483   : > { %v5299_v3 = vld [vmem:[#allocation6 + $0x108] sm:$0xff]  ;;  %v4826_v51 = vadd.f32 %v11355_v57, %v4787_v40 }
 0x484   : > { %v5044_v7 = vld [vmem:[#allocation6 + $0x109] sm:$0xff]  ;;  %5383 = vrot.lane.b32.xlu0 %v5299_v3, %s8361_s18  ;;  %5012 = vst.msk [vmem:[#allocation7 + $0x370] sm:$0xff] %vm4869_vm1, %v5299_v3 }
 0x485   : > { %v11579_v59 = vld [vmem:[#allocation6 + $0x109] sm:$0xff]  ;;  %5130 = vrot.lane.b32.xlu1 %v5044_v7, %s8361_s18  ;;  %v4858_v15 = vmax.f32 %v4826_v51, 0.0 }
 0x486   : > { %5523 = vst.msk [vmem:[#allocation7 + $0x330] sm:$0xff] %vm4869_vm1, %v11579_v59  ;;  %v5746_v18 = vld [vmem:[#allocation6 + $0x108] sm:$0xff] }
 0x487   : > { %5778 = vst.msk [vmem:[#allocation7 + $0x2e8] sm:$0xff] %vm4869_vm1, %v5746_v18  ;;  %v6099_v13 = vld [vmem:[#allocation7 + $0x198] sm:$0xff]  ;;  %4947 = vst.msk [vmem:[#allocation6 + $0x111] sm:$0xff] %vm4869_vm1, %v4858_v15 }
 0x488   : > { %6490 = vmatprep.mubr.f32.mxu0 %v6099_v13  ;;  %v5366_v37 = vpop.permute.xlu0 %5365 }
 0x489   : > { %6491 = vmatmul.mubr.f32.gmra.mrb[52].mxu0 %v6098_v34  ;;  %v5113_v19 = vpop.permute.xlu1 %5112  ;;  %5450 = vst.msk [vmem:[#allocation7 + $0x1c0] sm:$0xff] %vm5182_vm3, %v5366_v37  ;;  %v6242_v34 = vld [vmem:[%s12434_s7 + $0x110] sm:$0xff]  ;;  %v6243_v37 = vld [vmem:[%s12434_s7 + $0x118] sm:$0xff] }
 0x48a   : > { %5196 = vst.msk [vmem:[#allocation7 + $0x208] sm:$0xff] %vm5182_vm3, %v5113_v19  ;;  %v8124_v19 = vpack.c.bf16 %v6243_v37, %v6242_v34  ;;  %v6247_v37 = vld [vmem:[%s12434_s7 + $0x138] sm:$0xff] }
 0x48b   : > { %v4485_v9 = vpop.f32.mrb[76].mxu1 }
 0x48c   : > { %v4711_v12 = vadd.f32 %v11339_v1, %v4485_v9  ;;  %v4487_v53 = vpop.f32.mrb[77].mxu1  ;;  %v6240_v1 = vld [vmem:[%s12434_s7 + $0x100] sm:$0xff] }
 0x48d   : > { %v8121_v46 = vpack.c.bf16 %v6241_v17, %v6240_v1 }
 0x48e   : > { %v4788_v39 = vmul.f32 %v11345_v48, %v4711_v12  ;;  %v5300_v30 = vld [vmem:[#allocation6 + $0x110] sm:$0xff] }
 0x48f   : > { %v11593_v54 = vld [vmem:[#allocation6 + $0x111] sm:$0xff]  ;;  %5385 = vrot.lane.b32.xlu0 %v5300_v30, %s8361_s18  ;;  %5013 = vst.msk [vmem:[#allocation7 + $0x398] sm:$0xff] %vm4869_vm1, %v5300_v30  ;;  %8122 = vmatpush1.bf16.msra.mxu0 %v8121_v46  ;;  %v6244_v46 = vld [vmem:[%s12434_s7 + $0x120] sm:$0xff] }
 0x490   : > { %v11595_v41 = vld [vmem:[#allocation6 + $0x10a] sm:$0xff]  ;;  %5132 = vrot.lane.b32.xlu1 %v11593_v54, %s8361_s18  ;;  %v11602_v56 = vld [vmem:[#allocation6 + $0x112] sm:$0xff]  ;;  %v4827_v62 = vadd.f32 %v11355_v57, %v4788_v39  ;;  %8123 = vmatprep.subr.bf16.mxu0 %v12443_v35 }
 0x491   : > { %6034 = vst.msk [vmem:[#allocation7 + $0x2f0] sm:$0xff] %vm4869_vm1, %v11595_v41  ;;  %5269 = vst.msk [vmem:[#allocation7 + $0x378] sm:$0xff] %vm4869_vm1, %v11595_v41  ;;  %v5492_v47 = vld [vmem:[#allocation6 + $0x111] sm:$0xff] }
 0x492   : > { %6035 = vst.msk [vmem:[#allocation7 + $0x318] sm:$0xff] %vm4869_vm1, %v11602_v56  ;;  %5270 = vst.msk [vmem:[#allocation7 + $0x3a0] sm:$0xff] %vm4869_vm1, %v11602_v56  ;;  %v5747_v45 = vld [vmem:[#allocation6 + $0x110] sm:$0xff]  ;;  %v4859_v52 = vmax.f32 %v4827_v62, 0.0 }
 0x493   : > { %v6104_v27 = vld [vmem:[#allocation7 + $0x1c0] sm:$0xff]  ;;  %5524 = vst.msk [vmem:[#allocation7 + $0x358] sm:$0xff] %vm4869_vm1, %v5492_v47  ;;  %5779 = vst.msk [vmem:[#allocation7 + $0x310] sm:$0xff] %vm4869_vm1, %v5747_v45  ;;  %8125 = vmatpush1.bf16.msra.mxu0 %v8124_v19  ;;  %v6245_v47 = vld [vmem:[%s12434_s7 + $0x128] sm:$0xff] }
 0x494   : > { %6495 = vmatprep.mubr.f32.mxu0 %v6104_v27  ;;  %4948 = vst.msk [vmem:[#allocation6 + $0x121] sm:$0xff] %vm4869_vm1, %v4859_v52  ;;  %8126 = vmatprep.subr.bf16.mxu0 %v12443_v35  ;;  %v6108_v62 = vld [vmem:[#allocation7 + $0x1e0] sm:$0xff]  ;;  %v8127_v45 = vpack.c.bf16 %v6245_v47, %v6244_v46 }
 0x495   : > { %6496 = vmatmul.mubr.f32.gmra.mrb[54].mxu0 %v6103_v21 }
 0x496   : > { %v5368_v40 = vpop.permute.xlu0 %5367 }
 0x497   : > { %v5115_v3 = vpop.permute.xlu1 %5114  ;;  %5451 = vst.msk [vmem:[#allocation7 + $0x1e8] sm:$0xff] %vm5182_vm3, %v5368_v40  ;;  %8128 = vmatpush1.bf16.msra.mxu0 %v8127_v45 }
 0x498   : > { %5197 = vst.msk [vmem:[#allocation7 + $0x230] sm:$0xff] %vm5182_vm3, %v5115_v3  ;;  %v6142_v7 = vld [vmem:[#allocation7 + $0x2f0] sm:$0xff]  ;;  %v4490_v51 = vpop.f32.mrb[78].mxu1  ;;  %8129 = vmatprep.subr.bf16.mxu0 %v12443_v35 }
 0x499   : > { %7952 = vmatprep.mubr.msk.f32.mxu1 %vm4869_vm1, %v6142_v7  ;;  %v6147_v18 = vld [vmem:[#allocation7 + $0x318] sm:$0xff]  ;;  %v4716_v15 = vadd.f32 %v11336_v43, %v4490_v51  ;;  %v4492_v13 = vpop.f32.mrb[79].mxu1 }
 0x49a   : > { %7953 = vmatmul.mubr.msk.f32.gmra.mrb[114].mxu1 %vm4869_vm1, %v6147_v18 }
 0x49b   : > { %v4789_v9 = vmul.f32 %v11345_v48, %v4716_v15  ;;  %v5301_v12 = vld [vmem:[#allocation6 + $0x120] sm:$0xff] }
 0x49c   : > { %v11634_v53 = vld [vmem:[#allocation6 + $0x121] sm:$0xff]  ;;  %5387 = vrot.lane.b32.xlu0 %v5301_v12, %s8361_s18  ;;  %5014 = vst.msk [vmem:[#allocation7 + $0x3c0] sm:$0xff] %vm4869_vm1, %v5301_v12 }
 0x49d   : > { %v5493_v39 = vld [vmem:[#allocation6 + $0x121] sm:$0xff]  ;;  %v4828_v43 = vadd.f32 %v11355_v57, %v4789_v9  ;;  %5134 = vrot.lane.b32.xlu1 %v11634_v53, %s8361_s18 }
 0x49e   : > { %5525 = vst.msk [vmem:[#allocation7 + $0x380] sm:$0xff] %vm4869_vm1, %v5493_v39  ;;  %v5748_v30 = vld [vmem:[#allocation6 + $0x120] sm:$0xff]  ;;  %v6109_v1 = vld [vmem:[#allocation7 + $0x1e8] sm:$0xff] }
 0x49f   : > { %5780 = vst.msk [vmem:[#allocation7 + $0x338] sm:$0xff] %vm4869_vm1, %v5748_v30  ;;  %v4860_v17 = vmax.f32 %v4828_v43, 0.0  ;;  %6500 = vmatprep.mubr.f32.mxu0 %v6109_v1  ;;  %v6113_v43 = vld [vmem:[#allocation7 + $0x208] sm:$0xff] }
 0x4a0   : > { %6501 = vmatmul.mubr.f32.gmra.mrb[56].mxu0 %v6108_v62  ;;  %v5370_v27 = vpop.permute.xlu0 %5369 }
 0x4a1   : > { %4949 = vst.msk [vmem:[#allocation6 + $0x129] sm:$0xff] %vm4869_vm1, %v4860_v17  ;;  %v5117_v52 = vpop.permute.xlu1 %5116 }
 0x4a2   : > { %5452 = vst.msk [vmem:[#allocation7 + $0x210] sm:$0xff] %vm5182_vm3, %v5370_v27  ;;  %5198 = vst.msk [vmem:[#allocation7 + $0x258] sm:$0xff] %vm5182_vm3, %v5117_v52  ;;  %v6248_v52 = vld [vmem:[%s12434_s7 + $0x140] sm:$0xff] }
 0x4a4   : > { %v4495_v21 = vpop.f32.mrb[80].mxu1 }
 0x4a5   : > { %v4721_v40 = vadd.f32 %v11408_v60, %v4495_v21  ;;  %v4497_v3 = vpop.f32.mrb[81].mxu1  ;;  %v6246_v60 = vld [vmem:[%s12434_s7 + $0x130] sm:$0xff]  ;;  %v6249_v21 = vld [vmem:[%s12434_s7 + $0x148] sm:$0xff] }
 0x4a6   : > { %v8130_v9 = vpack.c.bf16 %v6247_v37, %v6246_v60 }
 0x4a7   : > { %v4790_v7 = vmul.f32 %v11345_v48, %v4721_v40  ;;  %v8133_v40 = vpack.c.bf16 %v6249_v21, %v6248_v52  ;;  %v6252_v52 = vld [vmem:[%s12434_s7 + $0x160] sm:$0xff]  ;;  %v6253_v21 = vld [vmem:[%s12434_s7 + $0x168] sm:$0xff] }
 0x4a8   : > { %v5302_v51 = vld [vmem:[#allocation6 + $0x128] sm:$0xff]  ;;  %8131 = vmatpush1.bf16.msra.mxu0 %v8130_v9  ;;  %v6251_v9 = vld [vmem:[%s12434_s7 + $0x158] sm:$0xff] }
 0x4a9   : > { %v11656_v18 = vld [vmem:[#allocation6 + $0x129] sm:$0xff]  ;;  %v4829_v13 = vadd.f32 %v11355_v57, %v4790_v7  ;;  %5389 = vrot.lane.b32.xlu0 %v5302_v51, %s8361_s18  ;;  %5015 = vst.msk [vmem:[#allocation7 + $0x3e8] sm:$0xff] %vm4869_vm1, %v5302_v51  ;;  %v6114_v19 = vld [vmem:[#allocation7 + $0x210] sm:$0xff]  ;;  %8132 = vmatprep.subr.bf16.mxu0 %v12443_v35 }
 0x4aa   : > { %v11658_v15 = vld [vmem:[#allocation6 + $0x122] sm:$0xff]  ;;  %5136 = vrot.lane.b32.xlu1 %v11656_v18, %s8361_s18  ;;  %v11666_v34 = vld [vmem:[#allocation6 + $0x12a] sm:$0xff]  ;;  %6505 = vmatprep.mubr.f32.mxu0 %v6114_v19 }
 0x4ab   : > { %6036 = vst.msk [vmem:[#allocation7 + $0x340] sm:$0xff] %vm4869_vm1, %v11658_v15  ;;  %5271 = vst.msk [vmem:[#allocation7 + $0x3c8] sm:$0xff] %vm4869_vm1, %v11658_v15  ;;  %v5494_v12 = vld [vmem:[#allocation6 + $0x129] sm:$0xff]  ;;  %v4861_v39 = vmax.f32 %v4829_v13, 0.0  ;;  %6506 = vmatmul.mubr.f32.gmra.mrb[58].mxu0 %v6113_v43  ;;  %v6118_v19 = vld [vmem:[#allocation7 + $0x230] sm:$0xff] }
 0x4ac   : > { %6037 = vst.msk [vmem:[#allocation7 + $0x368] sm:$0xff] %vm4869_vm1, %v11666_v34  ;;  %5272 = vst.msk [vmem:[#allocation7 + $0x3f0] sm:$0xff] %vm4869_vm1, %v11666_v34  ;;  %v5749_v30 = vld [vmem:[#allocation6 + $0x128] sm:$0xff]  ;;  %8134 = vmatpush1.bf16.msra.mxu0 %v8133_v40  ;;  %v11747_v40 = vld [vmem:[%s12433_s6] ss:$0 sm:$0xff] }
 0x4ad   : > { %5526 = vst.msk [vmem:[#allocation7 + $0x3a8] sm:$0xff] %vm4869_vm1, %v5494_v12  ;;  %5781 = vst.msk [vmem:[#allocation7 + $0x360] sm:$0xff] %vm4869_vm1, %v5749_v30  ;;  %8135 = vmatprep.subr.bf16.mxu0 %v12443_v35 }
 0x4ae   : > { %4950 = vst.msk [vmem:[#allocation6 + $0x139] sm:$0xff] %vm4869_vm1, %v4861_v39  ;;  %v5372_v1 = vpop.permute.xlu0 %5371 }
 0x4af   : > { %v5119_v17 = vpop.permute.xlu1 %5118  ;;  %5453 = vst.msk [vmem:[#allocation7 + $0x238] sm:$0xff] %vm5182_vm3, %v5372_v1 }
 0x4b0   : > { %5199 = vst.msk [vmem:[#allocation7 + $0x280] sm:$0xff] %vm5182_vm3, %v5119_v17  ;;  %v4500_v62 = vpop.f32.mrb[82].mxu1 }
 0x4b1   : > { %v4726_v47 = vadd.f32 %v11405_v63, %v4500_v62  ;;  %v4502_v45 = vpop.f32.mrb[83].mxu1  ;;  %v11721_v62 = vld [vmem:[%s12432_s5] ss:$0 sm:$0xff] }
 0x4b2   : > { %v6152_v46 = vld [vmem:[#allocation7 + $0x340] sm:$0xff] }
 0x4b3   : > { %7955 = vmatprep.mubr.msk.f32.mxu1 %vm4869_vm1, %v6152_v46  ;;  %v6157_v27 = vld [vmem:[#allocation7 + $0x368] sm:$0xff]  ;;  %v4791_v3 = vmul.f32 %v11345_v48, %v4726_v47 }
 0x4b4   : > { %7956 = vmatmul.mubr.msk.f32.gmra.mrb[116].mxu1 %vm4869_vm1, %v6157_v27 }
 0x4b5   : > { %v5303_v7 = vld [vmem:[#allocation6 + $0x138] sm:$0xff]  ;;  %v4830_v13 = vadd.f32 %v11355_v57, %v4791_v3  ;;  %v6250_v57 = vld [vmem:[%s12434_s7 + $0x150] sm:$0xff] }
 0x4b6   : > { %v11697_v51 = vld [vmem:[#allocation6 + $0x139] sm:$0xff]  ;;  %5391 = vrot.lane.b32.xlu0 %v5303_v7, %s8361_s18  ;;  %5016 = vst.msk [vmem:[#allocation7 + $0x410] sm:$0xff] %vm4869_vm1, %v5303_v7  ;;  %v6119_v37 = vld [vmem:[#allocation7 + $0x238] sm:$0xff]  ;;  %v8136_v12 = vpack.c.bf16 %v6251_v9, %v6250_v57 }
 0x4b7   : > { %v5495_v63 = vld [vmem:[#allocation6 + $0x139] sm:$0xff]  ;;  %5138 = vrot.lane.b32.xlu1 %v11697_v51, %s8361_s18  ;;  %v4862_v48 = vmax.f32 %v4830_v13, 0.0  ;;  %6510 = vmatprep.mubr.f32.mxu0 %v6119_v37 }
 0x4b8   : > { %5527 = vst.msk [vmem:[#allocation7 + $0x3d0] sm:$0xff] %vm4869_vm1, %v5495_v63  ;;  %v5750_v60 = vld [vmem:[#allocation6 + $0x138] sm:$0xff]  ;;  %6511 = vmatmul.mubr.f32.gmra.mrb[60].mxu0 %v6118_v19  ;;  %v8139_v63 = vpack.c.bf16 %v6253_v21, %v6252_v52 }
 0x4b9   : > { %5782 = vst.msk [vmem:[#allocation7 + $0x388] sm:$0xff] %vm4869_vm1, %v5750_v60  ;;  %4951 = vst.msk [vmem:[#allocation6 + $0x141] sm:$0xff] %vm4869_vm1, %v4862_v48  ;;  %v5374_v39 = vpop.permute.xlu0 %5373  ;;  %8137 = vmatpush1.bf16.msra.mxu0 %v8136_v12  ;;  %v6123_v60 = vld [vmem:[#allocation7 + $0x258] sm:$0xff]  ;;  %v6254_v12 = vld [vmem:[%s12434_s7 + $0x170] sm:$0xff] }
 0x4ba   : > { %v5121_v43 = vpop.permute.xlu1 %5120  ;;  %5454 = vst.msk [vmem:[#allocation7 + $0x260] sm:$0xff] %vm5182_vm3, %v5374_v39  ;;  %8138 = vmatprep.subr.bf16.mxu0 %v12443_v35  ;;  %v6255_v39 = vld [vmem:[%s12434_s7 + $0x178] sm:$0xff] }
 0x4bb   : > { %5200 = vst.msk [vmem:[#allocation7 + $0x2a8] sm:$0xff] %vm5182_vm3, %v5121_v43 }
 0x4bc   : > { %v4505_v30 = vpop.f32.mrb[84].mxu1 }
 0x4bd   : > { %v4731_v1 = vadd.f32 %v11465_v20, %v4505_v30  ;;  %v4507_v17 = vpop.f32.mrb[85].mxu1  ;;  %8140 = vmatpush1.bf16.msra.mxu0 %v8139_v63 }
 0x4be   : > { %8141 = vmatprep.subr.bf16.mxu0 %v12443_v35 }
 0x4bf   : > { %v4792_v46 = vmul.f32 %v11721_v62, %v4731_v1  ;;  %v8142_v1 = vpack.c.bf16 %v6255_v39, %v6254_v12  ;;  %v6258_v12 = vld [vmem:[%s12434_s7 + $0x190] sm:$0xff]  ;;  %v6259_v39 = vld [vmem:[%s12434_s7 + $0x198] sm:$0xff] }
 0x4c0   : > { %v5304_v47 = vld [vmem:[#allocation6 + $0x140] sm:$0xff] }
 0x4c1   : > { %v11724_v45 = vld [vmem:[#allocation6 + $0x141] sm:$0xff]  ;;  %5393 = vrot.lane.b32.xlu0 %v5304_v47, %s8361_s18  ;;  %5017 = vst.msk [vmem:[#allocation7 + $0x438] sm:$0xff] %vm4869_vm1, %v5304_v47  ;;  %v4831_v3 = vadd.f32 %v11747_v40, %v4792_v46  ;;  %v6124_v7 = vld [vmem:[#allocation7 + $0x260] sm:$0xff]  ;;  %8143 = vmatpush1.bf16.msra.mxu0 %v8142_v1 }
 0x4c2   : > { %v11726_v27 = vld [vmem:[#allocation6 + $0x13a] sm:$0xff]  ;;  %5140 = vrot.lane.b32.xlu1 %v11724_v45, %s8361_s18  ;;  %v11733_v20 = vld [vmem:[#allocation6 + $0x142] sm:$0xff]  ;;  %6515 = vmatprep.mubr.f32.mxu0 %v6124_v7 }
 0x4c3   : > { %6038 = vst.msk [vmem:[#allocation7 + $0x390] sm:$0xff] %vm4869_vm1, %v11726_v27  ;;  %5273 = vst.msk [vmem:[#allocation7 + $0x418] sm:$0xff] %vm4869_vm1, %v11726_v27  ;;  %v5496_v13 = vld [vmem:[#allocation6 + $0x141] sm:$0xff]  ;;  %v4863_v48 = vmax.f32 %v4831_v3, 0.0  ;;  %6516 = vmatmul.mubr.f32.gmra.mrb[62].mxu0 %v6123_v60  ;;  %8144 = vmatprep.subr.bf16.mxu0 %v12443_v35 }
 0x4c4   : > { %6039 = vst.msk [vmem:[#allocation7 + $0x3b8] sm:$0xff] %vm4869_vm1, %v11733_v20  ;;  %5274 = vst.msk [vmem:[#allocation7 + $0x440] sm:$0xff] %vm4869_vm1, %v11733_v20  ;;  %v5751_v37 = vld [vmem:[#allocation6 + $0x140] sm:$0xff] }
 0x4c5   : > { %5528 = vst.msk [vmem:[#allocation7 + $0x3f8] sm:$0xff] %vm4869_vm1, %v5496_v13  ;;  %5783 = vst.msk [vmem:[#allocation7 + $0x3b0] sm:$0xff] %vm4869_vm1, %v5751_v37  ;;  %v6128_v13 = vld [vmem:[#allocation7 + $0x280] sm:$0xff]  ;;  %v6256_v37 = vld [vmem:[%s12434_s7 + $0x180] sm:$0xff] }
 0x4c6   : > { %4952 = vst.msk [vmem:[#allocation6 + $0x151] sm:$0xff] %vm4869_vm1, %v4863_v48  ;;  %v5376_v19 = vpop.permute.xlu0 %5375  ;;  %v6257_v48 = vld [vmem:[%s12434_s7 + $0x188] sm:$0xff] }
 0x4c7   : > { %v5123_v57 = vpop.permute.xlu1 %5122  ;;  %5455 = vst.msk [vmem:[#allocation7 + $0x288] sm:$0xff] %vm5182_vm3, %v5376_v19  ;;  %v8145_v19 = vpack.c.bf16 %v6257_v48, %v6256_v37 }
 0x4c8   : > { %5201 = vst.msk [vmem:[#allocation7 + $0x2d0] sm:$0xff] %vm5182_vm3, %v5123_v57  ;;  %v4510_v43 = vpop.f32.mrb[86].mxu1 }
 0x4c9   : > { %v4736_v17 = vadd.f32 %v11463_v61, %v4510_v43  ;;  %v4512_v46 = vpop.f32.mrb[87].mxu1  ;;  %8146 = vmatpush1.bf16.msra.mxu0 %v8145_v19  ;;  %v6260_v19 = vld [vmem:[%s12434_s7 + $0x1a0] sm:$0xff] }
 0x4ca   : > { %v6162_v9 = vld [vmem:[#allocation7 + $0x390] sm:$0xff]  ;;  %8147 = vmatprep.subr.bf16.mxu0 %v12443_v35 }
 0x4cb   : > { %7958 = vmatprep.mubr.msk.f32.mxu1 %vm4869_vm1, %v6162_v9  ;;  %v6167_v30 = vld [vmem:[#allocation7 + $0x3b8] sm:$0xff]  ;;  %v4793_v47 = vmul.f32 %v11721_v62, %v4736_v17  ;;  %v8148_v17 = vpack.c.bf16 %v6259_v39, %v6258_v12 }
 0x4cc   : > { %7959 = vmatmul.mubr.msk.f32.gmra.mrb[118].mxu1 %vm4869_vm1, %v6167_v30 }
 0x4cd   : > { %v5305_v52 = vld [vmem:[#allocation6 + $0x150] sm:$0xff]  ;;  %v4832_v7 = vadd.f32 %v11747_v40, %v4793_v47  ;;  %8149 = vmatpush1.bf16.msra.mxu0 %v8148_v17 }
 0x4ce   : > { %v11771_v21 = vld [vmem:[#allocation6 + $0x151] sm:$0xff]  ;;  %5395 = vrot.lane.b32.xlu0 %v5305_v52, %s8361_s18  ;;  %5018 = vst.msk [vmem:[#allocation7 + $0x460] sm:$0xff] %vm4869_vm1, %v5305_v52  ;;  %8150 = vmatprep.subr.bf16.mxu0 %v12443_v35 }
 0x4cf   : > { %v5497_v3 = vld [vmem:[#allocation6 + $0x151] sm:$0xff]  ;;  %5142 = vrot.lane.b32.xlu1 %v11771_v21, %s8361_s18  ;;  %v4864_v60 = vmax.f32 %v4832_v7, 0.0 }
 0x4d0   : > { %v6129_v61 = vld [vmem:[#allocation7 + $0x288] sm:$0xff]  ;;  %5529 = vst.msk [vmem:[#allocation7 + $0x420] sm:$0xff] %vm4869_vm1, %v5497_v3  ;;  %v5752_v63 = vld [vmem:[#allocation6 + $0x150] sm:$0xff] }
 0x4d1   : > { %6520 = vmatprep.mubr.f32.mxu0 %v6129_v61  ;;  %5784 = vst.msk [vmem:[#allocation7 + $0x3d8] sm:$0xff] %vm4869_vm1, %v5752_v63  ;;  %4953 = vst.msk [vmem:[#allocation6 + $0x159] sm:$0xff] %vm4869_vm1, %v4864_v60  ;;  %v5378_v57 = vpop.permute.xlu0 %5377  ;;  %v6133_v61 = vld [vmem:[#allocation7 + $0x2a8] sm:$0xff] }
 0x4d2   : > { %6521 = vmatmul.mubr.f32.gmra.mrb[64].mxu0 %v6128_v13  ;;  %v5125_v9 = vpop.permute.xlu1 %5124  ;;  %5456 = vst.msk [vmem:[#allocation7 + $0x2b0] sm:$0xff] %vm5182_vm3, %v5378_v57  ;;  %v6261_v57 = vld [vmem:[%s12434_s7 + $0x1a8] sm:$0xff] }
 0x4d3   : > { %5202 = vst.msk [vmem:[#allocation7 + $0x2f8] sm:$0xff] %vm5182_vm3, %v5125_v9  ;;  %v8151_v39 = vpack.c.bf16 %v6261_v57, %v6260_v19 }
 0x4d5   : > { %8152 = vmatpush1.bf16.msra.mxu0 %v8151_v39  ;;  %v6264_v39 = vld [vmem:[%s12434_s7 + $0x1c0] sm:$0xff] }
 0x4d6   : > { %8153 = vmatprep.subr.bf16.mxu0 %v12443_v35 }
 0x4d7   : > { %v4515_v46 = vpop.f32.mrb[88].mxu1 }
 0x4d8   : > { %v5306_v43 = vld [vmem:[#allocation6 + $0x158] sm:$0xff]  ;;  %v4741_v3 = vadd.f32 %v11525_v10, %v4515_v46  ;;  %v4517_v7 = vpop.f32.mrb[89].mxu1 }
 0x4d9   : > { %v11796_v30 = vld [vmem:[#allocation6 + $0x159] sm:$0xff]  ;;  %5397 = vrot.lane.b32.xlu0 %v5306_v43, %s8361_s18  ;;  %5019 = vst.msk [vmem:[#allocation7 + $0x488] sm:$0xff] %vm4869_vm1, %v5306_v43 }
 0x4da   : > { %v11798_v1 = vld [vmem:[#allocation6 + $0x152] sm:$0xff]  ;;  %5144 = vrot.lane.b32.xlu1 %v11796_v30, %s8361_s18  ;;  %v6134_v47 = vld [vmem:[#allocation7 + $0x2b0] sm:$0xff]  ;;  %v4794_v10 = vmul.f32 %v11721_v62, %v4741_v3 }
 0x4db   : > { %6040 = vst.msk [vmem:[#allocation7 + $0x3e0] sm:$0xff] %vm4869_vm1, %v11798_v1  ;;  %v11805_v52 = vld [vmem:[#allocation6 + $0x15a] sm:$0xff]  ;;  %5275 = vst.msk [vmem:[#allocation7 + $0x468] sm:$0xff] %vm4869_vm1, %v11798_v1  ;;  %6525 = vmatprep.mubr.f32.mxu0 %v6134_v47 }
 0x4dc   : > { %6041 = vst.msk [vmem:[#allocation7 + $0x408] sm:$0xff] %vm4869_vm1, %v11805_v52  ;;  %5276 = vst.msk [vmem:[#allocation7 + $0x490] sm:$0xff] %vm4869_vm1, %v11805_v52  ;;  %v5498_v63 = vld [vmem:[#allocation6 + $0x159] sm:$0xff]  ;;  %6526 = vmatmul.mubr.f32.gmra.mrb[66].mxu0 %v6133_v61  ;;  %v4833_v48 = vadd.f32 %v11747_v40, %v4794_v10  ;;  %v6262_v61 = vld [vmem:[%s12434_s7 + $0x1b0] sm:$0xff] }
 0x4dd   : > { %v5753_v13 = vld [vmem:[#allocation6 + $0x158] sm:$0xff]  ;;  %5530 = vst.msk [vmem:[#allocation7 + $0x448] sm:$0xff] %vm4869_vm1, %v5498_v63  ;;  %v6138_v7 = vld [vmem:[#allocation7 + $0x2d0] sm:$0xff] }
 0x4de   : > { %5785 = vst.msk [vmem:[#allocation7 + $0x400] sm:$0xff] %vm4869_vm1, %v5753_v13  ;;  %v5380_v60 = vpop.permute.xlu0 %5379  ;;  %v4865_v9 = vmax.f32 %v4833_v48, 0.0  ;;  %v6263_v63 = vld [vmem:[%s12434_s7 + $0x1b8] sm:$0xff] }
 0x4df   : > { %v5127_v37 = vpop.permute.xlu1 %5126  ;;  %5457 = vst.msk [vmem:[#allocation7 + $0x2d8] sm:$0xff] %vm5182_vm3, %v5380_v60  ;;  %v8154_v10 = vpack.c.bf16 %v6263_v63, %v6262_v61  ;;  %v6143_v61 = vld [vmem:[#allocation7 + $0x2f8] sm:$0xff] }
 0x4e0   : > { %5203 = vst.msk [vmem:[#allocation7 + $0x320] sm:$0xff] %vm5182_vm3, %v5127_v37 }
 0x4e1   : > { %4954 = vst.msk [vmem:[#allocation6 + $0x169] sm:$0xff] %vm4869_vm1, %v4865_v9  ;;  %8155 = vmatpush1.bf16.msra.mxu0 %v8154_v10 }
 0x4e2   : > { %v6172_v12 = vld [vmem:[#allocation7 + $0x3e0] sm:$0xff]  ;;  %8156 = vmatprep.subr.bf16.mxu0 %v12443_v35 }
 0x4e3   : > { %7961 = vmatprep.mubr.msk.f32.mxu1 %vm4869_vm1, %v6172_v12  ;;  %v6177_v43 = vld [vmem:[#allocation7 + $0x408] sm:$0xff]  ;;  %v4520_v17 = vpop.f32.mrb[90].mxu1 }
 0x4e4   : > { %7962 = vmatmul.mubr.msk.f32.gmra.mrb[120].mxu1 %vm4869_vm1, %v6177_v43  ;;  %v4746_v47 = vadd.f32 %v11523_v38, %v4520_v17  ;;  %v4522_v3 = vpop.f32.mrb[91].mxu1  ;;  %v6265_v43 = vld [vmem:[%s12434_s7 + $0x1c8] sm:$0xff] }
 0x4e5   : > { %v8157_v17 = vpack.c.bf16 %v6265_v43, %v6264_v39  ;;  %v6267_v39 = vld [vmem:[%s12434_s7 + $0x1d8] sm:$0xff] }
 0x4e6   : > { %v6139_v46 = vld [vmem:[#allocation7 + $0x2d8] sm:$0xff]  ;;  %v4795_v13 = vmul.f32 %v11721_v62, %v4746_v47 }
 0x4e7   : > { %6530 = vmatprep.mubr.f32.mxu0 %v6139_v46  ;;  %8158 = vmatpush1.bf16.msra.mxu0 %v8157_v17 }
 0x4e8   : > { %6531 = vmatmul.mubr.f32.gmra.mrb[68].mxu0 %v6138_v7  ;;  %v5307_v48 = vld [vmem:[#allocation6 + $0x168] sm:$0xff]  ;;  %v4834_v57 = vadd.f32 %v11747_v40, %v4795_v13  ;;  %8159 = vmatprep.subr.bf16.mxu0 %v12443_v35 }
 0x4e9   : > { %v5382_v60 = vpop.permute.xlu0 %5381  ;;  %v11840_v19 = vld [vmem:[#allocation6 + $0x169] sm:$0xff]  ;;  %5399 = vrot.lane.b32.xlu0 %v5307_v48, %s8361_s18  ;;  %5020 = vst.msk [vmem:[#allocation7 + $0x4b0] sm:$0xff] %vm4869_vm1, %v5307_v48 }
 0x4ea   : > { %v5129_v37 = vpop.permute.xlu1 %5128  ;;  %v5499_v38 = vld [vmem:[#allocation6 + $0x169] sm:$0xff]  ;;  %5458 = vst.msk [vmem:[#allocation7 + $0x300] sm:$0xff] %vm5182_vm3, %v5382_v60  ;;  %5146 = vrot.lane.b32.xlu1 %v11840_v19, %s8361_s18  ;;  %v4866_v12 = vmax.f32 %v4834_v57, 0.0 }
 0x4eb   : > { %5204 = vst.msk [vmem:[#allocation7 + $0x348] sm:$0xff] %vm5182_vm3, %v5129_v37  ;;  %v5754_v9 = vld [vmem:[#allocation6 + $0x168] sm:$0xff] }
 0x4ec   : > { %5531 = vst.msk [vmem:[#allocation7 + $0x470] sm:$0xff] %vm4869_vm1, %v5499_v38  ;;  %5786 = vst.msk [vmem:[#allocation7 + $0x428] sm:$0xff] %vm4869_vm1, %v5754_v9 }
 0x4ed   : > { %4955 = vst.msk [vmem:[#allocation6 + $0x171] sm:$0xff] %vm4869_vm1, %v4866_v12  ;;  %v6266_v12 = vld [vmem:[%s12434_s7 + $0x1d0] sm:$0xff] }
 0x4ee   : > { %v8160_v17 = vpack.c.bf16 %v6267_v39, %v6266_v12 }
 0x4ef   : > { %v4525_v46 = vpop.f32.mrb[92].mxu1 }
 0x4f0   : > { %v4751_v3 = vadd.f32 %v11551_v29, %v4525_v46  ;;  %v4527_v7 = vpop.f32.mrb[93].mxu1  ;;  %v5535_v46 = vld [vmem:[#allocation6 + $0x1a] sm:$0xff]  ;;  %8161 = vmatpush1.bf16.msra.mxu0 %v8160_v17 }
 0x4f1   : > { %v6144_v47 = vld [vmem:[#allocation7 + $0x300] sm:$0xff]  ;;  %8162 = vmatprep.subr.bf16.mxu0 %v12443_v35 }
 0x4f2   : > { %6535 = vmatprep.mubr.f32.mxu0 %v6144_v47  ;;  %v4796_v63 = vmul.f32 %v11721_v62, %v4751_v3 }
 0x4f3   : > { %6536 = vmatmul.mubr.f32.gmra.mrb[70].mxu0 %v6143_v61 }
 0x4f4   : > { %v5308_v60 = vld [vmem:[#allocation6 + $0x170] sm:$0xff]  ;;  %v4835_v38 = vadd.f32 %v11747_v40, %v4796_v63 }
 0x4f5   : > { %v11862_v37 = vld [vmem:[#allocation6 + $0x171] sm:$0xff]  ;;  %5401 = vrot.lane.b32.xlu0 %v5308_v60, %s8361_s18  ;;  %5021 = vst.msk [vmem:[#allocation7 + $0x4d8] sm:$0xff] %vm4869_vm1, %v5308_v60  ;;  %v6268_v60 = vld [vmem:[%s12434_s7 + $0x1e0] sm:$0xff] }
 0x4f6   : > { %v5384_v13 = vpop.permute.xlu0 %5383  ;;  %v11864_v48 = vld [vmem:[#allocation6 + $0x16a] sm:$0xff]  ;;  %5148 = vrot.lane.b32.xlu1 %v11862_v37, %s8361_s18  ;;  %v11874_v29 = vld [vmem:[#allocation6 + $0x172] sm:$0xff]  ;;  %v4867_v43 = vmax.f32 %v4835_v38, 0.0 }
 0x4f7   : > { %v5131_v10 = vpop.permute.xlu1 %5130  ;;  %5459 = vst.msk [vmem:[#allocation7 + $0x328] sm:$0xff] %vm5182_vm3, %v5384_v13  ;;  %v5500_v57 = vld [vmem:[#allocation6 + $0x171] sm:$0xff]  ;;  %v6269_v38 = vld [vmem:[%s12434_s7 + $0x1e8] sm:$0xff] }
 0x4f8   : > { %5205 = vst.msk [vmem:[#allocation7 + $0x370] sm:$0xff] %vm5182_vm3, %v5131_v10  ;;  %v5755_v9 = vld [vmem:[#allocation6 + $0x170] sm:$0xff] }
 0x4f9   : > { %6042 = vst.msk [vmem:[#allocation7 + $0x430] sm:$0xff] %vm4869_vm1, %v11864_v48  ;;  %5277 = vst.msk [vmem:[#allocation7 + $0x4b8] sm:$0xff] %vm4869_vm1, %v11864_v48  ;;  %v6148_v13 = vld [vmem:[#allocation7 + $0x320] sm:$0xff] }
 0x4fa   : > { %6043 = vst.msk [vmem:[#allocation7 + $0x458] sm:$0xff] %vm4869_vm1, %v11874_v29  ;;  %5278 = vst.msk [vmem:[#allocation7 + $0x4e0] sm:$0xff] %vm4869_vm1, %v11874_v29  ;;  %5599 = vrot.lane.b32.xlu1 %v5535_v46, %s8361_s18 }
 0x4fb   : > { %5532 = vst.msk [vmem:[#allocation7 + $0x498] sm:$0xff] %vm4869_vm1, %v5500_v57  ;;  %5787 = vst.msk [vmem:[#allocation7 + $0x450] sm:$0xff] %vm4869_vm1, %v5755_v9  ;;  %v4530_v47 = vpop.f32.mrb[94].mxu1  ;;  %v8163_v57 = vpack.c.bf16 %v6269_v38, %v6268_v60  ;;  %v5539_v38 = vld [vmem:[#allocation6 + $0x4a] sm:$0xff] }
 0x4fc   : > { %4956 = vst.msk [vmem:[#allocation6 + $0x181] sm:$0xff] %vm4869_vm1, %v4867_v43  ;;  %v4756_v61 = vadd.f32 %v11547_v24, %v4530_v47  ;;  %v4532_v63 = vpop.f32.mrb[95].mxu1 }
 0x4fd   : > { %8164 = vmatpush1.bf16.msra.mxu0 %v8163_v57  ;;  %v6270_v63 = vld [vmem:[%s12434_s7 + $0x1f0] sm:$0xff]  ;;  %v6153_v57 = vld [vmem:[#allocation7 + $0x348] sm:$0xff] }
 0x4fe   : > { %v6149_v3 = vld [vmem:[#allocation7 + $0x328] sm:$0xff]  ;;  %5601 = vrot.lane.b32.xlu1 %v11096_v4, %s8361_s18  ;;  %v4797_v24 = vmul.f32 %v11721_v62, %v4756_v61  ;;  %8165 = vmatprep.subr.bf16.mxu0 %v12443_v35 }
 0x4ff   : > { %6540 = vmatprep.mubr.f32.mxu0 %v6149_v3  ;;  %v5537_v4 = vld [vmem:[#allocation6 + $0x32] sm:$0xff]  ;;  %v11906_v12 = vpop.f32.mrb[96].mxu1 }
 0x500   : > { %v6182_v7 = vld [vmem:[#allocation7 + $0x430] sm:$0xff]  ;;  %6541 = vmatmul.mubr.f32.gmra.mrb[72].mxu0 %v6148_v13  ;;  %v4836_v46 = vadd.f32 %v11747_v40, %v4797_v24  ;;  %v11914_v62 = vpop.f32.mrb[97].mxu1  ;;  %v6271_v13 = vld [vmem:[%s12434_s7 + $0x1f8] sm:$0xff] }
 0x501   : > { %v6187_v10 = vld [vmem:[#allocation7 + $0x458] sm:$0xff]  ;;  %7964 = vmatprep.mubr.msk.f32.mxu1 %vm4869_vm1, %v6182_v7  ;;  %v5386_v9 = vpop.permute.xlu0 %5385  ;;  %v5538_v7 = vld [vmem:[#allocation6 + $0x3a] sm:$0xff] }
 0x502   : > { %7965 = vmatmul.mubr.msk.f32.gmra.mrb[122].mxu1 %vm4869_vm1, %v6187_v10  ;;  %5460 = vst.msk [vmem:[#allocation7 + $0x350] sm:$0xff] %vm5182_vm3, %v5386_v9  ;;  %v5133_v47 = vpop.permute.xlu1 %5132  ;;  %5603 = vrot.lane.b32.xlu1 %v5537_v4, %s8361_s18  ;;  %v4868_v3 = vmax.f32 %v4836_v46, 0.0  ;;  %v8166_v10 = vpack.c.bf16 %v6271_v13, %v6270_v63  ;;  %v5540_v9 = vld [vmem:[#allocation6 + $0x52] sm:$0xff] }
 0x503   : > { %v5309_v39 = vld [vmem:[#allocation6 + $0x180] sm:$0xff]  ;;  %5206 = vst.msk [vmem:[#allocation7 + $0x398] sm:$0xff] %vm5182_vm3, %v5133_v47  ;;  %v11921_v40 = vpop.f32.mrb[98].mxu1 }
 0x504   : > { %v11908_v43 = vld [vmem:[#allocation6 + $0x181] sm:$0xff]  ;;  %5403 = vrot.lane.b32.xlu0 %v5309_v39, %s8361_s18  ;;  %4957 = vst.msk [vmem:[#allocation6 + $0x189] sm:$0xff] %vm4869_vm1, %v4868_v3  ;;  %v11925_v61 = vpop.f32.mrb[99].mxu1  ;;  %8167 = vmatpush1.bf16.msra.mxu0 %v8166_v10 }
 0x505   : > { %v5756_v17 = vld [vmem:[#allocation6 + $0x180] sm:$0xff]  ;;  %5533 = vst.msk [vmem:[#allocation7 + $0x4c0] sm:$0xff] %vm4869_vm1, %v11908_v43 }
 0x506   : > { %5788 = vst.msk [vmem:[#allocation7 + $0x478] sm:$0xff] %vm4869_vm1, %v5756_v17  ;;  %5605 = vrot.lane.b32.xlu1 %v5538_v7, %s8361_s18 }
 0x507   : > { %v11933_v60 = vpop.f32.mrb[100].mxu1 }
 0x508   : > { %v11936_v4 = vpop.f32.mrb[101].mxu1 }
 0x509   : > { %v6154_v24 = vld [vmem:[#allocation7 + $0x350] sm:$0xff] }
 0x50a   : > { %5607 = vrot.lane.b32.xlu1 %v5539_v38, %s8361_s18  ;;  %6545 = vmatprep.mubr.f32.mxu0 %v6154_v24  ;;  %v5541_v24 = vld [vmem:[#allocation6 + $0x62] sm:$0xff] }
 0x50b   : > { %6546 = vmatmul.mubr.f32.gmra.mrb[74].mxu0 %v6153_v57  ;;  %v11938_v39 = vpop.f32.mrb[102].mxu1  ;;  %v5310_v17 = vld [vmem:[#allocation6 + $0x188] sm:$0xff] }
 0x50c   : > { %v11940_v46 = vld [vmem:[#allocation6 + $0x182] sm:$0xff]  ;;  %v11942_v47 = vld [vmem:[#allocation6 + $0x18a] sm:$0xff]  ;;  %5405 = vrot.lane.b32.xlu0 %v5310_v17, %s8361_s18  ;;  %v11954_v10 = vpop.f32.mrb[103].mxu1 }
 0x50d   : > { %6044 = vst.msk [vmem:[#allocation7 + $0x480] sm:$0xff] %vm4869_vm1, %v11940_v46  ;;  %6045 = vst.msk [vmem:[#allocation7 + $0x4a8] sm:$0xff] %vm4869_vm1, %v11942_v47  ;;  %v11950_v63 = vld [vmem:[#allocation6 + $0x189] sm:$0xff] }
 0x50e   : > { %v5388_v3 = vpop.permute.xlu0 %5387  ;;  %5609 = vrot.lane.b32.xlu1 %v5540_v9, %s8361_s18  ;;  %v5757_v13 = vld [vmem:[#allocation6 + $0x188] sm:$0xff]  ;;  %5534 = vst.msk [vmem:[#allocation7 + $0x4e8] sm:$0xff] %vm4869_vm1, %v11950_v63 }
 0x50f   : > { %v5135_v7 = vpop.permute.xlu1 %5134  ;;  %5461 = vst.msk [vmem:[#allocation7 + $0x378] sm:$0xff] %vm5182_vm3, %v5388_v3  ;;  %v11959_v38 = vpop.f32.mrb[104].mxu1  ;;  %v5542_v17 = vld [vmem:[#allocation6 + $0x6a] sm:$0xff] }
 0x510   : > { %5207 = vst.msk [vmem:[#allocation7 + $0x3c0] sm:$0xff] %vm5182_vm3, %v5135_v7  ;;  %5856 = vrot.lane.b32.xlu0 %v11164_v33, %s8361_s18  ;;  %v11964_v57 = vpop.f32.mrb[105].mxu1  ;;  %v5543_v33 = vld [vmem:[#allocation6 + $0x7a] sm:$0xff] }
 0x511   : > { %5789 = vst.msk [vmem:[#allocation7 + $0x4a0] sm:$0xff] %vm4869_vm1, %v5757_v13 }
 0x512   : > { %5611 = vrot.lane.b32.xlu1 %v5541_v24, %s8361_s18  ;;  %v6158_v24 = vld [vmem:[#allocation7 + $0x370] sm:$0xff] }
 0x513   : > { %v11966_v9 = vpop.f32.mrb[106].mxu1 }
 0x514   : > { %12448 = vst [vmem:[#allocation9_spill] sm:$0xff] %v11966_v9  ;;  %v6192_v3 = vld [vmem:[#allocation7 + $0x480] sm:$0xff]  ;;  %v6197_v7 = vld [vmem:[#allocation7 + $0x4a8] sm:$0xff]  ;;  %v11970_v35 = vpop.f32.mrb[107].mxu1  ;;  %5858 = vrot.lane.b32.xlu0 %v11196_v32, %s8361_s18 }
 0x515   : > { %7967 = vmatprep.mubr.msk.f32.mxu1 %vm4869_vm1, %v6192_v3  ;;  %v5545_v32 = vld [vmem:[#allocation6 + $0x92] sm:$0xff] }
 0x516   : > { %5613 = vrot.lane.b32.xlu1 %v5542_v17, %s8361_s18  ;;  %v6159_v13 = vld [vmem:[#allocation7 + $0x378] sm:$0xff]  ;;  %7968 = vmatmul.mubr.msk.f32.gmra.mrb[124].mxu1 %vm4869_vm1, %v6197_v7 }
 0x517   : > { %6550 = vmatprep.mubr.f32.mxu0 %v6159_v13  ;;  %v5544_v17 = vld [vmem:[#allocation6 + $0x82] sm:$0xff] }
 0x518   : > { %6551 = vmatmul.mubr.f32.gmra.mrb[76].mxu0 %v6158_v24  ;;  %5860 = vrot.lane.b32.xlu0 %v11217_v6, %s8361_s18  ;;  %v5546_v6 = vld [vmem:[#allocation6 + $0x9a] sm:$0xff] }
 0x51a   : > { %5615 = vrot.lane.b32.xlu1 %v5543_v33, %s8361_s18 }
 0x51b   : > { %v5390_v0 = vpop.permute.xlu0 %5389 }
 0x51c   : > { %v5137_v9 = vpop.permute.xlu1 %5136  ;;  %5462 = vst.msk [vmem:[#allocation7 + $0x3a0] sm:$0xff] %vm5182_vm3, %v5390_v0  ;;  %5862 = vrot.lane.b32.xlu0 %v11245_v42, %s8361_s18  ;;  %v6163_v0 = vld [vmem:[#allocation7 + $0x398] sm:$0xff] }
 0x51d   : > { %5208 = vst.msk [vmem:[#allocation7 + $0x3e8] sm:$0xff] %vm5182_vm3, %v5137_v9  ;;  %v5547_v42 = vld [vmem:[#allocation6 + $0xaa] sm:$0xff] }
 0x51e   : > { %5617 = vrot.lane.b32.xlu1 %v5544_v17, %s8361_s18  ;;  %v6168_v17 = vld [vmem:[#allocation7 + $0x3c0] sm:$0xff] }
 0x520   : > { %5864 = vrot.lane.b32.xlu0 %v11262_v55, %s8361_s18  ;;  %v5548_v55 = vld [vmem:[#allocation6 + $0xb2] sm:$0xff] }
 0x522   : > { %5619 = vrot.lane.b32.xlu1 %v5545_v32, %s8361_s18  ;;  %v5549_v32 = vld [vmem:[#allocation6 + $0xc2] sm:$0xff] }
 0x523   : > { %v6164_v3 = vld [vmem:[#allocation7 + $0x3a0] sm:$0xff] }
 0x524   : > { %6555 = vmatprep.mubr.f32.mxu0 %v6164_v3  ;;  %5866 = vrot.lane.b32.xlu0 %v11288_v16, %s8361_s18  ;;  %v5550_v16 = vld [vmem:[#allocation6 + $0xca] sm:$0xff] }
 0x525   : > { %v11986_v7 = vpop.f32.mrb[108].mxu1  ;;  %6556 = vmatmul.mubr.f32.gmra.mrb[78].mxu0 %v6163_v0 }
 0x526   : > { %v11988_v9 = vpop.f32.mrb[109].mxu1  ;;  %5621 = vrot.lane.b32.xlu1 %v5546_v6, %s8361_s18 }
 0x528   : > { %v5392_v13 = vpop.permute.xlu0 %5391  ;;  %5868 = vrot.lane.b32.xlu0 %v11306_v22, %s8361_s18 }
 0x529   : > { %v5139_v24 = vpop.permute.xlu1 %5138  ;;  %5463 = vst.msk [vmem:[#allocation7 + $0x3c8] sm:$0xff] %vm5182_vm3, %v5392_v13 }
 0x52a   : > { %5209 = vst.msk [vmem:[#allocation7 + $0x410] sm:$0xff] %vm5182_vm3, %v5139_v24  ;;  %5623 = vrot.lane.b32.xlu1 %v5547_v42, %s8361_s18 }
 0x52c   : > { %5870 = vrot.lane.b32.xlu0 %v11327_v36, %s8361_s18  ;;  %v6173_v36 = vld [vmem:[#allocation7 + $0x3e8] sm:$0xff] }
 0x52e   : > { %5625 = vrot.lane.b32.xlu1 %v5548_v55, %s8361_s18 }
 0x530   : > { %v6169_v33 = vld [vmem:[#allocation7 + $0x3c8] sm:$0xff]  ;;  %5872 = vrot.lane.b32.xlu0 %v11350_v50, %s8361_s18 }
 0x531   : > { %6560 = vmatprep.mubr.f32.mxu0 %v6169_v33  ;;  %v5822_v33 = vld [vmem:[#allocation6 + $0x199] sm:$0xff] }
 0x532   : > { %6561 = vmatmul.mubr.f32.gmra.mrb[80].mxu0 %v6168_v17  ;;  %5627 = vrot.lane.b32.xlu1 %v5549_v32, %s8361_s18 }
 0x533   : > { %v5394_v3 = vpop.permute.xlu0 %5393 }
 0x534   : > { %v5141_v0 = vpop.permute.xlu1 %5140  ;;  %5464 = vst.msk [vmem:[#allocation7 + $0x3f0] sm:$0xff] %vm5182_vm3, %v5394_v3  ;;  %5874 = vrot.lane.b32.xlu0 %v11381_v8, %s8361_s18 }
 0x535   : > { %5210 = vst.msk [vmem:[#allocation7 + $0x438] sm:$0xff] %vm5182_vm3, %v5141_v0 }
 0x536   : > { %5629 = vrot.lane.b32.xlu1 %v5550_v16, %s8361_s18  ;;  %v5823_v16 = vld [vmem:[#allocation6 + $0x1a1] sm:$0xff] }
 0x538   : > { %5876 = vrot.lane.b32.xlu0 %v11395_v28, %s8361_s18 }
 0x53a   : > { %5631 = vrot.lane.b32.xlu1 %v11501_v23, %s8361_s18 }
 0x53b   : > { %v6174_v22 = vld [vmem:[#allocation7 + $0x3f0] sm:$0xff] }
 0x53c   : > { %6565 = vmatprep.mubr.f32.mxu0 %v6174_v22  ;;  %5878 = vrot.lane.b32.xlu0 %v11428_v5, %s8361_s18  ;;  %v6178_v5 = vld [vmem:[#allocation7 + $0x410] sm:$0xff] }
 0x53d   : > { %v12013_v6 = vpop.f32.mrb[110].mxu1  ;;  %6566 = vmatmul.mubr.f32.gmra.mrb[82].mxu0 %v6173_v36 }
 0x53e   : > { %v12015_v13 = vpop.f32.mrb[111].mxu1  ;;  %5633 = vrot.lane.b32.xlu1 %v11508_v25, %s8361_s18 }
 0x540   : > { %v5396_v50 = vpop.permute.xlu0 %5395  ;;  %5880 = vrot.lane.b32.xlu0 %v11445_v26, %s8361_s18 }
 0x541   : > { %v5143_v8 = vpop.permute.xlu1 %5142  ;;  %5465 = vst.msk [vmem:[#allocation7 + $0x418] sm:$0xff] %vm5182_vm3, %v5396_v50 }
 0x542   : > { %5211 = vst.msk [vmem:[#allocation7 + $0x460] sm:$0xff] %vm5182_vm3, %v5143_v8  ;;  %5635 = vrot.lane.b32.xlu1 %v11549_v31, %s8361_s18  ;;  %v6183_v31 = vld [vmem:[#allocation7 + $0x438] sm:$0xff] }
 0x544   : > { %5882 = vrot.lane.b32.xlu0 %v11475_v44, %s8361_s18 }
 0x546   : > { %5637 = vrot.lane.b32.xlu1 %v11558_v2, %s8361_s18 }
 0x548   : > { %v6179_v28 = vld [vmem:[#allocation7 + $0x418] sm:$0xff]  ;;  %5884 = vrot.lane.b32.xlu0 %v11487_v49, %s8361_s18 }
 0x549   : > { %6570 = vmatprep.mubr.f32.mxu0 %v6179_v28 }
 0x54a   : > { %6571 = vmatmul.mubr.f32.gmra.mrb[84].mxu0 %v6178_v5  ;;  %5639 = vrot.lane.b32.xlu1 %v11595_v41, %s8361_s18 }
 0x54b   : > { %v5398_v23 = vpop.permute.xlu0 %5397 }
 0x54c   : > { %v5145_v25 = vpop.permute.xlu1 %5144  ;;  %5466 = vst.msk [vmem:[#allocation7 + $0x440] sm:$0xff] %vm5182_vm3, %v5398_v23  ;;  %5886 = vrot.lane.b32.xlu0 %v11513_v14, %s8361_s18 }
 0x54d   : > { %5212 = vst.msk [vmem:[#allocation7 + $0x488] sm:$0xff] %vm5182_vm3, %v5145_v25 }
 0x54e   : > { %5641 = vrot.lane.b32.xlu1 %v11602_v56, %s8361_s18 }
 0x550   : > { %5888 = vrot.lane.b32.xlu0 %v11533_v58, %s8361_s18 }
 0x552   : > { %5643 = vrot.lane.b32.xlu1 %v11658_v15, %s8361_s18 }
 0x553   : > { %v6184_v44 = vld [vmem:[#allocation7 + $0x440] sm:$0xff] }
 0x554   : > { %6575 = vmatprep.mubr.f32.mxu0 %v6184_v44  ;;  %5890 = vrot.lane.b32.xlu0 %v11563_v11, %s8361_s18  ;;  %v6188_v11 = vld [vmem:[#allocation7 + $0x460] sm:$0xff] }
 0x555   : > { %v12045_v26 = vpop.f32.mrb[112].mxu1  ;;  %6576 = vmatmul.mubr.f32.gmra.mrb[86].mxu0 %v6183_v31 }
 0x556   : > { %v12047_v49 = vpop.f32.mrb[113].mxu1  ;;  %5645 = vrot.lane.b32.xlu1 %v11666_v34, %s8361_s18  ;;  %v6193_v34 = vld [vmem:[#allocation7 + $0x488] sm:$0xff] }
 0x558   : > { %5892 = vrot.lane.b32.xlu0 %v11579_v59, %s8361_s18 }
 0x55a   : > { %5647 = vrot.lane.b32.xlu1 %v11726_v27, %s8361_s18 }
 0x55b   : > { %v5400_v14 = vpop.permute.xlu0 %5399 }
 0x55c   : > { %v5147_v58 = vpop.permute.xlu1 %5146  ;;  %5467 = vst.msk [vmem:[#allocation7 + $0x468] sm:$0xff] %vm5182_vm3, %v5400_v14  ;;  %5894 = vrot.lane.b32.xlu0 %v11593_v54, %s8361_s18 }
 0x55d   : > { %5213 = vst.msk [vmem:[#allocation7 + $0x4b0] sm:$0xff] %vm5182_vm3, %v5147_v58 }
 0x55e   : > { %5649 = vrot.lane.b32.xlu1 %v11733_v20, %s8361_s18  ;;  %v5758_v20 = vld [vmem:[#allocation6 + $0x198] sm:$0xff] }
 0x55f   : > { %5790 = vst.msk [vmem:[#allocation7 + $0x4c8] sm:$0xff] %vm4869_vm1, %v5758_v20 }
 0x560   : > { %5896 = vrot.lane.b32.xlu0 %v11634_v53, %s8361_s18 }
 0x562   : > { %5651 = vrot.lane.b32.xlu1 %v11798_v1, %s8361_s18 }
 0x563   : > { %v6189_v2 = vld [vmem:[#allocation7 + $0x468] sm:$0xff] }
 0x564   : > { %6580 = vmatprep.mubr.f32.mxu0 %v6189_v2  ;;  %5898 = vrot.lane.b32.xlu0 %v11656_v18, %s8361_s18 }
 0x565   : > { %6581 = vmatmul.mubr.f32.gmra.mrb[88].mxu0 %v6188_v11 }
 0x566   : > { %5653 = vrot.lane.b32.xlu1 %v11805_v52, %s8361_s18  ;;  %v6198_v52 = vld [vmem:[#allocation7 + $0x4b0] sm:$0xff] }
 0x567   : > { %v5402_v59 = vpop.permute.xlu0 %5401 }
 0x568   : > { %v5149_v41 = vpop.permute.xlu1 %5148  ;;  %5468 = vst.msk [vmem:[#allocation7 + $0x490] sm:$0xff] %vm5182_vm3, %v5402_v59  ;;  %5900 = vrot.lane.b32.xlu0 %v11697_v51, %s8361_s18 }
 0x569   : > { %5214 = vst.msk [vmem:[#allocation7 + $0x4d8] sm:$0xff] %vm5182_vm3, %v5149_v41 }
 0x56a   : > { %5655 = vrot.lane.b32.xlu1 %v11864_v48, %s8361_s18 }
 0x56c   : > { %v5600_v53 = vpop.permute.xlu1 %5599  ;;  %5902 = vrot.lane.b32.xlu0 %v11724_v45, %s8361_s18 }
 0x56d   : > { %v12077_v54 = vpop.f32.mrb[114].mxu1  ;;  %5695 = vst.msk [vmem:[#allocation7 + $0x10] sm:$0xff] %vm5182_vm3, %v5600_v53 }
 0x56e   : > { %v12079_v56 = vpop.f32.mrb[115].mxu1  ;;  %5657 = vrot.lane.b32.xlu1 %v11874_v29, %s8361_s18 }
 0x56f   : > { %v6194_v15 = vld [vmem:[#allocation7 + $0x490] sm:$0xff] }
 0x570   : > { %v5602_v18 = vpop.permute.xlu1 %5601  ;;  %6585 = vmatprep.mubr.f32.mxu0 %v6194_v15  ;;  %5904 = vrot.lane.b32.xlu0 %v11771_v21, %s8361_s18 }
 0x571   : > { %5696 = vst.msk [vmem:[#allocation7 + $0x38] sm:$0xff] %vm5182_vm3, %v5602_v18  ;;  %6586 = vmatmul.mubr.f32.gmra.mrb[90].mxu0 %v6193_v34 }
 0x572   : > { %5659 = vrot.lane.b32.xlu1 %v11940_v46, %s8361_s18  ;;  %v6014_v46 = vld [vmem:[#allocation6 + $0x19a] sm:$0xff] }
 0x573   : > { %6046 = vst.msk [vmem:[#allocation7 + $0x4d0] sm:$0xff] %vm4869_vm1, %v6014_v46 }
 0x574   : > { %v5604_v27 = vpop.permute.xlu1 %5603  ;;  %5906 = vrot.lane.b32.xlu0 %v11796_v30, %s8361_s18  ;;  %v5759_v30 = vld [vmem:[#allocation6 + $0x1a0] sm:$0xff] }
 0x575   : > { %5697 = vst.msk [vmem:[#allocation7 + $0x60] sm:$0xff] %vm5182_vm3, %v5604_v27  ;;  %v6050_v50 = vld [vmem:[#allocation7 + $0x10] sm:$0xff] }
 0x576   : > { %v5404_v51 = vpop.permute.xlu0 %5403  ;;  %5661 = vrot.lane.b32.xlu1 %v11942_v47, %s8361_s18  ;;  %5791 = vst.msk [vmem:[#allocation7 + $0x4f0] sm:$0xff] %vm4869_vm1, %v5759_v30 }
 0x577   : > { %5469 = vst.msk [vmem:[#allocation7 + $0x4b8] sm:$0xff] %vm5182_vm3, %v5404_v51 }
 0x578   : > { %v5606_v45 = vpop.permute.xlu1 %5605  ;;  %5908 = vrot.lane.b32.xlu0 %v11840_v19, %s8361_s18  ;;  %v6015_v19 = vld [vmem:[#allocation6 + $0x1a2] sm:$0xff] }
 0x579   : > { %5698 = vst.msk [vmem:[#allocation7 + $0x88] sm:$0xff] %vm5182_vm3, %v5606_v45  ;;  %v6055_v23 = vld [vmem:[#allocation7 + $0x38] sm:$0xff] }
 0x57a   : > { %6047 = vst.msk [vmem:[#allocation7 + $0x4f8] sm:$0xff] %vm4869_vm1, %v6015_v19  ;;  %v6202_v17 = vld [vmem:[#allocation7 + $0x4d0] sm:$0xff] }
 0x57b   : > { %7970 = vmatprep.mubr.msk.f32.mxu1 %vm4869_vm1, %v6202_v17 }
 0x57c   : > { %v5608_v21 = vpop.permute.xlu1 %5607  ;;  %5910 = vrot.lane.b32.xlu0 %v11862_v37, %s8361_s18  ;;  %v6060_v14 = vld [vmem:[#allocation7 + $0x60] sm:$0xff] }
 0x57d   : > { %5699 = vst.msk [vmem:[#allocation7 + $0xb0] sm:$0xff] %vm5182_vm3, %v5608_v21 }
 0x57e   : > { %v6199_v1 = vld [vmem:[#allocation7 + $0x4b8] sm:$0xff]  ;;  %v5406_v48 = vpop.permute.xlu0 %5405 }
 0x57f   : > { %6590 = vmatprep.mubr.f32.mxu0 %v6199_v1  ;;  %5470 = vst.msk [vmem:[#allocation7 + $0x4e0] sm:$0xff] %vm5182_vm3, %v5406_v48 }
 0x580   : > { %6591 = vmatmul.mubr.f32.gmra.mrb[92].mxu0 %v6198_v52  ;;  %v5610_v29 = vpop.permute.xlu1 %5609  ;;  %5912 = vrot.lane.b32.xlu0 %v11908_v43, %s8361_s18  ;;  %v6203_v43 = vld [vmem:[#allocation7 + $0x4d8] sm:$0xff]  ;;  %v6065_v59 = vld [vmem:[#allocation7 + $0x88] sm:$0xff] }
 0x581   : > { %5700 = vst.msk [vmem:[#allocation7 + $0xd8] sm:$0xff] %vm5182_vm3, %v5610_v29  ;;  %v6207_v0 = vld [vmem:[#allocation7 + $0x4f8] sm:$0xff] }
 0x582   : > { %v5857_v37 = vpop.permute.xlu0 %5856  ;;  %7971 = vmatmul.mubr.msk.f32.gmra.mrb[126].mxu1 %vm4869_vm1, %v6207_v0 }
 0x583   : > { %5952 = vst.msk [vmem:[#allocation7 + $0x18] sm:$0xff] %vm5182_vm3, %v5857_v37 }
 0x584   : > { %v5612_v42 = vpop.permute.xlu1 %5611  ;;  %5914 = vrot.lane.b32.xlu0 %v11950_v63, %s8361_s18  ;;  %v6070_v51 = vld [vmem:[#allocation7 + $0xb0] sm:$0xff] }
 0x585   : > { %5701 = vst.msk [vmem:[#allocation7 + $0x100] sm:$0xff] %vm5182_vm3, %v5612_v42 }
 0x586   : > { %v6204_v55 = vld [vmem:[#allocation7 + $0x4e0] sm:$0xff]  ;;  %v5859_v32 = vpop.permute.xlu0 %5858 }
 0x587   : > { %v12111_v47 = vpop.f32.mrb[116].mxu1  ;;  %6595 = vmatprep.mubr.f32.mxu0 %v6204_v55  ;;  %5953 = vst.msk [vmem:[#allocation7 + $0x40] sm:$0xff] %vm5182_vm3, %v5859_v32 }
 0x588   : > { %v12114_v24 = vpop.f32.mrb[117].mxu1  ;;  %v5614_v3 = vpop.permute.xlu1 %5613  ;;  %6596 = vmatmul.mubr.f32.gmra.mrb[94].mxu0 %v6203_v43  ;;  %5916 = vrot.lane.b32.xlu0 %v5822_v33, %s8361_s18  ;;  %v6075_v21 = vld [vmem:[#allocation7 + $0xd8] sm:$0xff] }
 0x589   : > { %5702 = vst.msk [vmem:[#allocation7 + $0x128] sm:$0xff] %vm5182_vm3, %v5614_v3 }
 0x58a   : > { %v6051_v63 = vld [vmem:[#allocation7 + $0x18] sm:$0xff]  ;;  %v5861_v22 = vpop.permute.xlu0 %5860 }
 0x58b   : > { %6665 = vmatprep.mubr.f32.mxu0 %v6051_v63  ;;  %5954 = vst.msk [vmem:[#allocation7 + $0x68] sm:$0xff] %vm5182_vm3, %v5861_v22 }
 0x58c   : > { %v5616_v36 = vpop.permute.xlu1 %5615  ;;  %6666 = vmatmul.mubr.f32.vlgmr.msra.gmra.mrb[32].mxu0 %v6050_v50  ;;  %5918 = vrot.lane.b32.xlu0 %v5823_v16, %s8361_s18  ;;  %v6080_v48 = vld [vmem:[#allocation7 + $0x100] sm:$0xff]  ;;  %s440_s18 = scalar_lea.vmem %s12440_s13, %s7664_s22 }
 0x58d   : > { %5703 = vst.msk [vmem:[#allocation7 + $0x150] sm:$0xff] %vm5182_vm3, %v5616_v36 }
 0x58e   : > { %v5863_v8 = vpop.permute.xlu0 %5862  ;;  %v6056_v5 = vld [vmem:[#allocation7 + $0x40] sm:$0xff] }
 0x58f   : > { %5955 = vst.msk [vmem:[#allocation7 + $0x90] sm:$0xff] %vm5182_vm3, %v5863_v8  ;;  %6670 = vmatprep.mubr.f32.mxu0 %v6056_v5 }
 0x590   : > { %v5618_v28 = vpop.permute.xlu1 %5617  ;;  %6671 = vmatmul.mubr.f32.gmra.mrb[34].mxu0 %v6055_v23  ;;  %v6085_v37 = vld [vmem:[#allocation7 + $0x128] sm:$0xff] }
 0x591   : > { %5704 = vst.msk [vmem:[#allocation7 + $0x178] sm:$0xff] %vm5182_vm3, %v5618_v28 }
 0x592   : > { %v5865_v25 = vpop.permute.xlu0 %5864  ;;  %v6061_v31 = vld [vmem:[#allocation7 + $0x68] sm:$0xff] }
 0x593   : > { %5956 = vst.msk [vmem:[#allocation7 + $0xb8] sm:$0xff] %vm5182_vm3, %v5865_v25  ;;  %6675 = vmatprep.mubr.f32.mxu0 %v6061_v31 }
 0x594   : > { %v5620_v44 = vpop.permute.xlu1 %5619  ;;  %6676 = vmatmul.mubr.f32.gmra.mrb[36].mxu0 %v6060_v14  ;;  %v6090_v17 = vld [vmem:[#allocation7 + $0x150] sm:$0xff] }
 0x595   : > { %5705 = vst.msk [vmem:[#allocation7 + $0x1a0] sm:$0xff] %vm5182_vm3, %v5620_v44 }
 0x596   : > { %v5867_v58 = vpop.permute.xlu0 %5866  ;;  %v6066_v11 = vld [vmem:[#allocation7 + $0x90] sm:$0xff] }
 0x597   : > { %5957 = vst.msk [vmem:[#allocation7 + $0xe0] sm:$0xff] %vm5182_vm3, %v5867_v58  ;;  %6680 = vmatprep.mubr.f32.mxu0 %v6066_v11 }
 0x598   : > { %v5622_v2 = vpop.permute.xlu1 %5621  ;;  %6681 = vmatmul.mubr.f32.gmra.mrb[38].mxu0 %v6065_v59  ;;  %v6095_v0 = vld [vmem:[#allocation7 + $0x178] sm:$0xff] }
 0x599   : > { %5706 = vst.msk [vmem:[#allocation7 + $0x1c8] sm:$0xff] %vm5182_vm3, %v5622_v2 }
 0x59a   : > { %v5869_v53 = vpop.permute.xlu0 %5868  ;;  %v6071_v15 = vld [vmem:[#allocation7 + $0xb8] sm:$0xff] }
 0x59b   : > { %5958 = vst.msk [vmem:[#allocation7 + $0x108] sm:$0xff] %vm5182_vm3, %v5869_v53  ;;  %6685 = vmatprep.mubr.f32.mxu0 %v6071_v15 }
 0x59c   : > { %v5624_v34 = vpop.permute.xlu1 %5623  ;;  %6686 = vmatmul.mubr.f32.gmra.mrb[40].mxu0 %v6070_v51  ;;  %v6100_v50 = vld [vmem:[#allocation7 + $0x1a0] sm:$0xff] }
 0x59d   : > { %5707 = vst.msk [vmem:[#allocation7 + $0x1f0] sm:$0xff] %vm5182_vm3, %v5624_v34 }
 0x59e   : > { %v5871_v27 = vpop.permute.xlu0 %5870  ;;  %v6076_v45 = vld [vmem:[#allocation7 + $0xe0] sm:$0xff] }
 0x59f   : > { %v12133_v41 = vpop.f32.mrb[118].mxu1  ;;  %5959 = vst.msk [vmem:[#allocation7 + $0x130] sm:$0xff] %vm5182_vm3, %v5871_v27  ;;  %6690 = vmatprep.mubr.f32.mxu0 %v6076_v45 }
 0x5a0   : > { %v12135_v18 = vpop.f32.mrb[119].mxu1  ;;  %v5626_v20 = vpop.permute.xlu1 %5625  ;;  %6691 = vmatmul.mubr.f32.gmra.mrb[42].mxu0 %v6075_v21  ;;  %v6105_v25 = vld [vmem:[#allocation7 + $0x1c8] sm:$0xff] }
 0x5a1   : > { %5708 = vst.msk [vmem:[#allocation7 + $0x218] sm:$0xff] %vm5182_vm3, %v5626_v20 }
 0x5a2   : > { %v5873_v1 = vpop.permute.xlu0 %5872  ;;  %v6081_v52 = vld [vmem:[#allocation7 + $0x108] sm:$0xff] }
 0x5a3   : > { %5960 = vst.msk [vmem:[#allocation7 + $0x158] sm:$0xff] %vm5182_vm3, %v5873_v1  ;;  %6695 = vmatprep.mubr.f32.mxu0 %v6081_v52 }
 0x5a4   : > { %v5628_v30 = vpop.permute.xlu1 %5627  ;;  %6696 = vmatmul.mubr.f32.gmra.mrb[44].mxu0 %v6080_v48  ;;  %v6110_v58 = vld [vmem:[#allocation7 + $0x1f0] sm:$0xff] }
 0x5a5   : > { %5709 = vst.msk [vmem:[#allocation7 + $0x240] sm:$0xff] %vm5182_vm3, %v5628_v30 }
 0x5a6   : > { %v5875_v29 = vpop.permute.xlu0 %5874  ;;  %v6086_v46 = vld [vmem:[#allocation7 + $0x130] sm:$0xff] }
 0x5a7   : > { %5961 = vst.msk [vmem:[#allocation7 + $0x180] sm:$0xff] %vm5182_vm3, %v5875_v29  ;;  %6700 = vmatprep.mubr.f32.mxu0 %v6086_v46 }
 0x5a8   : > { %v5630_v19 = vpop.permute.xlu1 %5629  ;;  %6701 = vmatmul.mubr.f32.gmra.mrb[46].mxu0 %v6085_v37  ;;  %v6115_v53 = vld [vmem:[#allocation7 + $0x218] sm:$0xff] }
 0x5a9   : > { %5710 = vst.msk [vmem:[#allocation7 + $0x268] sm:$0xff] %vm5182_vm3, %v5630_v19 }
 0x5aa   : > { %v5877_v42 = vpop.permute.xlu0 %5876  ;;  %v6091_v55 = vld [vmem:[#allocation7 + $0x158] sm:$0xff] }
 0x5ab   : > { %5962 = vst.msk [vmem:[#allocation7 + $0x1a8] sm:$0xff] %vm5182_vm3, %v5877_v42  ;;  %6705 = vmatprep.mubr.f32.mxu0 %v6091_v55 }
 0x5ac   : > { %v5632_v33 = vpop.permute.xlu1 %5631  ;;  %6706 = vmatmul.mubr.f32.gmra.mrb[48].mxu0 %v6090_v17  ;;  %v6120_v27 = vld [vmem:[#allocation7 + $0x240] sm:$0xff] }
 0x5ad   : > { %5711 = vst.msk [vmem:[#allocation7 + $0x290] sm:$0xff] %vm5182_vm3, %v5632_v33 }
 0x5ae   : > { %v5879_v32 = vpop.permute.xlu0 %5878  ;;  %v6096_v3 = vld [vmem:[#allocation7 + $0x180] sm:$0xff] }
 0x5af   : > { %5963 = vst.msk [vmem:[#allocation7 + $0x1d0] sm:$0xff] %vm5182_vm3, %v5879_v32  ;;  %6710 = vmatprep.mubr.f32.mxu0 %v6096_v3 }
 0x5b0   : > { %v5634_v43 = vpop.permute.xlu1 %5633  ;;  %6711 = vmatmul.mubr.f32.gmra.mrb[50].mxu0 %v6095_v0  ;;  %v6125_v1 = vld [vmem:[#allocation7 + $0x268] sm:$0xff] }
 0x5b1   : > { %5712 = vst.msk [vmem:[#allocation7 + $0x2b8] sm:$0xff] %vm5182_vm3, %v5634_v43 }
 0x5b2   : > { %v5881_v63 = vpop.permute.xlu0 %5880  ;;  %v6101_v16 = vld [vmem:[#allocation7 + $0x1a8] sm:$0xff] }
 0x5b3   : > { %5964 = vst.msk [vmem:[#allocation7 + $0x1f8] sm:$0xff] %vm5182_vm3, %v5881_v63  ;;  %6715 = vmatprep.mubr.f32.mxu0 %v6101_v16 }
 0x5b4   : > { %v5636_v36 = vpop.permute.xlu1 %5635  ;;  %6716 = vmatmul.mubr.f32.gmra.mrb[52].mxu0 %v6100_v50  ;;  %v6130_v29 = vld [vmem:[#allocation7 + $0x290] sm:$0xff] }
 0x5b5   : > { %5713 = vst.msk [vmem:[#allocation7 + $0x2e0] sm:$0xff] %vm5182_vm3, %v5636_v36 }
 0x5b6   : > { %v5883_v28 = vpop.permute.xlu0 %5882  ;;  %v6106_v5 = vld [vmem:[#allocation7 + $0x1d0] sm:$0xff] }
 0x5b7   : > { %v12149_v22 = vpop.f32.mrb[120].mxu1  ;;  %5965 = vst.msk [vmem:[#allocation7 + $0x220] sm:$0xff] %vm5182_vm3, %v5883_v28  ;;  %6720 = vmatprep.mubr.f32.mxu0 %v6106_v5 }
 0x5b8   : > { %v12152_v8 = vpop.f32.mrb[121].mxu1  ;;  %v5638_v23 = vpop.permute.xlu1 %5637  ;;  %6721 = vmatmul.mubr.f32.gmra.mrb[54].mxu0 %v6105_v25  ;;  %v6135_v42 = vld [vmem:[#allocation7 + $0x2b8] sm:$0xff] }
 0x5b9   : > { %5714 = vst.msk [vmem:[#allocation7 + $0x308] sm:$0xff] %vm5182_vm3, %v5638_v23 }
 0x5ba   : > { %v5885_v44 = vpop.permute.xlu0 %5884  ;;  %v6111_v31 = vld [vmem:[#allocation7 + $0x1f8] sm:$0xff] }
 0x5bb   : > { %5966 = vst.msk [vmem:[#allocation7 + $0x248] sm:$0xff] %vm5182_vm3, %v5885_v44  ;;  %6725 = vmatprep.mubr.f32.mxu0 %v6111_v31 }
 0x5bc   : > { %v5640_v14 = vpop.permute.xlu1 %5639  ;;  %6726 = vmatmul.mubr.f32.gmra.mrb[56].mxu0 %v6110_v58  ;;  %v6140_v43 = vld [vmem:[#allocation7 + $0x2e0] sm:$0xff] }
 0x5bd   : > { %5715 = vst.msk [vmem:[#allocation7 + $0x330] sm:$0xff] %vm5182_vm3, %v5640_v14 }
 0x5be   : > { %v5887_v2 = vpop.permute.xlu0 %5886  ;;  %v6116_v11 = vld [vmem:[#allocation7 + $0x220] sm:$0xff] }
 0x5bf   : > { %5967 = vst.msk [vmem:[#allocation7 + $0x270] sm:$0xff] %vm5182_vm3, %v5887_v2  ;;  %6730 = vmatprep.mubr.f32.mxu0 %v6116_v11 }
 0x5c0   : > { %v5642_v59 = vpop.permute.xlu1 %5641  ;;  %6731 = vmatmul.mubr.f32.gmra.mrb[58].mxu0 %v6115_v53  ;;  %v6145_v36 = vld [vmem:[#allocation7 + $0x308] sm:$0xff] }
 0x5c1   : > { %5716 = vst.msk [vmem:[#allocation7 + $0x358] sm:$0xff] %vm5182_vm3, %v5642_v59 }
 0x5c2   : > { %v5889_v15 = vpop.permute.xlu0 %5888  ;;  %v6121_v34 = vld [vmem:[#allocation7 + $0x248] sm:$0xff] }
 0x5c3   : > { %5968 = vst.msk [vmem:[#allocation7 + $0x298] sm:$0xff] %vm5182_vm3, %v5889_v15  ;;  %6735 = vmatprep.mubr.f32.mxu0 %v6121_v34 }
 0x5c4   : > { %v5644_v51 = vpop.permute.xlu1 %5643  ;;  %6736 = vmatmul.mubr.f32.gmra.mrb[60].mxu0 %v6120_v27  ;;  %v6150_v23 = vld [vmem:[#allocation7 + $0x330] sm:$0xff] }
 0x5c5   : > { %5717 = vst.msk [vmem:[#allocation7 + $0x380] sm:$0xff] %vm5182_vm3, %v5644_v51 }
 0x5c6   : > { %v5891_v45 = vpop.permute.xlu0 %5890  ;;  %v6126_v20 = vld [vmem:[#allocation7 + $0x270] sm:$0xff] }
 0x5c7   : > { %5969 = vst.msk [vmem:[#allocation7 + $0x2c0] sm:$0xff] %vm5182_vm3, %v5891_v45  ;;  %6740 = vmatprep.mubr.f32.mxu0 %v6126_v20 }
 0x5c8   : > { %v5646_v21 = vpop.permute.xlu1 %5645  ;;  %6741 = vmatmul.mubr.f32.gmra.mrb[62].mxu0 %v6125_v1  ;;  %v6155_v14 = vld [vmem:[#allocation7 + $0x358] sm:$0xff] }
 0x5c9   : > { %5718 = vst.msk [vmem:[#allocation7 + $0x3a8] sm:$0xff] %vm5182_vm3, %v5646_v21 }
 0x5ca   : > { %v5893_v52 = vpop.permute.xlu0 %5892  ;;  %v6131_v30 = vld [vmem:[#allocation7 + $0x298] sm:$0xff] }
 0x5cb   : > { %5970 = vst.msk [vmem:[#allocation7 + $0x2e8] sm:$0xff] %vm5182_vm3, %v5893_v52  ;;  %6745 = vmatprep.mubr.f32.mxu0 %v6131_v30 }
 0x5cc   : > { %v5648_v48 = vpop.permute.xlu1 %5647  ;;  %6746 = vmatmul.mubr.f32.gmra.mrb[64].mxu0 %v6130_v29  ;;  %v6160_v59 = vld [vmem:[#allocation7 + $0x380] sm:$0xff] }
 0x5cd   : > { %5719 = vst.msk [vmem:[#allocation7 + $0x3d0] sm:$0xff] %vm5182_vm3, %v5648_v48 }
 0x5ce   : > { %v5895_v46 = vpop.permute.xlu0 %5894  ;;  %v6136_v19 = vld [vmem:[#allocation7 + $0x2c0] sm:$0xff] }
 0x5cf   : > { %5971 = vst.msk [vmem:[#allocation7 + $0x310] sm:$0xff] %vm5182_vm3, %v5895_v46  ;;  %6750 = vmatprep.mubr.f32.mxu0 %v6136_v19 }
 0x5d0   : > { %v5650_v37 = vpop.permute.xlu1 %5649  ;;  %6751 = vmatmul.mubr.f32.gmra.mrb[66].mxu0 %v6135_v42  ;;  %v6165_v51 = vld [vmem:[#allocation7 + $0x3a8] sm:$0xff] }
 0x5d1   : > { %5720 = vst.msk [vmem:[#allocation7 + $0x3f8] sm:$0xff] %vm5182_vm3, %v5650_v37 }
 0x5d2   : > { %v5897_v17 = vpop.permute.xlu0 %5896  ;;  %v6141_v32 = vld [vmem:[#allocation7 + $0x2e8] sm:$0xff] }
 0x5d3   : > { %5972 = vst.msk [vmem:[#allocation7 + $0x338] sm:$0xff] %vm5182_vm3, %v5897_v17  ;;  %6755 = vmatprep.mubr.f32.mxu0 %v6141_v32 }
 0x5d4   : > { %v5652_v3 = vpop.permute.xlu1 %5651  ;;  %6756 = vmatmul.mubr.f32.gmra.mrb[68].mxu0 %v6140_v43  ;;  %v6170_v1 = vld [vmem:[#allocation7 + $0x3d0] sm:$0xff] }
 0x5d5   : > { %v12169_v55 = vpop.f32.mrb[122].mxu1  ;;  %5721 = vst.msk [vmem:[#allocation7 + $0x420] sm:$0xff] %vm5182_vm3, %v5652_v3 }
 0x5d6   : > { %v12171_v33 = vpop.f32.mrb[123].mxu1  ;;  %v5899_v0 = vpop.permute.xlu0 %5898  ;;  %v6146_v63 = vld [vmem:[#allocation7 + $0x310] sm:$0xff] }
 0x5d7   : > { %5973 = vst.msk [vmem:[#allocation7 + $0x360] sm:$0xff] %vm5182_vm3, %v5899_v0  ;;  %6760 = vmatprep.mubr.f32.mxu0 %v6146_v63 }
 0x5d8   : > { %v5654_v16 = vpop.permute.xlu1 %5653  ;;  %6761 = vmatmul.mubr.f32.gmra.mrb[70].mxu0 %v6145_v36  ;;  %v6175_v48 = vld [vmem:[#allocation7 + $0x3f8] sm:$0xff] }
 0x5d9   : > { %5722 = vst.msk [vmem:[#allocation7 + $0x448] sm:$0xff] %vm5182_vm3, %v5654_v16 }
 0x5da   : > { %v5901_v50 = vpop.permute.xlu0 %5900  ;;  %v6151_v28 = vld [vmem:[#allocation7 + $0x338] sm:$0xff] }
 0x5db   : > { %5974 = vst.msk [vmem:[#allocation7 + $0x388] sm:$0xff] %vm5182_vm3, %v5901_v50  ;;  %6765 = vmatprep.mubr.f32.mxu0 %v6151_v28 }
 0x5dc   : > { %v5656_v5 = vpop.permute.xlu1 %5655  ;;  %6766 = vmatmul.mubr.f32.gmra.mrb[72].mxu0 %v6150_v23  ;;  %v6180_v19 = vld [vmem:[#allocation7 + $0x420] sm:$0xff] }
 0x5dd   : > { %5723 = vst.msk [vmem:[#allocation7 + $0x470] sm:$0xff] %vm5182_vm3, %v5656_v5 }
 0x5de   : > { %v5903_v25 = vpop.permute.xlu0 %5902  ;;  %v6156_v44 = vld [vmem:[#allocation7 + $0x360] sm:$0xff] }
 0x5df   : > { %5975 = vst.msk [vmem:[#allocation7 + $0x3b0] sm:$0xff] %vm5182_vm3, %v5903_v25  ;;  %6770 = vmatprep.mubr.f32.mxu0 %v6156_v44 }
 0x5e0   : > { %v5658_v31 = vpop.permute.xlu1 %5657  ;;  %6771 = vmatmul.mubr.f32.gmra.mrb[74].mxu0 %v6155_v14  ;;  %v6185_v17 = vld [vmem:[#allocation7 + $0x448] sm:$0xff] }
 0x5e1   : > { %5724 = vst.msk [vmem:[#allocation7 + $0x498] sm:$0xff] %vm5182_vm3, %v5658_v31 }
 0x5e2   : > { %v5905_v58 = vpop.permute.xlu0 %5904  ;;  %v6161_v2 = vld [vmem:[#allocation7 + $0x388] sm:$0xff] }
 0x5e3   : > { %5976 = vst.msk [vmem:[#allocation7 + $0x3d8] sm:$0xff] %vm5182_vm3, %v5905_v58  ;;  %6775 = vmatprep.mubr.f32.mxu0 %v6161_v2  ;;  %v12203_v58 = vld [vmem:[%s12435_s8] ss:$0 sm:$0xff] }
 0x5e4   : > { %v5660_v11 = vpop.permute.xlu1 %5659  ;;  %6776 = vmatmul.mubr.f32.gmra.mrb[76].mxu0 %v6160_v59  ;;  %v6190_v43 = vld [vmem:[#allocation7 + $0x470] sm:$0xff] }
 0x5e5   : > { %5725 = vst.msk [vmem:[#allocation7 + $0x4c0] sm:$0xff] %vm5182_vm3, %v5660_v11 }
 0x5e6   : > { %v5907_v53 = vpop.permute.xlu0 %5906  ;;  %v6166_v15 = vld [vmem:[#allocation7 + $0x3b0] sm:$0xff] }
 0x5e7   : > { %5977 = vst.msk [vmem:[#allocation7 + $0x400] sm:$0xff] %vm5182_vm3, %v5907_v53  ;;  %6780 = vmatprep.mubr.f32.mxu0 %v6166_v15  ;;  %v12210_v15 = vld [vmem:[%s12436_s9] ss:$0 sm:$0xff] }
 0x5e8   : > { %v5662_v34 = vpop.permute.xlu1 %5661  ;;  %6781 = vmatmul.mubr.f32.gmra.mrb[78].mxu0 %v6165_v51  ;;  %v6195_v16 = vld [vmem:[#allocation7 + $0x498] sm:$0xff] }
 0x5e9   : > { %5726 = vst.msk [vmem:[#allocation7 + $0x4e8] sm:$0xff] %vm5182_vm3, %v5662_v34  ;;  %v12185_v27 = vpop.f32.mrb[124].mxu1 }
 0x5ea   : > { %v12187_v45 = vpop.f32.mrb[125].mxu1  ;;  %v5909_v20 = vpop.permute.xlu0 %5908  ;;  %v6171_v21 = vld [vmem:[#allocation7 + $0x3d8] sm:$0xff] }
 0x5eb   : > { %5978 = vst.msk [vmem:[#allocation7 + $0x428] sm:$0xff] %vm5182_vm3, %v5909_v20  ;;  %6785 = vmatprep.mubr.f32.mxu0 %v6171_v21 }
 0x5ec   : > { %6786 = vmatmul.mubr.f32.gmra.mrb[80].mxu0 %v6170_v1  ;;  %v6200_v50 = vld [vmem:[#allocation7 + $0x4c0] sm:$0xff] }
 0x5ee   : > { %v5911_v52 = vpop.permute.xlu0 %5910  ;;  %v6176_v30 = vld [vmem:[#allocation7 + $0x400] sm:$0xff] }
 0x5ef   : > { %5979 = vst.msk [vmem:[#allocation7 + $0x450] sm:$0xff] %vm5182_vm3, %v5911_v52  ;;  %6790 = vmatprep.mubr.f32.mxu0 %v6176_v30 }
 0x5f0   : > { %6791 = vmatmul.mubr.f32.gmra.mrb[82].mxu0 %v6175_v48  ;;  %v6205_v5 = vld [vmem:[#allocation7 + $0x4e8] sm:$0xff] }
 0x5f2   : > { %v5913_v29 = vpop.permute.xlu0 %5912  ;;  %v6181_v46 = vld [vmem:[#allocation7 + $0x428] sm:$0xff] }
 0x5f3   : > { %5980 = vst.msk [vmem:[#allocation7 + $0x478] sm:$0xff] %vm5182_vm3, %v5913_v29  ;;  %6795 = vmatprep.mubr.f32.mxu0 %v6181_v46 }
 0x5f4   : > { %6796 = vmatmul.mubr.f32.gmra.mrb[84].mxu0 %v6180_v19 }
 0x5f6   : > { %v5915_v37 = vpop.permute.xlu0 %5914  ;;  %v6186_v42 = vld [vmem:[#allocation7 + $0x450] sm:$0xff] }
 0x5f7   : > { %5981 = vst.msk [vmem:[#allocation7 + $0x4a0] sm:$0xff] %vm5182_vm3, %v5915_v37  ;;  %6800 = vmatprep.mubr.f32.mxu0 %v6186_v42 }
 0x5f8   : > { %6801 = vmatmul.mubr.f32.gmra.mrb[86].mxu0 %v6185_v17 }
 0x5fa   : > { %v5917_v32 = vpop.permute.xlu0 %5916  ;;  %v6191_v3 = vld [vmem:[#allocation7 + $0x478] sm:$0xff] }
 0x5fb   : > { %5982 = vst.msk [vmem:[#allocation7 + $0x4c8] sm:$0xff] %vm5182_vm3, %v5917_v32  ;;  %6805 = vmatprep.mubr.f32.mxu0 %v6191_v3 }
 0x5fc   : > { %6806 = vmatmul.mubr.f32.gmra.mrb[88].mxu0 %v6190_v43 }
 0x5fe   : > { %v5919_v0 = vpop.permute.xlu0 %5918  ;;  %v6196_v63 = vld [vmem:[#allocation7 + $0x4a0] sm:$0xff] }
 0x5ff   : > { %5983 = vst.msk [vmem:[#allocation7 + $0x4f0] sm:$0xff] %vm5182_vm3, %v5919_v0  ;;  %6810 = vmatprep.mubr.f32.mxu0 %v6196_v63 }
 0x600   : > { %6811 = vmatmul.mubr.f32.gmra.mrb[90].mxu0 %v6195_v16 }
 0x602   : > { %v6201_v36 = vld [vmem:[#allocation7 + $0x4c8] sm:$0xff] }
 0x603   : > { %6815 = vmatprep.mubr.f32.mxu0 %v6201_v36 }
 0x604   : > { %6816 = vmatmul.mubr.f32.gmra.mrb[92].mxu0 %v6200_v50 }
 0x606   : > { %v6206_v28 = vld [vmem:[#allocation7 + $0x4f0] sm:$0xff] }
 0x607   : > { %6820 = vmatprep.mubr.f32.mxu0 %v6206_v28 }
 0x608   : > { %6821 = vmatmul.mubr.f32.gmra.mrb[94].mxu0 %v6205_v5 }
 0x655   : > { %v12195_v23 = vpop.f32.mrb[126].mxu1 }
 0x656   : > { %v12197_v25 = vpop.f32.mrb[127].mxu1 }
 0x65f   : > { %v6667_v44 = vpop.f32.mrb[32].mxu0 }
 0x660   : > { %v6893_v31 = vadd.f32 %v11914_v62, %v6667_v44  ;;  %v6669_v14 = vpop.f32.mrb[33].mxu0 }
 0x662   : > { %v7058_v53 = vmul.f32 %v12203_v58, %v6893_v31 }
 0x663   : > { %v6672_v2 = vpop.f32.mrb[34].mxu0 }
 0x664   : > { %v6898_v11 = vadd.f32 %v11906_v12, %v6672_v2  ;;  %v6674_v59 = vpop.f32.mrb[35].mxu0  ;;  %v7097_v20 = vadd.f32 %v12210_v15, %v7058_v53 }
 0x666   : > { %v7059_v21 = vmul.f32 %v12203_v58, %v6898_v11  ;;  %v7129_v29 = vmax.f32 %v7097_v20, 0.0  ;;  %v12449_v11 = vmov 0.0  }
 0x667   : > { %v6677_v34 = vpop.f32.mrb[36].mxu0  ;;  %8005 = vmatprep.mubr.msk.f32.mxu1 %vm8363_vm4, %v12449_v11 }
 0x668   : > { %v6903_v62 = vadd.f32 %v11925_v61, %v6677_v34  ;;  %v6679_v51 = vpop.f32.mrb[37].mxu0  ;;  %v7098_v46 = vadd.f32 %v12210_v15, %v7059_v21 }
 0x66a   : > { %v7060_v1 = vmul.f32 %v12203_v58, %v6903_v62  ;;  %v7130_v43 = vmax.f32 %v7098_v46, 0.0 }
 0x66b   : > { %v6682_v52 = vpop.f32.mrb[38].mxu0 }
 0x66c   : > { %v7099_v12 = vadd.f32 %v12210_v15, %v7060_v1  ;;  %v6908_v30 = vadd.f32 %v11921_v40, %v6682_v52  ;;  %v6684_v48 = vpop.f32.mrb[39].mxu0 }
 0x66e   : > { %v7131_v19 = vmax.f32 %v7099_v12, 0.0  ;;  %v7061_v37 = vmul.f32 %v12203_v58, %v6908_v30 }
 0x66f   : > { %v6687_v61 = vpop.f32.mrb[40].mxu0 }
 0x670   : > { %v7161_v42 = vmax.f32 %v7129_v29, %v7131_v19  ;;  %v7100_v17 = vadd.f32 %v12210_v15, %v7061_v37  ;;  %v6913_v32 = vadd.f32 %v11936_v4, %v6687_v61  ;;  %v6689_v3 = vpop.f32.mrb[41].mxu0  ;;  %v7274_v19 = vld [vmem:[%s12438_s11] sm:$0x3f] }
 0x672   : > { %7177 = vst [vmem:[#allocation8] sm:$0xff] %v7161_v42  ;;  %v7132_v0 = vmax.f32 %v7100_v17, 0.0  ;;  %v7062_v50 = vmul.f32 %v12203_v58, %v6913_v32 }
 0x673   : > { %v6692_v63 = vpop.f32.mrb[42].mxu0 }
 0x674   : > { %v7162_v16 = vmax.f32 %v7130_v43, %v7132_v0  ;;  %v6918_v40 = vadd.f32 %v11933_v60, %v6692_v63  ;;  %v6694_v36 = vpop.f32.mrb[43].mxu0  ;;  %v7101_v31 = vadd.f32 %v12210_v15, %v7062_v50 }
 0x676   : > { %7178 = vst [vmem:[#allocation8 + $0x8] sm:$0xff] %v7162_v16  ;;  %v7063_v4 = vmul.f32 %v12203_v58, %v6918_v40 }
 0x677   : > { %v6697_v28 = vpop.f32.mrb[44].mxu0 }
 0x678   : > { %v6923_v5 = vadd.f32 %v11954_v10, %v6697_v28  ;;  %v6699_v44 = vpop.f32.mrb[45].mxu0  ;;  %v7133_v10 = vmax.f32 %v7101_v31, 0.0  ;;  %v7102_v20 = vadd.f32 %v12210_v15, %v7063_v4  ;;  %v12450_v31 = vmov 0.0|0.0   ;;  %v12451_v4 = vld [vmem:[#allocation9_spill] sm:$0xff] }
 0x67a   : > { %v7064_v14 = vmul.f32 %v12203_v58, %v6923_v5  ;;  %v7134_v37 = vmax.f32 %v7102_v20, 0.0 }
 0x67b   : > { %v6702_v2 = vpop.f32.mrb[46].mxu0 }
 0x67c   : > { %v7103_v60 = vadd.f32 %v12210_v15, %v7064_v14  ;;  %v6928_v59 = vadd.f32 %v11938_v39, %v6702_v2  ;;  %v6704_v53 = vpop.f32.mrb[47].mxu0 }
 0x67d   : > { %v7194_v34 = vld [vmem:[#allocation8 + $0x8] sm:$0x7f] }
 0x67e   : > { %v7209_v62 = vld [vmem:[#allocation8 + $0x1] sm:$0xff]  ;;  %v7210_v51 = vld [vmem:[#allocation8 + $0x9] sm:$0x7f]  ;;  %v7135_v52 = vmax.f32 %v7103_v60, 0.0  ;;  %v7065_v12 = vmul.f32 %v12203_v58, %v6928_v59 }
 0x67f   : > { %v7225_v21 = vmax.f32 %v7161_v42, %v7209_v62  ;;  %v7226_v1 = vmax.f32 %v7194_v34, %v7210_v51  ;;  %v6707_v30 = vpop.f32.mrb[48].mxu0  ;;  %v8364_v42 = vmov 0  }
 0x680   : > { %v7163_v48 = vmax.f32 %v7133_v10, %v7135_v52  ;;  %v7104_v29 = vadd.f32 %v12210_v15, %v7065_v12  ;;  %v6933_v39 = vadd.f32 %v11964_v57, %v6707_v30  ;;  %v6709_v46 = vpop.f32.mrb[49].mxu0  ;;  %8326 = vset.pattern.permute.xlu0 %v8364_v42 }
 0x681   : > { %7241 = vst [vmem:[#allocation8] sm:$0xff] %v7225_v21  ;;  %7242 = vst [vmem:[#allocation8 + $0x8] sm:$0x7f] %v7226_v1  ;;  %7277 = vperm.xlu0 %8326, %v7274_v19  }
 0x682   : > { %7179 = vst [vmem:[#allocation8 + $0x10] sm:$0xff] %v7163_v48  ;;  %v7136_v61 = vmax.f32 %v7104_v29, 0.0  ;;  %v7066_v0 = vmul.f32 %v12203_v58, %v6933_v39 }
 0x683   : > { %v6712_v17 = vpop.f32.mrb[50].mxu0 }
 0x684   : > { %v7164_v32 = vmax.f32 %v7134_v37, %v7136_v61  ;;  %v6938_v3 = vadd.f32 %v11959_v38, %v6712_v17  ;;  %v6714_v43 = vpop.f32.mrb[51].mxu0  ;;  %v7105_v50 = vadd.f32 %v12210_v15, %v7066_v0 }
 0x686   : > { %7180 = vst [vmem:[#allocation8 + $0x18] sm:$0xff] %v7164_v32  ;;  %v7067_v28 = vmul.f32 %v12203_v58, %v6938_v3  ;;  %v7137_v53 = vmax.f32 %v7105_v50, 0.0 }
 0x687   : > { %v6717_v57 = vpop.f32.mrb[52].mxu0 }
 0x688   : > { %v7258_v63 = vld [vmem:[#allocation8 + $0x8] sm:$0xff]  ;;  %v6943_v16 = vadd.f32 %v11970_v35, %v6717_v57  ;;  %v6719_v40 = vpop.f32.mrb[53].mxu0  ;;  %v7106_v34 = vadd.f32 %v12210_v15, %v7067_v28 }
 0x689   : > { %v8185_v36 = vpack.c.bf16 %v7258_v63, %v7225_v21 }
 0x68a   : > { %v7068_v5 = vmul.f32 %v12203_v58, %v6943_v16  ;;  %v7138_v29 = vmax.f32 %v7106_v34, 0.0 }
 0x68b   : > { %8186 = vmatpush3.bf16.xpose.msra.mxu1 %v8185_v36  ;;  %v6722_v44 = vpop.f32.mrb[54].mxu0 }
 0x68c   : > { %8187 = vmatprep.subr.bf16.mxu1 %v12450_v31  ;;  %v7107_v38 = vadd.f32 %v12210_v15, %v7068_v5  ;;  %v6948_v14 = vadd.f32 %v12451_v4, %v6722_v44  ;;  %v6724_v2 = vpop.f32.mrb[55].mxu0 }
 0x68d   : > { %v7196_v60 = vld [vmem:[#allocation8 + $0x18] sm:$0x7f] }
 0x68e   : > { %v7211_v59 = vld [vmem:[#allocation8 + $0x11] sm:$0xff]  ;;  %v7212_v35 = vld [vmem:[#allocation8 + $0x19] sm:$0x7f]  ;;  %v7139_v10 = vmax.f32 %v7107_v38, 0.0  ;;  %v7069_v20 = vmul.f32 %v12203_v58, %v6948_v14 }
 0x68f   : > { %v7227_v62 = vmax.f32 %v7163_v48, %v7211_v59  ;;  %v7228_v51 = vmax.f32 %v7196_v60, %v7212_v35  ;;  %v6727_v21 = vpop.f32.mrb[56].mxu0 }
 0x690   : > { %v7165_v1 = vmax.f32 %v7137_v53, %v7139_v10  ;;  %v7108_v52 = vadd.f32 %v12210_v15, %v7069_v20  ;;  %v6953_v12 = vadd.f32 %v11988_v9, %v6727_v21  ;;  %v6729_v30 = vpop.f32.mrb[57].mxu0 }
 0x691   : > { %7243 = vst [vmem:[#allocation8 + $0x10] sm:$0xff] %v7227_v62  ;;  %7244 = vst [vmem:[#allocation8 + $0x18] sm:$0x7f] %v7228_v51 }
 0x692   : > { %7181 = vst [vmem:[#allocation8 + $0x20] sm:$0xff] %v7165_v1  ;;  %v7140_v39 = vmax.f32 %v7108_v52, 0.0  ;;  %v7070_v61 = vmul.f32 %v12203_v58, %v6953_v12 }
 0x693   : > { %v6732_v46 = vpop.f32.mrb[58].mxu0 }
 0x694   : > { %v7166_v19 = vmax.f32 %v7138_v29, %v7140_v39  ;;  %v6958_v48 = vadd.f32 %v11986_v7, %v6732_v46  ;;  %v6734_v37 = vpop.f32.mrb[59].mxu0  ;;  %v7109_v9 = vadd.f32 %v12210_v15, %v7070_v61 }
 0x696   : > { %7182 = vst [vmem:[#allocation8 + $0x28] sm:$0xff] %v7166_v19  ;;  %v7071_v0 = vmul.f32 %v12203_v58, %v6958_v48  ;;  %v7141_v28 = vmax.f32 %v7109_v9, 0.0 }
 0x697   : > { %v6737_v42 = vpop.f32.mrb[60].mxu0 }
 0x698   : > { %v7260_v17 = vld [vmem:[#allocation8 + $0x18] sm:$0xff]  ;;  %v6963_v32 = vadd.f32 %v12015_v13, %v6737_v42  ;;  %v6739_v3 = vpop.f32.mrb[61].mxu0  ;;  %v7110_v5 = vadd.f32 %v12210_v15, %v7071_v0 }
 0x699   : > { %v8188_v43 = vpack.c.bf16 %v7260_v17, %v7227_v62 }
 0x69a   : > { %v7072_v57 = vmul.f32 %v12203_v58, %v6963_v32  ;;  %v7142_v53 = vmax.f32 %v7110_v5, 0.0 }
 0x69b   : > { %8189 = vmatpush3.bf16.xpose.msra.mxu1 %v8188_v43  ;;  %v6742_v63 = vpop.f32.mrb[62].mxu0 }
 0x69c   : > { %8190 = vmatprep.subr.bf16.mxu1 %v12450_v31  ;;  %v7111_v7 = vadd.f32 %v12210_v15, %v7072_v57  ;;  %v6968_v16 = vadd.f32 %v12013_v6, %v6742_v63  ;;  %v6744_v40 = vpop.f32.mrb[63].mxu0 }
 0x69d   : > { %v7198_v36 = vld [vmem:[#allocation8 + $0x28] sm:$0x7f] }
 0x69e   : > { %v7213_v50 = vld [vmem:[#allocation8 + $0x21] sm:$0xff]  ;;  %v7214_v13 = vld [vmem:[#allocation8 + $0x29] sm:$0x7f]  ;;  %v7143_v4 = vmax.f32 %v7111_v7, 0.0  ;;  %v7073_v14 = vmul.f32 %v12203_v58, %v6968_v16 }
 0x69f   : > { %v7229_v44 = vmax.f32 %v7165_v1, %v7213_v50  ;;  %v7230_v38 = vmax.f32 %v7198_v36, %v7214_v13  ;;  %v6747_v2 = vpop.f32.mrb[64].mxu0 }
 0x6a0   : > { %v7167_v60 = vmax.f32 %v7141_v28, %v7143_v4  ;;  %v7112_v59 = vadd.f32 %v12210_v15, %v7073_v14  ;;  %v6973_v6 = vadd.f32 %v12047_v49, %v6747_v2  ;;  %v6749_v35 = vpop.f32.mrb[65].mxu0 }
 0x6a1   : > { %7245 = vst [vmem:[#allocation8 + $0x20] sm:$0xff] %v7229_v44  ;;  %7246 = vst [vmem:[#allocation8 + $0x28] sm:$0x7f] %v7230_v38 }
 0x6a2   : > { %7183 = vst [vmem:[#allocation8 + $0x30] sm:$0xff] %v7167_v60  ;;  %v7144_v34 = vmax.f32 %v7112_v59, 0.0  ;;  %v7074_v21 = vmul.f32 %v12203_v58, %v6973_v6 }
 0x6a3   : > { %v6752_v62 = vpop.f32.mrb[66].mxu0 }
 0x6a4   : > { %v7168_v51 = vmax.f32 %v7142_v53, %v7144_v34  ;;  %v6978_v10 = vadd.f32 %v12045_v26, %v6752_v62  ;;  %v6754_v20 = vpop.f32.mrb[67].mxu0  ;;  %v7113_v49 = vadd.f32 %v12210_v15, %v7074_v21 }
 0x6a6   : > { %7184 = vst [vmem:[#allocation8 + $0x38] sm:$0xff] %v7168_v51  ;;  %v7075_v39 = vmul.f32 %v12203_v58, %v6978_v10  ;;  %v7145_v17 = vmax.f32 %v7113_v49, 0.0 }
 0x6a7   : > { %v6757_v1 = vpop.f32.mrb[68].mxu0 }
 0x6a8   : > { %v7262_v52 = vld [vmem:[#allocation8 + $0x28] sm:$0xff]  ;;  %v6983_v12 = vadd.f32 %v12079_v56, %v6757_v1  ;;  %v6759_v30 = vpop.f32.mrb[69].mxu0  ;;  %v7114_v32 = vadd.f32 %v12210_v15, %v7075_v39 }
 0x6a9   : > { %v8191_v29 = vpack.c.bf16 %v7262_v52, %v7229_v44 }
 0x6aa   : > { %v7076_v46 = vmul.f32 %v12203_v58, %v6983_v12  ;;  %v7146_v40 = vmax.f32 %v7114_v32, 0.0 }
 0x6ab   : > { %8192 = vmatpush3.bf16.xpose.msra.mxu1 %v8191_v29  ;;  %v6762_v19 = vpop.f32.mrb[70].mxu0 }
 0x6ac   : > { %8193 = vmatprep.subr.bf16.mxu1 %v12450_v31  ;;  %v7115_v26 = vadd.f32 %v12210_v15, %v7076_v46  ;;  %v6988_v48 = vadd.f32 %v12077_v54, %v6762_v19  ;;  %v6764_v37 = vpop.f32.mrb[71].mxu0 }
 0x6ad   : > { %v7200_v61 = vld [vmem:[#allocation8 + $0x38] sm:$0x7f] }
 0x6ae   : > { %v7215_v42 = vld [vmem:[#allocation8 + $0x31] sm:$0xff]  ;;  %v7216_v56 = vld [vmem:[#allocation8 + $0x39] sm:$0x7f]  ;;  %v7147_v9 = vmax.f32 %v7115_v26, 0.0  ;;  %v7077_v0 = vmul.f32 %v12203_v58, %v6988_v48 }
 0x6af   : > { %v7231_v3 = vmax.f32 %v7167_v60, %v7215_v42  ;;  %v7232_v43 = vmax.f32 %v7200_v61, %v7216_v56  ;;  %v6767_v57 = vpop.f32.mrb[72].mxu0 }
 0x6b0   : > { %v7169_v63 = vmax.f32 %v7145_v17, %v7147_v9  ;;  %v7116_v7 = vadd.f32 %v12210_v15, %v7077_v0  ;;  %v6993_v54 = vadd.f32 %v12114_v24, %v6767_v57  ;;  %v6769_v16 = vpop.f32.mrb[73].mxu0 }
 0x6b1   : > { %7247 = vst [vmem:[#allocation8 + $0x30] sm:$0xff] %v7231_v3  ;;  %7248 = vst [vmem:[#allocation8 + $0x38] sm:$0x7f] %v7232_v43 }
 0x6b2   : > { %7185 = vst [vmem:[#allocation8 + $0x40] sm:$0xff] %v7169_v63  ;;  %v7148_v36 = vmax.f32 %v7116_v7, 0.0  ;;  %v7078_v44 = vmul.f32 %v12203_v58, %v6993_v54 }
 0x6b3   : > { %v6772_v50 = vpop.f32.mrb[74].mxu0 }
 0x6b4   : > { %v7170_v13 = vmax.f32 %v7146_v40, %v7148_v36  ;;  %v6998_v28 = vadd.f32 %v12111_v47, %v6772_v50  ;;  %v6774_v5 = vpop.f32.mrb[75].mxu0  ;;  %v7117_v24 = vadd.f32 %v12210_v15, %v7078_v44 }
 0x6b6   : > { %7186 = vst [vmem:[#allocation8 + $0x48] sm:$0xff] %v7170_v13  ;;  %v7079_v59 = vmul.f32 %v12203_v58, %v6998_v28  ;;  %v7149_v10 = vmax.f32 %v7117_v24, 0.0 }
 0x6b7   : > { %v6777_v38 = vpop.f32.mrb[76].mxu0 }
 0x6b8   : > { %v7264_v4 = vld [vmem:[#allocation8 + $0x38] sm:$0xff]  ;;  %v7003_v14 = vadd.f32 %v12135_v18, %v6777_v38  ;;  %v6779_v2 = vpop.f32.mrb[77].mxu0  ;;  %v7118_v20 = vadd.f32 %v12210_v15, %v7079_v59 }
 0x6b9   : > { %v8194_v60 = vpack.c.bf16 %v7264_v4, %v7231_v3 }
 0x6ba   : > { %v7080_v6 = vmul.f32 %v12203_v58, %v7003_v14  ;;  %v7150_v46 = vmax.f32 %v7118_v20, 0.0 }
 0x6bb   : > { %8195 = vmatpush3.bf16.xpose.msra.mxu1 %v8194_v60  ;;  %v6782_v35 = vpop.f32.mrb[78].mxu0 }
 0x6bc   : > { %8196 = vmatprep.subr.bf16.mxu1 %v12450_v31  ;;  %v7119_v47 = vadd.f32 %v12210_v15, %v7080_v6  ;;  %v7008_v53 = vadd.f32 %v12133_v41, %v6782_v35  ;;  %v6784_v34 = vpop.f32.mrb[79].mxu0 }
 0x6bd   : > { %v7202_v62 = vld [vmem:[#allocation8 + $0x48] sm:$0x7f] }
 0x6be   : > { %v7217_v51 = vld [vmem:[#allocation8 + $0x41] sm:$0xff]  ;;  %v7218_v18 = vld [vmem:[#allocation8 + $0x49] sm:$0x7f]  ;;  %v7151_v52 = vmax.f32 %v7119_v47, 0.0  ;;  %v7081_v12 = vmul.f32 %v12203_v58, %v7008_v53 }
 0x6bf   : > { %v7233_v21 = vmax.f32 %v7169_v63, %v7217_v51  ;;  %v7234_v1 = vmax.f32 %v7202_v62, %v7218_v18  ;;  %v6787_v30 = vpop.f32.mrb[80].mxu0 }
 0x6c0   : > { %v7171_v29 = vmax.f32 %v7149_v10, %v7151_v52  ;;  %v7120_v49 = vadd.f32 %v12210_v15, %v7081_v12  ;;  %v7013_v41 = vadd.f32 %v12152_v8, %v6787_v30  ;;  %v6789_v39 = vpop.f32.mrb[81].mxu0 }
 0x6c1   : > { %7249 = vst [vmem:[#allocation8 + $0x40] sm:$0xff] %v7233_v21  ;;  %7250 = vst [vmem:[#allocation8 + $0x48] sm:$0x7f] %v7234_v1 }
 0x6c2   : > { %7187 = vst [vmem:[#allocation8 + $0x50] sm:$0xff] %v7171_v29  ;;  %v7152_v19 = vmax.f32 %v7120_v49, 0.0  ;;  %v7082_v42 = vmul.f32 %v12203_v58, %v7013_v41 }
 0x6c3   : > { %v6792_v26 = vpop.f32.mrb[82].mxu0 }
 0x6c4   : > { %v7172_v48 = vmax.f32 %v7150_v46, %v7152_v19  ;;  %v7018_v37 = vadd.f32 %v12149_v22, %v6792_v26  ;;  %v6794_v61 = vpop.f32.mrb[83].mxu0  ;;  %v7121_v8 = vadd.f32 %v12210_v15, %v7082_v42 }
 0x6c6   : > { %7188 = vst [vmem:[#allocation8 + $0x58] sm:$0xff] %v7172_v48  ;;  %v7083_v9 = vmul.f32 %v12203_v58, %v7018_v37  ;;  %v7153_v40 = vmax.f32 %v7121_v8, 0.0  ;;  %v7353_v8 = vld [vmem:[%s12439_s12 + $0x18] sm:$0xff] }
 0x6c7   : > { %v6797_v56 = vpop.f32.mrb[84].mxu0 }
 0x6c8   : > { %v7266_v17 = vld [vmem:[#allocation8 + $0x48] sm:$0xff]  ;;  %v7023_v32 = vadd.f32 %v12171_v33, %v6797_v56  ;;  %v6799_v3 = vpop.f32.mrb[85].mxu0  ;;  %v7122_v36 = vadd.f32 %v12210_v15, %v7083_v9 }
 0x6c9   : > { %v8197_v43 = vpack.c.bf16 %v7266_v17, %v7233_v21 }
 0x6ca   : > { %v7084_v0 = vmul.f32 %v12203_v58, %v7023_v32  ;;  %v7154_v2 = vmax.f32 %v7122_v36, 0.0  ;;  %v7356_v36 = vld [vmem:[%s12439_s12 + $0x30] sm:$0xff] }
 0x6cb   : > { %8198 = vmatpush3.bf16.xpose.msra.mxu1 %v8197_v43  ;;  %v6802_v57 = vpop.f32.mrb[86].mxu0 }
 0x6cc   : > { %8199 = vmatprep.subr.bf16.mxu1 %v12450_v31  ;;  %v7123_v22 = vadd.f32 %v12210_v15, %v7084_v0  ;;  %v7028_v63 = vadd.f32 %v12169_v55, %v6802_v57  ;;  %v6804_v7 = vpop.f32.mrb[87].mxu0 }
 0x6cd   : > { %v7204_v54 = vld [vmem:[#allocation8 + $0x58] sm:$0x7f]  ;;  %v7357_v7 = vld [vmem:[%s12439_s12 + $0x38] sm:$0xff] }
 0x6ce   : > { %v7219_v16 = vld [vmem:[#allocation8 + $0x51] sm:$0xff]  ;;  %v7220_v33 = vld [vmem:[#allocation8 + $0x59] sm:$0x7f]  ;;  %v7155_v28 = vmax.f32 %v7123_v22, 0.0  ;;  %v7085_v5 = vmul.f32 %v12203_v58, %v7028_v63  ;;  %v7352_v22 = vld [vmem:[%s12439_s12 + $0x10] sm:$0xff] }
 0x6cf   : > { %v7235_v50 = vmax.f32 %v7171_v29, %v7219_v16  ;;  %v7236_v13 = vmax.f32 %v7204_v54, %v7220_v33  ;;  %v6807_v44 = vpop.f32.mrb[88].mxu0  ;;  %v7355_v63 = vld [vmem:[%s12439_s12 + $0x28] sm:$0xff]  ;;  %v7273_v54 = vld [vmem:[%s12437_s10] sm:$0x3f] }
 0x6d0   : > { %v7173_v38 = vmax.f32 %v7153_v40, %v7155_v28  ;;  %v7124_v4 = vadd.f32 %v12210_v15, %v7085_v5  ;;  %v7033_v55 = vadd.f32 %v12187_v45, %v6807_v44  ;;  %v6809_v14 = vpop.f32.mrb[89].mxu0  ;;  %v8212_v33 = vpack.c.bf16 %v7357_v7, %v7355_v63  ;;  %v7354_v40 = vld [vmem:[%s12439_s12 + $0x20] sm:$0xff] }
 0x6d1   : > { %7251 = vst [vmem:[#allocation8 + $0x50] sm:$0xff] %v7235_v50  ;;  %7252 = vst [vmem:[#allocation8 + $0x58] sm:$0x7f] %v7236_v13  ;;  %v7361_v13 = vld [vmem:[%s12439_s12 + $0x58] sm:$0xff]  ;;  %v8214_v28 = vpack.c.bf16 %v7356_v36, %v7354_v40  ;;  %v7358_v44 = vld [vmem:[%s12439_s12 + $0x40] sm:$0xff] }
 0x6d2   : > { %7189 = vst [vmem:[#allocation8 + $0x60] sm:$0xff] %v7173_v38  ;;  %v7156_v60 = vmax.f32 %v7124_v4, 0.0  ;;  %v7086_v47 = vmul.f32 %v12203_v58, %v7033_v55  ;;  %v7363_v4 = vld [vmem:[%s12439_s12 + $0x68] sm:$0xff]  ;;  %v7365_v55 = vld [vmem:[%s12439_s12 + $0x78] sm:$0xff] }
 0x6d3   : > { %v6812_v24 = vpop.f32.mrb[90].mxu0  ;;  %v8220_v14 = vpack.c.bf16 %v7365_v55, %v7363_v4 }
 0x6d4   : > { %v7174_v59 = vmax.f32 %v7154_v2, %v7156_v60  ;;  %v7038_v6 = vadd.f32 %v12185_v27, %v6812_v24  ;;  %v6814_v35 = vpop.f32.mrb[91].mxu0  ;;  %v7125_v45 = vadd.f32 %v12210_v15, %v7086_v47  ;;  %v7362_v2 = vld [vmem:[%s12439_s12 + $0x60] sm:$0xff]  ;;  %v7364_v60 = vld [vmem:[%s12439_s12 + $0x70] sm:$0xff]  ;;  %v7367_v24 = vld [vmem:[%s12439_s12 + $0x88] sm:$0xff] }
 0x6d5   : > { %v7366_v47 = vld [vmem:[%s12439_s12 + $0x80] sm:$0xff] }
 0x6d6   : > { %7190 = vst [vmem:[#allocation8 + $0x68] sm:$0xff] %v7174_v59  ;;  %v7087_v10 = vmul.f32 %v12203_v58, %v7038_v6  ;;  %v7157_v29 = vmax.f32 %v7125_v45, 0.0  ;;  %v7369_v59 = vld [vmem:[%s12439_s12 + $0x98] sm:$0xff]  ;;  %v8222_v6 = vpack.c.bf16 %v7364_v60, %v7362_v2  ;;  %v7370_v45 = vld [vmem:[%s12439_s12 + $0xa0] sm:$0xff] }
 0x6d7   : > { %v6817_v53 = vpop.f32.mrb[92].mxu0  ;;  %v8224_v35 = vpack.c.bf16 %v7369_v59, %v7367_v24 }
 0x6d8   : > { %v7268_v34 = vld [vmem:[#allocation8 + $0x58] sm:$0xff]  ;;  %v7043_v62 = vadd.f32 %v12197_v25, %v6817_v53  ;;  %v6819_v51 = vpop.f32.mrb[93].mxu0  ;;  %v7126_v49 = vadd.f32 %v12210_v15, %v7087_v10  ;;  %v7368_v53 = vld [vmem:[%s12439_s12 + $0x90] sm:$0xff] }
 0x6d9   : > { %v8200_v18 = vpack.c.bf16 %v7268_v34, %v7235_v50  ;;  %v7359_v50 = vld [vmem:[%s12439_s12 + $0x48] sm:$0xff]  ;;  %v8226_v51 = vpack.c.bf16 %v7368_v53, %v7366_v47  ;;  %v7372_v10 = vld [vmem:[%s12439_s12 + $0xb0] sm:$0xff] }
 0x6da   : > { %v7088_v20 = vmul.f32 %v12203_v58, %v7043_v62  ;;  %v7158_v37 = vmax.f32 %v7126_v49, 0.0  ;;  %v8216_v5 = vpack.c.bf16 %v7361_v13, %v7359_v50  ;;  %v7371_v34 = vld [vmem:[%s12439_s12 + $0xa8] sm:$0xff]  ;;  %v7373_v62 = vld [vmem:[%s12439_s12 + $0xb8] sm:$0xff] }
 0x6db   : > { %8201 = vmatpush3.bf16.xpose.msra.mxu1 %v8200_v18  ;;  %v6822_v21 = vpop.f32.mrb[94].mxu0  ;;  %v8228_v18 = vpack.c.bf16 %v7373_v62, %v7371_v34 }
 0x6dc   : > { %8202 = vmatprep.subr.bf16.mxu1 %v12450_v31  ;;  %v7127_v27 = vadd.f32 %v12210_v15, %v7088_v20  ;;  %v7048_v1 = vadd.f32 %v12195_v23, %v6822_v21  ;;  %v6824_v52 = vpop.f32.mrb[95].mxu0  ;;  %v7375_v20 = vld [vmem:[%s12439_s12 + $0xc8] sm:$0xff]  ;;  %v7377_v21 = vld [vmem:[%s12439_s12 + $0xd8] sm:$0xff] }
 0x6dd   : > { %v7206_v12 = vld [vmem:[#allocation8 + $0x68] sm:$0x7f]  ;;  %v7374_v52 = vld [vmem:[%s12439_s12 + $0xc0] sm:$0xff] }
 0x6de   : > { %v7221_v30 = vld [vmem:[#allocation8 + $0x61] sm:$0xff]  ;;  %v7222_v25 = vld [vmem:[#allocation8 + $0x69] sm:$0x7f]  ;;  %v7159_v46 = vmax.f32 %v7127_v27, 0.0  ;;  %v7089_v19 = vmul.f32 %v12203_v58, %v7048_v1  ;;  %v8230_v27 = vpack.c.bf16 %v7372_v10, %v7370_v45  ;;  %v8232_v1 = vpack.c.bf16 %v7377_v21, %v7375_v20 }
 0x6df   : > { %v7237_v41 = vmax.f32 %v7173_v38, %v7221_v30  ;;  %v7238_v39 = vmax.f32 %v7206_v12, %v7222_v25  ;;  %v7360_v38 = vld [vmem:[%s12439_s12 + $0x50] sm:$0xff]  ;;  %v7379_v30 = vld [vmem:[%s12439_s12 + $0xe8] sm:$0xff]  ;;  %v7381_v25 = vld [vmem:[%s12439_s12 + $0xf8] sm:$0xff] }
 0x6e0   : > { %v7175_v26 = vmax.f32 %v7157_v29, %v7159_v46  ;;  %v7128_v48 = vadd.f32 %v12210_v15, %v7089_v19  ;;  %v7351_v15 = vld [vmem:[%s12439_s12 + $0x8] sm:$0xff]  ;;  %v7376_v12 = vld [vmem:[%s12439_s12 + $0xd0] sm:$0xff]  ;;  %v8236_v49 = vpack.c.bf16 %v7381_v25, %v7379_v30 }
 0x6e1   : > { %7253 = vst [vmem:[#allocation8 + $0x60] sm:$0xff] %v7237_v41  ;;  %7254 = vst [vmem:[#allocation8 + $0x68] sm:$0x7f] %v7238_v39  ;;  %v8208_v0 = vpack.c.bf16 %v7353_v8, %v7351_v15  ;;  %v8234_v29 = vpack.c.bf16 %v7376_v12, %v7374_v52  ;;  %v7380_v39 = vld [vmem:[%s12439_s12 + $0xf0] sm:$0xff] }
 0x6e2   : > { %7191 = vst [vmem:[#allocation8 + $0x70] sm:$0xff] %v7175_v26  ;;  %v7160_v23 = vmax.f32 %v7128_v48, 0.0 }
 0x6e4   : > { %v7176_v61 = vmax.f32 %v7158_v37, %v7160_v23 }
 0x6e6   : > { %7192 = vst [vmem:[#allocation8 + $0x78] sm:$0xff] %v7176_v61 }
 0x6e8   : > { %v7270_v42 = vld [vmem:[#allocation8 + $0x68] sm:$0xff] }
 0x6e9   : > { %v8203_v56 = vpack.c.bf16 %v7270_v42, %v7237_v41  ;;  %v7378_v41 = vld [vmem:[%s12439_s12 + $0xe0] sm:$0xff] }
 0x6ea   : > { %v8238_v46 = vpack.c.bf16 %v7380_v39, %v7378_v41 }
 0x6eb   : > { %8204 = vmatpush3.bf16.xpose.msra.mxu1 %v8203_v56 }
 0x6ec   : > { %8205 = vmatprep.subr.bf16.mxu1 %v12450_v31  ;;  %v7350_v31 = vld [vmem:[%s12439_s12] sm:$0xff] }
 0x6ed   : > { %v7208_v17 = vld [vmem:[#allocation8 + $0x78] sm:$0x7f]  ;;  %v8210_v16 = vpack.c.bf16 %v7352_v22, %v7350_v31 }
 0x6ee   : > { %v7223_v32 = vld [vmem:[#allocation8 + $0x71] sm:$0xff]  ;;  %v7224_v3 = vld [vmem:[#allocation8 + $0x79] sm:$0x7f] }
 0x6ef   : > { %v7239_v43 = vmax.f32 %v7175_v26, %v7223_v32  ;;  %v7240_v58 = vmax.f32 %v7208_v17, %v7224_v3 }
 0x6f1   : > { %7255 = vst [vmem:[#allocation8 + $0x70] sm:$0xff] %v7239_v43  ;;  %7256 = vst [vmem:[#allocation8 + $0x78] sm:$0x7f] %v7240_v58 }
 0x6f8   : > { %v7272_v9 = vld [vmem:[#allocation8 + $0x78] sm:$0xff] }
 0x6f9   : > { %v8206_v57 = vpack.c.bf16 %v7272_v9, %v7239_v43 }
 0x6fb   : > { %8207 = vmatpush3.bf16.xpose.msra.mxu1 %v8206_v57 }
 0x6fc   : > { %8209 = vmatprep.subr.bf16.mxu1 %v8208_v0 }
 0x700   : > { %v7278_v19 = vpop.permute.xlu0 %7277 }
 0x702   : > { %8006 = vmatmul.mubr.f32.vlgmr.msra.gmra.mrb[128].mxu1 %v7273_v54 }
 0x703   : > { %8211 = vmatpush1.bf16.msra.mxu1 %v8210_v16  ;;  %7446 = vmatprep.mubr.f32.mxu1 %v12449_v11  ;;  %v8218_v11 = vpack.c.bf16 %v7360_v38, %v7358_v44 }
 0x704   : > { %8213 = vmatprep.subr.bf16.mxu1 %v8212_v33 }
 0x707   : > { %8215 = vmatpush1.bf16.msra.mxu1 %v8214_v28 }
 0x708   : > { %8217 = vmatprep.subr.bf16.mxu1 %v8216_v5 }
 0x70b   : > { %8219 = vmatpush1.bf16.msra.mxu1 %v8218_v11 }
 0x70c   : > { %8221 = vmatprep.subr.bf16.mxu1 %v8220_v14 }
 0x70f   : > { %8223 = vmatpush1.bf16.msra.mxu1 %v8222_v6 }
 0x710   : > { %8225 = vmatprep.subr.bf16.mxu1 %v8224_v35 }
 0x713   : > { %8227 = vmatpush1.bf16.msra.mxu1 %v8226_v51 }
 0x714   : > { %8229 = vmatprep.subr.bf16.mxu1 %v8228_v18 }
 0x717   : > { %8231 = vmatpush1.bf16.msra.mxu1 %v8230_v27 }
 0x718   : > { %8233 = vmatprep.subr.bf16.mxu1 %v8232_v1 }
 0x71b   : > { %8235 = vmatpush1.bf16.msra.mxu1 %v8234_v29 }
 0x71c   : > { %8237 = vmatprep.subr.bf16.mxu1 %v8236_v49 }
 0x71f   : > { %8239 = vmatpush1.bf16.msra.mxu1 %v8238_v46 }
 0x7d5   : > { %v7346_v26 = vpop.f32.mrb[128].mxu1 }
 0x7d6   : > { %v7347_v48 = vadd.f32 %v7346_v26, %v7278_v19  ;;  %v8007_v37 = vpop.f32.mrb[129].mxu1 }
 0x7d8   : > { %7447 = vmatmul.mubr.f32.vlgmr.msra.gmra.mrb[130].mxu1 %v7347_v48 }
 0x8ab   : > { %v7448_v23 = vpop.f32.mrb[130].mxu1 }
 0x8ac   : > { %v7454_v61 = vsel %vm7453_vm5, %v7448_v23, -inf  ;;  %v7450_v42 = vpop.f32.mrb[131].mxu1 }
 0x8ad   : > { %v7455_v56 = vrot.slane %v7454_v61, 4  ;;  %v7461_v17 = vsel %vm7453_vm5, %v7450_v42, -inf }
 0x8ae   : > { %v7462_v32 = vrot.slane %v7461_v17, 4 }
 0x8af   : > { %v7456_v3 = vmax.f32 %v7454_v61, %v7455_v56 }
 0x8b0   : > { %v7463_v43 = vmax.f32 %v7461_v17, %v7462_v32 }
 0x8b1   : > { %v7457_v58 = vrot.slane %v7456_v3, 2 }
 0x8b2   : > { %v7464_v15 = vrot.slane %v7463_v43, 2 }
 0x8b3   : > { %v7458_v8 = vmax.f32 %v7456_v3, %v7457_v58 }
 0x8b4   : > { %v7465_v9 = vmax.f32 %v7463_v43, %v7464_v15 }
 0x8b5   : > { %v7459_v0 = vrot.slane %v7458_v8, 1 }
 0x8b6   : > { %v7466_v57 = vrot.slane %v7465_v9, 1 }
 0x8b7   : > { %v7460_v31 = vmax.f32 %v7458_v8, %v7459_v0 }
 0x8b8   : > { %v7467_v22 = vmax.f32 %v7465_v9, %v7466_v57 }
 0x8b9   : > { %v7468_v63 = vsub.f32 %v7448_v23, %v7460_v31 }
 0x8ba   : > { %v7469_v7 = vsub.f32 %v7450_v42, %v7467_v22 }
 0x8bb   : > { %v7470_v54 = vmul.f32 1.442695, %v7468_v63 }
 0x8bc   : > { %v7472_v16 = vmul.f32 1.442695, %v7469_v7 }
 0x8bd   : > { %8327 = vpow2.f32 %v7470_v54 }
 0x8be   : > { %8329 = vpow2.f32 %v7472_v16 }
 0x8c7   : > { %v8328_v33 = vpop.eup %8327 }
 0x8c8   : > { %v8330_v40 = vpop.eup %8329  ;;  %v7474_v36 = vsel %vm7453_vm5, %v8328_v33, 0.0 }
 0x8c9   : > { %v7475_v50 = vrot.slane %v7474_v36, 4  ;;  %v7481_v13 = vsel %vm7453_vm5, %v8330_v40, 0.0 }
 0x8ca   : > { %v7482_v28 = vrot.slane %v7481_v13, 4 }
 0x8cb   : > { %v7476_v5 = vadd.f32 %v7475_v50, %v7474_v36 }
 0x8cc   : > { %v7483_v44 = vadd.f32 %v7482_v28, %v7481_v13 }
 0x8cd   : > { %v7477_v38 = vrot.slane %v7476_v5, 2 }
 0x8ce   : > { %v7484_v4 = vrot.slane %v7483_v44, 2 }
 0x8cf   : > { %v7478_v55 = vadd.f32 %v7477_v38, %v7476_v5 }
 0x8d0   : > { %v7485_v11 = vadd.f32 %v7484_v4, %v7483_v44 }
 0x8d1   : > { %v7479_v14 = vrot.slane %v7478_v55, 1 }
 0x8d2   : > { %v7486_v2 = vrot.slane %v7485_v11, 1 }
 0x8d3   : > { %v7480_v60 = vadd.f32 %v7479_v14, %v7478_v55 }
 0x8d4   : > { %v7487_v24 = vadd.f32 %v7486_v2, %v7485_v11 }
 0x8d5   : > { %8331 = vrcp.f32 %v7480_v60 }
 0x8d6   : > { %8333 = vrcp.f32 %v7487_v24 }
 0x8df   : > { %v8332_v59 = vpop.eup %8331 }
 0x8e0   : > { %v8334_v6 = vpop.eup %8333  ;;  %v7489_v35 = vmul.f32 %v8332_v59, %v8328_v33 }
 0x8e1   : > { %v7491_v47 = vmul.f32 %v8334_v6, %v8330_v40 }
 0x8e2   : > { %7492 = vst [vmem:[%s440_s18] sm:$0x3f] %v7489_v35 }
 0x8e3   : > { %7493 = vst [vmem:[%s440_s18 + $0x8] sm:$0x3f] %v7491_v47 }
 0x8e4 PF: > { %s23_s25 = sadd.s32 1, %s8349_s25  }
 0x8e5   : > { %p20_p4 = scmp.ge.s32.totalorder %s23_s25, 4  }
 0x8e7   :  { %22 = sbr.rel (!%p20_p4) target bundleno = 1 (0x1), region = 108 }

</bundles_post_ra>
